<compile_context>
chip_gen: v7x
topology: tpu7x:2x2x1
jax: 0.10.0
libtpu: 0.0.40
codegen_flags: <defaults>
</compile_context>

<pallas_src>
import numpy as np
import jax
import jax.numpy as jnp
from jax.experimental import pallas as pl
from jax.experimental.pallas import tpu as pltpu

H = W = 8
HW = H * W
LANE = 128


def _round_up(n, m):
    return ((n + m - 1) // m) * m


# ---------------------------------------------------------------------------
# glue: conv(3x3, pad=1) as a dense linear operator on the channel-major flat vector
# ---------------------------------------------------------------------------
def conv3x3_to_dense(w):
    """w: (Cout, Cin, 3, 3) numpy -> A (Cout*64, Cin*64) with out_flat = A @ in_flat."""
    Cout, Cin, _, _ = w.shape
    A = np.zeros((Cout * HW, Cin * HW), np.float32)
    co = np.arange(Cout)[:, None]
    ci = np.arange(Cin)[None, :]
    for h in range(H):
        for ww in range(W):
            p = h * W + ww
            for kh in range(3):
                for kw in range(3):
                    hh, wc = h + kh - 1, ww + kw - 1
                    if 0 <= hh < H and 0 <= wc < W:
                        q = hh * W + wc
                        A[co * HW + p, ci * HW + q] = w[:, :, kh, kw]
    return A


def _pad2(a, rows, cols):
    out = np.zeros((rows, cols), np.float32)
    out[:a.shape[0], :a.shape[1]] = a
    return out


# ---------------------------------------------------------------------------
# Pallas kernel: full forward for one TB-sized batch tile
# ---------------------------------------------------------------------------
def forward_kernel(x_ref, at_ref, scale_ref, shift_ref,
                   pool_ref, expand_ref,
                   sew1_ref, seb1_ref, sew2_ref, seb2_ref,
                   fc1w_ref, fc1b_ref, fc2w_ref, fc2b_ref,
                   out_ref):
    n_blocks = sew1_ref.shape[0]

    act = x_ref[...]                                   # (TB, C*64) bf16, channel-major

    def conv_bn(a, k):
        # conv3x3 (dense Toeplitz matmul, bf16 MXU) + folded BatchNorm (eval) + conv bias
        y = jnp.dot(a.astype(jnp.bfloat16), at_ref[k],
                    preferred_element_type=jnp.float32)
        return y * scale_ref[k] + shift_ref[k]

    # conv0 -> bn0 -> relu  (activations f32 from here on)
    act = jnp.maximum(conv_bn(act, 0), 0.0)

    # residual + SqueezeExcitation blocks (dropout p=0 / eval mode => identity)
    for b in range(n_blocks):
        identity = act
        out = jnp.maximum(conv_bn(act, 1 + 2 * b), 0.0)
        out = conv_bn(out, 2 + 2 * b)
        # SE: global average pool per channel (lane-padded constant pooling matmul, bf16 MXU)
        s = jnp.dot(out.astype(jnp.bfloat16), pool_ref[...],
                    preferred_element_type=jnp.float32)                           # (TB, CP)
        z = jnp.maximum(
            jnp.dot(s.astype(jnp.bfloat16), sew1_ref[b],
                    preferred_element_type=jnp.float32) + seb1_ref[b],
            0.0)                                                                  # (TB, SQ)
        g = jax.nn.sigmoid(
            jnp.dot(z.astype(jnp.bfloat16), sew2_ref[b],
                    preferred_element_type=jnp.float32) + seb2_ref[b])            # (TB, CP)
        gate = jnp.dot(g.astype(jnp.bfloat16), expand_ref[...],
                       preferred_element_type=jnp.float32)                        # (TB, C*64)
        # SE gating, residual add + relu (kept in f32 -- v5e VPU has no bf16 path)
        act = jnp.maximum(out * gate + identity, 0.0)

    # flatten (already channel-major flat) -> fc1 -> relu -> fc2  (hidden padded to 128)
    h = jnp.maximum(
        jnp.dot(act.astype(jnp.bfloat16), fc1w_ref[...],
                preferred_element_type=jnp.float32) + fc1b_ref[...],
        0.0)
    logits = jnp.dot(h.astype(jnp.bfloat16), fc2w_ref[...],
                     preferred_element_type=jnp.float32) + fc2b_ref[...]
    out_ref[...] = logits.astype(out_ref.dtype)        # bf16 store -> halves output HBM traffic


# ---------------------------------------------------------------------------
# wrapper
# ---------------------------------------------------------------------------
def neural_network_forward(x, packed, *, max_tb=512):
    """x: (N, C, 8, 8) float32 NCHW.  Returns (N, num_classes) bfloat16 logits."""
    N, C = x.shape[0], x.shape[1]
    CF = C * HW
    (at_all, scale_all, shift_all, pool, expand,
     se_w1T, se_b1, se_w2T, se_b2, fc1_wT, fc1_b, fc2_wT, fc2_b) = packed
    num_classes = fc2_wT.shape[1]

    # torch Flatten order on NCHW; feed bf16 (halves the input DMA, conv0 uses bf16 anyway)
    x_flat = x.reshape(N, CF).astype(jnp.bfloat16)

    # batch tile: multiple of 8 sublanes, at most max_tb; target >=2 grid steps when there
    # is enough work so the 'parallel' batch axis spans both v7x TensorCores.
    TB = min(max_tb, max(8, _round_up(-(-N // 2), 8)))
    N_pad = _round_up(N, TB)
    if N_pad != N:
        x_flat = jnp.pad(x_flat, ((0, N_pad - N), (0, 0)))

    consts = (at_all, scale_all, shift_all, pool, expand,
              se_w1T, se_b1, se_w2T, se_b2, fc1_wT, fc1_b, fc2_wT, fc2_b)

    def _const_spec(a, single_buffer):
        nd = a.ndim
        imap = lambda i, _nd=nd: (0,) * _nd
        if single_buffer:
            # grid-invariant weights: single-buffer (no point double-buffering a block
            # that never changes across the grid) -> halves their VMEM footprint
            return pl.BlockSpec(a.shape, imap, pipeline_mode=pl.Buffered(1))
        return pl.BlockSpec(a.shape, imap)

    def _run(single_buffer_consts):
        in_specs = [pl.BlockSpec((TB, CF), lambda i: (i, 0))] + [
            _const_spec(a, single_buffer_consts) for a in consts]
        fn = pl.pallas_call(
            forward_kernel,
            out_shape=jax.ShapeDtypeStruct((N_pad, num_classes), jnp.bfloat16),
            grid_spec=pltpu.PrefetchScalarGridSpec(
                num_scalar_prefetch=0,
                grid=(N_pad // TB,),
                in_specs=in_specs,
                out_specs=pl.BlockSpec((TB, num_classes), lambda i: (i, 0)),
            ),
            compiler_params=pltpu.CompilerParams(
                dimension_semantics=("parallel",),        # independent batch tiles (2 TCs on v7x)
                vmem_limit_bytes=48 * 1024 * 1024,        # v5e default (16 MiB) is too tight
            ),
        )
        return fn(x_flat, *consts)

    try:
        out = jax.block_until_ready(_run(True))
    except Exception:
        # pipeline_mode=pl.Buffered(1) not supported on this jax build -> plain specs
        out = jax.block_until_ready(_run(False))
    return out[:N]


# ---------------------------------------------------------------------------
# deterministic parameter init (shapes follow the torch module's __init__)
# ---------------------------------------------------------------------------
def init_params(key, C, hidden, n_blocks, squeeze_factor, num_classes):
    CF = C * HW
    Csq = max(C // squeeze_factor, 1)
    keys = iter(jax.random.split(key, 256))

    def u(shape, fan_in):
        b = 1.0 / np.sqrt(fan_in)
        return jax.random.uniform(next(keys), shape, jnp.float32, -b, b)

    def conv_p():
        return dict(w=u((C, C, 3, 3), 9 * C), b=u((C,), 9 * C))

    def bn_p():
        return dict(gamma=1.0 + 0.1 * jax.random.normal(next(keys), (C,), jnp.float32),
                    beta=0.1 * jax.random.normal(next(keys), (C,), jnp.float32),
                    mean=0.1 * jax.random.normal(next(keys), (C,), jnp.float32),
                    var=1.0 + 0.1 * jax.random.uniform(next(keys), (C,), jnp.float32))

    p = dict(conv0=conv_p(), bn0=bn_p(), blocks=[])
    for _ in range(n_blocks):
        p['blocks'].append(dict(
            conv1=conv_p(), bn1=bn_p(), conv2=conv_p(), bn2=bn_p(),
            se_w1=u((Csq, C), C), se_b1=u((Csq,), C),
            se_w2=u((C, Csq), Csq), se_b2=u((C,), Csq)))
    p['fc1_w'] = u((hidden, CF), CF)
    p['fc1_b'] = u((hidden,), CF)
    p['fc2_w'] = u((num_classes, hidden), hidden)
    p['fc2_b'] = u((num_classes,), hidden)
    return p


def pack_params(p, C, eps=1e-5):
    conv_list = [(p['conv0'], p['bn0'])]
    for blk in p['blocks']:
        conv_list.append((blk['conv1'], blk['bn1']))
        conv_list.append((blk['conv2'], blk['bn2']))

    A_T, scale_rows, shift_rows = [], [], []
    for conv, bn in conv_list:
        A = conv3x3_to_dense(np.asarray(conv['w']))
        A_T.append(A.T)
        s = np.asarray(bn['gamma']) / np.sqrt(np.asarray(bn['var']) + eps)
        t = np.asarray(bn['beta']) - np.asarray(bn['mean']) * s + np.asarray(conv['b']) * s
        scale_rows.append(np.repeat(s, HW))          # channel-major expansion
        shift_rows.append(np.repeat(t, HW))

    CF = C * HW
    Csq = np.asarray(p['blocks'][0]['se_w1']).shape[0]
    hidden = np.asarray(p['fc1_w']).shape[0]
    num_classes = np.asarray(p['fc2_w']).shape[0]
    CP = _round_up(C, LANE)         # lane-padded channel count
    SQ = _round_up(Csq, LANE)       # lane-padded squeeze count
    HP = _round_up(hidden, LANE)    # lane-padded hidden size

    pool = np.zeros((CF, CP), np.float32)            # spatial mean per channel (padded lanes)
    expand = np.zeros((CP, CF), np.float32)          # channel gate broadcast (padded rows = 0,
    for c in range(C):                               #  so padded gate lanes have no effect)
        pool[c * HW:(c + 1) * HW, c] = 1.0 / HW      # 1/64 and 0/1 are exact in bf16
        expand[c, c * HW:(c + 1) * HW] = 1.0

    se_w1T = np.stack([_pad2(np.asarray(b['se_w1']).T, CP, SQ) for b in p['blocks']])
    se_b1 = np.stack([_pad2(np.asarray(b['se_b1'])[None, :], 1, SQ) for b in p['blocks']])
    se_w2T = np.stack([_pad2(np.asarray(b['se_w2']).T, SQ, CP) for b in p['blocks']])
    se_b2 = np.stack([_pad2(np.asarray(b['se_b2'])[None, :], 1, CP) for b in p['blocks']])

    fc1_wT = _pad2(np.asarray(p['fc1_w']).T, CF, HP)            # zero-pad hidden columns
    fc1_b = _pad2(np.asarray(p['fc1_b'])[None, :], 1, HP)
    fc2_wT = _pad2(np.asarray(p['fc2_w']).T, HP, num_classes)   # zero-pad K rows (h pad = 0)
    fc2_b = np.asarray(p['fc2_b'])[None, :].astype(np.float32)

    packed = (
        jnp.asarray(np.stack(A_T), dtype=jnp.bfloat16),              # (n_conv, CF, CF) bf16
        jnp.asarray(np.stack(scale_rows))[:, None, :],               # (n_conv, 1, CF) f32
        jnp.asarray(np.stack(shift_rows))[:, None, :],               # (n_conv, 1, CF) f32
        jnp.asarray(pool, dtype=jnp.bfloat16),                       # (CF, CP) bf16
        jnp.asarray(expand, dtype=jnp.bfloat16),                     # (CP, CF) bf16
        jnp.asarray(se_w1T, dtype=jnp.bfloat16), jnp.asarray(se_b1), # (B, CP, SQ) bf16 / f32
        jnp.asarray(se_w2T, dtype=jnp.bfloat16), jnp.asarray(se_b2), # (B, SQ, CP) bf16 / f32
        jnp.asarray(fc1_wT, dtype=jnp.bfloat16), jnp.asarray(fc1_b),
        jnp.asarray(fc2_wT, dtype=jnp.bfloat16), jnp.asarray(fc2_b),
    )
    return packed


# ---------------------------------------------------------------------------
# pure-JAX reference (mirrors the torch forward, eval mode, full f32)
# ---------------------------------------------------------------------------
def ref_forward(x, p, eps=1e-5):
    def conv(xx, w, b):
        y = jax.lax.conv_general_dilated(xx, w, (1, 1), ((1, 1), (1, 1)),
                                         dimension_numbers=('NCHW', 'OIHW', 'NCHW'))
        return y + b[None, :, None, None]

    def bn(xx, q):
        return ((xx - q['mean'][None, :, None, None])
                / jnp.sqrt(q['var'][None, :, None, None] + eps)
                * q['gamma'][None, :, None, None] + q['beta'][None, :, None, None])

    y = jax.nn.relu(bn(conv(x, p['conv0']['w'], p['conv0']['b']), p['bn0']))
    for blk in p['blocks']:
        identity = y
        o = jax.nn.relu(bn(conv(y, blk['conv1']['w'], blk['conv1']['b']), blk['bn1']))
        o = bn(conv(o, blk['conv2']['w'], blk['conv2']['b']), blk['bn2'])
        s = o.mean(axis=(2, 3))
        z = jax.nn.relu(s @ blk['se_w1'].T + blk['se_b1'])
        g = jax.nn.sigmoid(z @ blk['se_w2'].T + blk['se_b2'])
        o = o * g[:, :, None, None]
        y = jax.nn.relu(o + identity)
    flat = y.reshape(y.shape[0], -1)
    h = jax.nn.relu(flat @ p['fc1_w'].T + p['fc1_b'])
    return h @ p['fc2_w'].T + p['fc2_b']


if __name__ == "__main__":
    plys = 3
    C = plys + 1                  # in_channels = plys + 1
    hidden = 32                   # hidden_layer_size
    n_blocks = 2                  # num_conv_blocks
    squeeze_factor = 2
    num_classes = 64 * 64
    N = 2

    key = jax.random.PRNGKey(0)
    kx, kp = jax.random.split(key)
    x = jax.random.normal(kx, (N, C, H, W), jnp.float32)
    params = init_params(kp, C, hidden, n_blocks, squeeze_factor, num_classes)
    packed = pack_params(params, C)

    out = jax.block_until_ready(neural_network_forward(x, packed))
    ref = jax.block_until_ready(ref_forward(x, params))

    assert out.shape == (N, num_classes)
    # tolerance accounts for bf16 input/weights/logits with f32 MXU accumulation
    np.testing.assert_allclose(np.asarray(out, dtype=np.float32), np.asarray(ref),
                               rtol=3e-2, atol=3e-2)
    print("KERNEL_OK")
</pallas_src>

<mosaic_0001>
module attributes {stable_mosaic.version = 11 : i64} {
  func.func @forward_kernel(%arg0: i32, %arg1: memref<8x256xbf16, #tpu.memory_space<vmem>>, %arg2: memref<5x256x256xbf16, #tpu.memory_space<vmem>>, %arg3: memref<5x1x256xf32, #tpu.memory_space<vmem>>, %arg4: memref<5x1x256xf32, #tpu.memory_space<vmem>>, %arg5: memref<256x128xbf16, #tpu.memory_space<vmem>>, %arg6: memref<128x256xbf16, #tpu.memory_space<vmem>>, %arg7: memref<2x128x128xbf16, #tpu.memory_space<vmem>>, %arg8: memref<2x1x128xf32, #tpu.memory_space<vmem>>, %arg9: memref<2x128x128xbf16, #tpu.memory_space<vmem>>, %arg10: memref<2x1x128xf32, #tpu.memory_space<vmem>>, %arg11: memref<256x128xbf16, #tpu.memory_space<vmem>>, %arg12: memref<1x128xf32, #tpu.memory_space<vmem>>, %arg13: memref<128x4096xbf16, #tpu.memory_space<vmem>>, %arg14: memref<1x4096xf32, #tpu.memory_space<vmem>>, %arg15: memref<8x4096xbf16, #tpu.memory_space<vmem>>) attributes {dimension_semantics = [#tpu.dimension_semantics<parallel>], iteration_bounds = array<i64: 1>, scalar_prefetch = 0 : i64, scratch_operands = 0 : i64, tpu.core_type = #tpu.core_type<tc>, window_params = [{transform_indices = @transform_0, window_bounds = array<i64: 8, 256>}, {pipeline_mode = #tpu.pipeline_mode<synchronous>, transform_indices = @transform_1, window_bounds = array<i64: 5, 256, 256>}, {pipeline_mode = #tpu.pipeline_mode<synchronous>, transform_indices = @transform_2, window_bounds = array<i64: 5, 1, 256>}, {pipeline_mode = #tpu.pipeline_mode<synchronous>, transform_indices = @transform_3, window_bounds = array<i64: 5, 1, 256>}, {pipeline_mode = #tpu.pipeline_mode<synchronous>, transform_indices = @transform_4, window_bounds = array<i64: 256, 128>}, {pipeline_mode = #tpu.pipeline_mode<synchronous>, transform_indices = @transform_5, window_bounds = array<i64: 128, 256>}, {pipeline_mode = #tpu.pipeline_mode<synchronous>, transform_indices = @transform_6, window_bounds = array<i64: 2, 128, 128>}, {pipeline_mode = #tpu.pipeline_mode<synchronous>, transform_indices = @transform_7, window_bounds = array<i64: 2, 1, 128>}, {pipeline_mode = #tpu.pipeline_mode<synchronous>, transform_indices = @transform_8, window_bounds = array<i64: 2, 128, 128>}, {pipeline_mode = #tpu.pipeline_mode<synchronous>, transform_indices = @transform_9, window_bounds = array<i64: 2, 1, 128>}, {pipeline_mode = #tpu.pipeline_mode<synchronous>, transform_indices = @transform_10, window_bounds = array<i64: 256, 128>}, {pipeline_mode = #tpu.pipeline_mode<synchronous>, transform_indices = @transform_11, window_bounds = array<i64: 1, 128>}, {pipeline_mode = #tpu.pipeline_mode<synchronous>, transform_indices = @transform_12, window_bounds = array<i64: 128, 4096>}, {pipeline_mode = #tpu.pipeline_mode<synchronous>, transform_indices = @transform_13, window_bounds = array<i64: 1, 4096>}, {transform_indices = @transform_14, window_bounds = array<i64: 8, 4096>}]} {
    %c0 = arith.constant 0 : index
    %c0_0 = arith.constant 0 : index
    %0 = vector.load %arg1[%c0, %c0_0] : memref<8x256xbf16, #tpu.memory_space<vmem>>, vector<8x256xbf16>
    %c0_1 = arith.constant 0 : index
    %c0_2 = arith.constant 0 : index
    %c0_3 = arith.constant 0 : index
    %1 = vector.load %arg2[%c0_1, %c0_2, %c0_3] : memref<5x256x256xbf16, #tpu.memory_space<vmem>>, vector<1x256x256xbf16>
    %2 = vector.shape_cast %1 : vector<1x256x256xbf16> to vector<256x256xbf16>
    %cst = arith.constant dense<0.000000e+00> : vector<8x256xf32>
    %3 = tpu.matmul %0, %2, %cst {dimension_numbers = #tpu.dot_dimension_numbers<[1], [0], [0], [1], [0, 0, 1, 1], [], []>} : vector<8x256xbf16>, vector<256x256xbf16>, vector<8x256xf32> -> vector<8x256xf32>
    %c0_4 = arith.constant 0 : index
    %c0_5 = arith.constant 0 : index
    %c0_6 = arith.constant 0 : index
    %4 = vector.load %arg3[%c0_4, %c0_5, %c0_6] : memref<5x1x256xf32, #tpu.memory_space<vmem>>, vector<1x1x256xf32>
    %5 = vector.shape_cast %4 : vector<1x1x256xf32> to vector<1x256xf32>
    %6 = vector.broadcast %5 : vector<1x256xf32> to vector<8x256xf32>
    %7 = arith.mulf %3, %6 : vector<8x256xf32>
    %c0_7 = arith.constant 0 : index
    %c0_8 = arith.constant 0 : index
    %c0_9 = arith.constant 0 : index
    %8 = vector.load %arg4[%c0_7, %c0_8, %c0_9] : memref<5x1x256xf32, #tpu.memory_space<vmem>>, vector<1x1x256xf32>
    %9 = vector.shape_cast %8 : vector<1x1x256xf32> to vector<1x256xf32>
    %10 = vector.broadcast %9 : vector<1x256xf32> to vector<8x256xf32>
    %11 = arith.addf %7, %10 : vector<8x256xf32>
    %cst_10 = arith.constant 0.000000e+00 : f32
    %12 = vector.broadcast %cst_10 : f32 to vector<8x256xf32>
    %13 = arith.maximumf %11, %12 : vector<8x256xf32>
    %14 = arith.truncf %13 : vector<8x256xf32> to vector<8x256xbf16>
    %c1 = arith.constant 1 : index
    %c0_11 = arith.constant 0 : index
    %c0_12 = arith.constant 0 : index
    %15 = vector.load %arg2[%c1, %c0_11, %c0_12] : memref<5x256x256xbf16, #tpu.memory_space<vmem>>, vector<1x256x256xbf16>
    %16 = vector.shape_cast %15 : vector<1x256x256xbf16> to vector<256x256xbf16>
    %cst_13 = arith.constant dense<0.000000e+00> : vector<8x256xf32>
    %17 = tpu.matmul %14, %16, %cst_13 {dimension_numbers = #tpu.dot_dimension_numbers<[1], [0], [0], [1], [0, 0, 1, 1], [], []>} : vector<8x256xbf16>, vector<256x256xbf16>, vector<8x256xf32> -> vector<8x256xf32>
    %c1_14 = arith.constant 1 : index
    %c0_15 = arith.constant 0 : index
    %c0_16 = arith.constant 0 : index
    %18 = vector.load %arg3[%c1_14, %c0_15, %c0_16] : memref<5x1x256xf32, #tpu.memory_space<vmem>>, vector<1x1x256xf32>
    %19 = vector.shape_cast %18 : vector<1x1x256xf32> to vector<1x256xf32>
    %20 = vector.broadcast %19 : vector<1x256xf32> to vector<8x256xf32>
    %21 = arith.mulf %17, %20 : vector<8x256xf32>
    %c1_17 = arith.constant 1 : index
    %c0_18 = arith.constant 0 : index
    %c0_19 = arith.constant 0 : index
    %22 = vector.load %arg4[%c1_17, %c0_18, %c0_19] : memref<5x1x256xf32, #tpu.memory_space<vmem>>, vector<1x1x256xf32>
    %23 = vector.shape_cast %22 : vector<1x1x256xf32> to vector<1x256xf32>
    %24 = vector.broadcast %23 : vector<1x256xf32> to vector<8x256xf32>
    %25 = arith.addf %21, %24 : vector<8x256xf32>
    %cst_20 = arith.constant 0.000000e+00 : f32
    %26 = vector.broadcast %cst_20 : f32 to vector<8x256xf32>
    %27 = arith.maximumf %25, %26 : vector<8x256xf32>
    %28 = arith.truncf %27 : vector<8x256xf32> to vector<8x256xbf16>
    %c2 = arith.constant 2 : index
    %c0_21 = arith.constant 0 : index
    %c0_22 = arith.constant 0 : index
    %29 = vector.load %arg2[%c2, %c0_21, %c0_22] : memref<5x256x256xbf16, #tpu.memory_space<vmem>>, vector<1x256x256xbf16>
    %30 = vector.shape_cast %29 : vector<1x256x256xbf16> to vector<256x256xbf16>
    %cst_23 = arith.constant dense<0.000000e+00> : vector<8x256xf32>
    %31 = tpu.matmul %28, %30, %cst_23 {dimension_numbers = #tpu.dot_dimension_numbers<[1], [0], [0], [1], [0, 0, 1, 1], [], []>} : vector<8x256xbf16>, vector<256x256xbf16>, vector<8x256xf32> -> vector<8x256xf32>
    %c2_24 = arith.constant 2 : index
    %c0_25 = arith.constant 0 : index
    %c0_26 = arith.constant 0 : index
    %32 = vector.load %arg3[%c2_24, %c0_25, %c0_26] : memref<5x1x256xf32, #tpu.memory_space<vmem>>, vector<1x1x256xf32>
    %33 = vector.shape_cast %32 : vector<1x1x256xf32> to vector<1x256xf32>
    %34 = vector.broadcast %33 : vector<1x256xf32> to vector<8x256xf32>
    %35 = arith.mulf %31, %34 : vector<8x256xf32>
    %c2_27 = arith.constant 2 : index
    %c0_28 = arith.constant 0 : index
    %c0_29 = arith.constant 0 : index
    %36 = vector.load %arg4[%c2_27, %c0_28, %c0_29] : memref<5x1x256xf32, #tpu.memory_space<vmem>>, vector<1x1x256xf32>
    %37 = vector.shape_cast %36 : vector<1x1x256xf32> to vector<1x256xf32>
    %38 = vector.broadcast %37 : vector<1x256xf32> to vector<8x256xf32>
    %39 = arith.addf %35, %38 : vector<8x256xf32>
    %40 = arith.truncf %39 : vector<8x256xf32> to vector<8x256xbf16>
    %c0_30 = arith.constant 0 : index
    %c0_31 = arith.constant 0 : index
    %41 = vector.load %arg5[%c0_30, %c0_31] : memref<256x128xbf16, #tpu.memory_space<vmem>>, vector<256x128xbf16>
    %cst_32 = arith.constant dense<0.000000e+00> : vector<8x128xf32>
    %42 = tpu.matmul %40, %41, %cst_32 {dimension_numbers = #tpu.dot_dimension_numbers<[1], [0], [0], [1], [0, 0, 1, 1], [], []>} : vector<8x256xbf16>, vector<256x128xbf16>, vector<8x128xf32> -> vector<8x128xf32>
    %43 = arith.truncf %42 : vector<8x128xf32> to vector<8x128xbf16>
    %c0_33 = arith.constant 0 : index
    %c0_34 = arith.constant 0 : index
    %c0_35 = arith.constant 0 : index
    %44 = vector.load %arg7[%c0_33, %c0_34, %c0_35] : memref<2x128x128xbf16, #tpu.memory_space<vmem>>, vector<1x128x128xbf16>
    %45 = vector.shape_cast %44 : vector<1x128x128xbf16> to vector<128x128xbf16>
    %cst_36 = arith.constant dense<0.000000e+00> : vector<8x128xf32>
    %46 = tpu.matmul %43, %45, %cst_36 {dimension_numbers = #tpu.dot_dimension_numbers<[1], [0], [0], [1], [0, 0, 1, 1], [], []>} : vector<8x128xbf16>, vector<128x128xbf16>, vector<8x128xf32> -> vector<8x128xf32>
    %c0_37 = arith.constant 0 : index
    %c0_38 = arith.constant 0 : index
    %c0_39 = arith.constant 0 : index
    %47 = vector.load %arg8[%c0_37, %c0_38, %c0_39] : memref<2x1x128xf32, #tpu.memory_space<vmem>>, vector<1x1x128xf32>
    %48 = vector.shape_cast %47 : vector<1x1x128xf32> to vector<1x128xf32>
    %49 = vector.broadcast %48 : vector<1x128xf32> to vector<8x128xf32>
    %50 = arith.addf %46, %49 : vector<8x128xf32>
    %cst_40 = arith.constant 0.000000e+00 : f32
    %51 = vector.broadcast %cst_40 : f32 to vector<8x128xf32>
    %52 = arith.maximumf %50, %51 : vector<8x128xf32>
    %53 = arith.truncf %52 : vector<8x128xf32> to vector<8x128xbf16>
    %c0_41 = arith.constant 0 : index
    %c0_42 = arith.constant 0 : index
    %c0_43 = arith.constant 0 : index
    %54 = vector.load %arg9[%c0_41, %c0_42, %c0_43] : memref<2x128x128xbf16, #tpu.memory_space<vmem>>, vector<1x128x128xbf16>
    %55 = vector.shape_cast %54 : vector<1x128x128xbf16> to vector<128x128xbf16>
    %cst_44 = arith.constant dense<0.000000e+00> : vector<8x128xf32>
    %56 = tpu.matmul %53, %55, %cst_44 {dimension_numbers = #tpu.dot_dimension_numbers<[1], [0], [0], [1], [0, 0, 1, 1], [], []>} : vector<8x128xbf16>, vector<128x128xbf16>, vector<8x128xf32> -> vector<8x128xf32>
    %c0_45 = arith.constant 0 : index
    %c0_46 = arith.constant 0 : index
    %c0_47 = arith.constant 0 : index
    %57 = vector.load %arg10[%c0_45, %c0_46, %c0_47] : memref<2x1x128xf32, #tpu.memory_space<vmem>>, vector<1x1x128xf32>
    %58 = vector.shape_cast %57 : vector<1x1x128xf32> to vector<1x128xf32>
    %59 = vector.broadcast %58 : vector<1x128xf32> to vector<8x128xf32>
    %60 = arith.addf %56, %59 : vector<8x128xf32>
    %61 = arith.negf %60 : vector<8x128xf32>
    %62 = math.exp %61 : vector<8x128xf32>
    %cst_48 = arith.constant 1.000000e+00 : f32
    %63 = vector.broadcast %cst_48 : f32 to vector<8x128xf32>
    %64 = arith.addf %63, %62 : vector<8x128xf32>
    %65 = arith.divf %63, %64 : vector<8x128xf32>
    %66 = arith.truncf %65 : vector<8x128xf32> to vector<8x128xbf16>
    %c0_49 = arith.constant 0 : index
    %c0_50 = arith.constant 0 : index
    %67 = vector.load %arg6[%c0_49, %c0_50] : memref<128x256xbf16, #tpu.memory_space<vmem>>, vector<128x256xbf16>
    %cst_51 = arith.constant dense<0.000000e+00> : vector<8x256xf32>
    %68 = tpu.matmul %66, %67, %cst_51 {dimension_numbers = #tpu.dot_dimension_numbers<[1], [0], [0], [1], [0, 0, 1, 1], [], []>} : vector<8x128xbf16>, vector<128x256xbf16>, vector<8x256xf32> -> vector<8x256xf32>
    %69 = arith.mulf %39, %68 : vector<8x256xf32>
    %70 = arith.addf %69, %13 : vector<8x256xf32>
    %cst_52 = arith.constant 0.000000e+00 : f32
    %71 = vector.broadcast %cst_52 : f32 to vector<8x256xf32>
    %72 = arith.maximumf %70, %71 : vector<8x256xf32>
    %73 = arith.truncf %72 : vector<8x256xf32> to vector<8x256xbf16>
    %c3 = arith.constant 3 : index
    %c0_53 = arith.constant 0 : index
    %c0_54 = arith.constant 0 : index
    %74 = vector.load %arg2[%c3, %c0_53, %c0_54] : memref<5x256x256xbf16, #tpu.memory_space<vmem>>, vector<1x256x256xbf16>
    %75 = vector.shape_cast %74 : vector<1x256x256xbf16> to vector<256x256xbf16>
    %cst_55 = arith.constant dense<0.000000e+00> : vector<8x256xf32>
    %76 = tpu.matmul %73, %75, %cst_55 {dimension_numbers = #tpu.dot_dimension_numbers<[1], [0], [0], [1], [0, 0, 1, 1], [], []>} : vector<8x256xbf16>, vector<256x256xbf16>, vector<8x256xf32> -> vector<8x256xf32>
    %c3_56 = arith.constant 3 : index
    %c0_57 = arith.constant 0 : index
    %c0_58 = arith.constant 0 : index
    %77 = vector.load %arg3[%c3_56, %c0_57, %c0_58] : memref<5x1x256xf32, #tpu.memory_space<vmem>>, vector<1x1x256xf32>
    %78 = vector.shape_cast %77 : vector<1x1x256xf32> to vector<1x256xf32>
    %79 = vector.broadcast %78 : vector<1x256xf32> to vector<8x256xf32>
    %80 = arith.mulf %76, %79 : vector<8x256xf32>
    %c3_59 = arith.constant 3 : index
    %c0_60 = arith.constant 0 : index
    %c0_61 = arith.constant 0 : index
    %81 = vector.load %arg4[%c3_59, %c0_60, %c0_61] : memref<5x1x256xf32, #tpu.memory_space<vmem>>, vector<1x1x256xf32>
    %82 = vector.shape_cast %81 : vector<1x1x256xf32> to vector<1x256xf32>
    %83 = vector.broadcast %82 : vector<1x256xf32> to vector<8x256xf32>
    %84 = arith.addf %80, %83 : vector<8x256xf32>
    %cst_62 = arith.constant 0.000000e+00 : f32
    %85 = vector.broadcast %cst_62 : f32 to vector<8x256xf32>
    %86 = arith.maximumf %84, %85 : vector<8x256xf32>
    %87 = arith.truncf %86 : vector<8x256xf32> to vector<8x256xbf16>
    %c4 = arith.constant 4 : index
    %c0_63 = arith.constant 0 : index
    %c0_64 = arith.constant 0 : index
    %88 = vector.load %arg2[%c4, %c0_63, %c0_64] : memref<5x256x256xbf16, #tpu.memory_space<vmem>>, vector<1x256x256xbf16>
    %89 = vector.shape_cast %88 : vector<1x256x256xbf16> to vector<256x256xbf16>
    %cst_65 = arith.constant dense<0.000000e+00> : vector<8x256xf32>
    %90 = tpu.matmul %87, %89, %cst_65 {dimension_numbers = #tpu.dot_dimension_numbers<[1], [0], [0], [1], [0, 0, 1, 1], [], []>} : vector<8x256xbf16>, vector<256x256xbf16>, vector<8x256xf32> -> vector<8x256xf32>
    %c4_66 = arith.constant 4 : index
    %c0_67 = arith.constant 0 : index
    %c0_68 = arith.constant 0 : index
    %91 = vector.load %arg3[%c4_66, %c0_67, %c0_68] : memref<5x1x256xf32, #tpu.memory_space<vmem>>, vector<1x1x256xf32>
    %92 = vector.shape_cast %91 : vector<1x1x256xf32> to vector<1x256xf32>
    %93 = vector.broadcast %92 : vector<1x256xf32> to vector<8x256xf32>
    %94 = arith.mulf %90, %93 : vector<8x256xf32>
    %c4_69 = arith.constant 4 : index
    %c0_70 = arith.constant 0 : index
    %c0_71 = arith.constant 0 : index
    %95 = vector.load %arg4[%c4_69, %c0_70, %c0_71] : memref<5x1x256xf32, #tpu.memory_space<vmem>>, vector<1x1x256xf32>
    %96 = vector.shape_cast %95 : vector<1x1x256xf32> to vector<1x256xf32>
    %97 = vector.broadcast %96 : vector<1x256xf32> to vector<8x256xf32>
    %98 = arith.addf %94, %97 : vector<8x256xf32>
    %99 = arith.truncf %98 : vector<8x256xf32> to vector<8x256xbf16>
    %c0_72 = arith.constant 0 : index
    %c0_73 = arith.constant 0 : index
    %100 = vector.load %arg5[%c0_72, %c0_73] : memref<256x128xbf16, #tpu.memory_space<vmem>>, vector<256x128xbf16>
    %cst_74 = arith.constant dense<0.000000e+00> : vector<8x128xf32>
    %101 = tpu.matmul %99, %100, %cst_74 {dimension_numbers = #tpu.dot_dimension_numbers<[1], [0], [0], [1], [0, 0, 1, 1], [], []>} : vector<8x256xbf16>, vector<256x128xbf16>, vector<8x128xf32> -> vector<8x128xf32>
    %102 = arith.truncf %101 : vector<8x128xf32> to vector<8x128xbf16>
    %c1_75 = arith.constant 1 : index
    %c0_76 = arith.constant 0 : index
    %c0_77 = arith.constant 0 : index
    %103 = vector.load %arg7[%c1_75, %c0_76, %c0_77] : memref<2x128x128xbf16, #tpu.memory_space<vmem>>, vector<1x128x128xbf16>
    %104 = vector.shape_cast %103 : vector<1x128x128xbf16> to vector<128x128xbf16>
    %cst_78 = arith.constant dense<0.000000e+00> : vector<8x128xf32>
    %105 = tpu.matmul %102, %104, %cst_78 {dimension_numbers = #tpu.dot_dimension_numbers<[1], [0], [0], [1], [0, 0, 1, 1], [], []>} : vector<8x128xbf16>, vector<128x128xbf16>, vector<8x128xf32> -> vector<8x128xf32>
    %c1_79 = arith.constant 1 : index
    %c0_80 = arith.constant 0 : index
    %c0_81 = arith.constant 0 : index
    %106 = vector.load %arg8[%c1_79, %c0_80, %c0_81] : memref<2x1x128xf32, #tpu.memory_space<vmem>>, vector<1x1x128xf32>
    %107 = vector.shape_cast %106 : vector<1x1x128xf32> to vector<1x128xf32>
    %108 = vector.broadcast %107 : vector<1x128xf32> to vector<8x128xf32>
    %109 = arith.addf %105, %108 : vector<8x128xf32>
    %cst_82 = arith.constant 0.000000e+00 : f32
    %110 = vector.broadcast %cst_82 : f32 to vector<8x128xf32>
    %111 = arith.maximumf %109, %110 : vector<8x128xf32>
    %112 = arith.truncf %111 : vector<8x128xf32> to vector<8x128xbf16>
    %c1_83 = arith.constant 1 : index
    %c0_84 = arith.constant 0 : index
    %c0_85 = arith.constant 0 : index
    %113 = vector.load %arg9[%c1_83, %c0_84, %c0_85] : memref<2x128x128xbf16, #tpu.memory_space<vmem>>, vector<1x128x128xbf16>
    %114 = vector.shape_cast %113 : vector<1x128x128xbf16> to vector<128x128xbf16>
    %cst_86 = arith.constant dense<0.000000e+00> : vector<8x128xf32>
    %115 = tpu.matmul %112, %114, %cst_86 {dimension_numbers = #tpu.dot_dimension_numbers<[1], [0], [0], [1], [0, 0, 1, 1], [], []>} : vector<8x128xbf16>, vector<128x128xbf16>, vector<8x128xf32> -> vector<8x128xf32>
    %c1_87 = arith.constant 1 : index
    %c0_88 = arith.constant 0 : index
    %c0_89 = arith.constant 0 : index
    %116 = vector.load %arg10[%c1_87, %c0_88, %c0_89] : memref<2x1x128xf32, #tpu.memory_space<vmem>>, vector<1x1x128xf32>
    %117 = vector.shape_cast %116 : vector<1x1x128xf32> to vector<1x128xf32>
    %118 = vector.broadcast %117 : vector<1x128xf32> to vector<8x128xf32>
    %119 = arith.addf %115, %118 : vector<8x128xf32>
    %120 = arith.negf %119 : vector<8x128xf32>
    %121 = math.exp %120 : vector<8x128xf32>
    %cst_90 = arith.constant 1.000000e+00 : f32
    %122 = vector.broadcast %cst_90 : f32 to vector<8x128xf32>
    %123 = arith.addf %122, %121 : vector<8x128xf32>
    %124 = arith.divf %122, %123 : vector<8x128xf32>
    %125 = arith.truncf %124 : vector<8x128xf32> to vector<8x128xbf16>
    %c0_91 = arith.constant 0 : index
    %c0_92 = arith.constant 0 : index
    %126 = vector.load %arg6[%c0_91, %c0_92] : memref<128x256xbf16, #tpu.memory_space<vmem>>, vector<128x256xbf16>
    %cst_93 = arith.constant dense<0.000000e+00> : vector<8x256xf32>
    %127 = tpu.matmul %125, %126, %cst_93 {dimension_numbers = #tpu.dot_dimension_numbers<[1], [0], [0], [1], [0, 0, 1, 1], [], []>} : vector<8x128xbf16>, vector<128x256xbf16>, vector<8x256xf32> -> vector<8x256xf32>
    %128 = arith.mulf %98, %127 : vector<8x256xf32>
    %129 = arith.addf %128, %72 : vector<8x256xf32>
    %cst_94 = arith.constant 0.000000e+00 : f32
    %130 = vector.broadcast %cst_94 : f32 to vector<8x256xf32>
    %131 = arith.maximumf %129, %130 : vector<8x256xf32>
    %132 = arith.truncf %131 : vector<8x256xf32> to vector<8x256xbf16>
    %c0_95 = arith.constant 0 : index
    %c0_96 = arith.constant 0 : index
    %133 = vector.load %arg11[%c0_95, %c0_96] : memref<256x128xbf16, #tpu.memory_space<vmem>>, vector<256x128xbf16>
    %cst_97 = arith.constant dense<0.000000e+00> : vector<8x128xf32>
    %134 = tpu.matmul %132, %133, %cst_97 {dimension_numbers = #tpu.dot_dimension_numbers<[1], [0], [0], [1], [0, 0, 1, 1], [], []>} : vector<8x256xbf16>, vector<256x128xbf16>, vector<8x128xf32> -> vector<8x128xf32>
    %c0_98 = arith.constant 0 : index
    %c0_99 = arith.constant 0 : index
    %135 = vector.load %arg12[%c0_98, %c0_99] : memref<1x128xf32, #tpu.memory_space<vmem>>, vector<1x128xf32>
    %136 = vector.broadcast %135 : vector<1x128xf32> to vector<8x128xf32>
    %137 = arith.addf %134, %136 : vector<8x128xf32>
    %cst_100 = arith.constant 0.000000e+00 : f32
    %138 = vector.broadcast %cst_100 : f32 to vector<8x128xf32>
    %139 = arith.maximumf %137, %138 : vector<8x128xf32>
    %140 = arith.truncf %139 : vector<8x128xf32> to vector<8x128xbf16>
    %c0_101 = arith.constant 0 : index
    %c0_102 = arith.constant 0 : index
    %141 = vector.load %arg13[%c0_101, %c0_102] : memref<128x4096xbf16, #tpu.memory_space<vmem>>, vector<128x4096xbf16>
    %cst_103 = arith.constant dense<0.000000e+00> : vector<8x4096xf32>
    %142 = tpu.matmul %140, %141, %cst_103 {dimension_numbers = #tpu.dot_dimension_numbers<[1], [0], [0], [1], [0, 0, 1, 1], [], []>} : vector<8x128xbf16>, vector<128x4096xbf16>, vector<8x4096xf32> -> vector<8x4096xf32>
    %c0_104 = arith.constant 0 : index
    %c0_105 = arith.constant 0 : index
    %143 = vector.load %arg14[%c0_104, %c0_105] : memref<1x4096xf32, #tpu.memory_space<vmem>>, vector<1x4096xf32>
    %144 = vector.broadcast %143 : vector<1x4096xf32> to vector<8x4096xf32>
    %145 = arith.addf %142, %144 : vector<8x4096xf32>
    %146 = arith.truncf %145 : vector<8x4096xf32> to vector<8x4096xbf16>
    %c0_106 = arith.constant 0 : index
    %c0_107 = arith.constant 0 : index
    %147 = vector.load %arg15[%c0_106, %c0_107] : memref<8x4096xbf16, #tpu.memory_space<vmem>>, vector<8x4096xbf16>
    tpu.vector_store %arg15[%c0_106, %c0_107], %146 {strides = array<i32>} : memref<8x4096xbf16, #tpu.memory_space<vmem>>, vector<8x4096xbf16>,
    return
  }
  func.func @transform_0(%arg0: i32) -> (i32, i32) {
    %c0_i32 = arith.constant 0 : i32
    %c0_i32_0 = arith.constant 0 : i32
    return %arg0, %c0_i32 : i32, i32
  }
  func.func @transform_1(%arg0: i32) -> (i32, i32, i32) {
    %c0_i32 = arith.constant 0 : i32
    %c0_i32_0 = arith.constant 0 : i32
    %c0_i32_1 = arith.constant 0 : i32
    %c0_i32_2 = arith.constant 0 : i32
    return %c0_i32, %c0_i32_0, %c0_i32_1 : i32, i32, i32
  }
  func.func @transform_2(%arg0: i32) -> (i32, i32, i32) {
    %c0_i32 = arith.constant 0 : i32
    %c0_i32_0 = arith.constant 0 : i32
    %c0_i32_1 = arith.constant 0 : i32
    %c0_i32_2 = arith.constant 0 : i32
    return %c0_i32, %c0_i32_0, %c0_i32_1 : i32, i32, i32
  }
  func.func @transform_3(%arg0: i32) -> (i32, i32, i32) {
    %c0_i32 = arith.constant 0 : i32
    %c0_i32_0 = arith.constant 0 : i32
    %c0_i32_1 = arith.constant 0 : i32
    %c0_i32_2 = arith.constant 0 : i32
    return %c0_i32, %c0_i32_0, %c0_i32_1 : i32, i32, i32
  }
  func.func @transform_4(%arg0: i32) -> (i32, i32) {
    %c0_i32 = arith.constant 0 : i32
    %c0_i32_0 = arith.constant 0 : i32
    %c0_i32_1 = arith.constant 0 : i32
    return %c0_i32, %c0_i32_0 : i32, i32
  }
  func.func @transform_5(%arg0: i32) -> (i32, i32) {
    %c0_i32 = arith.constant 0 : i32
    %c0_i32_0 = arith.constant 0 : i32
    %c0_i32_1 = arith.constant 0 : i32
    return %c0_i32, %c0_i32_0 : i32, i32
  }
  func.func @transform_6(%arg0: i32) -> (i32, i32, i32) {
    %c0_i32 = arith.constant 0 : i32
    %c0_i32_0 = arith.constant 0 : i32
    %c0_i32_1 = arith.constant 0 : i32
    %c0_i32_2 = arith.constant 0 : i32
    return %c0_i32, %c0_i32_0, %c0_i32_1 : i32, i32, i32
  }
  func.func @transform_7(%arg0: i32) -> (i32, i32, i32) {
    %c0_i32 = arith.constant 0 : i32
    %c0_i32_0 = arith.constant 0 : i32
    %c0_i32_1 = arith.constant 0 : i32
    %c0_i32_2 = arith.constant 0 : i32
    return %c0_i32, %c0_i32_0, %c0_i32_1 : i32, i32, i32
  }
  func.func @transform_8(%arg0: i32) -> (i32, i32, i32) {
    %c0_i32 = arith.constant 0 : i32
    %c0_i32_0 = arith.constant 0 : i32
    %c0_i32_1 = arith.constant 0 : i32
    %c0_i32_2 = arith.constant 0 : i32
    return %c0_i32, %c0_i32_0, %c0_i32_1 : i32, i32, i32
  }
  func.func @transform_9(%arg0: i32) -> (i32, i32, i32) {
    %c0_i32 = arith.constant 0 : i32
    %c0_i32_0 = arith.constant 0 : i32
    %c0_i32_1 = arith.constant 0 : i32
    %c0_i32_2 = arith.constant 0 : i32
    return %c0_i32, %c0_i32_0, %c0_i32_1 : i32, i32, i32
  }
  func.func @transform_10(%arg0: i32) -> (i32, i32) {
    %c0_i32 = arith.constant 0 : i32
    %c0_i32_0 = arith.constant 0 : i32
    %c0_i32_1 = arith.constant 0 : i32
    return %c0_i32, %c0_i32_0 : i32, i32
  }
  func.func @transform_11(%arg0: i32) -> (i32, i32) {
    %c0_i32 = arith.constant 0 : i32
    %c0_i32_0 = arith.constant 0 : i32
    %c0_i32_1 = arith.constant 0 : i32
    return %c0_i32, %c0_i32_0 : i32, i32
  }
  func.func @transform_12(%arg0: i32) -> (i32, i32) {
    %c0_i32 = arith.constant 0 : i32
    %c0_i32_0 = arith.constant 0 : i32
    %c0_i32_1 = arith.constant 0 : i32
    return %c0_i32, %c0_i32_0 : i32, i32
  }
  func.func @transform_13(%arg0: i32) -> (i32, i32) {
    %c0_i32 = arith.constant 0 : i32
    %c0_i32_0 = arith.constant 0 : i32
    %c0_i32_1 = arith.constant 0 : i32
    return %c0_i32, %c0_i32_0 : i32, i32
  }
  func.func @transform_14(%arg0: i32) -> (i32, i32) {
    %c0_i32 = arith.constant 0 : i32
    %c0_i32_0 = arith.constant 0 : i32
    return %arg0, %c0_i32 : i32, i32
  }
}

module attributes {stable_mosaic.version = 11 : i64} {
  func.func @forward_kernel(%arg0: i32, %arg1: memref<8x256xbf16, #tpu.memory_space<vmem>>, %arg2: memref<5x256x256xbf16, #tpu.memory_space<vmem>>, %arg3: memref<5x1x256xf32, #tpu.memory_space<vmem>>, %arg4: memref<5x1x256xf32, #tpu.memory_space<vmem>>, %arg5: memref<256x128xbf16, #tpu.memory_space<vmem>>, %arg6: memref<128x256xbf16, #tpu.memory_space<vmem>>, %arg7: memref<2x128x128xbf16, #tpu.memory_space<vmem>>, %arg8: memref<2x1x128xf32, #tpu.memory_space<vmem>>, %arg9: memref<2x128x128xbf16, #tpu.memory_space<vmem>>, %arg10: memref<2x1x128xf32, #tpu.memory_space<vmem>>, %arg11: memref<256x128xbf16, #tpu.memory_space<vmem>>, %arg12: memref<1x128xf32, #tpu.memory_space<vmem>>, %arg13: memref<128x4096xbf16, #tpu.memory_space<vmem>>, %arg14: memref<1x4096xf32, #tpu.memory_space<vmem>>, %arg15: memref<8x4096xbf16, #tpu.memory_space<vmem>>) attributes {dimension_semantics = [#tpu.dimension_semantics<parallel>], iteration_bounds = array<i64: 1>, scalar_prefetch = 0 : i64, scratch_operands = 0 : i64, tpu.core_type = #tpu.core_type<tc>, window_params = [{transform_indices = @transform_0, window_bounds = array<i64: 8, 256>}, {pipeline_mode = #tpu.pipeline_mode<synchronous>, transform_indices = @transform_1, window_bounds = array<i64: 5, 256, 256>}, {pipeline_mode = #tpu.pipeline_mode<synchronous>, transform_indices = @transform_2, window_bounds = array<i64: 5, 1, 256>}, {pipeline_mode = #tpu.pipeline_mode<synchronous>, transform_indices = @transform_3, window_bounds = array<i64: 5, 1, 256>}, {pipeline_mode = #tpu.pipeline_mode<synchronous>, transform_indices = @transform_4, window_bounds = array<i64: 256, 128>}, {pipeline_mode = #tpu.pipeline_mode<synchronous>, transform_indices = @transform_5, window_bounds = array<i64: 128, 256>}, {pipeline_mode = #tpu.pipeline_mode<synchronous>, transform_indices = @transform_6, window_bounds = array<i64: 2, 128, 128>}, {pipeline_mode = #tpu.pipeline_mode<synchronous>, transform_indices = @transform_7, window_bounds = array<i64: 2, 1, 128>}, {pipeline_mode = #tpu.pipeline_mode<synchronous>, transform_indices = @transform_8, window_bounds = array<i64: 2, 128, 128>}, {pipeline_mode = #tpu.pipeline_mode<synchronous>, transform_indices = @transform_9, window_bounds = array<i64: 2, 1, 128>}, {pipeline_mode = #tpu.pipeline_mode<synchronous>, transform_indices = @transform_10, window_bounds = array<i64: 256, 128>}, {pipeline_mode = #tpu.pipeline_mode<synchronous>, transform_indices = @transform_11, window_bounds = array<i64: 1, 128>}, {pipeline_mode = #tpu.pipeline_mode<synchronous>, transform_indices = @transform_12, window_bounds = array<i64: 128, 4096>}, {pipeline_mode = #tpu.pipeline_mode<synchronous>, transform_indices = @transform_13, window_bounds = array<i64: 1, 4096>}, {transform_indices = @transform_14, window_bounds = array<i64: 8, 4096>}]} {
    %c0 = arith.constant 0 : index
    %c0_0 = arith.constant 0 : index
    %0 = vector.load %arg1[%c0, %c0_0] : memref<8x256xbf16, #tpu.memory_space<vmem>>, vector<8x256xbf16>
    %c0_1 = arith.constant 0 : index
    %c0_2 = arith.constant 0 : index
    %c0_3 = arith.constant 0 : index
    %1 = vector.load %arg2[%c0_1, %c0_2, %c0_3] : memref<5x256x256xbf16, #tpu.memory_space<vmem>>, vector<1x256x256xbf16>
    %2 = vector.shape_cast %1 : vector<1x256x256xbf16> to vector<256x256xbf16>
    %cst = arith.constant dense<0.000000e+00> : vector<8x256xf32>
    %3 = tpu.matmul %0, %2, %cst {dimension_numbers = #tpu.dot_dimension_numbers<[1], [0], [0], [1], [0, 0, 1, 1], [], []>} : vector<8x256xbf16>, vector<256x256xbf16>, vector<8x256xf32> -> vector<8x256xf32>
    %c0_4 = arith.constant 0 : index
    %c0_5 = arith.constant 0 : index
    %c0_6 = arith.constant 0 : index
    %4 = vector.load %arg3[%c0_4, %c0_5, %c0_6] : memref<5x1x256xf32, #tpu.memory_space<vmem>>, vector<1x1x256xf32>
    %5 = vector.shape_cast %4 : vector<1x1x256xf32> to vector<1x256xf32>
    %6 = vector.broadcast %5 : vector<1x256xf32> to vector<8x256xf32>
    %7 = arith.mulf %3, %6 : vector<8x256xf32>
    %c0_7 = arith.constant 0 : index
    %c0_8 = arith.constant 0 : index
    %c0_9 = arith.constant 0 : index
    %8 = vector.load %arg4[%c0_7, %c0_8, %c0_9] : memref<5x1x256xf32, #tpu.memory_space<vmem>>, vector<1x1x256xf32>
    %9 = vector.shape_cast %8 : vector<1x1x256xf32> to vector<1x256xf32>
    %10 = vector.broadcast %9 : vector<1x256xf32> to vector<8x256xf32>
    %11 = arith.addf %7, %10 : vector<8x256xf32>
    %cst_10 = arith.constant 0.000000e+00 : f32
    %12 = vector.broadcast %cst_10 : f32 to vector<8x256xf32>
    %13 = arith.maximumf %11, %12 : vector<8x256xf32>
    %14 = arith.truncf %13 : vector<8x256xf32> to vector<8x256xbf16>
    %c1 = arith.constant 1 : index
    %c0_11 = arith.constant 0 : index
    %c0_12 = arith.constant 0 : index
    %15 = vector.load %arg2[%c1, %c0_11, %c0_12] : memref<5x256x256xbf16, #tpu.memory_space<vmem>>, vector<1x256x256xbf16>
    %16 = vector.shape_cast %15 : vector<1x256x256xbf16> to vector<256x256xbf16>
    %cst_13 = arith.constant dense<0.000000e+00> : vector<8x256xf32>
    %17 = tpu.matmul %14, %16, %cst_13 {dimension_numbers = #tpu.dot_dimension_numbers<[1], [0], [0], [1], [0, 0, 1, 1], [], []>} : vector<8x256xbf16>, vector<256x256xbf16>, vector<8x256xf32> -> vector<8x256xf32>
    %c1_14 = arith.constant 1 : index
    %c0_15 = arith.constant 0 : index
    %c0_16 = arith.constant 0 : index
    %18 = vector.load %arg3[%c1_14, %c0_15, %c0_16] : memref<5x1x256xf32, #tpu.memory_space<vmem>>, vector<1x1x256xf32>
    %19 = vector.shape_cast %18 : vector<1x1x256xf32> to vector<1x256xf32>
    %20 = vector.broadcast %19 : vector<1x256xf32> to vector<8x256xf32>
    %21 = arith.mulf %17, %20 : vector<8x256xf32>
    %c1_17 = arith.constant 1 : index
    %c0_18 = arith.constant 0 : index
    %c0_19 = arith.constant 0 : index
    %22 = vector.load %arg4[%c1_17, %c0_18, %c0_19] : memref<5x1x256xf32, #tpu.memory_space<vmem>>, vector<1x1x256xf32>
    %23 = vector.shape_cast %22 : vector<1x1x256xf32> to vector<1x256xf32>
    %24 = vector.broadcast %23 : vector<1x256xf32> to vector<8x256xf32>
    %25 = arith.addf %21, %24 : vector<8x256xf32>
    %cst_20 = arith.constant 0.000000e+00 : f32
    %26 = vector.broadcast %cst_20 : f32 to vector<8x256xf32>
    %27 = arith.maximumf %25, %26 : vector<8x256xf32>
    %28 = arith.truncf %27 : vector<8x256xf32> to vector<8x256xbf16>
    %c2 = arith.constant 2 : index
    %c0_21 = arith.constant 0 : index
    %c0_22 = arith.constant 0 : index
    %29 = vector.load %arg2[%c2, %c0_21, %c0_22] : memref<5x256x256xbf16, #tpu.memory_space<vmem>>, vector<1x256x256xbf16>
    %30 = vector.shape_cast %29 : vector<1x256x256xbf16> to vector<256x256xbf16>
    %cst_23 = arith.constant dense<0.000000e+00> : vector<8x256xf32>
    %31 = tpu.matmul %28, %30, %cst_23 {dimension_numbers = #tpu.dot_dimension_numbers<[1], [0], [0], [1], [0, 0, 1, 1], [], []>} : vector<8x256xbf16>, vector<256x256xbf16>, vector<8x256xf32> -> vector<8x256xf32>
    %c2_24 = arith.constant 2 : index
    %c0_25 = arith.constant 0 : index
    %c0_26 = arith.constant 0 : index
    %32 = vector.load %arg3[%c2_24, %c0_25, %c0_26] : memref<5x1x256xf32, #tpu.memory_space<vmem>>, vector<1x1x256xf32>
    %33 = vector.shape_cast %32 : vector<1x1x256xf32> to vector<1x256xf32>
    %34 = vector.broadcast %33 : vector<1x256xf32> to vector<8x256xf32>
    %35 = arith.mulf %31, %34 : vector<8x256xf32>
    %c2_27 = arith.constant 2 : index
    %c0_28 = arith.constant 0 : index
    %c0_29 = arith.constant 0 : index
    %36 = vector.load %arg4[%c2_27, %c0_28, %c0_29] : memref<5x1x256xf32, #tpu.memory_space<vmem>>, vector<1x1x256xf32>
    %37 = vector.shape_cast %36 : vector<1x1x256xf32> to vector<1x256xf32>
    %38 = vector.broadcast %37 : vector<1x256xf32> to vector<8x256xf32>
    %39 = arith.addf %35, %38 : vector<8x256xf32>
    %40 = arith.truncf %39 : vector<8x256xf32> to vector<8x256xbf16>
    %c0_30 = arith.constant 0 : index
    %c0_31 = arith.constant 0 : index
    %41 = vector.load %arg5[%c0_30, %c0_31] : memref<256x128xbf16, #tpu.memory_space<vmem>>, vector<256x128xbf16>
    %cst_32 = arith.constant dense<0.000000e+00> : vector<8x128xf32>
    %42 = tpu.matmul %40, %41, %cst_32 {dimension_numbers = #tpu.dot_dimension_numbers<[1], [0], [0], [1], [0, 0, 1, 1], [], []>} : vector<8x256xbf16>, vector<256x128xbf16>, vector<8x128xf32> -> vector<8x128xf32>
    %43 = arith.truncf %42 : vector<8x128xf32> to vector<8x128xbf16>
    %c0_33 = arith.constant 0 : index
    %c0_34 = arith.constant 0 : index
    %c0_35 = arith.constant 0 : index
    %44 = vector.load %arg7[%c0_33, %c0_34, %c0_35] : memref<2x128x128xbf16, #tpu.memory_space<vmem>>, vector<1x128x128xbf16>
    %45 = vector.shape_cast %44 : vector<1x128x128xbf16> to vector<128x128xbf16>
    %cst_36 = arith.constant dense<0.000000e+00> : vector<8x128xf32>
    %46 = tpu.matmul %43, %45, %cst_36 {dimension_numbers = #tpu.dot_dimension_numbers<[1], [0], [0], [1], [0, 0, 1, 1], [], []>} : vector<8x128xbf16>, vector<128x128xbf16>, vector<8x128xf32> -> vector<8x128xf32>
    %c0_37 = arith.constant 0 : index
    %c0_38 = arith.constant 0 : index
    %c0_39 = arith.constant 0 : index
    %47 = vector.load %arg8[%c0_37, %c0_38, %c0_39] : memref<2x1x128xf32, #tpu.memory_space<vmem>>, vector<1x1x128xf32>
    %48 = vector.shape_cast %47 : vector<1x1x128xf32> to vector<1x128xf32>
    %49 = vector.broadcast %48 : vector<1x128xf32> to vector<8x128xf32>
    %50 = arith.addf %46, %49 : vector<8x128xf32>
    %cst_40 = arith.constant 0.000000e+00 : f32
    %51 = vector.broadcast %cst_40 : f32 to vector<8x128xf32>
    %52 = arith.maximumf %50, %51 : vector<8x128xf32>
    %53 = arith.truncf %52 : vector<8x128xf32> to vector<8x128xbf16>
    %c0_41 = arith.constant 0 : index
    %c0_42 = arith.constant 0 : index
    %c0_43 = arith.constant 0 : index
    %54 = vector.load %arg9[%c0_41, %c0_42, %c0_43] : memref<2x128x128xbf16, #tpu.memory_space<vmem>>, vector<1x128x128xbf16>
    %55 = vector.shape_cast %54 : vector<1x128x128xbf16> to vector<128x128xbf16>
    %cst_44 = arith.constant dense<0.000000e+00> : vector<8x128xf32>
    %56 = tpu.matmul %53, %55, %cst_44 {dimension_numbers = #tpu.dot_dimension_numbers<[1], [0], [0], [1], [0, 0, 1, 1], [], []>} : vector<8x128xbf16>, vector<128x128xbf16>, vector<8x128xf32> -> vector<8x128xf32>
    %c0_45 = arith.constant 0 : index
    %c0_46 = arith.constant 0 : index
    %c0_47 = arith.constant 0 : index
    %57 = vector.load %arg10[%c0_45, %c0_46, %c0_47] : memref<2x1x128xf32, #tpu.memory_space<vmem>>, vector<1x1x128xf32>
    %58 = vector.shape_cast %57 : vector<1x1x128xf32> to vector<1x128xf32>
    %59 = vector.broadcast %58 : vector<1x128xf32> to vector<8x128xf32>
    %60 = arith.addf %56, %59 : vector<8x128xf32>
    %61 = arith.negf %60 : vector<8x128xf32>
    %62 = math.exp %61 : vector<8x128xf32>
    %cst_48 = arith.constant 1.000000e+00 : f32
    %63 = vector.broadcast %cst_48 : f32 to vector<8x128xf32>
    %64 = arith.addf %63, %62 : vector<8x128xf32>
    %65 = arith.divf %63, %64 : vector<8x128xf32>
    %66 = arith.truncf %65 : vector<8x128xf32> to vector<8x128xbf16>
    %c0_49 = arith.constant 0 : index
    %c0_50 = arith.constant 0 : index
    %67 = vector.load %arg6[%c0_49, %c0_50] : memref<128x256xbf16, #tpu.memory_space<vmem>>, vector<128x256xbf16>
    %cst_51 = arith.constant dense<0.000000e+00> : vector<8x256xf32>
    %68 = tpu.matmul %66, %67, %cst_51 {dimension_numbers = #tpu.dot_dimension_numbers<[1], [0], [0], [1], [0, 0, 1, 1], [], []>} : vector<8x128xbf16>, vector<128x256xbf16>, vector<8x256xf32> -> vector<8x256xf32>
    %69 = arith.mulf %39, %68 : vector<8x256xf32>
    %70 = arith.addf %69, %13 : vector<8x256xf32>
    %cst_52 = arith.constant 0.000000e+00 : f32
    %71 = vector.broadcast %cst_52 : f32 to vector<8x256xf32>
    %72 = arith.maximumf %70, %71 : vector<8x256xf32>
    %73 = arith.truncf %72 : vector<8x256xf32> to vector<8x256xbf16>
    %c3 = arith.constant 3 : index
    %c0_53 = arith.constant 0 : index
    %c0_54 = arith.constant 0 : index
    %74 = vector.load %arg2[%c3, %c0_53, %c0_54] : memref<5x256x256xbf16, #tpu.memory_space<vmem>>, vector<1x256x256xbf16>
    %75 = vector.shape_cast %74 : vector<1x256x256xbf16> to vector<256x256xbf16>
    %cst_55 = arith.constant dense<0.000000e+00> : vector<8x256xf32>
    %76 = tpu.matmul %73, %75, %cst_55 {dimension_numbers = #tpu.dot_dimension_numbers<[1], [0], [0], [1], [0, 0, 1, 1], [], []>} : vector<8x256xbf16>, vector<256x256xbf16>, vector<8x256xf32> -> vector<8x256xf32>
    %c3_56 = arith.constant 3 : index
    %c0_57 = arith.constant 0 : index
    %c0_58 = arith.constant 0 : index
    %77 = vector.load %arg3[%c3_56, %c0_57, %c0_58] : memref<5x1x256xf32, #tpu.memory_space<vmem>>, vector<1x1x256xf32>
    %78 = vector.shape_cast %77 : vector<1x1x256xf32> to vector<1x256xf32>
    %79 = vector.broadcast %78 : vector<1x256xf32> to vector<8x256xf32>
    %80 = arith.mulf %76, %79 : vector<8x256xf32>
    %c3_59 = arith.constant 3 : index
    %c0_60 = arith.constant 0 : index
    %c0_61 = arith.constant 0 : index
    %81 = vector.load %arg4[%c3_59, %c0_60, %c0_61] : memref<5x1x256xf32, #tpu.memory_space<vmem>>, vector<1x1x256xf32>
    %82 = vector.shape_cast %81 : vector<1x1x256xf32> to vector<1x256xf32>
    %83 = vector.broadcast %82 : vector<1x256xf32> to vector<8x256xf32>
    %84 = arith.addf %80, %83 : vector<8x256xf32>
    %cst_62 = arith.constant 0.000000e+00 : f32
    %85 = vector.broadcast %cst_62 : f32 to vector<8x256xf32>
    %86 = arith.maximumf %84, %85 : vector<8x256xf32>
    %87 = arith.truncf %86 : vector<8x256xf32> to vector<8x256xbf16>
    %c4 = arith.constant 4 : index
    %c0_63 = arith.constant 0 : index
    %c0_64 = arith.constant 0 : index
    %88 = vector.load %arg2[%c4, %c0_63, %c0_64] : memref<5x256x256xbf16, #tpu.memory_space<vmem>>, vector<1x256x256xbf16>
    %89 = vector.shape_cast %88 : vector<1x256x256xbf16> to vector<256x256xbf16>
    %cst_65 = arith.constant dense<0.000000e+00> : vector<8x256xf32>
    %90 = tpu.matmul %87, %89, %cst_65 {dimension_numbers = #tpu.dot_dimension_numbers<[1], [0], [0], [1], [0, 0, 1, 1], [], []>} : vector<8x256xbf16>, vector<256x256xbf16>, vector<8x256xf32> -> vector<8x256xf32>
    %c4_66 = arith.constant 4 : index
    %c0_67 = arith.constant 0 : index
    %c0_68 = arith.constant 0 : index
    %91 = vector.load %arg3[%c4_66, %c0_67, %c0_68] : memref<5x1x256xf32, #tpu.memory_space<vmem>>, vector<1x1x256xf32>
    %92 = vector.shape_cast %91 : vector<1x1x256xf32> to vector<1x256xf32>
    %93 = vector.broadcast %92 : vector<1x256xf32> to vector<8x256xf32>
    %94 = arith.mulf %90, %93 : vector<8x256xf32>
    %c4_69 = arith.constant 4 : index
    %c0_70 = arith.constant 0 : index
    %c0_71 = arith.constant 0 : index
    %95 = vector.load %arg4[%c4_69, %c0_70, %c0_71] : memref<5x1x256xf32, #tpu.memory_space<vmem>>, vector<1x1x256xf32>
    %96 = vector.shape_cast %95 : vector<1x1x256xf32> to vector<1x256xf32>
    %97 = vector.broadcast %96 : vector<1x256xf32> to vector<8x256xf32>
    %98 = arith.addf %94, %97 : vector<8x256xf32>
    %99 = arith.truncf %98 : vector<8x256xf32> to vector<8x256xbf16>
    %c0_72 = arith.constant 0 : index
    %c0_73 = arith.constant 0 : index
    %100 = vector.load %arg5[%c0_72, %c0_73] : memref<256x128xbf16, #tpu.memory_space<vmem>>, vector<256x128xbf16>
    %cst_74 = arith.constant dense<0.000000e+00> : vector<8x128xf32>
    %101 = tpu.matmul %99, %100, %cst_74 {dimension_numbers = #tpu.dot_dimension_numbers<[1], [0], [0], [1], [0, 0, 1, 1], [], []>} : vector<8x256xbf16>, vector<256x128xbf16>, vector<8x128xf32> -> vector<8x128xf32>
    %102 = arith.truncf %101 : vector<8x128xf32> to vector<8x128xbf16>
    %c1_75 = arith.constant 1 : index
    %c0_76 = arith.constant 0 : index
    %c0_77 = arith.constant 0 : index
    %103 = vector.load %arg7[%c1_75, %c0_76, %c0_77] : memref<2x128x128xbf16, #tpu.memory_space<vmem>>, vector<1x128x128xbf16>
    %104 = vector.shape_cast %103 : vector<1x128x128xbf16> to vector<128x128xbf16>
    %cst_78 = arith.constant dense<0.000000e+00> : vector<8x128xf32>
    %105 = tpu.matmul %102, %104, %cst_78 {dimension_numbers = #tpu.dot_dimension_numbers<[1], [0], [0], [1], [0, 0, 1, 1], [], []>} : vector<8x128xbf16>, vector<128x128xbf16>, vector<8x128xf32> -> vector<8x128xf32>
    %c1_79 = arith.constant 1 : index
    %c0_80 = arith.constant 0 : index
    %c0_81 = arith.constant 0 : index
    %106 = vector.load %arg8[%c1_79, %c0_80, %c0_81] : memref<2x1x128xf32, #tpu.memory_space<vmem>>, vector<1x1x128xf32>
    %107 = vector.shape_cast %106 : vector<1x1x128xf32> to vector<1x128xf32>
    %108 = vector.broadcast %107 : vector<1x128xf32> to vector<8x128xf32>
    %109 = arith.addf %105, %108 : vector<8x128xf32>
    %cst_82 = arith.constant 0.000000e+00 : f32
    %110 = vector.broadcast %cst_82 : f32 to vector<8x128xf32>
    %111 = arith.maximumf %109, %110 : vector<8x128xf32>
    %112 = arith.truncf %111 : vector<8x128xf32> to vector<8x128xbf16>
    %c1_83 = arith.constant 1 : index
    %c0_84 = arith.constant 0 : index
    %c0_85 = arith.constant 0 : index
    %113 = vector.load %arg9[%c1_83, %c0_84, %c0_85] : memref<2x128x128xbf16, #tpu.memory_space<vmem>>, vector<1x128x128xbf16>
    %114 = vector.shape_cast %113 : vector<1x128x128xbf16> to vector<128x128xbf16>
    %cst_86 = arith.constant dense<0.000000e+00> : vector<8x128xf32>
    %115 = tpu.matmul %112, %114, %cst_86 {dimension_numbers = #tpu.dot_dimension_numbers<[1], [0], [0], [1], [0, 0, 1, 1], [], []>} : vector<8x128xbf16>, vector<128x128xbf16>, vector<8x128xf32> -> vector<8x128xf32>
    %c1_87 = arith.constant 1 : index
    %c0_88 = arith.constant 0 : index
    %c0_89 = arith.constant 0 : index
    %116 = vector.load %arg10[%c1_87, %c0_88, %c0_89] : memref<2x1x128xf32, #tpu.memory_space<vmem>>, vector<1x1x128xf32>
    %117 = vector.shape_cast %116 : vector<1x1x128xf32> to vector<1x128xf32>
    %118 = vector.broadcast %117 : vector<1x128xf32> to vector<8x128xf32>
    %119 = arith.addf %115, %118 : vector<8x128xf32>
    %120 = arith.negf %119 : vector<8x128xf32>
    %121 = math.exp %120 : vector<8x128xf32>
    %cst_90 = arith.constant 1.000000e+00 : f32
    %122 = vector.broadcast %cst_90 : f32 to vector<8x128xf32>
    %123 = arith.addf %122, %121 : vector<8x128xf32>
    %124 = arith.divf %122, %123 : vector<8x128xf32>
    %125 = arith.truncf %124 : vector<8x128xf32> to vector<8x128xbf16>
    %c0_91 = arith.constant 0 : index
    %c0_92 = arith.constant 0 : index
    %126 = vector.load %arg6[%c0_91, %c0_92] : memref<128x256xbf16, #tpu.memory_space<vmem>>, vector<128x256xbf16>
    %cst_93 = arith.constant dense<0.000000e+00> : vector<8x256xf32>
    %127 = tpu.matmul %125, %126, %cst_93 {dimension_numbers = #tpu.dot_dimension_numbers<[1], [0], [0], [1], [0, 0, 1, 1], [], []>} : vector<8x128xbf16>, vector<128x256xbf16>, vector<8x256xf32> -> vector<8x256xf32>
    %128 = arith.mulf %98, %127 : vector<8x256xf32>
    %129 = arith.addf %128, %72 : vector<8x256xf32>
    %cst_94 = arith.constant 0.000000e+00 : f32
    %130 = vector.broadcast %cst_94 : f32 to vector<8x256xf32>
    %131 = arith.maximumf %129, %130 : vector<8x256xf32>
    %132 = arith.truncf %131 : vector<8x256xf32> to vector<8x256xbf16>
    %c0_95 = arith.constant 0 : index
    %c0_96 = arith.constant 0 : index
    %133 = vector.load %arg11[%c0_95, %c0_96] : memref<256x128xbf16, #tpu.memory_space<vmem>>, vector<256x128xbf16>
    %cst_97 = arith.constant dense<0.000000e+00> : vector<8x128xf32>
    %134 = tpu.matmul %132, %133, %cst_97 {dimension_numbers = #tpu.dot_dimension_numbers<[1], [0], [0], [1], [0, 0, 1, 1], [], []>} : vector<8x256xbf16>, vector<256x128xbf16>, vector<8x128xf32> -> vector<8x128xf32>
    %c0_98 = arith.constant 0 : index
    %c0_99 = arith.constant 0 : index
    %135 = vector.load %arg12[%c0_98, %c0_99] : memref<1x128xf32, #tpu.memory_space<vmem>>, vector<1x128xf32>
    %136 = vector.broadcast %135 : vector<1x128xf32> to vector<8x128xf32>
    %137 = arith.addf %134, %136 : vector<8x128xf32>
    %cst_100 = arith.constant 0.000000e+00 : f32
    %138 = vector.broadcast %cst_100 : f32 to vector<8x128xf32>
    %139 = arith.maximumf %137, %138 : vector<8x128xf32>
    %140 = arith.truncf %139 : vector<8x128xf32> to vector<8x128xbf16>
    %c0_101 = arith.constant 0 : index
    %c0_102 = arith.constant 0 : index
    %141 = vector.load %arg13[%c0_101, %c0_102] : memref<128x4096xbf16, #tpu.memory_space<vmem>>, vector<128x4096xbf16>
    %cst_103 = arith.constant dense<0.000000e+00> : vector<8x4096xf32>
    %142 = tpu.matmul %140, %141, %cst_103 {dimension_numbers = #tpu.dot_dimension_numbers<[1], [0], [0], [1], [0, 0, 1, 1], [], []>} : vector<8x128xbf16>, vector<128x4096xbf16>, vector<8x4096xf32> -> vector<8x4096xf32>
    %c0_104 = arith.constant 0 : index
    %c0_105 = arith.constant 0 : index
    %143 = vector.load %arg14[%c0_104, %c0_105] : memref<1x4096xf32, #tpu.memory_space<vmem>>, vector<1x4096xf32>
    %144 = vector.broadcast %143 : vector<1x4096xf32> to vector<8x4096xf32>
    %145 = arith.addf %142, %144 : vector<8x4096xf32>
    %146 = arith.truncf %145 : vector<8x4096xf32> to vector<8x4096xbf16>
    %c0_106 = arith.constant 0 : index
    %c0_107 = arith.constant 0 : index
    %147 = vector.load %arg15[%c0_106, %c0_107] : memref<8x4096xbf16, #tpu.memory_space<vmem>>, vector<8x4096xbf16>
    tpu.vector_store %arg15[%c0_106, %c0_107], %146 {strides = array<i32>} : memref<8x4096xbf16, #tpu.memory_space<vmem>>, vector<8x4096xbf16>,
    return
  }
  func.func @transform_0(%arg0: i32) -> (i32, i32) {
    %c0_i32 = arith.constant 0 : i32
    %c0_i32_0 = arith.constant 0 : i32
    return %arg0, %c0_i32 : i32, i32
  }
  func.func @transform_1(%arg0: i32) -> (i32, i32, i32) {
    %c0_i32 = arith.constant 0 : i32
    %c0_i32_0 = arith.constant 0 : i32
    %c0_i32_1 = arith.constant 0 : i32
    %c0_i32_2 = arith.constant 0 : i32
    return %c0_i32, %c0_i32_0, %c0_i32_1 : i32, i32, i32
  }
  func.func @transform_2(%arg0: i32) -> (i32, i32, i32) {
    %c0_i32 = arith.constant 0 : i32
    %c0_i32_0 = arith.constant 0 : i32
    %c0_i32_1 = arith.constant 0 : i32
    %c0_i32_2 = arith.constant 0 : i32
    return %c0_i32, %c0_i32_0, %c0_i32_1 : i32, i32, i32
  }
  func.func @transform_3(%arg0: i32) -> (i32, i32, i32) {
    %c0_i32 = arith.constant 0 : i32
    %c0_i32_0 = arith.constant 0 : i32
    %c0_i32_1 = arith.constant 0 : i32
    %c0_i32_2 = arith.constant 0 : i32
    return %c0_i32, %c0_i32_0, %c0_i32_1 : i32, i32, i32
  }
  func.func @transform_4(%arg0: i32) -> (i32, i32) {
    %c0_i32 = arith.constant 0 : i32
    %c0_i32_0 = arith.constant 0 : i32
    %c0_i32_1 = arith.constant 0 : i32
    return %c0_i32, %c0_i32_0 : i32, i32
  }
  func.func @transform_5(%arg0: i32) -> (i32, i32) {
    %c0_i32 = arith.constant 0 : i32
    %c0_i32_0 = arith.constant 0 : i32
    %c0_i32_1 = arith.constant 0 : i32
    return %c0_i32, %c0_i32_0 : i32, i32
  }
  func.func @transform_6(%arg0: i32) -> (i32, i32, i32) {
    %c0_i32 = arith.constant 0 : i32
    %c0_i32_0 = arith.constant 0 : i32
    %c0_i32_1 = arith.constant 0 : i32
    %c0_i32_2 = arith.constant 0 : i32
    return %c0_i32, %c0_i32_0, %c0_i32_1 : i32, i32, i32
  }
  func.func @transform_7(%arg0: i32) -> (i32, i32, i32) {
    %c0_i32 = arith.constant 0 : i32
    %c0_i32_0 = arith.constant 0 : i32
    %c0_i32_1 = arith.constant 0 : i32
    %c0_i32_2 = arith.constant 0 : i32
    return %c0_i32, %c0_i32_0, %c0_i32_1 : i32, i32, i32
  }
  func.func @transform_8(%arg0: i32) -> (i32, i32, i32) {
    %c0_i32 = arith.constant 0 : i32
    %c0_i32_0 = arith.constant 0 : i32
    %c0_i32_1 = arith.constant 0 : i32
    %c0_i32_2 = arith.constant 0 : i32
    return %c0_i32, %c0_i32_0, %c0_i32_1 : i32, i32, i32
  }
  func.func @transform_9(%arg0: i32) -> (i32, i32, i32) {
    %c0_i32 = arith.constant 0 : i32
    %c0_i32_0 = arith.constant 0 : i32
    %c0_i32_1 = arith.constant 0 : i32
    %c0_i32_2 = arith.constant 0 : i32
    return %c0_i32, %c0_i32_0, %c0_i32_1 : i32, i32, i32
  }
  func.func @transform_10(%arg0: i32) -> (i32, i32) {
    %c0_i32 = arith.constant 0 : i32
    %c0_i32_0 = arith.constant 0 : i32
    %c0_i32_1 = arith.constant 0 : i32
    return %c0_i32, %c0_i32_0 : i32, i32
  }
  func.func @transform_11(%arg0: i32) -> (i32, i32) {
    %c0_i32 = arith.constant 0 : i32
    %c0_i32_0 = arith.constant 0 : i32
    %c0_i32_1 = arith.constant 0 : i32
    return %c0_i32, %c0_i32_0 : i32, i32
  }
  func.func @transform_12(%arg0: i32) -> (i32, i32) {
    %c0_i32 = arith.constant 0 : i32
    %c0_i32_0 = arith.constant 0 : i32
    %c0_i32_1 = arith.constant 0 : i32
    return %c0_i32, %c0_i32_0 : i32, i32
  }
  func.func @transform_13(%arg0: i32) -> (i32, i32) {
    %c0_i32 = arith.constant 0 : i32
    %c0_i32_0 = arith.constant 0 : i32
    %c0_i32_1 = arith.constant 0 : i32
    return %c0_i32, %c0_i32_0 : i32, i32
  }
  func.func @transform_14(%arg0: i32) -> (i32, i32) {
    %c0_i32 = arith.constant 0 : i32
    %c0_i32_0 = arith.constant 0 : i32
    return %arg0, %c0_i32 : i32, i32
  }
}

</mosaic_0001>

<bundles_post_ra>
// kernel: tpu_custom_call.1
= control target key start
LH: loop header
LB: loop body
LE: loop exit
PB: predicated region body
PF: predicated region fallthrough
CT: control target
= control target key end

     0   :  { %19 = vsyncpa [#allocation3], 0  ;;  %s7030_s0 = inlined_call_operand.hbm [shape: bf16[8,256], index: 0, kind: input, shape index: {}]   ;;  %s7031_s1 = inlined_call_operand.hbm [shape: bf16[5,256,256], index: 1, kind: input, shape index: {}]   ;;  %s7032_s2 = inlined_call_operand.hbm [shape: f32[5,1,256], index: 2, kind: input, shape index: {}]   ;;  %s7033_s3 = inlined_call_operand.vmem [shape: f32[5,1,256], index: 3, kind: input, shape index: {}]   ;;  %s7034_s4 = inlined_call_operand.hbm [shape: bf16[256,128], index: 4, kind: input, shape index: {}]   ;;  %s7035_s5 = inlined_call_operand.hbm [shape: bf16[128,256], index: 5, kind: input, shape index: {}]   ;;  %s7036_s6 = inlined_call_operand.hbm [shape: bf16[2,128,128], index: 6, kind: input, shape index: {}]   ;;  %s7037_s7 = inlined_call_operand.vmem [shape: f32[2,1,128], index: 7, kind: input, shape index: {}]   ;;  %s7038_s8 = inlined_call_operand.hbm [shape: bf16[2,128,128], index: 8, kind: input, shape index: {}]   ;;  %s7039_s9 = inlined_call_operand.vmem [shape: f32[2,1,128], index: 9, kind: input, shape index: {}]   ;;  %s7040_s10 = inlined_call_operand.hbm [shape: bf16[256,128], index: 10, kind: input, shape index: {}]   ;;  %s7041_s11 = inlined_call_operand.vmem [shape: f32[1,128], index: 11, kind: input, shape index: {}]   ;;  %s7042_s12 = inlined_call_operand.hbm [shape: bf16[128,4096], index: 12, kind: input, shape index: {}]   ;;  %s7043_s13 = inlined_call_operand.vmem [shape: f32[1,4096], index: 13, kind: input, shape index: {}]   ;;  %s7044_s14 = inlined_call_operand.hbm [shape: bf16[8,4096], index: 14, kind: output, shape index: {}]  }
   0x1   :  { %20 = vsyncpa [#allocation6], 0 }
   0x2   :  { %21 = vsyncpa [#allocation9], 0 }
   0x3   :  { %22 = vsyncpa [#allocation12], 0 }
   0x4   :  { %23 = vsyncpa [#allocation15], 0 }
   0x5   :  { %24 = vsyncpa [#allocation4], 0  ;;  %s6395_s29 = smov [#allocation5]   ;;  %s6163_s17 = scalar_lea.hbm %s7031_s1, 20480 }
   0x6   :  { %s40_s30 = sshll.u32 %s6395_s29, 4  ;;  %p6164_p0 = scmp.ne.s32.totalorder %s7031_s1, %s6163_s17  ;;  %s41_s30 = int_to_ptr.vmem [resolvable:$true] %s40_s30 }
   0x7   :  { %p6167_p1 = scmp.lt.u32.totalorder %s6163_s17, %s7031_s1 }
   0x9   :  { %p6169_p2 = pnand %p6167_p1, %p6164_p0 }
   0xb   :  { %6172 = shalt.err (!%p6169_p2)
}
   0xc   :  { %s6173_s22 = scalar_lea.vmem %s41_s30, 20480  ;;  %p6178_p4 = scmp.lt.s32.totalorder %s41_s30, %s41_s30 }
   0xd   :  { %p6174_p3 = scmp.ne.s32.totalorder %s41_s30, %s6173_s22  ;;  %p6179_p5 = scmp.lt.s32.totalorder %s6173_s22, %s6173_s22 }
   0xf   :  { %p6180_p6 = por %p6179_p5, %p6178_p4 }
  0x11   :  { %p6181_p7 = pnand %p6180_p6, %p6174_p3 }
  0x13   :  { %6184 = shalt.err (!%p6181_p7)
}
  0x14   :  { %s7045_s23 = smov 128   ;;  %s6397_s24 = smov 8  }
  0x15   :  { %46 = dma.hbm_to_vmem [thread:$0]  %s7031_s1, 20480, %s41_s30, [#allocation6], %s7045_s23, %s7045_s23, %s6397_s24  }
  0x16   :  { %s6398_s27 = smov [#allocation8]   ;;  %s6185_s16 = scalar_lea.hbm %s7034_s4, 2048 }
  0x17   :  { %s66_s28 = sshll.u32 %s6398_s27, 4  ;;  %p6186_p8 = scmp.ne.s32.totalorder %s7034_s4, %s6185_s16  ;;  %s67_s28 = int_to_ptr.vmem [resolvable:$true] %s66_s28 }
  0x18   :  { %p6189_p9 = scmp.lt.u32.totalorder %s6185_s16, %s7034_s4 }
  0x1a   :  { %p6191_p10 = pnand %p6189_p9, %p6186_p8 }
  0x1c   :  { %6194 = shalt.err (!%p6191_p10)
}
  0x1d   :  { %s6195_s21 = scalar_lea.vmem %s67_s28, 2048  ;;  %p6200_p12 = scmp.lt.s32.totalorder %s67_s28, %s67_s28 }
  0x1e   :  { %p6196_p11 = scmp.ne.s32.totalorder %s67_s28, %s6195_s21  ;;  %p6201_p13 = scmp.lt.s32.totalorder %s6195_s21, %s6195_s21 }
  0x20   :  { %p6202_p0 = por %p6201_p13, %p6200_p12 }
  0x22   :  { %p6203_p1 = pnand %p6202_p0, %p6196_p11 }
  0x24   :  { %6206 = shalt.err (!%p6203_p1)
}
  0x25   :  { %s6399_s1 = smov 64   ;;  %s6400_s30 = smov 4  }
  0x26   :  { %72 = dma.hbm_to_vmem [thread:$0]  %s7034_s4, 2048, %s67_s28, [#allocation9], %s6399_s1, %s6399_s1, %s6400_s30  }
  0x27   :  { %s6401_s26 = smov [#allocation11]   ;;  %s6402_s29 = smov [#allocation14]  }
  0x28   :  { %s90_s27 = sshll.u32 %s6401_s26, 4  ;;  %s118_s15 = sshll.u32 %s6402_s29, 4  ;;  %s91_s27 = int_to_ptr.vmem [resolvable:$true] %s90_s27  ;;  %s6520_s15 = int_to_ptr.vmem [resolvable:$true] %s118_s15 }
  0x29   :  { %s6207_s18 = scalar_lea.hbm %s7036_s6, 2048 }
  0x2a   :  { %p6208_p2 = scmp.ne.s32.totalorder %s7036_s6, %s6207_s18  ;;  %p6211_p3 = scmp.lt.u32.totalorder %s6207_s18, %s7036_s6 }
  0x2c   :  { %p6213_p4 = pnand %p6211_p3, %p6208_p2 }
  0x2e   :  { %6216 = shalt.err (!%p6213_p4)
}
  0x2f   :  { %s6217_s4 = scalar_lea.vmem %s91_s27, 2048  ;;  %p6222_p6 = scmp.lt.s32.totalorder %s91_s27, %s91_s27 }
  0x30   :  { %p6218_p5 = scmp.ne.s32.totalorder %s91_s27, %s6217_s4  ;;  %p6223_p7 = scmp.lt.s32.totalorder %s6217_s4, %s6217_s4 }
  0x32   :  { %p6224_p8 = por %p6223_p7, %p6222_p6 }
  0x34   :  { %p6225_p9 = pnand %p6224_p8, %p6218_p5 }
  0x36   :  { %6228 = shalt.err (!%p6225_p9)
}
  0x37   :  { %96 = dma.hbm_to_vmem [thread:$0]  %s7036_s6, 2048, %s91_s27, [#allocation12], %s6399_s1, %s6399_s1, %s6400_s30  }
  0x38   :  { %s6229_s23 = scalar_lea.hbm %s7040_s10, 2048 }
  0x39   :  { %p6230_p10 = scmp.ne.s32.totalorder %s7040_s10, %s6229_s23  ;;  %p6233_p11 = scmp.lt.u32.totalorder %s6229_s23, %s7040_s10 }
  0x3b   :  { %p6235_p12 = pnand %p6233_p11, %p6230_p10 }
  0x3d   :  { %6238 = shalt.err (!%p6235_p12)
}
  0x3e   :  { %s6239_s19 = scalar_lea.vmem %s6520_s15, 2048  ;;  %p6244_p0 = scmp.lt.s32.totalorder %s6520_s15, %s6520_s15 }
  0x3f   :  { %p6240_p13 = scmp.ne.s32.totalorder %s6520_s15, %s6239_s19  ;;  %p6245_p1 = scmp.lt.s32.totalorder %s6239_s19, %s6239_s19 }
  0x41   :  { %p6246_p2 = por %p6245_p1, %p6244_p0 }
  0x43   :  { %p6247_p3 = pnand %p6246_p2, %p6240_p13 }
  0x45   :  { %6250 = shalt.err (!%p6247_p3)
}
  0x46   :  { %124 = dma.hbm_to_vmem [thread:$0]  %s7040_s10, 2048, %s6520_s15, [#allocation15], %s6399_s1, %s6399_s1, %s6400_s30  }
  0x47   :  { %s6403_s20 = smov [#allocation2]   ;;  %s6404_s4 = smov [#allocation7]  }
  0x48   :  { %s31_s21 = sshll.u32 %s6403_s20, 4  ;;  %s52_s28 = sshll.u32 %s6404_s4, 4  ;;  %s32_s21 = int_to_ptr.vmem [resolvable:$true] %s31_s21  ;;  %s6557_s28 = int_to_ptr.vmem [resolvable:$true] %s52_s28 }
  0x49   :  { %s6251_s26 = scalar_lea.hbm %s7030_s0, 128 }
  0x4a   :  { %p6252_p4 = scmp.ne.s32.totalorder %s7030_s0, %s6251_s26  ;;  %p6255_p5 = scmp.lt.u32.totalorder %s6251_s26, %s7030_s0 }
  0x4c   :  { %p6257_p6 = pnand %p6255_p5, %p6252_p4 }
  0x4e   :  { %6260 = shalt.err (!%p6257_p6)
}
  0x4f   :  { %s6261_s10 = scalar_lea.vmem %s32_s21, 128  ;;  %p6266_p8 = scmp.lt.s32.totalorder %s32_s21, %s32_s21 }
  0x50   :  { %p6262_p7 = scmp.ne.s32.totalorder %s32_s21, %s6261_s10  ;;  %p6267_p9 = scmp.lt.s32.totalorder %s6261_s10, %s6261_s10 }
  0x52   :  { %p6268_p10 = por %p6267_p9, %p6266_p8 }
  0x54   :  { %p6269_p11 = pnand %p6268_p10, %p6262_p7 }
  0x56   :  { %6272 = shalt.err (!%p6269_p11)
}
  0x57   :  { %34 = dma.hbm_to_vmem [thread:$0]  %s7030_s0, 128, %s32_s21, [#allocation3]  }
  0x58   :  { %s6273_s27 = scalar_lea.hbm %s7032_s2, 160 }
  0x59   :  { %p6274_p12 = scmp.ne.s32.totalorder %s7032_s2, %s6273_s27  ;;  %p6277_p13 = scmp.lt.u32.totalorder %s6273_s27, %s7032_s2 }
  0x5b   :  { %p6279_p0 = pnand %p6277_p13, %p6274_p12 }
  0x5d   :  { %6282 = shalt.err (!%p6279_p0)
}
  0x5e   :  { %s6283_s26 = scalar_lea.vmem %s6557_s28, 160  ;;  %p6288_p2 = scmp.lt.s32.totalorder %s6557_s28, %s6557_s28 }
  0x5f   :  { %p6284_p1 = scmp.ne.s32.totalorder %s6557_s28, %s6283_s26  ;;  %p6289_p3 = scmp.lt.s32.totalorder %s6283_s26, %s6283_s26 }
  0x61   :  { %p6290_p4 = por %p6289_p3, %p6288_p2 }
  0x63   :  { %p6291_p5 = pnand %p6290_p4, %p6284_p1 }
  0x65   :  { %6294 = shalt.err (!%p6291_p5)
}
  0x66   :  { %s6405_s0 = smov 32   ;;  %s6406_s21 = smov 2  }
  0x67   :  { %58 = dma.hbm_to_vmem [thread:$0]  %s7032_s2, 160, %s6557_s28, [#allocation6], %s6405_s0, %s6405_s0, %s6406_s21  }
  0x68   :  { %s6407_s16 = smov [#allocation10]   ;;  %s6408_s10 = smov [#allocation13]  }
  0x69   :  { %s78_s17 = sshll.u32 %s6407_s16, 4  ;;  %s104_s15 = sshll.u32 %s6408_s10, 4  ;;  %s79_s17 = int_to_ptr.vmem [resolvable:$true] %s78_s17  ;;  %s6588_s15 = int_to_ptr.vmem [resolvable:$true] %s104_s15 }
  0x6a   :  { %s6295_s6 = scalar_lea.hbm %s7035_s5, 2048 }
  0x6b   :  { %p6296_p6 = scmp.ne.s32.totalorder %s7035_s5, %s6295_s6  ;;  %p6299_p7 = scmp.lt.u32.totalorder %s6295_s6, %s7035_s5 }
  0x6d   :  { %p6301_p8 = pnand %p6299_p7, %p6296_p6 }
  0x6f   :  { %6304 = shalt.err (!%p6301_p8)
}
  0x70   :  { %s6305_s2 = scalar_lea.vmem %s79_s17, 2048  ;;  %p6310_p10 = scmp.lt.s32.totalorder %s79_s17, %s79_s17 }
  0x71   :  { %p6306_p9 = scmp.ne.s32.totalorder %s79_s17, %s6305_s2  ;;  %p6311_p11 = scmp.lt.s32.totalorder %s6305_s2, %s6305_s2 }
  0x73   :  { %p6312_p12 = por %p6311_p11, %p6310_p10 }
  0x75   :  { %p6313_p13 = pnand %p6312_p12, %p6306_p9 }
  0x77   :  { %6316 = shalt.err (!%p6313_p13)
}
  0x78   :  { %s7047_s28 = smov 128   ;;  %s6317_s23 = scalar_lea.hbm %s7038_s8, 2048 }
  0x79   :  { %84 = dma.hbm_to_vmem [thread:$0]  %s7035_s5, 2048, %s79_s17, [#allocation9], %s7047_s28, %s7047_s28, %s6397_s24  }
  0x7a   :  { %p6318_p0 = scmp.ne.s32.totalorder %s7038_s8, %s6317_s23  ;;  %p6321_p1 = scmp.lt.u32.totalorder %s6317_s23, %s7038_s8 }
  0x7c   :  { %p6323_p2 = pnand %p6321_p1, %p6318_p0 }
  0x7e   :  { %6326 = shalt.err (!%p6323_p2)
}
  0x7f   :  { %s6327_s19 = scalar_lea.vmem %s6588_s15, 2048  ;;  %p6332_p4 = scmp.lt.s32.totalorder %s6588_s15, %s6588_s15 }
  0x80   :  { %p6328_p3 = scmp.ne.s32.totalorder %s6588_s15, %s6327_s19  ;;  %p6333_p5 = scmp.lt.s32.totalorder %s6327_s19, %s6327_s19 }
  0x82   :  { %p6334_p6 = por %p6333_p5, %p6332_p4 }
  0x84   :  { %p6335_p7 = pnand %p6334_p6, %p6328_p3 }
  0x86   :  { %6338 = shalt.err (!%p6335_p7)
}
  0x87   :  { %110 = dma.hbm_to_vmem [thread:$0]  %s7038_s8, 2048, %s6588_s15, [#allocation12], %s6399_s1, %s6399_s1, %s6400_s30  }
  0x88   :  { %s6409_s17 = smov [#allocation16]   ;;  %s6339_s4 = scalar_lea.hbm %s7042_s12, 32768 }
  0x89   :  { %s132_s6 = sshll.u32 %s6409_s17, 4  ;;  %p6340_p8 = scmp.ne.s32.totalorder %s7042_s12, %s6339_s4  ;;  %s133_s6 = int_to_ptr.vmem [resolvable:$true] %s132_s6 }
  0x8a   :  { %p6343_p9 = scmp.lt.u32.totalorder %s6339_s4, %s7042_s12 }
  0x8c   :  { %p6345_p10 = pnand %p6343_p9, %p6340_p8 }
  0x8e   :  { %6348 = shalt.err (!%p6345_p10)
}
  0x8f   :  { %s6349_s0 = scalar_lea.vmem %s133_s6, 32768  ;;  %p6354_p12 = scmp.lt.s32.totalorder %s133_s6, %s133_s6 }
  0x90   :  { %p6350_p11 = scmp.ne.s32.totalorder %s133_s6, %s6349_s0  ;;  %p6355_p13 = scmp.lt.s32.totalorder %s6349_s0, %s6349_s0 }
  0x92   :  { %p6356_p0 = por %p6355_p13, %p6354_p12 }
  0x94   :  { %p6357_p1 = pnand %p6356_p0, %p6350_p11 }
  0x96   :  { %6360 = shalt.err (!%p6357_p1)
}
  0x97   :  { %s6410_s8 = smov 2048  }
  0x98   :  { %138 = dma.hbm_to_vmem [thread:$0]  %s7042_s12, 32768, %s133_s6, [#allocation15], %s6410_s8, %s6410_s8, %s7047_s28  }
  0x99   :  { %6383 = dma.done.wait [#allocation3], 128  }
  0x9a   :  { %6384 = vsyncadd [#allocation3], 4294967168 }
  0x9b   :  { %6385 = dma.done.wait [#allocation6], 20640  }
  0x9c   :  { %6386 = vsyncadd [#allocation6], 4294946656 }
  0x9d   :  { %6387 = dma.done.wait [#allocation9], 4096  }
  0x9e   :  { %6388 = vsyncadd [#allocation9], 4294963200 }
  0x9f   :  { %6389 = dma.done.wait [#allocation12], 4096  }
  0xa0   :  { %6390 = vsyncadd [#allocation12], 4294963200 }
  0xa1   :  { %6391 = dma.done.wait [#allocation15], 34816  }
  0xa2   :  { %6392 = vsyncadd [#allocation15], 4294932480  ;;  %v5825_v0 = vld [vmem:[#allocation5 + $0x4] ss:$8 sps:$4 sm:$0xff]   ;;  %v5827_v1 = vld [vmem:[#allocation5] ss:$8 sps:$4 sm:$0xff]  }
  0xa3   :  { %369 = vmatprep.subr.bf16.mxu0 %v5825_v0  ;;  %v5828_v2 = vld [vmem:[#allocation5 + $0x14] ss:$8 sps:$4 sm:$0xff]   ;;  %v5830_v3 = vld [vmem:[#allocation5 + $0x10] ss:$8 sps:$4 sm:$0xff]   ;;  %v5831_v4 = vld [vmem:[#allocation5 + $0x24] ss:$8 sps:$4 sm:$0xff]  }
  0xa4   :  { %370 = vmatpush1.bf16.msra.mxu0 %v5827_v1  ;;  %v5833_v5 = vld [vmem:[#allocation5 + $0x20] ss:$8 sps:$4 sm:$0xff]   ;;  %v5834_v6 = vld [vmem:[#allocation5 + $0x34] ss:$8 sps:$4 sm:$0xff]   ;;  %v5836_v7 = vld [vmem:[#allocation5 + $0x30] ss:$8 sps:$4 sm:$0xff]  }
  0xa5   :  { %371 = vmatprep.subr.bf16.mxu0 %v5828_v2  ;;  %v5837_v8 = vld [vmem:[#allocation5 + $0x44] ss:$8 sps:$4 sm:$0xff]   ;;  %v5839_v9 = vld [vmem:[#allocation5 + $0x40] ss:$8 sps:$4 sm:$0xff]   ;;  %v5840_v10 = vld [vmem:[#allocation5 + $0x54] ss:$8 sps:$4 sm:$0xff]  }
  0xa6   :  { %v5842_v11 = vld [vmem:[#allocation5 + $0x50] ss:$8 sps:$4 sm:$0xff]   ;;  %v5843_v12 = vld [vmem:[#allocation5 + $0x64] ss:$8 sps:$4 sm:$0xff]   ;;  %v5845_v13 = vld [vmem:[#allocation5 + $0x60] ss:$8 sps:$4 sm:$0xff]  }
  0xa7   :  { %v6638_v14 = vld [vmem:[#allocation2] sm:$0xff]  ;;  %v5875_v16 = vld [vmem:[#allocation5 + $0x104] ss:$8 sps:$4 sm:$0xff]   ;;  %v5877_v17 = vld [vmem:[#allocation5 + $0x100] ss:$8 sps:$4 sm:$0xff]   ;;  %vm6412_vm0 = vmmov 0  }
  0xa8   :  { %372 = vmatpush1.bf16.msra.mxu0 %v5830_v3  ;;  %v5081_v15 = vcombine.high %v6638_v14, %v6638_v14  ;;  %v5878_v18 = vld [vmem:[#allocation5 + $0x114] ss:$8 sps:$4 sm:$0xff]   ;;  %635 = vmatprep.subr.bf16.mxu1 %v5875_v16  ;;  %v5848_v20 = vld [vmem:[#allocation5 + $0x70] ss:$8 sps:$4 sm:$0xff]   ;;  %v5881_v22 = vld [vmem:[#allocation5 + $0x124] ss:$8 sps:$4 sm:$0xff]   ;;  %v5080_v57 = vcombine.low %v6638_v14, %v6638_v14 }
  0xa9   :  { %373 = vmatprep.subr.bf16.mxu0 %v5831_v4  ;;  %v5846_v19 = vld [vmem:[#allocation5 + $0x74] ss:$8 sps:$4 sm:$0xff]   ;;  %636 = vmatpush1.bf16.msra.mxu1 %v5877_v17  ;;  %v5880_v21 = vld [vmem:[#allocation5 + $0x110] ss:$8 sps:$4 sm:$0xff]   ;;  %v5849_v23 = vld [vmem:[#allocation5 + $0x84] ss:$8 sps:$4 sm:$0xff]  }
  0xaa   :  { %401 = vmatprep.mubr.bf16.mxu0 %v5081_v15  ;;  %637 = vmatprep.subr.bf16.mxu1 %v5878_v18  ;;  %v5851_v24 = vld [vmem:[#allocation5 + $0x80] ss:$8 sps:$4 sm:$0xff]   ;;  %v5884_v26 = vld [vmem:[#allocation5 + $0x134] ss:$8 sps:$4 sm:$0xff]   ;;  %v5854_v28 = vld [vmem:[#allocation5 + $0x90] ss:$8 sps:$4 sm:$0xff]  }
  0xab   :  { %v5883_v25 = vld [vmem:[#allocation5 + $0x120] ss:$8 sps:$4 sm:$0xff]   ;;  %v5852_v27 = vld [vmem:[#allocation5 + $0x94] ss:$8 sps:$4 sm:$0xff]   ;;  %v5886_v29 = vld [vmem:[#allocation5 + $0x130] ss:$8 sps:$4 sm:$0xff]  }
  0xac   :  { %374 = vmatpush1.bf16.msra.mxu0 %v5833_v5  ;;  %v5887_v30 = vld [vmem:[#allocation5 + $0x144] ss:$8 sps:$4 sm:$0xff]   ;;  %v5857_v32 = vld [vmem:[#allocation5 + $0xa0] ss:$8 sps:$4 sm:$0xff]   ;;  %v5858_v33 = vld [vmem:[#allocation5 + $0xb4] ss:$8 sps:$4 sm:$0xff]  }
  0xad   :  { %375 = vmatprep.subr.bf16.mxu0 %v5834_v6  ;;  %638 = vmatpush1.bf16.msra.mxu1 %v5880_v21  ;;  %v5855_v31 = vld [vmem:[#allocation5 + $0xa4] ss:$8 sps:$4 sm:$0xff]   ;;  %v5889_v34 = vld [vmem:[#allocation5 + $0x140] ss:$8 sps:$4 sm:$0xff]   ;;  %v5890_v35 = vld [vmem:[#allocation5 + $0x154] ss:$8 sps:$4 sm:$0xff]  }
  0xae   :  { %639 = vmatprep.subr.bf16.mxu1 %v5881_v22  ;;  %v5892_v36 = vld [vmem:[#allocation5 + $0x150] ss:$8 sps:$4 sm:$0xff]   ;;  %v5893_v38 = vld [vmem:[#allocation5 + $0x164] ss:$8 sps:$4 sm:$0xff]   ;;  %v5895_v40 = vld [vmem:[#allocation5 + $0x160] ss:$8 sps:$4 sm:$0xff]  }
  0xaf   :  { %v5860_v37 = vld [vmem:[#allocation5 + $0xb0] ss:$8 sps:$4 sm:$0xff]   ;;  %v5861_v39 = vld [vmem:[#allocation5 + $0xc4] ss:$8 sps:$4 sm:$0xff]   ;;  %v5863_v41 = vld [vmem:[#allocation5 + $0xc0] ss:$8 sps:$4 sm:$0xff]  }
  0xb0   :  { %376 = vmatpush1.bf16.msra.mxu0 %v5836_v7  ;;  %v5896_v42 = vld [vmem:[#allocation5 + $0x174] ss:$8 sps:$4 sm:$0xff]   ;;  %v5898_v44 = vld [vmem:[#allocation5 + $0x170] ss:$8 sps:$4 sm:$0xff]   ;;  %v5899_v46 = vld [vmem:[#allocation5 + $0x184] ss:$8 sps:$4 sm:$0xff]  }
  0xb1   :  { %377 = vmatprep.subr.bf16.mxu0 %v5837_v8  ;;  %640 = vmatpush1.bf16.msra.mxu1 %v5883_v25  ;;  %v5864_v43 = vld [vmem:[#allocation5 + $0xd4] ss:$8 sps:$4 sm:$0xff]   ;;  %v5866_v45 = vld [vmem:[#allocation5 + $0xd0] ss:$8 sps:$4 sm:$0xff]   ;;  %v5867_v47 = vld [vmem:[#allocation5 + $0xe4] ss:$8 sps:$4 sm:$0xff]  }
  0xb2   :  { %641 = vmatprep.subr.bf16.mxu1 %v5884_v26  ;;  %v5901_v48 = vld [vmem:[#allocation5 + $0x180] ss:$8 sps:$4 sm:$0xff]   ;;  %v5902_v50 = vld [vmem:[#allocation5 + $0x194] ss:$8 sps:$4 sm:$0xff]   ;;  %v5904_v52 = vld [vmem:[#allocation5 + $0x190] ss:$8 sps:$4 sm:$0xff]  }
  0xb3   :  { %v5869_v49 = vld [vmem:[#allocation5 + $0xe0] ss:$8 sps:$4 sm:$0xff]   ;;  %v5870_v51 = vld [vmem:[#allocation5 + $0xf4] ss:$8 sps:$4 sm:$0xff]   ;;  %v5872_v53 = vld [vmem:[#allocation5 + $0xf0] ss:$8 sps:$4 sm:$0xff]  }
  0xb4   :  { %378 = vmatpush1.bf16.msra.mxu0 %v5839_v9  ;;  %v5905_v54 = vld [vmem:[#allocation5 + $0x1a4] ss:$8 sps:$4 sm:$0xff]   ;;  %v5907_v55 = vld [vmem:[#allocation5 + $0x1a0] ss:$8 sps:$4 sm:$0xff]   ;;  %v5908_v56 = vld [vmem:[#allocation5 + $0x1b4] ss:$8 sps:$4 sm:$0xff]  }
  0xb5   :  { %379 = vmatprep.subr.bf16.mxu0 %v5840_v10  ;;  %642 = vmatpush1.bf16.msra.mxu1 %v5886_v29  ;;  %v5910_v58 = vld [vmem:[#allocation5 + $0x1b0] ss:$8 sps:$4 sm:$0xff]   ;;  %v5911_v59 = vld [vmem:[#allocation5 + $0x1c4] ss:$8 sps:$4 sm:$0xff]   ;;  %v5913_v60 = vld [vmem:[#allocation5 + $0x1c0] ss:$8 sps:$4 sm:$0xff]  }
  0xb6   :  { %643 = vmatprep.subr.bf16.mxu1 %v5887_v30  ;;  %v5914_v61 = vld [vmem:[#allocation5 + $0x1d4] ss:$8 sps:$4 sm:$0xff]   ;;  %v5916_v62 = vld [vmem:[#allocation5 + $0x1d0] ss:$8 sps:$4 sm:$0xff]   ;;  %v5917_v63 = vld [vmem:[#allocation5 + $0x1e4] ss:$8 sps:$4 sm:$0xff]  }
  0xb7   :  { %v5919_v0 = vld [vmem:[#allocation5 + $0x1e0] ss:$8 sps:$4 sm:$0xff]   ;;  %v5920_v1 = vld [vmem:[#allocation5 + $0x1f4] ss:$8 sps:$4 sm:$0xff]   ;;  %v5922_v2 = vld [vmem:[#allocation5 + $0x1f0] ss:$8 sps:$4 sm:$0xff]  }
  0xb8   :  { %380 = vmatpush1.bf16.msra.mxu0 %v5842_v11  ;;  %v5923_v3 = vld [vmem:[#allocation5 + $0x200] ss:$8 sps:$4 sm:$0xff]   ;;  %v5925_v4 = vld [vmem:[#allocation5 + $0x204] ss:$8 sps:$4 sm:$0xff]   ;;  %v5928_v5 = vld [vmem:[#allocation5 + $0x214] ss:$8 sps:$4 sm:$0xff]  }
  0xb9   :  { %381 = vmatprep.subr.bf16.mxu0 %v5843_v12  ;;  %644 = vmatpush1.bf16.msra.mxu1 %v5889_v34  ;;  %v5926_v6 = vld [vmem:[#allocation5 + $0x210] ss:$8 sps:$4 sm:$0xff]   ;;  %v5931_v7 = vld [vmem:[#allocation5 + $0x224] ss:$8 sps:$4 sm:$0xff]   ;;  %v5929_v8 = vld [vmem:[#allocation5 + $0x220] ss:$8 sps:$4 sm:$0xff]  }
  0xba   :  { %645 = vmatprep.subr.bf16.mxu1 %v5890_v35  ;;  %v5934_v9 = vld [vmem:[#allocation5 + $0x234] ss:$8 sps:$4 sm:$0xff]   ;;  %v5932_v10 = vld [vmem:[#allocation5 + $0x230] ss:$8 sps:$4 sm:$0xff]   ;;  %v5937_v11 = vld [vmem:[#allocation5 + $0x244] ss:$8 sps:$4 sm:$0xff]  }
  0xbb   :  { %v5935_v12 = vld [vmem:[#allocation5 + $0x240] ss:$8 sps:$4 sm:$0xff]   ;;  %v5938_v14 = vld [vmem:[#allocation5 + $0x250] ss:$8 sps:$4 sm:$0xff]   ;;  %v5943_v15 = vld [vmem:[#allocation5 + $0x264] ss:$8 sps:$4 sm:$0xff]  }
  0xbc   :  { %382 = vmatpush1.bf16.msra.mxu0 %v5845_v13  ;;  %v5940_v13 = vld [vmem:[#allocation5 + $0x254] ss:$8 sps:$4 sm:$0xff]   ;;  %v5941_v16 = vld [vmem:[#allocation5 + $0x260] ss:$8 sps:$4 sm:$0xff]   ;;  %v5944_v18 = vld [vmem:[#allocation5 + $0x270] ss:$8 sps:$4 sm:$0xff]  }
  0xbd   :  { %383 = vmatprep.subr.bf16.mxu0 %v5846_v19  ;;  %646 = vmatpush1.bf16.msra.mxu1 %v5892_v36  ;;  %v5946_v17 = vld [vmem:[#allocation5 + $0x274] ss:$8 sps:$4 sm:$0xff]   ;;  %v5949_v19 = vld [vmem:[#allocation5 + $0x284] ss:$8 sps:$4 sm:$0xff]   ;;  %v5950_v22 = vld [vmem:[#allocation5 + $0x290] ss:$8 sps:$4 sm:$0xff]  }
  0xbe   :  { %647 = vmatprep.subr.bf16.mxu1 %v5893_v38  ;;  %v5952_v21 = vld [vmem:[#allocation5 + $0x294] ss:$8 sps:$4 sm:$0xff]   ;;  %v5956_v26 = vld [vmem:[#allocation5 + $0x2b0] ss:$8 sps:$4 sm:$0xff]   ;;  %v410_v34 = vld [vmem:[#allocation7] sm:$0x3] }
  0xbf   :  { %v5958_v25 = vld [vmem:[#allocation5 + $0x2b4] ss:$8 sps:$4 sm:$0xff]   ;;  %v5962_v30 = vld [vmem:[#allocation5 + $0x2d0] ss:$8 sps:$4 sm:$0xff]   ;;  %v424_v36 = vld [vmem:[%s7033_s3] sm:$0x3] }
  0xc0   :  { %384 = vmatpush1.bf16.msra.mxu0 %v5848_v20  ;;  %v5947_v20 = vld [vmem:[#allocation5 + $0x280] ss:$8 sps:$4 sm:$0xff]   ;;  %v5964_v29 = vld [vmem:[#allocation5 + $0x2d4] ss:$8 sps:$4 sm:$0xff]  }
  0xc1   :  { %385 = vmatprep.subr.bf16.mxu0 %v5849_v23  ;;  %648 = vmatpush1.bf16.msra.mxu1 %v5895_v40  ;;  %v5955_v23 = vld [vmem:[#allocation5 + $0x2a4] ss:$8 sps:$4 sm:$0xff]  }
  0xc2   :  { %649 = vmatprep.subr.bf16.mxu1 %v5896_v42 }
  0xc4   :  { %386 = vmatpush1.bf16.msra.mxu0 %v5851_v24  ;;  %v5953_v24 = vld [vmem:[#allocation5 + $0x2a0] ss:$8 sps:$4 sm:$0xff]  }
  0xc5   :  { %387 = vmatprep.subr.bf16.mxu0 %v5852_v27  ;;  %650 = vmatpush1.bf16.msra.mxu1 %v5898_v44  ;;  %v5961_v27 = vld [vmem:[#allocation5 + $0x2c4] ss:$8 sps:$4 sm:$0xff]  }
  0xc6   :  { %651 = vmatprep.subr.bf16.mxu1 %v5899_v46 }
  0xc8   :  { %388 = vmatpush1.bf16.msra.mxu0 %v5854_v28  ;;  %v5959_v28 = vld [vmem:[#allocation5 + $0x2c0] ss:$8 sps:$4 sm:$0xff]  }
  0xc9   :  { %389 = vmatprep.subr.bf16.mxu0 %v5855_v31  ;;  %652 = vmatpush1.bf16.msra.mxu1 %v5901_v48  ;;  %v412_v31 = vlaneseq }
  0xca   :  { %653 = vmatprep.subr.bf16.mxu1 %v5902_v50 }
  0xcc   :  { %390 = vmatpush1.bf16.msra.mxu0 %v5857_v32  ;;  %v6644_v32 = vshrl.u32 %v412_v31, 7 }
  0xcd   :  { %391 = vmatprep.subr.bf16.mxu0 %v5858_v33  ;;  %654 = vmatpush1.bf16.msra.mxu1 %v5904_v52 }
  0xce   :  { %655 = vmatprep.subr.bf16.mxu1 %v5905_v54  ;;  %v6647_v33 = vsub.s32 0, %v6644_v32  ;;  %v6650_v35 = vsub.s32 1, %v6644_v32  ;;  %v5965_v54 = vld [vmem:[#allocation5 + $0x2e0] ss:$8 sps:$4 sm:$0xff]  }
  0xd0   :  { %392 = vmatpush1.bf16.msra.mxu0 %v5860_v37  ;;  %v415_v37 = vrot.slane %v410_v34, %v6647_v33  ;;  %v419_v38 = vrot.slane %v410_v34, %v6650_v35 }
  0xd1   :  { %393 = vmatprep.subr.bf16.mxu0 %v5861_v39  ;;  %656 = vmatpush1.bf16.msra.mxu1 %v5907_v55  ;;  %v429_v39 = vrot.slane %v424_v36, %v6647_v33  ;;  %v5970_v55 = vld [vmem:[#allocation5 + $0x2f4] ss:$8 sps:$4 sm:$0xff]  }
  0xd2   :  { %657 = vmatprep.subr.bf16.mxu1 %v5908_v56  ;;  %v5968_v56 = vld [vmem:[#allocation5 + $0x2f0] ss:$8 sps:$4 sm:$0xff]  }
  0xd4   :  { %394 = vmatpush1.bf16.msra.mxu0 %v5863_v41  ;;  %v433_v41 = vrot.slane %v424_v36, %v6650_v35 }
  0xd5   :  { %395 = vmatprep.subr.bf16.mxu0 %v5864_v43  ;;  %658 = vmatpush1.bf16.msra.mxu1 %v5910_v58  ;;  %v6669_v58 = vld [vmem:[#allocation8] sm:$0xff]  }
  0xd6   :  { %659 = vmatprep.subr.bf16.mxu1 %v5911_v59  ;;  %v6671_v59 = vld [vmem:[#allocation8 + $0x48] sm:$0xff]  }
  0xd8   :  { %396 = vmatpush1.bf16.msra.mxu0 %v5866_v45 }
  0xd9   :  { %397 = vmatprep.subr.bf16.mxu0 %v5867_v47  ;;  %660 = vmatpush1.bf16.msra.mxu1 %v5913_v60  ;;  %v6675_v60 = vld [vmem:[#allocation8 + $0x8] sm:$0xff]  }
  0xda   :  { %661 = vmatprep.subr.bf16.mxu1 %v5914_v61  ;;  %v6678_v61 = vld [vmem:[#allocation8 + $0x50] sm:$0xff]  }
  0xdc   :  { %398 = vmatpush1.bf16.msra.mxu0 %v5869_v49 }
  0xdd   :  { %399 = vmatprep.subr.bf16.mxu0 %v5870_v51  ;;  %662 = vmatpush1.bf16.msra.mxu1 %v5916_v62  ;;  %v6681_v62 = vld [vmem:[#allocation8 + $0x10] sm:$0xff]  }
  0xde   :  { %663 = vmatprep.subr.bf16.mxu1 %v5917_v63  ;;  %v6684_v63 = vld [vmem:[#allocation8 + $0x58] sm:$0xff]  }
  0xe0   :  { %400 = vmatpush1.bf16.msra.mxu0 %v5872_v53  ;;  %v5967_v53 = vld [vmem:[#allocation5 + $0x2e4] ss:$8 sps:$4 sm:$0xff]  }
  0xe1   :  { %664 = vmatpush1.bf16.msra.mxu1 %v5919_v0  ;;  %903 = vmatprep.subr.bf16.mxu0 %v5925_v4  ;;  %v6687_v0 = vld [vmem:[#allocation8 + $0x18] sm:$0xff]   ;;  %v6699_v4 = vld [vmem:[#allocation8 + $0x28] sm:$0xff]  }
  0xe2   :  { %665 = vmatprep.subr.bf16.mxu1 %v5920_v1  ;;  %v6690_v1 = vld [vmem:[#allocation8 + $0x60] sm:$0xff]  }
  0xe3   :  { %402 = vmatmul.mubr.bf16.vlgmr.msra.gmra.mrb[0].mxu0 %v5080_v57  ;;  %v6667_v57 = vld [vmem:[#allocation8 + $0x40] sm:$0xff]  }
  0xe4   :  { %904 = vmatpush1.bf16.msra.mxu0 %v5923_v3  ;;  %v6696_v3 = vld [vmem:[#allocation8 + $0x68] sm:$0xff]  }
  0xe5   :  { %666 = vmatpush1.bf16.msra.mxu1 %v5922_v2  ;;  %905 = vmatprep.subr.bf16.mxu0 %v5928_v5  ;;  %v6693_v2 = vld [vmem:[#allocation8 + $0x20] sm:$0xff]   ;;  %v677_v5 = vld [vmem:[#allocation7 + $0x2] sm:$0x3] }
  0xe6   :  { %5623 = vmatprep.subr.bf16.mxu1 %v6667_v57 }
  0xe8   :  { %906 = vmatpush1.bf16.msra.mxu0 %v5926_v6  ;;  %v5146_v6 = vld [vmem:[%s7033_s3 + $0x2] sm:$0x3] }
  0xe9   :  { %907 = vmatprep.subr.bf16.mxu0 %v5931_v7  ;;  %v682_v7 = vrot.slane %v677_v5, %v6647_v33 }
  0xec   :  { %908 = vmatpush1.bf16.msra.mxu0 %v5929_v8  ;;  %v686_v8 = vrot.slane %v677_v5, %v6650_v35  ;;  %v5995_v5 = vld [vmem:[#allocation13] sm:$0xff]  }
  0xed   :  { %909 = vmatprep.subr.bf16.mxu0 %v5934_v9  ;;  %v697_v9 = vrot.slane %v5146_v6, %v6647_v33 }
  0xf0   :  { %910 = vmatpush1.bf16.msra.mxu0 %v5932_v10 }
  0xf1   :  { %911 = vmatprep.subr.bf16.mxu0 %v5937_v11  ;;  %v701_v11 = vrot.slane %v5146_v6, %v6650_v35  ;;  %v5996_v6 = vld [vmem:[#allocation13 + $0x8] sm:$0xff]  }
  0xf4   :  { %912 = vmatpush1.bf16.msra.mxu0 %v5935_v12 }
  0xf5   :  { %913 = vmatprep.subr.bf16.mxu0 %v5940_v13 }
  0xf8   :  { %914 = vmatpush1.bf16.msra.mxu0 %v5938_v14 }
  0xf9   :  { %915 = vmatprep.subr.bf16.mxu0 %v5943_v15 }
  0xfc   :  { %916 = vmatpush1.bf16.msra.mxu0 %v5941_v16 }
  0xfd   :  { %917 = vmatprep.subr.bf16.mxu0 %v5946_v17 }
 0x100   :  { %918 = vmatpush1.bf16.msra.mxu0 %v5944_v18 }
 0x101   :  { %919 = vmatprep.subr.bf16.mxu0 %v5949_v19 }
 0x104   :  { %920 = vmatpush1.bf16.msra.mxu0 %v5947_v20 }
 0x105   :  { %921 = vmatprep.subr.bf16.mxu0 %v5952_v21 }
 0x108   :  { %922 = vmatpush1.bf16.msra.mxu0 %v5950_v22 }
 0x109   :  { %923 = vmatprep.subr.bf16.mxu0 %v5955_v23  ;;  %v6710_v23 = vld [vmem:[#allocation8 + $0x70] sm:$0xff]  }
 0x10c   :  { %924 = vmatpush1.bf16.msra.mxu0 %v5953_v24  ;;  %v6712_v24 = vld [vmem:[#allocation8 + $0x30] sm:$0xff]  }
 0x10d   :  { %925 = vmatprep.subr.bf16.mxu0 %v5958_v25  ;;  %v6716_v25 = vld [vmem:[#allocation8 + $0x78] sm:$0xff]  }
 0x110   :  { %926 = vmatpush1.bf16.msra.mxu0 %v5956_v26  ;;  %v6718_v26 = vld [vmem:[#allocation8 + $0x38] sm:$0xff]  }
 0x111   :  { %927 = vmatprep.subr.bf16.mxu0 %v5961_v27  ;;  %v6411_v27 = vmov 0.0  }
 0x114   :  { %928 = vmatpush1.bf16.msra.mxu0 %v5959_v28  ;;  %v945_v28 = vld [vmem:[#allocation7 + $0x4] sm:$0x3] }
 0x115   :  { %929 = vmatprep.subr.bf16.mxu0 %v5964_v29  ;;  %v5179_v29 = vld [vmem:[%s7033_s3 + $0x4] sm:$0x3]  ;;  %v954_v31 = vrot.slane %v945_v28, %v6650_v35 }
 0x116   :  { %v965_v34 = vrot.slane %v5179_v29, %v6647_v33 }
 0x118   :  { %930 = vmatpush1.bf16.msra.mxu0 %v5962_v30  ;;  %v950_v30 = vrot.slane %v945_v28, %v6647_v33 }
 0x119   :  { %931 = vmatprep.subr.bf16.mxu0 %v5967_v53  ;;  %v5991_v53 = vld [vmem:[#allocation11 + $0x20] sm:$0xff]  }
 0x11c   :  { %932 = vmatpush1.bf16.msra.mxu0 %v5965_v54  ;;  %v5992_v54 = vld [vmem:[#allocation11 + $0x28] sm:$0xff]  }
 0x11d   :  { %933 = vmatprep.subr.bf16.mxu0 %v5970_v55  ;;  %v5993_v55 = vld [vmem:[#allocation11 + $0x30] sm:$0xff]  }
 0x120   :  { %934 = vmatpush1.bf16.msra.mxu0 %v5968_v56  ;;  %v5994_v56 = vld [vmem:[#allocation11 + $0x38] sm:$0xff]  }
 0x121   :  { %5745 = vmatprep.subr.bf16.mxu0 %v6411_v27 }
 0x1b6   :  { %v403_v40 = vpop.f32.mrb[0].mxu0 }
 0x1b7   :  { %v422_v42 = vmul.f32 %v415_v37, %v403_v40  ;;  %v405_v43 = vpop.f32.mrb[1].mxu0  ;;  %v969_v37 = vrot.slane %v5179_v29, %v6650_v35 }
 0x1b8   :  { %v423_v44 = vmul.f32 %v419_v38, %v405_v43  ;;  %v407_v45 = vpop.f32.mrb[2].mxu0 }
 0x1b9   :  { %v436_v46 = vadd.f32 %v429_v39, %v422_v42  ;;  %v408_v47 = vpop.f32.mrb[3].mxu0 }
 0x1ba   :  { %v437_v48 = vadd.f32 %v433_v41, %v423_v44 }
 0x1bb   :  { %v6659_v49 = vmax.f32 %v436_v46, 0.0  ;;  %v5987_v46 = vld [vmem:[#allocation11] sm:$0xff]  }
 0x1bc   :  { %v6661_v50 = vmax.f32 %v437_v48, 0.0  ;;  %v5988_v48 = vld [vmem:[#allocation11 + $0x8] sm:$0xff]  }
 0x1bd   :  { %v440_v52 = vpack.c.bf16 %v6659_v49, %v6659_v49 }
 0x1be   :  { %v441_v51 = vpack.c.bf16 %v6661_v50, %v6661_v50 }
 0x1c0   :  { %667 = vmatprep.mubr.bf16.mxu1 %v441_v51  ;;  %v5989_v51 = vld [vmem:[#allocation11 + $0x10] sm:$0xff]  }
 0x1c1   :  { %668 = vmatmul.mubr.bf16.vlgmr.msra.gmra.mrb[0].mxu1 %v440_v52  ;;  %v5990_v52 = vld [vmem:[#allocation11 + $0x18] sm:$0xff]  }
 0x1c2   :  { %5624 = vmatpush3.bf16.msra.mxu1 %v6669_v58 }
 0x1c3   :  { %5625 = vmatprep.subr.bf16.mxu1 %v6671_v59 }
 0x1c6   :  { %5626 = vmatpush3.bf16.msra.mxu1 %v6675_v60 }
 0x1c7   :  { %5627 = vmatprep.subr.bf16.mxu1 %v6678_v61 }
 0x1ca   :  { %5628 = vmatpush3.bf16.msra.mxu1 %v6681_v62 }
 0x1cb   :  { %5629 = vmatprep.subr.bf16.mxu1 %v6684_v63 }
 0x1ce   :  { %5630 = vmatpush3.bf16.msra.mxu1 %v6687_v0 }
 0x1cf   :  { %5631 = vmatprep.subr.bf16.mxu1 %v6690_v1 }
 0x1d2   :  { %5632 = vmatpush3.bf16.msra.mxu1 %v6693_v2 }
 0x1d3   :  { %5633 = vmatprep.subr.bf16.mxu1 %v6696_v3 }
 0x1d6   :  { %5634 = vmatpush3.bf16.msra.mxu1 %v6699_v4 }
 0x1d7   :  { %5635 = vmatprep.subr.bf16.mxu1 %v6710_v23 }
 0x1da   :  { %5636 = vmatpush3.bf16.msra.mxu1 %v6712_v24 }
 0x1db   :  { %5637 = vmatprep.subr.bf16.mxu1 %v6716_v25 }
 0x1de   :  { %5638 = vmatpush3.bf16.msra.mxu1 %v6718_v26 }
 0x1df   :  { %5725 = vmatprep.subr.bf16.mxu1 %v6411_v27 }
 0x294   :  { %v669_v10 = vpop.f32.mrb[0].mxu1 }
 0x295   :  { %v689_v12 = vmul.f32 %v682_v7, %v669_v10  ;;  %v671_v13 = vpop.f32.mrb[1].mxu1  ;;  %v5997_v7 = vld [vmem:[#allocation13 + $0x10] sm:$0xff]   ;;  %v6000_v10 = vld [vmem:[#allocation13 + $0x28] sm:$0xff]  }
 0x296   :  { %v690_v14 = vmul.f32 %v686_v8, %v671_v13  ;;  %v673_v15 = vpop.f32.mrb[2].mxu1  ;;  %v5998_v8 = vld [vmem:[#allocation13 + $0x18] sm:$0xff]  }
 0x297   :  { %v704_v16 = vadd.f32 %v697_v9, %v689_v12  ;;  %v674_v17 = vpop.f32.mrb[3].mxu1  ;;  %v5999_v9 = vld [vmem:[#allocation13 + $0x20] sm:$0xff]  }
 0x298   :  { %v705_v18 = vadd.f32 %v701_v11, %v690_v14  ;;  %v6001_v17 = vld [vmem:[#allocation13 + $0x30] sm:$0xff]  }
 0x299   :  { %v706_v19 = vmax.f32 %v704_v16, 0.0 }
 0x29a   :  { %v707_v20 = vmax.f32 %v705_v18, 0.0  ;;  %v6002_v18 = vld [vmem:[#allocation13 + $0x38] sm:$0xff]  }
 0x29b   :  { %v708_v22 = vpack.c.bf16 %v706_v19, %v706_v19  ;;  %v6757_v19 = vld [vmem:[#allocation10] ss:$8 sps:$4 sm:$0xff]  }
 0x29c   :  { %v709_v21 = vpack.c.bf16 %v707_v20, %v707_v20  ;;  %v6759_v20 = vld [vmem:[#allocation10 + $0x4] ss:$8 sps:$4 sm:$0xff]  }
 0x29e   :  { %935 = vmatprep.mubr.bf16.mxu0 %v709_v21  ;;  %v5196_v21 = vld [vmem:[%s7037_s7] ss:$0 sm:$0xff] }
 0x29f   :  { %936 = vmatmul.mubr.bf16.vlgmr.msra.gmra.mrb[4].mxu0 %v708_v22 }
 0x2a0   :  { %5761 = vmatprep.mubr.msk.bf16.mxu0 %vm6412_vm0, %v6411_v27  ;;  %5746 = vmatpush3.bf16.msra.mxu0 %v5995_v5  ;;  %v6029_v5 = vld [vmem:[#allocation5 + $0x304] ss:$8 sps:$4 sm:$0xff]  }
 0x2a1   :  { %5747 = vmatprep.subr.bf16.mxu0 %v6411_v27 }
 0x2a4   :  { %5748 = vmatpush3.bf16.msra.mxu0 %v5996_v6  ;;  %v6032_v6 = vld [vmem:[#allocation5 + $0x314] ss:$8 sps:$4 sm:$0xff]  }
 0x2a5   :  { %5749 = vmatprep.subr.bf16.mxu0 %v6411_v27 }
 0x2a8   :  { %5750 = vmatpush3.bf16.msra.mxu0 %v5997_v7  ;;  %v6030_v7 = vld [vmem:[#allocation5 + $0x310] ss:$8 sps:$4 sm:$0xff]  }
 0x2a9   :  { %5751 = vmatprep.subr.bf16.mxu0 %v6411_v27 }
 0x2ac   :  { %5752 = vmatpush3.bf16.msra.mxu0 %v5998_v8  ;;  %v6035_v8 = vld [vmem:[#allocation5 + $0x324] ss:$8 sps:$4 sm:$0xff]  }
 0x2ad   :  { %5753 = vmatprep.subr.bf16.mxu0 %v6411_v27 }
 0x2b0   :  { %5754 = vmatpush3.bf16.msra.mxu0 %v5999_v9  ;;  %v6033_v9 = vld [vmem:[#allocation5 + $0x320] ss:$8 sps:$4 sm:$0xff]  }
 0x2b1   :  { %5755 = vmatprep.subr.bf16.mxu0 %v6411_v27 }
 0x2b4   :  { %5756 = vmatpush3.bf16.msra.mxu0 %v6000_v10  ;;  %v6038_v10 = vld [vmem:[#allocation5 + $0x334] ss:$8 sps:$4 sm:$0xff]  }
 0x2b5   :  { %5757 = vmatprep.subr.bf16.mxu0 %v6411_v27 }
 0x2b8   :  { %5758 = vmatpush3.bf16.msra.mxu0 %v6001_v17  ;;  %v6045_v17 = vld [vmem:[#allocation5 + $0x360] ss:$8 sps:$4 sm:$0xff]  }
 0x2b9   :  { %5759 = vmatprep.subr.bf16.mxu0 %v6411_v27 }
 0x2bc   :  { %5760 = vmatpush3.bf16.msra.mxu0 %v6002_v18  ;;  %v6050_v18 = vld [vmem:[#allocation5 + $0x374] ss:$8 sps:$4 sm:$0xff]  }
 0x2bd   :  { %1714 = vmatprep.subr.bf16.mxu0 %v6029_v5  ;;  %v6065_v5 = vld [vmem:[#allocation5 + $0x3c4] ss:$8 sps:$4 sm:$0xff]  }
 0x372   :  { %v937_v36 = vpop.f32.mrb[4].mxu0 }
 0x373   :  { %v957_v38 = vmul.f32 %v950_v30, %v937_v36  ;;  %v939_v39 = vpop.f32.mrb[5].mxu0 }
 0x374   :  { %v958_v40 = vmul.f32 %v954_v31, %v939_v39  ;;  %v941_v41 = vpop.f32.mrb[6].mxu0  ;;  %v6772_v39 = vld [vmem:[#allocation10 + $0x24] ss:$8 sps:$4 sm:$0xff]  }
 0x375   :  { %v6731_v42 = vadd.f32 %v965_v34, %v957_v38  ;;  %v942_v43 = vpop.f32.mrb[7].mxu0  ;;  %v6768_v38 = vld [vmem:[#allocation10 + $0x10] ss:$8 sps:$4 sm:$0xff]   ;;  %v6778_v41 = vld [vmem:[#allocation10 + $0x34] ss:$8 sps:$4 sm:$0xff]  }
 0x376   :  { %v6733_v44 = vadd.f32 %v969_v37, %v958_v40  ;;  %v6766_v37 = vld [vmem:[#allocation10 + $0x14] ss:$8 sps:$4 sm:$0xff]   ;;  %v6774_v40 = vld [vmem:[#allocation10 + $0x20] ss:$8 sps:$4 sm:$0xff]   ;;  %v6780_v43 = vld [vmem:[#allocation10 + $0x30] ss:$8 sps:$4 sm:$0xff]  }
 0x377   :  { %v974_v47 = vpack.c.bf16 %v6731_v42, %v6731_v42 }
 0x378   :  { %v975_v45 = vpack.c.bf16 %v6733_v44, %v6733_v44 }
 0x37a   :  { %1136 = vmatprep.mubr.bf16.mxu1 %v975_v45  ;;  %v6784_v45 = vld [vmem:[#allocation10 + $0x44] ss:$8 sps:$4 sm:$0xff]  }
 0x37b   :  { %1137 = vmatmul.mubr.bf16.vlgmr.msra.gmra.mrb[4].mxu1 %v974_v47  ;;  %v6790_v47 = vld [vmem:[#allocation10 + $0x54] ss:$8 sps:$4 sm:$0xff]  }
 0x37c   :  { %5726 = vmatpush3.bf16.msra.mxu1 %v5987_v46  ;;  %5741 = vmatprep.mubr.msk.bf16.mxu1 %vm6412_vm0, %v6411_v27  ;;  %v6786_v46 = vld [vmem:[#allocation10 + $0x40] ss:$8 sps:$4 sm:$0xff]  }
 0x37d   :  { %5727 = vmatprep.subr.bf16.mxu1 %v6411_v27 }
 0x380   :  { %5728 = vmatpush3.bf16.msra.mxu1 %v5988_v48  ;;  %v6792_v48 = vld [vmem:[#allocation10 + $0x50] ss:$8 sps:$4 sm:$0xff]  }
 0x381   :  { %5729 = vmatprep.subr.bf16.mxu1 %v6411_v27 }
 0x384   :  { %5730 = vmatpush3.bf16.msra.mxu1 %v5989_v51  ;;  %v6794_v51 = vld [vmem:[#allocation10 + $0x64] ss:$8 sps:$4 sm:$0xff]  }
 0x385   :  { %5731 = vmatprep.subr.bf16.mxu1 %v6411_v27 }
 0x388   :  { %5732 = vmatpush3.bf16.msra.mxu1 %v5990_v52  ;;  %v6798_v52 = vld [vmem:[#allocation10 + $0x60] ss:$8 sps:$4 sm:$0xff]  }
 0x389   :  { %5733 = vmatprep.subr.bf16.mxu1 %v6411_v27 }
 0x38c   :  { %5734 = vmatpush3.bf16.msra.mxu1 %v5991_v53  ;;  %v6413_v53 = vmov 0  }
 0x38d   :  { %5735 = vmatprep.subr.bf16.mxu1 %v6411_v27 }
 0x390   :  { %5736 = vmatpush3.bf16.msra.mxu1 %v5992_v54  ;;  %v6802_v54 = vld [vmem:[#allocation10 + $0x74] ss:$8 sps:$4 sm:$0xff]  }
 0x391   :  { %5737 = vmatprep.subr.bf16.mxu1 %v6411_v27 }
 0x394   :  { %5738 = vmatpush3.bf16.msra.mxu1 %v5993_v55  ;;  %v6805_v55 = vld [vmem:[#allocation10 + $0x70] ss:$8 sps:$4 sm:$0xff]  }
 0x395   :  { %5739 = vmatprep.subr.bf16.mxu1 %v6411_v27 }
 0x398   :  { %5740 = vmatpush3.bf16.msra.mxu1 %v5994_v56  ;;  %v6027_v56 = vld [vmem:[#allocation5 + $0x300] ss:$8 sps:$4 sm:$0xff]  }
 0x399   :  { %1472 = vmatprep.subr.bf16.mxu1 %v6759_v20 }
 0x44e   :  { %v5639_v11 = vpop.f32.mrb[4].mxu1 }
 0x44f   :  { %v5640_v12 = vpop.f32.mrb[5].mxu1 }
 0x450   :  { %v5641_v13 = vadd.f32 %v5640_v12, %v5639_v11  ;;  %v5642_v14 = vpop.f32.mrb[6].mxu1  ;;  %v6036_v11 = vld [vmem:[#allocation5 + $0x330] ss:$8 sps:$4 sm:$0xff]   ;;  %v6041_v12 = vld [vmem:[#allocation5 + $0x344] ss:$8 sps:$4 sm:$0xff]  }
 0x451   :  { %v5643_v15 = vpop.f32.mrb[7].mxu1  ;;  %v6044_v14 = vld [vmem:[#allocation5 + $0x354] ss:$8 sps:$4 sm:$0xff]  }
 0x452   :  { %v1144_v16 = vpack.c.bf16 %v5641_v13, %v5641_v13  ;;  %v6039_v13 = vld [vmem:[#allocation5 + $0x340] ss:$8 sps:$4 sm:$0xff]   ;;  %v6042_v15 = vld [vmem:[#allocation5 + $0x350] ss:$8 sps:$4 sm:$0xff]  }
 0x454   :  { %5742 = vmatmul.mubr.bf16.vlgmr.msra.gmra.mrb[8].mxu1 %v1144_v16  ;;  %v6047_v16 = vld [vmem:[#allocation5 + $0x364] ss:$8 sps:$4 sm:$0xff]  }
 0x455   :  { %1473 = vmatpush1.bf16.msra.mxu1 %v6757_v19  ;;  %1504 = vmatprep.mubr.bf16.mxu1 %v6413_v53 }
 0x456   :  { %1474 = vmatprep.subr.bf16.mxu1 %v6766_v37 }
 0x459   :  { %1475 = vmatpush1.bf16.msra.mxu1 %v6768_v38 }
 0x45a   :  { %1476 = vmatprep.subr.bf16.mxu1 %v6772_v39 }
 0x45d   :  { %1477 = vmatpush1.bf16.msra.mxu1 %v6774_v40 }
 0x45e   :  { %1478 = vmatprep.subr.bf16.mxu1 %v6778_v41 }
 0x461   :  { %1479 = vmatpush1.bf16.msra.mxu1 %v6780_v43 }
 0x462   :  { %1480 = vmatprep.subr.bf16.mxu1 %v6784_v45 }
 0x465   :  { %1481 = vmatpush1.bf16.msra.mxu1 %v6786_v46 }
 0x466   :  { %1482 = vmatprep.subr.bf16.mxu1 %v6790_v47 }
 0x469   :  { %1483 = vmatpush1.bf16.msra.mxu1 %v6792_v48 }
 0x46a   :  { %1484 = vmatprep.subr.bf16.mxu1 %v6794_v51 }
 0x46d   :  { %1485 = vmatpush1.bf16.msra.mxu1 %v6798_v52 }
 0x46e   :  { %1486 = vmatprep.subr.bf16.mxu1 %v6802_v54 }
 0x471   :  { %1487 = vmatpush1.bf16.msra.mxu1 %v6805_v55 }
 0x527   :  { %v1250_v22 = vpop.f32.mrb[8].mxu1 }
 0x528   :  { %v1251_v28 = vadd.f32 %v5196_v21, %v1250_v22  ;;  %v5743_v29 = vpop.f32.mrb[9].mxu1  ;;  %v6048_v21 = vld [vmem:[#allocation5 + $0x370] ss:$8 sps:$4 sm:$0xff]   ;;  %v6053_v22 = vld [vmem:[#allocation5 + $0x384] ss:$8 sps:$4 sm:$0xff]  }
 0x529   :  { %v1253_v30 = vpop.f32.mrb[10].mxu1  ;;  %v6056_v29 = vld [vmem:[#allocation5 + $0x394] ss:$8 sps:$4 sm:$0xff]  }
 0x52a   :  { %v1256_v31 = vmax.f32 %v1251_v28, 0.0  ;;  %v5744_v34 = vpop.f32.mrb[11].mxu1  ;;  %v6051_v28 = vld [vmem:[#allocation5 + $0x380] ss:$8 sps:$4 sm:$0xff]   ;;  %v6054_v30 = vld [vmem:[#allocation5 + $0x390] ss:$8 sps:$4 sm:$0xff]  }
 0x52b   :  { %v6057_v34 = vld [vmem:[#allocation5 + $0x3a0] ss:$8 sps:$4 sm:$0xff]  }
 0x52c   :  { %v1257_v36 = vpack.c.bf16 %v1256_v31, %v1256_v31  ;;  %v6059_v31 = vld [vmem:[#allocation5 + $0x3a4] ss:$8 sps:$4 sm:$0xff]  }
 0x52e   :  { %5762 = vmatmul.mubr.bf16.vlgmr.msra.gmra.mrb[8].mxu0 %v1257_v36  ;;  %v6062_v36 = vld [vmem:[#allocation5 + $0x3b4] ss:$8 sps:$4 sm:$0xff]  }
 0x52f   :  { %1715 = vmatpush1.bf16.msra.mxu0 %v6027_v56  ;;  %v6060_v56 = vld [vmem:[#allocation5 + $0x3b0] ss:$8 sps:$4 sm:$0xff]  }
 0x530   :  { %1716 = vmatprep.subr.bf16.mxu0 %v6032_v6  ;;  %v6063_v6 = vld [vmem:[#allocation5 + $0x3c0] ss:$8 sps:$4 sm:$0xff]  }
 0x533   :  { %1717 = vmatpush1.bf16.msra.mxu0 %v6030_v7  ;;  %v6068_v7 = vld [vmem:[#allocation5 + $0x3d4] ss:$8 sps:$4 sm:$0xff]  }
 0x534   :  { %1718 = vmatprep.subr.bf16.mxu0 %v6035_v8  ;;  %v6066_v8 = vld [vmem:[#allocation5 + $0x3d0] ss:$8 sps:$4 sm:$0xff]  }
 0x537   :  { %1719 = vmatpush1.bf16.msra.mxu0 %v6033_v9  ;;  %v5205_v9 = vld [vmem:[%s7039_s9] ss:$0 sm:$0xff] }
 0x538   :  { %1720 = vmatprep.subr.bf16.mxu0 %v6038_v10 }
 0x53b   :  { %1721 = vmatpush1.bf16.msra.mxu0 %v6036_v11 }
 0x53c   :  { %1722 = vmatprep.subr.bf16.mxu0 %v6041_v12 }
 0x53f   :  { %1723 = vmatpush1.bf16.msra.mxu0 %v6039_v13 }
 0x540   :  { %1724 = vmatprep.subr.bf16.mxu0 %v6044_v14 }
 0x543   :  { %1725 = vmatpush1.bf16.msra.mxu0 %v6042_v15 }
 0x544   :  { %1726 = vmatprep.subr.bf16.mxu0 %v6047_v16 }
 0x547   :  { %1727 = vmatpush1.bf16.msra.mxu0 %v6045_v17 }
 0x548   :  { %1728 = vmatprep.subr.bf16.mxu0 %v6050_v18 }
 0x54b   :  { %1729 = vmatpush1.bf16.msra.mxu0 %v6048_v21 }
 0x54c   :  { %1730 = vmatprep.subr.bf16.mxu0 %v6053_v22  ;;  %v6071_v22 = vld [vmem:[#allocation5 + $0x3e4] ss:$8 sps:$4 sm:$0xff]  }
 0x54f   :  { %1731 = vmatpush1.bf16.msra.mxu0 %v6051_v28  ;;  %v6069_v28 = vld [vmem:[#allocation5 + $0x3e0] ss:$8 sps:$4 sm:$0xff]  }
 0x550   :  { %1732 = vmatprep.subr.bf16.mxu0 %v6056_v29  ;;  %v6074_v29 = vld [vmem:[#allocation5 + $0x3f4] ss:$8 sps:$4 sm:$0xff]  }
 0x553   :  { %1733 = vmatpush1.bf16.msra.mxu0 %v6054_v30  ;;  %v6072_v30 = vld [vmem:[#allocation5 + $0x3f0] ss:$8 sps:$4 sm:$0xff]  }
 0x554   :  { %1734 = vmatprep.subr.bf16.mxu0 %v6059_v31  ;;  %v6075_v31 = vld [vmem:[#allocation5 + $0x400] ss:$8 sps:$4 sm:$0xff]  }
 0x557   :  { %1735 = vmatpush1.bf16.msra.mxu0 %v6057_v34  ;;  %v6077_v34 = vld [vmem:[#allocation5 + $0x404] ss:$8 sps:$4 sm:$0xff]  }
 0x558   :  { %1736 = vmatprep.subr.bf16.mxu0 %v6062_v36  ;;  %v6080_v36 = vld [vmem:[#allocation5 + $0x414] ss:$8 sps:$4 sm:$0xff]   ;;  %1982 = vmatprep.subr.bf16.mxu1 %v6077_v34  ;;  %v6111_v34 = vld [vmem:[#allocation5 + $0x4c0] ss:$8 sps:$4 sm:$0xff]  }
 0x55b   :  { %1737 = vmatpush1.bf16.msra.mxu0 %v6060_v56  ;;  %v6078_v56 = vld [vmem:[#allocation5 + $0x410] ss:$8 sps:$4 sm:$0xff]  }
 0x55c   :  { %1738 = vmatprep.subr.bf16.mxu0 %v6065_v5  ;;  %v6083_v5 = vld [vmem:[#allocation5 + $0x424] ss:$8 sps:$4 sm:$0xff]  }
 0x55f   :  { %1739 = vmatpush1.bf16.msra.mxu0 %v6063_v6  ;;  %v6081_v6 = vld [vmem:[#allocation5 + $0x420] ss:$8 sps:$4 sm:$0xff]  }
 0x560   :  { %1740 = vmatprep.subr.bf16.mxu0 %v6068_v7  ;;  %v6086_v7 = vld [vmem:[#allocation5 + $0x434] ss:$8 sps:$4 sm:$0xff]  }
 0x563   :  { %1741 = vmatpush1.bf16.msra.mxu0 %v6066_v8  ;;  %v6084_v8 = vld [vmem:[#allocation5 + $0x430] ss:$8 sps:$4 sm:$0xff]  }
 0x564   :  { %1742 = vmatprep.subr.bf16.mxu0 %v6071_v22  ;;  %v6107_v22 = vld [vmem:[#allocation5 + $0x4a4] ss:$8 sps:$4 sm:$0xff]  }
 0x567   :  { %1743 = vmatpush1.bf16.msra.mxu0 %v6069_v28  ;;  %v6105_v28 = vld [vmem:[#allocation5 + $0x4a0] ss:$8 sps:$4 sm:$0xff]  }
 0x568   :  { %1744 = vmatprep.subr.bf16.mxu0 %v6074_v29  ;;  %v6110_v29 = vld [vmem:[#allocation5 + $0x4b4] ss:$8 sps:$4 sm:$0xff]  }
 0x56b   :  { %1745 = vmatpush1.bf16.msra.mxu0 %v6072_v30  ;;  %v6108_v30 = vld [vmem:[#allocation5 + $0x4b0] ss:$8 sps:$4 sm:$0xff]  }
 0x56c   :  { %5663 = vmatprep.subr.bf16.mxu0 %v6667_v57  ;;  %v6092_v57 = vld [vmem:[#allocation5 + $0x454] ss:$8 sps:$4 sm:$0xff]  }
 0x601   :  { %v1363_v10 = vpop.f32.mrb[8].mxu0 }
 0x602   :  { %v1364_v11 = vadd.f32 %v5205_v9, %v1363_v10  ;;  %v5763_v12 = vpop.f32.mrb[9].mxu0  ;;  %v6089_v9 = vld [vmem:[#allocation5 + $0x444] ss:$8 sps:$4 sm:$0xff]   ;;  %v6087_v10 = vld [vmem:[#allocation5 + $0x440] ss:$8 sps:$4 sm:$0xff]  }
 0x603   :  { %v1366_v13 = vpop.f32.mrb[10].mxu0  ;;  %v6095_v12 = vld [vmem:[#allocation5 + $0x464] ss:$8 sps:$4 sm:$0xff]  }
 0x604   :  { %v5214_v14 = vmul.f32 -1.442695, %v1364_v11  ;;  %v5764_v15 = vpop.f32.mrb[11].mxu0  ;;  %v6090_v11 = vld [vmem:[#allocation5 + $0x450] ss:$8 sps:$4 sm:$0xff]  }
 0x605   :  { %v6093_v13 = vld [vmem:[#allocation5 + $0x460] ss:$8 sps:$4 sm:$0xff]   ;;  %v6096_v15 = vld [vmem:[#allocation5 + $0x470] ss:$8 sps:$4 sm:$0xff]  }
 0x606   :  { %6155 = vpow2.f32 %v5214_v14  ;;  %v6098_v14 = vld [vmem:[#allocation5 + $0x474] ss:$8 sps:$4 sm:$0xff]  }
 0x610   :  { %v6156_v16 = vpop.eup %6155 }
 0x611   :  { %v1372_v17 = vadd.f32 1.0, %v6156_v16  ;;  %v6101_v16 = vld [vmem:[#allocation5 + $0x484] ss:$8 sps:$4 sm:$0xff]  }
 0x613   :  { %6157 = vrcp.f32 %v1372_v17  ;;  %v6099_v17 = vld [vmem:[#allocation5 + $0x480] ss:$8 sps:$4 sm:$0xff]  }
 0x61d   :  { %v6158_v18 = vpop.eup %6157 }
 0x61e   :  { %v1375_v21 = vpack.c.bf16 %v6158_v18, %v6158_v18  ;;  %v6104_v18 = vld [vmem:[#allocation5 + $0x494] ss:$8 sps:$4 sm:$0xff]  }
 0x620   :  { %1505 = vmatmul.mubr.bf16.vlgmr.msra.gmra.mrb[12].mxu1 %v1375_v21  ;;  %v6102_v21 = vld [vmem:[#allocation5 + $0x490] ss:$8 sps:$4 sm:$0xff]  }
 0x621   :  { %1983 = vmatpush1.bf16.msra.mxu1 %v6075_v31  ;;  %v6113_v31 = vld [vmem:[#allocation5 + $0x4c4] ss:$8 sps:$4 sm:$0xff]  }
 0x622   :  { %1984 = vmatprep.subr.bf16.mxu1 %v6080_v36  ;;  %v6116_v36 = vld [vmem:[#allocation5 + $0x4d4] ss:$8 sps:$4 sm:$0xff]  }
 0x625   :  { %1985 = vmatpush1.bf16.msra.mxu1 %v6078_v56  ;;  %v6114_v56 = vld [vmem:[#allocation5 + $0x4d0] ss:$8 sps:$4 sm:$0xff]  }
 0x626   :  { %1986 = vmatprep.subr.bf16.mxu1 %v6083_v5 }
 0x629   :  { %1987 = vmatpush1.bf16.msra.mxu1 %v6081_v6 }
 0x62a   :  { %1988 = vmatprep.subr.bf16.mxu1 %v6086_v7 }
 0x62d   :  { %1989 = vmatpush1.bf16.msra.mxu1 %v6084_v8 }
 0x62e   :  { %1990 = vmatprep.subr.bf16.mxu1 %v6089_v9 }
 0x631   :  { %1991 = vmatpush1.bf16.msra.mxu1 %v6087_v10 }
 0x632   :  { %1992 = vmatprep.subr.bf16.mxu1 %v6092_v57 }
 0x635   :  { %1993 = vmatpush1.bf16.msra.mxu1 %v6090_v11 }
 0x636   :  { %1994 = vmatprep.subr.bf16.mxu1 %v6095_v12 }
 0x639   :  { %1995 = vmatpush1.bf16.msra.mxu1 %v6093_v13 }
 0x63a   :  { %1996 = vmatprep.subr.bf16.mxu1 %v6098_v14 }
 0x63d   :  { %1997 = vmatpush1.bf16.msra.mxu1 %v6096_v15 }
 0x63e   :  { %1998 = vmatprep.subr.bf16.mxu1 %v6101_v16 }
 0x641   :  { %1999 = vmatpush1.bf16.msra.mxu1 %v6099_v17 }
 0x642   :  { %2000 = vmatprep.subr.bf16.mxu1 %v6104_v18 }
 0x645   :  { %2001 = vmatpush1.bf16.msra.mxu1 %v6102_v21  ;;  %v6123_v21 = vld [vmem:[#allocation11 + $0x40] sm:$0xff]  }
 0x646   :  { %2002 = vmatprep.subr.bf16.mxu1 %v6107_v22  ;;  %v6124_v22 = vld [vmem:[#allocation11 + $0x48] sm:$0xff]  }
 0x649   :  { %2003 = vmatpush1.bf16.msra.mxu1 %v6105_v28  ;;  %v6125_v28 = vld [vmem:[#allocation11 + $0x50] sm:$0xff]  }
 0x64a   :  { %2004 = vmatprep.subr.bf16.mxu1 %v6110_v29  ;;  %v6126_v29 = vld [vmem:[#allocation11 + $0x58] sm:$0xff]  }
 0x64d   :  { %2005 = vmatpush1.bf16.msra.mxu1 %v6108_v30  ;;  %v6127_v30 = vld [vmem:[#allocation11 + $0x60] sm:$0xff]  }
 0x64e   :  { %2006 = vmatprep.subr.bf16.mxu1 %v6113_v31  ;;  %v6128_v31 = vld [vmem:[#allocation11 + $0x68] sm:$0xff]  }
 0x651   :  { %2007 = vmatpush1.bf16.msra.mxu1 %v6111_v34  ;;  %v6129_v34 = vld [vmem:[#allocation11 + $0x70] sm:$0xff]  }
 0x652   :  { %2008 = vmatprep.subr.bf16.mxu1 %v6116_v36  ;;  %v2024_v36 = vld [vmem:[#allocation7 + $0x8] sm:$0x3] }
 0x655   :  { %2009 = vmatpush1.bf16.msra.mxu1 %v6114_v56  ;;  %v5296_v56 = vld [vmem:[%s7033_s3 + $0x8] sm:$0x3] }
 0x6f3   :  { %v1506_v5 = vpop.f32.mrb[12].mxu1 }
 0x6f4   :  { %v1513_v6 = vmul.f32 %v1506_v5, %v6731_v42  ;;  %v1508_v7 = vpop.f32.mrb[13].mxu1  ;;  %v2029_v5 = vrot.slane %v2024_v36, %v6647_v33 }
 0x6f5   :  { %v1514_v8 = vmul.f32 %v1508_v7, %v6733_v44  ;;  %v1510_v9 = vpop.f32.mrb[14].mxu1  ;;  %v2044_v7 = vrot.slane %v5296_v56, %v6647_v33 }
 0x6f6   :  { %v1515_v10 = vadd.f32 %v1513_v6, %v6659_v49  ;;  %v1511_v57 = vpop.f32.mrb[15].mxu1  ;;  %v6119_v49 = vld [vmem:[#allocation5 + $0x4e4] ss:$8 sps:$4 sm:$0xff]   ;;  %v2033_v6 = vrot.slane %v2024_v36, %v6650_v35  ;;  %v2048_v9 = vrot.slane %v5296_v56, %v6650_v35 }
 0x6f7   :  { %v1516_v11 = vadd.f32 %v1514_v8, %v6661_v50  ;;  %v6117_v50 = vld [vmem:[#allocation5 + $0x4e0] ss:$8 sps:$4 sm:$0xff]   ;;  %2010 = vmatprep.subr.bf16.mxu1 %v6119_v49 }
 0x6f8   :  { %v6817_v12 = vmax.f32 %v1515_v10, 0.0  ;;  %2011 = vmatpush1.bf16.msra.mxu1 %v6117_v50 }
 0x6f9   :  { %v6819_v13 = vmax.f32 %v1516_v11, 0.0 }
 0x6fa   :  { %v1519_v15 = vpack.c.bf16 %v6817_v12, %v6817_v12 }
 0x6fb   :  { %v1520_v14 = vpack.c.bf16 %v6819_v13, %v6819_v13 }
 0x6fd   :  { %1746 = vmatprep.mubr.bf16.mxu0 %v1520_v14 }
 0x6fe   :  { %1747 = vmatmul.mubr.bf16.vlgmr.msra.gmra.mrb[12].mxu0 %v1519_v15 }
 0x6ff   :  { %5664 = vmatpush3.bf16.msra.mxu0 %v6669_v58  ;;  %v6122_v58 = vld [vmem:[#allocation5 + $0x4f4] ss:$8 sps:$4 sm:$0xff]  }
 0x700   :  { %5665 = vmatprep.subr.bf16.mxu0 %v6671_v59  ;;  %v6120_v59 = vld [vmem:[#allocation5 + $0x4f0] ss:$8 sps:$4 sm:$0xff]   ;;  %2012 = vmatprep.subr.bf16.mxu1 %v6122_v58 }
 0x701   :  { %2013 = vmatpush1.bf16.msra.mxu1 %v6120_v59 }
 0x702   :  { %5765 = vmatprep.subr.bf16.mxu1 %v6411_v27 }
 0x703   :  { %5666 = vmatpush3.bf16.msra.mxu0 %v6675_v60  ;;  %v1756_v60 = vld [vmem:[#allocation7 + $0x6] sm:$0x3] }
 0x704   :  { %5667 = vmatprep.subr.bf16.mxu0 %v6678_v61  ;;  %v5263_v61 = vld [vmem:[%s7033_s3 + $0x6] sm:$0x3] }
 0x707   :  { %5668 = vmatpush3.bf16.msra.mxu0 %v6681_v62  ;;  %v1761_v62 = vrot.slane %v1756_v60, %v6647_v33 }
 0x708   :  { %5669 = vmatprep.subr.bf16.mxu0 %v6684_v63  ;;  %v1765_v63 = vrot.slane %v1756_v60, %v6650_v35  ;;  %v6130_v60 = vld [vmem:[#allocation11 + $0x78] sm:$0xff]  }
 0x70b   :  { %5670 = vmatpush3.bf16.msra.mxu0 %v6687_v0  ;;  %v1776_v0 = vrot.slane %v5263_v61, %v6647_v33 }
 0x70c   :  { %5671 = vmatprep.subr.bf16.mxu0 %v6690_v1 }
 0x70f   :  { %5672 = vmatpush3.bf16.msra.mxu0 %v6693_v2  ;;  %v1780_v2 = vrot.slane %v5263_v61, %v6650_v35  ;;  %v6131_v61 = vld [vmem:[#allocation13 + $0x40] sm:$0xff]  }
 0x710   :  { %5673 = vmatprep.subr.bf16.mxu0 %v6696_v3 }
 0x713   :  { %5674 = vmatpush3.bf16.msra.mxu0 %v6699_v4 }
 0x714   :  { %5675 = vmatprep.subr.bf16.mxu0 %v6710_v23 }
 0x717   :  { %5676 = vmatpush3.bf16.msra.mxu0 %v6712_v24 }
 0x718   :  { %5677 = vmatprep.subr.bf16.mxu0 %v6716_v25 }
 0x71b   :  { %5678 = vmatpush3.bf16.msra.mxu0 %v6718_v26 }
 0x71c   :  { %5785 = vmatprep.subr.bf16.mxu0 %v6411_v27 }
 0x7d1   :  { %v1748_v1 = vpop.f32.mrb[12].mxu0 }
 0x7d2   :  { %v1768_v3 = vmul.f32 %v1761_v62, %v1748_v1  ;;  %v1750_v4 = vpop.f32.mrb[13].mxu0  ;;  %v6132_v62 = vld [vmem:[#allocation13 + $0x48] sm:$0xff]   ;;  %v6135_v1 = vld [vmem:[#allocation13 + $0x60] sm:$0xff]  }
 0x7d3   :  { %v1769_v23 = vmul.f32 %v1765_v63, %v1750_v4  ;;  %v1752_v24 = vpop.f32.mrb[14].mxu0  ;;  %v6133_v63 = vld [vmem:[#allocation13 + $0x50] sm:$0xff]  }
 0x7d4   :  { %v1783_v25 = vadd.f32 %v1776_v0, %v1768_v3  ;;  %v1753_v26 = vpop.f32.mrb[15].mxu0  ;;  %v6134_v0 = vld [vmem:[#allocation13 + $0x58] sm:$0xff]  }
 0x7d5   :  { %v1784_v42 = vadd.f32 %v1780_v2, %v1769_v23  ;;  %v6136_v2 = vld [vmem:[#allocation13 + $0x68] sm:$0xff]   ;;  %v6145_v26 = vld [vmem:[#allocation14 + $0x58] sm:$0xff]  }
 0x7d6   :  { %v1785_v44 = vmax.f32 %v1783_v25, 0.0 }
 0x7d7   :  { %v1786_v16 = vmax.f32 %v1784_v42, 0.0  ;;  %v6146_v42 = vld [vmem:[#allocation14 + $0x18] sm:$0xff]  }
 0x7d8   :  { %v1787_v18 = vpack.c.bf16 %v1785_v44, %v1785_v44  ;;  %v6147_v44 = vld [vmem:[#allocation14 + $0x60] sm:$0xff]  }
 0x7d9   :  { %v1788_v17 = vpack.c.bf16 %v1786_v16, %v1786_v16  ;;  %v6148_v16 = vld [vmem:[#allocation14 + $0x20] sm:$0xff]  }
 0x7db   :  { %2014 = vmatprep.mubr.bf16.mxu1 %v1788_v17  ;;  %v6149_v17 = vld [vmem:[#allocation14 + $0x68] sm:$0xff]  }
 0x7dc   :  { %2015 = vmatmul.mubr.bf16.vlgmr.msra.gmra.mrb[16].mxu1 %v1787_v18  ;;  %v5308_v18 = vld [vmem:[%s7039_s9 + $0x1] ss:$0 sm:$0xff] }
 0x7dd   :  { %5781 = vmatprep.mubr.msk.bf16.mxu1 %vm6412_vm0, %v6411_v27  ;;  %5766 = vmatpush3.bf16.msra.mxu1 %v6123_v21 }
 0x7de   :  { %5767 = vmatprep.subr.bf16.mxu1 %v6411_v27 }
 0x7e1   :  { %5768 = vmatpush3.bf16.msra.mxu1 %v6124_v22 }
 0x7e2   :  { %5769 = vmatprep.subr.bf16.mxu1 %v6411_v27 }
 0x7e5   :  { %5770 = vmatpush3.bf16.msra.mxu1 %v6125_v28 }
 0x7e6   :  { %5771 = vmatprep.subr.bf16.mxu1 %v6411_v27 }
 0x7e9   :  { %5772 = vmatpush3.bf16.msra.mxu1 %v6126_v29 }
 0x7ea   :  { %5773 = vmatprep.subr.bf16.mxu1 %v6411_v27 }
 0x7ed   :  { %5774 = vmatpush3.bf16.msra.mxu1 %v6127_v30 }
 0x7ee   :  { %5775 = vmatprep.subr.bf16.mxu1 %v6411_v27 }
 0x7f1   :  { %5776 = vmatpush3.bf16.msra.mxu1 %v6128_v31 }
 0x7f2   :  { %5777 = vmatprep.subr.bf16.mxu1 %v6411_v27 }
 0x7f5   :  { %5778 = vmatpush3.bf16.msra.mxu1 %v6129_v34 }
 0x7f6   :  { %5779 = vmatprep.subr.bf16.mxu1 %v6411_v27 }
 0x7f9   :  { %5780 = vmatpush3.bf16.msra.mxu1 %v6130_v60  ;;  %v2589_v60 = vld [vmem:[#allocation16 + $0x100] sm:$0xff] }
 0x7fa   :  { %2331 = vmatprep.subr.bf16.mxu1 %v6759_v20 }
 0x8af   :  { %v2016_v8 = vpop.f32.mrb[16].mxu1 }
 0x8b0   :  { %v2036_v10 = vmul.f32 %v2029_v5, %v2016_v8  ;;  %v2018_v57 = vpop.f32.mrb[17].mxu1  ;;  %v6152_v8 = vld [vmem:[#allocation14 + $0x30] sm:$0xff]  }
 0x8b1   :  { %v2037_v11 = vmul.f32 %v2033_v6, %v2018_v57  ;;  %v2020_v14 = vpop.f32.mrb[18].mxu1  ;;  %v6150_v6 = vld [vmem:[#allocation14 + $0x28] sm:$0xff]   ;;  %v2557_v57 = vld [vmem:[#allocation16] sm:$0xff] }
 0x8b2   :  { %v6865_v15 = vadd.f32 %v2044_v7, %v2036_v10  ;;  %v2021_v49 = vpop.f32.mrb[19].mxu1  ;;  %v6151_v7 = vld [vmem:[#allocation14 + $0x70] sm:$0xff]   ;;  %v6154_v10 = vld [vmem:[#allocation14 + $0x38] sm:$0xff]   ;;  %v2558_v14 = vld [vmem:[#allocation16 + $0x8] sm:$0xff] }
 0x8b3   :  { %v6867_v50 = vadd.f32 %v2048_v9, %v2037_v11  ;;  %v6153_v9 = vld [vmem:[#allocation14 + $0x78] sm:$0xff]   ;;  %v2573_v11 = vld [vmem:[#allocation16 + $0x80] sm:$0xff] }
 0x8b4   :  { %v2053_v59 = vpack.c.bf16 %v6865_v15, %v6865_v15  ;;  %v5335_v49 = vcombine.low %v2557_v57, %v2573_v11 }
 0x8b5   :  { %v2054_v58 = vpack.c.bf16 %v6867_v50, %v6867_v50 }
 0x8b7   :  { %2087 = vmatprep.mubr.bf16.mxu0 %v2054_v58  ;;  %v5336_v58 = vcombine.high %v2557_v57, %v2573_v11  ;;  %v2749_v57 = vld [vmem:[#allocation16 + $0x600] sm:$0xff] }
 0x8b8   :  { %2088 = vmatmul.mubr.bf16.vlgmr.msra.gmra.mrb[16].mxu0 %v2053_v59  ;;  %v2574_v59 = vld [vmem:[#allocation16 + $0x88] sm:$0xff]  ;;  %v2765_v11 = vld [vmem:[#allocation16 + $0x680] sm:$0xff] }
 0x8b9   :  { %5801 = vmatprep.mubr.msk.bf16.mxu0 %vm6412_vm0, %v6411_v27  ;;  %5786 = vmatpush3.bf16.msra.mxu0 %v6131_v61  ;;  %v2605_v61 = vld [vmem:[#allocation16 + $0x180] sm:$0xff] }
 0x8ba   :  { %5787 = vmatprep.subr.bf16.mxu0 %v6411_v27 }
 0x8bd   :  { %5788 = vmatpush3.bf16.msra.mxu0 %v6132_v62  ;;  %v5337_v62 = vcombine.low %v2558_v14, %v2574_v59 }
 0x8be   :  { %5789 = vmatprep.subr.bf16.mxu0 %v6411_v27 }
 0x8c1   :  { %5790 = vmatpush3.bf16.msra.mxu0 %v6133_v63  ;;  %v5338_v63 = vcombine.high %v2558_v14, %v2574_v59  ;;  %v2750_v14 = vld [vmem:[#allocation16 + $0x608] sm:$0xff]  ;;  %v5527_v59 = vcombine.low %v2749_v57, %v2765_v11 }
 0x8c2   :  { %5791 = vmatprep.subr.bf16.mxu0 %v6411_v27 }
 0x8c5   :  { %5792 = vmatpush3.bf16.msra.mxu0 %v6134_v0  ;;  %v5368_v0 = vcombine.high %v2589_v60, %v2605_v61 }
 0x8c6   :  { %5793 = vmatprep.subr.bf16.mxu0 %v6411_v27 }
 0x8c9   :  { %5794 = vmatpush3.bf16.msra.mxu0 %v6135_v1  ;;  %v5367_v1 = vcombine.low %v2589_v60, %v2605_v61 }
 0x8ca   :  { %5795 = vmatprep.subr.bf16.mxu0 %v6411_v27 }
 0x8cd   :  { %5796 = vmatpush3.bf16.msra.mxu0 %v6136_v2  ;;  %v2621_v2 = vld [vmem:[#allocation16 + $0x200] sm:$0xff] }
 0x8ce   :  { %5797 = vmatprep.subr.bf16.mxu0 %v6411_v27 }
 0x98b   :  { %v5679_v20 = vpop.f32.mrb[16].mxu0 }
 0x98c   :  { %v5680_v3 = vpop.f32.mrb[17].mxu0 }
 0x98d   :  { %v5681_v4 = vadd.f32 %v5680_v3, %v5679_v20  ;;  %v5682_v23 = vpop.f32.mrb[18].mxu0  ;;  %v2637_v20 = vld [vmem:[#allocation16 + $0x280] sm:$0xff] }
 0x98e   :  { %v5683_v24 = vpop.f32.mrb[19].mxu0  ;;  %v5400_v3 = vcombine.high %v2621_v2, %v2637_v20  ;;  %v2653_v23 = vld [vmem:[#allocation16 + $0x300] sm:$0xff] }
 0x98f   :  { %v2095_v25 = vpack.c.bf16 %v5681_v4, %v5681_v4  ;;  %v5399_v4 = vcombine.low %v2621_v2, %v2637_v20  ;;  %v2669_v24 = vld [vmem:[#allocation16 + $0x380] sm:$0xff]  ;;  %v2798_v2 = vld [vmem:[#allocation16 + $0x788] sm:$0xff] }
 0x991   :  { %5782 = vmatmul.mubr.bf16.vlgmr.msra.gmra.mrb[20].mxu1 %v2095_v25  ;;  %v5432_v25 = vcombine.high %v2653_v23, %v2669_v24 }
 0x992   :  { %2332 = vmatpush1.bf16.msra.mxu1 %v6757_v19  ;;  %2363 = vmatprep.mubr.bf16.mxu1 %v6413_v53  ;;  %v6137_v19 = vld [vmem:[#allocation13 + $0x70] sm:$0xff]  }
 0x993   :  { %2333 = vmatprep.subr.bf16.mxu1 %v6766_v37  ;;  %5798 = vmatpush3.bf16.msra.mxu0 %v6137_v19  ;;  %v6138_v37 = vld [vmem:[#allocation13 + $0x78] sm:$0xff]   ;;  %v5431_v19 = vcombine.low %v2653_v23, %v2669_v24  ;;  %v2559_v23 = vld [vmem:[#allocation16 + $0x10] sm:$0xff] }
 0x994   :  { %5799 = vmatprep.subr.bf16.mxu0 %v6411_v27  ;;  %v6142_v27 = vld [vmem:[#allocation14 + $0x8] sm:$0xff]   ;;  %v2575_v24 = vld [vmem:[#allocation16 + $0x90] sm:$0xff] }
 0x996   :  { %2334 = vmatpush1.bf16.msra.mxu1 %v6768_v38  ;;  %v5298_v38 = vld [vmem:[%s7037_s7 + $0x1] ss:$0 sm:$0xff] }
 0x997   :  { %2335 = vmatprep.subr.bf16.mxu1 %v6772_v39  ;;  %5800 = vmatpush3.bf16.msra.mxu0 %v6138_v37  ;;  %v2685_v37 = vld [vmem:[#allocation16 + $0x400] sm:$0xff] }
 0x99a   :  { %2336 = vmatpush1.bf16.msra.mxu1 %v6774_v40 }
 0x99b   :  { %2337 = vmatprep.subr.bf16.mxu1 %v6778_v41 }
 0x99e   :  { %2338 = vmatpush1.bf16.msra.mxu1 %v6780_v43 }
 0x99f   :  { %2339 = vmatprep.subr.bf16.mxu1 %v6784_v45 }
 0x9a2   :  { %2340 = vmatpush1.bf16.msra.mxu1 %v6786_v46 }
 0x9a3   :  { %2341 = vmatprep.subr.bf16.mxu1 %v6790_v47 }
 0x9a6   :  { %2342 = vmatpush1.bf16.msra.mxu1 %v6792_v48  ;;  %v6139_v48 = vld [vmem:[#allocation14 + $0x40] sm:$0xff]  }
 0x9a7   :  { %2343 = vmatprep.subr.bf16.mxu1 %v6794_v51  ;;  %v6140_v51 = vld [vmem:[#allocation14] sm:$0xff]   ;;  %5703 = vmatprep.subr.bf16.mxu0 %v6139_v48 }
 0x9aa   :  { %2344 = vmatpush1.bf16.msra.mxu1 %v6798_v52  ;;  %v6141_v52 = vld [vmem:[#allocation14 + $0x48] sm:$0xff]  }
 0x9ab   :  { %2345 = vmatprep.subr.bf16.mxu1 %v6802_v54  ;;  %v6143_v54 = vld [vmem:[#allocation14 + $0x50] sm:$0xff]  }
 0x9ae   :  { %2346 = vmatpush1.bf16.msra.mxu1 %v6805_v55  ;;  %v6144_v55 = vld [vmem:[#allocation14 + $0x10] sm:$0xff]  }
 0x9af   :  { %4261 = vmatprep.subr.bf16.mxu1 %v5336_v58  ;;  %v2766_v58 = vld [vmem:[#allocation16 + $0x688] sm:$0xff] }
 0x9b0   :  { %v5529_v60 = vcombine.low %v2750_v14, %v2766_v58  ;;  %v5530_v61 = vcombine.high %v2750_v14, %v2766_v58  ;;  %v2735_v58 = vld [vmem:[#allocation16 + $0x590] sm:$0xff] }
 0xa64   :  { %v2203_v39 = vpop.f32.mrb[20].mxu1 }
 0xa65   :  { %v2204_v40 = vadd.f32 %v5298_v38, %v2203_v39  ;;  %v5783_v41 = vpop.f32.mrb[21].mxu1  ;;  %v2701_v38 = vld [vmem:[#allocation16 + $0x480] sm:$0xff] }
 0xa66   :  { %v2206_v43 = vpop.f32.mrb[22].mxu1  ;;  %v5464_v39 = vcombine.high %v2685_v37, %v2701_v38  ;;  %v2717_v41 = vld [vmem:[#allocation16 + $0x500] sm:$0xff] }
 0xa67   :  { %v2209_v45 = vmax.f32 %v2204_v40, 0.0  ;;  %v5784_v46 = vpop.f32.mrb[23].mxu1  ;;  %v5463_v40 = vcombine.low %v2685_v37, %v2701_v38  ;;  %v2733_v43 = vld [vmem:[#allocation16 + $0x580] sm:$0xff]  ;;  %v2576_v37 = vld [vmem:[#allocation16 + $0x98] sm:$0xff]  ;;  %v5339_v38 = vcombine.low %v2559_v23, %v2575_v24 }
 0xa68   :  { %v5495_v46 = vcombine.low %v2717_v41, %v2733_v43 }
 0xa69   :  { %v2210_v47 = vpack.c.bf16 %v2209_v45, %v2209_v45  ;;  %v5496_v45 = vcombine.high %v2717_v41, %v2733_v43  ;;  %v5318_v43 = vld [vmem:[%s7041_s11] ss:$0 sm:$0xff] }
 0xa6b   :  { %5802 = vmatmul.mubr.bf16.vlgmr.msra.gmra.mrb[20].mxu0 %v2210_v47 }
 0xa6c   :  { %5704 = vmatpush3.bf16.msra.mxu0 %v6140_v51 }
 0xa6d   :  { %5705 = vmatprep.subr.bf16.mxu0 %v6141_v52 }
 0xa70   :  { %5706 = vmatpush3.bf16.msra.mxu0 %v6142_v27 }
 0xa71   :  { %5707 = vmatprep.subr.bf16.mxu0 %v6143_v54 }
 0xa74   :  { %5708 = vmatpush3.bf16.msra.mxu0 %v6144_v55 }
 0xa75   :  { %5709 = vmatprep.subr.bf16.mxu0 %v6145_v26 }
 0xa78   :  { %5710 = vmatpush3.bf16.msra.mxu0 %v6146_v42 }
 0xa79   :  { %5711 = vmatprep.subr.bf16.mxu0 %v6147_v44 }
 0xa7c   :  { %5712 = vmatpush3.bf16.msra.mxu0 %v6148_v16  ;;  %v2590_v16 = vld [vmem:[#allocation16 + $0x108] sm:$0xff] }
 0xa7d   :  { %5713 = vmatprep.subr.bf16.mxu0 %v6149_v17  ;;  %v2606_v17 = vld [vmem:[#allocation16 + $0x188] sm:$0xff] }
 0xa80   :  { %5714 = vmatpush3.bf16.msra.mxu0 %v6150_v6  ;;  %v2718_v6 = vld [vmem:[#allocation16 + $0x508] sm:$0xff] }
 0xa81   :  { %5715 = vmatprep.subr.bf16.mxu0 %v6151_v7  ;;  %v2734_v7 = vld [vmem:[#allocation16 + $0x588] sm:$0xff] }
 0xa84   :  { %5716 = vmatpush3.bf16.msra.mxu0 %v6152_v8 }
 0xa85   :  { %5717 = vmatprep.subr.bf16.mxu0 %v6153_v9  ;;  %v5498_v9 = vcombine.high %v2718_v6, %v2734_v7 }
 0xa88   :  { %5718 = vmatpush3.bf16.msra.mxu0 %v6154_v10  ;;  %v5497_v10 = vcombine.low %v2718_v6, %v2734_v7  ;;  %v2687_v6 = vld [vmem:[#allocation16 + $0x410] sm:$0xff] }
 0xa89   :  { %4302 = vmatprep.subr.bf16.mxu0 %v5338_v63  ;;  %v2797_v63 = vld [vmem:[#allocation16 + $0x780] sm:$0xff]  ;;  %v2703_v7 = vld [vmem:[#allocation16 + $0x490] sm:$0xff] }
 0xb3e   :  { %v2318_v21 = vpop.f32.mrb[20].mxu0 }
 0xb3f   :  { %v2319_v22 = vadd.f32 %v5308_v18, %v2318_v21  ;;  %v5803_v28 = vpop.f32.mrb[21].mxu0 }
 0xb40   :  { %v2321_v29 = vpop.f32.mrb[22].mxu0  ;;  %v2622_v28 = vld [vmem:[#allocation16 + $0x208] sm:$0xff] }
 0xb41   :  { %v5317_v30 = vmul.f32 -1.442695, %v2319_v22  ;;  %v5804_v31 = vpop.f32.mrb[23].mxu0  ;;  %v5370_v22 = vcombine.high %v2590_v16, %v2606_v17  ;;  %v2638_v29 = vld [vmem:[#allocation16 + $0x288] sm:$0xff] }
 0xb43   :  { %6159 = vpow2.f32 %v5317_v30  ;;  %v2670_v30 = vld [vmem:[#allocation16 + $0x388] sm:$0xff] }
 0xb4d   :  { %v6160_v34 = vpop.eup %6159 }
 0xb4e   :  { %v2327_v36 = vadd.f32 1.0, %v6160_v34  ;;  %v2686_v34 = vld [vmem:[#allocation16 + $0x408] sm:$0xff] }
 0xb50   :  { %6161 = vrcp.f32 %v2327_v36  ;;  %v2702_v36 = vld [vmem:[#allocation16 + $0x488] sm:$0xff] }
 0xb51   :  { %v5465_v8 = vcombine.low %v2686_v34, %v2702_v36 }
 0xb5a   :  { %v6162_v56 = vpop.eup %6161 }
 0xb5b   :  { %v2330_v5 = vpack.c.bf16 %v6162_v56, %v6162_v56 }
 0xb5d   :  { %2364 = vmatmul.mubr.bf16.vlgmr.msra.gmra.mrb[24].mxu1 %v2330_v5  ;;  %v5466_v5 = vcombine.high %v2686_v34, %v2702_v36 }
 0xb5e   :  { %4293 = vmatprep.mubr.bf16.mxu1 %v6413_v53  ;;  %4262 = vmatpush1.bf16.msra.mxu1 %v5335_v49  ;;  %v5528_v49 = vcombine.high %v2749_v57, %v2765_v11  ;;  %v5468_v11 = vcombine.high %v2687_v6, %v2703_v7 }
 0xb5f   :  { %4263 = vmatprep.subr.bf16.mxu1 %v5368_v0  ;;  %v2782_v0 = vld [vmem:[#allocation16 + $0x708] sm:$0xff] }
 0xb62   :  { %4264 = vmatpush1.bf16.msra.mxu1 %v5367_v1 }
 0xb63   :  { %4265 = vmatprep.subr.bf16.mxu1 %v5400_v3  ;;  %v5561_v3 = vcombine.low %v2782_v0, %v2798_v2 }
 0xb66   :  { %4266 = vmatpush1.bf16.msra.mxu1 %v5399_v4  ;;  %v5562_v4 = vcombine.high %v2782_v0, %v2798_v2  ;;  %v2767_v2 = vld [vmem:[#allocation16 + $0x690] sm:$0xff] }
 0xb67   :  { %4267 = vmatprep.subr.bf16.mxu1 %v5432_v25  ;;  %v2560_v25 = vld [vmem:[#allocation16 + $0x18] sm:$0xff] }
 0xb6a   :  { %4268 = vmatpush1.bf16.msra.mxu1 %v5431_v19  ;;  %v5340_v19 = vcombine.high %v2559_v23, %v2575_v24 }
 0xb6b   :  { %4269 = vmatprep.subr.bf16.mxu1 %v5464_v39  ;;  %v5341_v39 = vcombine.low %v2560_v25, %v2576_v37 }
 0xb6e   :  { %4270 = vmatpush1.bf16.msra.mxu1 %v5463_v40  ;;  %v5342_v40 = vcombine.high %v2560_v25, %v2576_v37  ;;  %v2799_v37 = vld [vmem:[#allocation16 + $0x790] sm:$0xff] }
 0xb6f   :  { %4271 = vmatprep.subr.bf16.mxu1 %v5496_v45 }
 0xb72   :  { %4272 = vmatpush1.bf16.msra.mxu1 %v5495_v46 }
 0xb73   :  { %4273 = vmatprep.subr.bf16.mxu1 %v5528_v49  ;;  %v2719_v49 = vld [vmem:[#allocation16 + $0x510] sm:$0xff] }
 0xb76   :  { %4274 = vmatpush1.bf16.msra.mxu1 %v5527_v59  ;;  %v2720_v59 = vld [vmem:[#allocation16 + $0x518] sm:$0xff] }
 0xc30   :  { %v2365_v47 = vpop.f32.mrb[24].mxu1 }
 0xc31   :  { %v2372_v48 = vmul.f32 %v2365_v47, %v6865_v15  ;;  %v2367_v51 = vpop.f32.mrb[25].mxu1  ;;  %v5369_v15 = vcombine.low %v2590_v16, %v2606_v17  ;;  %v2623_v17 = vld [vmem:[#allocation16 + $0x210] sm:$0xff] }
 0xc32   :  { %v2373_v52 = vmul.f32 %v2367_v51, %v6867_v50  ;;  %v2369_v27 = vpop.f32.mrb[26].mxu1  ;;  %v2654_v50 = vld [vmem:[#allocation16 + $0x308] sm:$0xff] }
 0xc33   :  { %v2374_v54 = vadd.f32 %v2372_v48, %v6817_v12  ;;  %v2370_v55 = vpop.f32.mrb[27].mxu1  ;;  %v5402_v12 = vcombine.high %v2622_v28, %v2638_v29  ;;  %v5434_v31 = vcombine.high %v2654_v50, %v2670_v30  ;;  %v5433_v56 = vcombine.low %v2654_v50, %v2670_v30  ;;  %v2607_v27 = vld [vmem:[#allocation16 + $0x190] sm:$0xff] }
 0xc34   :  { %v2375_v26 = vadd.f32 %v2373_v52, %v6819_v13  ;;  %v5401_v13 = vcombine.low %v2622_v28, %v2638_v29  ;;  %v2591_v52 = vld [vmem:[#allocation16 + $0x110] sm:$0xff]  ;;  %v2608_v55 = vld [vmem:[#allocation16 + $0x198] sm:$0xff] }
 0xc35   :  { %v2376_v42 = vmax.f32 %v2374_v54, 0.0  ;;  %v2592_v54 = vld [vmem:[#allocation16 + $0x118] sm:$0xff]  ;;  %v5371_v28 = vcombine.low %v2591_v52, %v2607_v27  ;;  %v2655_v50 = vld [vmem:[#allocation16 + $0x310] sm:$0xff] }
 0xc36   :  { %v2377_v44 = vmax.f32 %v2375_v26, 0.0  ;;  %v5374_v16 = vcombine.high %v2592_v54, %v2608_v55  ;;  %v5373_v29 = vcombine.low %v2592_v54, %v2608_v55  ;;  %v2671_v30 = vld [vmem:[#allocation16 + $0x390] sm:$0xff] }
 0xc37   :  { %v2378_v21 = vpack.c.bf16 %v2376_v42, %v2376_v42 }
 0xc38   :  { %v2379_v18 = vpack.c.bf16 %v2377_v44, %v2377_v44  ;;  %v5372_v44 = vcombine.high %v2591_v52, %v2607_v27 }
 0xc3a   :  { %2547 = vmatprep.mubr.bf16.mxu0 %v2379_v18  ;;  %v2639_v18 = vld [vmem:[#allocation16 + $0x290] sm:$0xff] }
 0xc3b   :  { %2548 = vmatmul.mubr.bf16.vlgmr.msra.gmra.mrb[24].mxu0 %v2378_v21  ;;  %v2624_v21 = vld [vmem:[#allocation16 + $0x218] sm:$0xff]  ;;  %v5403_v34 = vcombine.low %v2623_v17, %v2639_v18 }
 0xc3c   :  { %4303 = vmatpush1.bf16.msra.mxu0 %v5337_v62  ;;  %4334 = vmatprep.mubr.bf16.mxu0 %v6413_v53  ;;  %v2781_v62 = vld [vmem:[#allocation16 + $0x700] sm:$0xff] }
 0xc3d   :  { %4304 = vmatprep.subr.bf16.mxu0 %v5370_v22  ;;  %v5560_v1 = vcombine.high %v2781_v62, %v2797_v63  ;;  %v5559_v20 = vcombine.low %v2781_v62, %v2797_v63  ;;  %v2640_v22 = vld [vmem:[#allocation16 + $0x298] sm:$0xff]  ;;  %v5500_v63 = vcombine.high %v2719_v49, %v2735_v58 }
 0xc3e   :  { %v5405_v36 = vcombine.low %v2624_v21, %v2640_v22 }
 0xc3f   :  { %4275 = vmatprep.subr.bf16.mxu1 %v5560_v1  ;;  %v2751_v1 = vld [vmem:[#allocation16 + $0x610] sm:$0xff] }
 0xc40   :  { %4305 = vmatpush1.bf16.msra.mxu0 %v5369_v15  ;;  %4276 = vmatpush1.bf16.msra.mxu1 %v5559_v20  ;;  %v5404_v15 = vcombine.high %v2623_v17, %v2639_v18  ;;  %v2752_v20 = vld [vmem:[#allocation16 + $0x618] sm:$0xff]  ;;  %v5532_v24 = vcombine.high %v2751_v1, %v2767_v2  ;;  %v2610_v17 = vld [vmem:[#allocation16 + $0x1a8] sm:$0xff] }
 0xc41   :  { %4306 = vmatprep.subr.bf16.mxu0 %v5402_v12  ;;  %4343 = vmatprep.subr.bf16.mxu1 %v5340_v19  ;;  %v5406_v12 = vcombine.high %v2624_v21, %v2640_v22  ;;  %v2783_v19 = vld [vmem:[#allocation16 + $0x710] sm:$0xff] }
 0xc42   :  { %v5563_v52 = vcombine.low %v2783_v19, %v2799_v37 }
 0xc44   :  { %4307 = vmatpush1.bf16.msra.mxu0 %v5401_v13  ;;  %v2656_v13 = vld [vmem:[#allocation16 + $0x318] sm:$0xff] }
 0xc45   :  { %4308 = vmatprep.subr.bf16.mxu0 %v5434_v31  ;;  %v2672_v31 = vld [vmem:[#allocation16 + $0x398] sm:$0xff] }
 0xc46   :  { %v5437_v57 = vcombine.low %v2656_v13, %v2672_v31 }
 0xc48   :  { %4309 = vmatpush1.bf16.msra.mxu0 %v5433_v56  ;;  %v5436_v56 = vcombine.high %v2655_v50, %v2671_v30 }
 0xc49   :  { %4310 = vmatprep.subr.bf16.mxu0 %v5466_v5  ;;  %v5438_v5 = vcombine.high %v2656_v13, %v2672_v31 }
 0xc4c   :  { %4311 = vmatpush1.bf16.msra.mxu0 %v5465_v8  ;;  %v2688_v8 = vld [vmem:[#allocation16 + $0x418] sm:$0xff] }
 0xc4d   :  { %4312 = vmatprep.subr.bf16.mxu0 %v5498_v9  ;;  %v2704_v9 = vld [vmem:[#allocation16 + $0x498] sm:$0xff] }
 0xc4e   :  { %v5470_v14 = vcombine.high %v2688_v8, %v2704_v9  ;;  %v5469_v62 = vcombine.low %v2688_v8, %v2704_v9 }
 0xc50   :  { %4313 = vmatpush1.bf16.msra.mxu0 %v5497_v10  ;;  %v5435_v10 = vcombine.low %v2655_v50, %v2671_v30  ;;  %v2642_v50 = vld [vmem:[#allocation16 + $0x2a8] sm:$0xff] }
 0xc51   :  { %4314 = vmatprep.subr.bf16.mxu0 %v5530_v61  ;;  %v5467_v61 = vcombine.low %v2687_v6, %v2703_v7  ;;  %v2674_v6 = vld [vmem:[#allocation16 + $0x3a8] sm:$0xff] }
 0xc54   :  { %4315 = vmatpush1.bf16.msra.mxu0 %v5529_v60  ;;  %v2736_v60 = vld [vmem:[#allocation16 + $0x598] sm:$0xff] }
 0xc55   :  { %4316 = vmatprep.subr.bf16.mxu0 %v5562_v4  ;;  %v5502_v0 = vcombine.high %v2720_v59, %v2736_v60  ;;  %v5499_v4 = vcombine.low %v2719_v49, %v2735_v58  ;;  %v5501_v23 = vcombine.low %v2720_v59, %v2736_v60  ;;  %v2706_v49 = vld [vmem:[#allocation16 + $0x4a8] sm:$0xff] }
 0xc58   :  { %4317 = vmatpush1.bf16.msra.mxu0 %v5561_v3  ;;  %v2768_v3 = vld [vmem:[#allocation16 + $0x698] sm:$0xff] }
 0xc59   :  { %4384 = vmatprep.subr.bf16.mxu0 %v5342_v40  ;;  %v5534_v25 = vcombine.high %v2752_v20, %v2768_v3  ;;  %v5531_v40 = vcombine.low %v2751_v1, %v2767_v2  ;;  %v2738_v1 = vld [vmem:[#allocation16 + $0x5a8] sm:$0xff] }
 0xd0e   :  { %v5719_v41 = vpop.f32.mrb[24].mxu0 }
 0xd0f   :  { %v5720_v45 = vpop.f32.mrb[25].mxu0 }
 0xd10   :  { %v5721_v46 = vadd.f32 %v5720_v45, %v5719_v41  ;;  %v5722_v47 = vpop.f32.mrb[26].mxu0  ;;  %v5533_v41 = vcombine.low %v2752_v20, %v2768_v3 }
 0xd11   :  { %v5723_v48 = vpop.f32.mrb[27].mxu0  ;;  %v2577_v47 = vld [vmem:[#allocation16 + $0xa0] sm:$0xff] }
 0xd12   :  { %v2550_v51 = vadd.f32 %v5721_v46, %v5318_v43  ;;  %v5564_v43 = vcombine.high %v2783_v19, %v2799_v37  ;;  %v2561_v46 = vld [vmem:[#allocation16 + $0x20] sm:$0xff]  ;;  %v2562_v48 = vld [vmem:[#allocation16 + $0x28] sm:$0xff] }
 0xd13   :  { %v5344_v54 = vcombine.high %v2561_v46, %v2577_v47  ;;  %v5343_v18 = vcombine.low %v2561_v46, %v2577_v47  ;;  %v2770_v19 = vld [vmem:[#allocation16 + $0x6a8] sm:$0xff] }
 0xd14   :  { %v2555_v26 = vmax.f32 %v2550_v51, 0.0  ;;  %v2578_v51 = vld [vmem:[#allocation16 + $0xa8] sm:$0xff] }
 0xd15   :  { %v5346_v55 = vcombine.high %v2562_v48, %v2578_v51  ;;  %v5345_v21 = vcombine.low %v2562_v48, %v2578_v51  ;;  %v2802_v46 = vld [vmem:[#allocation16 + $0x7a8] sm:$0xff] }
 0xd16   :  { %v6914_v42 = vpack.c.bf16 %v2555_v26, %v2555_v26  ;;  %v2593_v26 = vld [vmem:[#allocation16 + $0x120] sm:$0xff] }
 0xd18   :  { %4294 = vmatmul.mubr.bf16.vlgmr.msra.gmra.mrb[28].mxu1 %v6914_v42  ;;  %4335 = vmatmul.mubr.bf16.vlgmr.msra.gmra.mrb[28].mxu0 %v6914_v42 }
 0xd19   :  { %4344 = vmatpush1.bf16.msra.mxu1 %v5339_v38  ;;  %4385 = vmatpush1.bf16.msra.mxu0 %v5341_v39  ;;  %v2784_v38 = vld [vmem:[#allocation16 + $0x718] sm:$0xff] }
 0xd1a   :  { %4345 = vmatprep.subr.bf16.mxu1 %v5372_v44  ;;  %4386 = vmatprep.subr.bf16.mxu0 %v5374_v16  ;;  %v2800_v39 = vld [vmem:[#allocation16 + $0x798] sm:$0xff]  ;;  %v2609_v44 = vld [vmem:[#allocation16 + $0x1a0] sm:$0xff]  ;;  %v2594_v16 = vld [vmem:[#allocation16 + $0x128] sm:$0xff] }
 0xd1b   :  { %4375 = vmatprep.mubr.bf16.mxu1 %v6413_v53  ;;  %4416 = vmatprep.mubr.bf16.mxu0 %v6413_v53  ;;  %v5566_v45 = vcombine.high %v2784_v38, %v2800_v39  ;;  %v5565_v27 = vcombine.low %v2784_v38, %v2800_v39  ;;  %v5376_v22 = vcombine.high %v2593_v26, %v2609_v44 }
 0xd1c   :  { %v5375_v30 = vcombine.low %v2593_v26, %v2609_v44  ;;  %v5377_v13 = vcombine.low %v2594_v16, %v2610_v17  ;;  %v2580_v26 = vld [vmem:[#allocation16 + $0xb8] sm:$0xff] }
 0xd1d   :  { %4346 = vmatpush1.bf16.msra.mxu1 %v5371_v28  ;;  %4387 = vmatpush1.bf16.msra.mxu0 %v5373_v29  ;;  %v5378_v28 = vcombine.high %v2594_v16, %v2610_v17  ;;  %v2625_v29 = vld [vmem:[#allocation16 + $0x220] sm:$0xff] }
 0xd1e   :  { %4347 = vmatprep.subr.bf16.mxu1 %v5404_v15  ;;  %4388 = vmatprep.subr.bf16.mxu0 %v5406_v12  ;;  %v2641_v15 = vld [vmem:[#allocation16 + $0x2a0] sm:$0xff]  ;;  %v2626_v12 = vld [vmem:[#allocation16 + $0x228] sm:$0xff] }
 0xd1f   :  { %v5408_v31 = vcombine.high %v2625_v29, %v2641_v15  ;;  %v5407_v7 = vcombine.low %v2625_v29, %v2641_v15  ;;  %v5409_v8 = vcombine.low %v2626_v12, %v2642_v50  ;;  %v2612_v29 = vld [vmem:[#allocation16 + $0x1b8] sm:$0xff] }
 0xd21   :  { %4348 = vmatpush1.bf16.msra.mxu1 %v5403_v34  ;;  %4389 = vmatpush1.bf16.msra.mxu0 %v5405_v36  ;;  %v5410_v34 = vcombine.high %v2626_v12, %v2642_v50  ;;  %v2657_v36 = vld [vmem:[#allocation16 + $0x320] sm:$0xff] }
 0xd22   :  { %4349 = vmatprep.subr.bf16.mxu1 %v5436_v56  ;;  %4390 = vmatprep.subr.bf16.mxu0 %v5438_v5  ;;  %v2673_v56 = vld [vmem:[#allocation16 + $0x3a0] sm:$0xff]  ;;  %v2658_v5 = vld [vmem:[#allocation16 + $0x328] sm:$0xff] }
 0xd23   :  { %v5440_v9 = vcombine.high %v2657_v36, %v2673_v56  ;;  %v5439_v58 = vcombine.low %v2657_v36, %v2673_v56  ;;  %v5441_v59 = vcombine.low %v2658_v5, %v2674_v6  ;;  %v2644_v36 = vld [vmem:[#allocation16 + $0x2b8] sm:$0xff] }
 0xd25   :  { %4350 = vmatpush1.bf16.msra.mxu1 %v5435_v10  ;;  %4391 = vmatpush1.bf16.msra.mxu0 %v5437_v57  ;;  %v5442_v10 = vcombine.high %v2658_v5, %v2674_v6  ;;  %v2689_v57 = vld [vmem:[#allocation16 + $0x420] sm:$0xff] }
 0xd26   :  { %4351 = vmatprep.subr.bf16.mxu1 %v5468_v11  ;;  %4392 = vmatprep.subr.bf16.mxu0 %v5470_v14  ;;  %v2705_v11 = vld [vmem:[#allocation16 + $0x4a0] sm:$0xff]  ;;  %v2690_v14 = vld [vmem:[#allocation16 + $0x428] sm:$0xff] }
 0xd27   :  { %v5472_v60 = vcombine.high %v2689_v57, %v2705_v11  ;;  %v5471_v2 = vcombine.low %v2689_v57, %v2705_v11  ;;  %v5473_v20 = vcombine.low %v2690_v14, %v2706_v49  ;;  %v2676_v57 = vld [vmem:[#allocation16 + $0x3b8] sm:$0xff] }
 0xd29   :  { %4352 = vmatpush1.bf16.msra.mxu1 %v5467_v61  ;;  %4393 = vmatpush1.bf16.msra.mxu0 %v5469_v62  ;;  %v5474_v61 = vcombine.high %v2690_v14, %v2706_v49  ;;  %v2721_v62 = vld [vmem:[#allocation16 + $0x520] sm:$0xff] }
 0xd2a   :  { %4353 = vmatprep.subr.bf16.mxu1 %v5500_v63  ;;  %4394 = vmatprep.subr.bf16.mxu0 %v5502_v0  ;;  %v2737_v63 = vld [vmem:[#allocation16 + $0x5a0] sm:$0xff]  ;;  %v2722_v0 = vld [vmem:[#allocation16 + $0x528] sm:$0xff] }
 0xd2b   :  { %v5504_v3 = vcombine.high %v2721_v62, %v2737_v63  ;;  %v5503_v37 = vcombine.low %v2721_v62, %v2737_v63  ;;  %v5505_v38 = vcombine.low %v2722_v0, %v2738_v1  ;;  %v2708_v62 = vld [vmem:[#allocation16 + $0x4b8] sm:$0xff] }
 0xd2d   :  { %4354 = vmatpush1.bf16.msra.mxu1 %v5499_v4  ;;  %4395 = vmatpush1.bf16.msra.mxu0 %v5501_v23  ;;  %v5506_v4 = vcombine.high %v2722_v0, %v2738_v1  ;;  %v2753_v23 = vld [vmem:[#allocation16 + $0x620] sm:$0xff] }
 0xd2e   :  { %4355 = vmatprep.subr.bf16.mxu1 %v5532_v24  ;;  %4396 = vmatprep.subr.bf16.mxu0 %v5534_v25  ;;  %v2769_v24 = vld [vmem:[#allocation16 + $0x6a0] sm:$0xff]  ;;  %v2754_v25 = vld [vmem:[#allocation16 + $0x628] sm:$0xff] }
 0xd2f   :  { %v5536_v39 = vcombine.high %v2753_v23, %v2769_v24  ;;  %v5535_v47 = vcombine.low %v2753_v23, %v2769_v24  ;;  %v5537_v48 = vcombine.low %v2754_v25, %v2770_v19  ;;  %v2740_v23 = vld [vmem:[#allocation16 + $0x5b8] sm:$0xff] }
 0xd31   :  { %4356 = vmatpush1.bf16.msra.mxu1 %v5531_v40  ;;  %4397 = vmatpush1.bf16.msra.mxu0 %v5533_v41  ;;  %v5538_v40 = vcombine.high %v2754_v25, %v2770_v19  ;;  %v2785_v41 = vld [vmem:[#allocation16 + $0x720] sm:$0xff] }
 0xd32   :  { %4357 = vmatprep.subr.bf16.mxu1 %v5564_v43  ;;  %4398 = vmatprep.subr.bf16.mxu0 %v5566_v45  ;;  %v2801_v43 = vld [vmem:[#allocation16 + $0x7a0] sm:$0xff]  ;;  %v2786_v45 = vld [vmem:[#allocation16 + $0x728] sm:$0xff] }
 0xd33   :  { %v5568_v51 = vcombine.high %v2785_v41, %v2801_v43  ;;  %v5567_v44 = vcombine.low %v2785_v41, %v2801_v43  ;;  %v5569_v16 = vcombine.low %v2786_v45, %v2802_v46  ;;  %v2772_v41 = vld [vmem:[#allocation16 + $0x6b8] sm:$0xff] }
 0xd35   :  { %4358 = vmatpush1.bf16.msra.mxu1 %v5563_v52  ;;  %4399 = vmatpush1.bf16.msra.mxu0 %v5565_v27  ;;  %v5570_v52 = vcombine.high %v2786_v45, %v2802_v46  ;;  %v2563_v27 = vld [vmem:[#allocation16 + $0x30] sm:$0xff] }
 0xd36   :  { %4425 = vmatprep.subr.bf16.mxu1 %v5344_v54  ;;  %4466 = vmatprep.subr.bf16.mxu0 %v5346_v55  ;;  %v2579_v54 = vld [vmem:[#allocation16 + $0xb0] sm:$0xff]  ;;  %v2564_v55 = vld [vmem:[#allocation16 + $0x38] sm:$0xff] }
 0xd37   :  { %v5348_v17 = vcombine.high %v2563_v27, %v2579_v54  ;;  %v5347_v15 = vcombine.low %v2563_v27, %v2579_v54  ;;  %v5349_v12 = vcombine.low %v2564_v55, %v2580_v26  ;;  %v2804_v27 = vld [vmem:[#allocation16 + $0x7b8] sm:$0xff] }
 0xd38   :  { %4376 = vmatmul.mubr.bf16.vlgmr.msra.gmra.mrb[32].mxu1 %v6914_v42  ;;  %4417 = vmatmul.mubr.bf16.vlgmr.msra.gmra.mrb[32].mxu0 %v6914_v42 }
 0xd39   :  { %4426 = vmatpush1.bf16.msra.mxu1 %v5343_v18  ;;  %4467 = vmatpush1.bf16.msra.mxu0 %v5345_v21  ;;  %v5350_v18 = vcombine.high %v2564_v55, %v2580_v26  ;;  %v2595_v21 = vld [vmem:[#allocation16 + $0x130] sm:$0xff] }
 0xd3a   :  { %4427 = vmatprep.subr.bf16.mxu1 %v5376_v22  ;;  %4468 = vmatprep.subr.bf16.mxu0 %v5378_v28  ;;  %v2611_v22 = vld [vmem:[#allocation16 + $0x1b0] sm:$0xff]  ;;  %v2596_v28 = vld [vmem:[#allocation16 + $0x138] sm:$0xff] }
 0xd3b   :  { %4457 = vmatprep.mubr.bf16.mxu1 %v6413_v53  ;;  %4498 = vmatprep.mubr.bf16.mxu0 %v6413_v53  ;;  %v5380_v50 = vcombine.high %v2595_v21, %v2611_v22  ;;  %v5379_v56 = vcombine.low %v2595_v21, %v2611_v22  ;;  %v5381_v5 = vcombine.low %v2596_v28, %v2612_v29  ;;  %v2582_v21 = vld [vmem:[#allocation16 + $0xc8] sm:$0xff] }
 0xd3d   :  { %4428 = vmatpush1.bf16.msra.mxu1 %v5375_v30  ;;  %4469 = vmatpush1.bf16.msra.mxu0 %v5377_v13  ;;  %v5382_v30 = vcombine.high %v2596_v28, %v2612_v29  ;;  %v2627_v13 = vld [vmem:[#allocation16 + $0x230] sm:$0xff] }
 0xd3e   :  { %4429 = vmatprep.subr.bf16.mxu1 %v5408_v31  ;;  %4470 = vmatprep.subr.bf16.mxu0 %v5410_v34  ;;  %v2643_v31 = vld [vmem:[#allocation16 + $0x2b0] sm:$0xff]  ;;  %v2628_v34 = vld [vmem:[#allocation16 + $0x238] sm:$0xff] }
 0xd3f   :  { %v5412_v6 = vcombine.high %v2627_v13, %v2643_v31  ;;  %v5411_v11 = vcombine.low %v2627_v13, %v2643_v31  ;;  %v5413_v14 = vcombine.low %v2628_v34, %v2644_v36  ;;  %v2614_v13 = vld [vmem:[#allocation16 + $0x1c8] sm:$0xff] }
 0xd41   :  { %4430 = vmatpush1.bf16.msra.mxu1 %v5407_v7  ;;  %4471 = vmatpush1.bf16.msra.mxu0 %v5409_v8  ;;  %v5414_v7 = vcombine.high %v2628_v34, %v2644_v36  ;;  %v2659_v8 = vld [vmem:[#allocation16 + $0x330] sm:$0xff] }
 0xd42   :  { %4431 = vmatprep.subr.bf16.mxu1 %v5440_v9  ;;  %4472 = vmatprep.subr.bf16.mxu0 %v5442_v10  ;;  %v2675_v9 = vld [vmem:[#allocation16 + $0x3b0] sm:$0xff]  ;;  %v2660_v10 = vld [vmem:[#allocation16 + $0x338] sm:$0xff] }
 0xd43   :  { %v5444_v49 = vcombine.high %v2659_v8, %v2675_v9  ;;  %v5443_v63 = vcombine.low %v2659_v8, %v2675_v9  ;;  %v5445_v0 = vcombine.low %v2660_v10, %v2676_v57  ;;  %v2646_v8 = vld [vmem:[#allocation16 + $0x2c8] sm:$0xff] }
 0xd45   :  { %4432 = vmatpush1.bf16.msra.mxu1 %v5439_v58  ;;  %4473 = vmatpush1.bf16.msra.mxu0 %v5441_v59  ;;  %v5446_v58 = vcombine.high %v2660_v10, %v2676_v57  ;;  %v2691_v59 = vld [vmem:[#allocation16 + $0x430] sm:$0xff] }
 0xd46   :  { %4433 = vmatprep.subr.bf16.mxu1 %v5472_v60  ;;  %4474 = vmatprep.subr.bf16.mxu0 %v5474_v61  ;;  %v2707_v60 = vld [vmem:[#allocation16 + $0x4b0] sm:$0xff]  ;;  %v2692_v61 = vld [vmem:[#allocation16 + $0x438] sm:$0xff] }
 0xd47   :  { %v5476_v1 = vcombine.high %v2691_v59, %v2707_v60  ;;  %v5475_v24 = vcombine.low %v2691_v59, %v2707_v60  ;;  %v5477_v25 = vcombine.low %v2692_v61, %v2708_v62  ;;  %v2678_v59 = vld [vmem:[#allocation16 + $0x3c8] sm:$0xff] }
 0xd49   :  { %4434 = vmatpush1.bf16.msra.mxu1 %v5471_v2  ;;  %4475 = vmatpush1.bf16.msra.mxu0 %v5473_v20  ;;  %v5478_v2 = vcombine.high %v2692_v61, %v2708_v62  ;;  %v2723_v20 = vld [vmem:[#allocation16 + $0x530] sm:$0xff] }
 0xd4a   :  { %4435 = vmatprep.subr.bf16.mxu1 %v5504_v3  ;;  %4476 = vmatprep.subr.bf16.mxu0 %v5506_v4  ;;  %v2739_v3 = vld [vmem:[#allocation16 + $0x5b0] sm:$0xff]  ;;  %v2724_v4 = vld [vmem:[#allocation16 + $0x538] sm:$0xff] }
 0xd4b   :  { %v5508_v19 = vcombine.high %v2723_v20, %v2739_v3  ;;  %v5507_v43 = vcombine.low %v2723_v20, %v2739_v3  ;;  %v5509_v45 = vcombine.low %v2724_v4, %v2740_v23  ;;  %v2710_v20 = vld [vmem:[#allocation16 + $0x4c8] sm:$0xff] }
 0xd4d   :  { %4436 = vmatpush1.bf16.msra.mxu1 %v5503_v37  ;;  %4477 = vmatpush1.bf16.msra.mxu0 %v5505_v38  ;;  %v5510_v37 = vcombine.high %v2724_v4, %v2740_v23  ;;  %v2755_v38 = vld [vmem:[#allocation16 + $0x630] sm:$0xff] }
 0xd4e   :  { %4437 = vmatprep.subr.bf16.mxu1 %v5536_v39  ;;  %4478 = vmatprep.subr.bf16.mxu0 %v5538_v40  ;;  %v2771_v39 = vld [vmem:[#allocation16 + $0x6b0] sm:$0xff]  ;;  %v2756_v40 = vld [vmem:[#allocation16 + $0x638] sm:$0xff] }
 0xd4f   :  { %v5540_v46 = vcombine.high %v2755_v38, %v2771_v39  ;;  %v5539_v54 = vcombine.low %v2755_v38, %v2771_v39  ;;  %v5541_v55 = vcombine.low %v2756_v40, %v2772_v41  ;;  %v2742_v38 = vld [vmem:[#allocation16 + $0x5c8] sm:$0xff] }
 0xd51   :  { %4438 = vmatpush1.bf16.msra.mxu1 %v5535_v47  ;;  %4479 = vmatpush1.bf16.msra.mxu0 %v5537_v48  ;;  %v5542_v47 = vcombine.high %v2756_v40, %v2772_v41  ;;  %v2787_v48 = vld [vmem:[#allocation16 + $0x730] sm:$0xff] }
 0xd52   :  { %4439 = vmatprep.subr.bf16.mxu1 %v5568_v51  ;;  %4480 = vmatprep.subr.bf16.mxu0 %v5570_v52  ;;  %v2803_v51 = vld [vmem:[#allocation16 + $0x7b0] sm:$0xff]  ;;  %v2788_v52 = vld [vmem:[#allocation16 + $0x738] sm:$0xff] }
 0xd53   :  { %v5572_v26 = vcombine.high %v2787_v48, %v2803_v51  ;;  %v5571_v22 = vcombine.low %v2787_v48, %v2803_v51  ;;  %v5573_v28 = vcombine.low %v2788_v52, %v2804_v27  ;;  %v2774_v48 = vld [vmem:[#allocation16 + $0x6c8] sm:$0xff] }
 0xd55   :  { %4440 = vmatpush1.bf16.msra.mxu1 %v5567_v44  ;;  %4481 = vmatpush1.bf16.msra.mxu0 %v5569_v16  ;;  %v5574_v44 = vcombine.high %v2788_v52, %v2804_v27  ;;  %v2565_v16 = vld [vmem:[#allocation16 + $0x40] sm:$0xff] }
 0xd56   :  { %4507 = vmatprep.subr.bf16.mxu1 %v5348_v17  ;;  %4548 = vmatprep.subr.bf16.mxu0 %v5350_v18  ;;  %v2581_v17 = vld [vmem:[#allocation16 + $0xc0] sm:$0xff]  ;;  %v2566_v18 = vld [vmem:[#allocation16 + $0x48] sm:$0xff] }
 0xd57   :  { %v5352_v29 = vcombine.high %v2565_v16, %v2581_v17  ;;  %v5351_v31 = vcombine.low %v2565_v16, %v2581_v17  ;;  %v5353_v34 = vcombine.low %v2566_v18, %v2582_v21  ;;  %v2806_v16 = vld [vmem:[#allocation16 + $0x7c8] sm:$0xff] }
 0xd58   :  { %4458 = vmatmul.mubr.bf16.vlgmr.msra.gmra.mrb[36].mxu1 %v6914_v42  ;;  %4499 = vmatmul.mubr.bf16.vlgmr.msra.gmra.mrb[36].mxu0 %v6914_v42 }
 0xd59   :  { %4508 = vmatpush1.bf16.msra.mxu1 %v5347_v15  ;;  %4549 = vmatpush1.bf16.msra.mxu0 %v5349_v12  ;;  %v5354_v15 = vcombine.high %v2566_v18, %v2582_v21  ;;  %v2597_v12 = vld [vmem:[#allocation16 + $0x140] sm:$0xff] }
 0xd5a   :  { %4509 = vmatprep.subr.bf16.mxu1 %v5380_v50  ;;  %4550 = vmatprep.subr.bf16.mxu0 %v5382_v30  ;;  %v2613_v50 = vld [vmem:[#allocation16 + $0x1c0] sm:$0xff]  ;;  %v2598_v30 = vld [vmem:[#allocation16 + $0x148] sm:$0xff] }
 0xd5b   :  { %4539 = vmatprep.mubr.bf16.mxu1 %v6413_v53  ;;  %4580 = vmatprep.mubr.bf16.mxu0 %v6413_v53  ;;  %v5384_v36 = vcombine.high %v2597_v12, %v2613_v50  ;;  %v5383_v9 = vcombine.low %v2597_v12, %v2613_v50  ;;  %v5385_v10 = vcombine.low %v2598_v30, %v2614_v13  ;;  %v2584_v12 = vld [vmem:[#allocation16 + $0xd8] sm:$0xff] }
 0xd5d   :  { %4510 = vmatpush1.bf16.msra.mxu1 %v5379_v56  ;;  %4551 = vmatpush1.bf16.msra.mxu0 %v5381_v5  ;;  %v5386_v56 = vcombine.high %v2598_v30, %v2614_v13  ;;  %v2629_v5 = vld [vmem:[#allocation16 + $0x240] sm:$0xff] }
 0xd5e   :  { %4511 = vmatprep.subr.bf16.mxu1 %v5412_v6  ;;  %4552 = vmatprep.subr.bf16.mxu0 %v5414_v7  ;;  %v2645_v6 = vld [vmem:[#allocation16 + $0x2c0] sm:$0xff]  ;;  %v2630_v7 = vld [vmem:[#allocation16 + $0x248] sm:$0xff] }
 0xd5f   :  { %v5416_v57 = vcombine.high %v2629_v5, %v2645_v6  ;;  %v5415_v60 = vcombine.low %v2629_v5, %v2645_v6  ;;  %v5417_v61 = vcombine.low %v2630_v7, %v2646_v8  ;;  %v2616_v5 = vld [vmem:[#allocation16 + $0x1d8] sm:$0xff] }
 0xd61   :  { %4512 = vmatpush1.bf16.msra.mxu1 %v5411_v11  ;;  %4553 = vmatpush1.bf16.msra.mxu0 %v5413_v14  ;;  %v5418_v11 = vcombine.high %v2630_v7, %v2646_v8  ;;  %v2661_v14 = vld [vmem:[#allocation16 + $0x340] sm:$0xff] }
 0xd62   :  { %4513 = vmatprep.subr.bf16.mxu1 %v5444_v49  ;;  %4554 = vmatprep.subr.bf16.mxu0 %v5446_v58  ;;  %v2677_v49 = vld [vmem:[#allocation16 + $0x3c0] sm:$0xff]  ;;  %v2662_v58 = vld [vmem:[#allocation16 + $0x348] sm:$0xff] }
 0xd63   :  { %v5448_v62 = vcombine.high %v2661_v14, %v2677_v49  ;;  %v5447_v3 = vcombine.low %v2661_v14, %v2677_v49  ;;  %v5449_v4 = vcombine.low %v2662_v58, %v2678_v59  ;;  %v2648_v14 = vld [vmem:[#allocation16 + $0x2d8] sm:$0xff] }
 0xd65   :  { %4514 = vmatpush1.bf16.msra.mxu1 %v5443_v63  ;;  %4555 = vmatpush1.bf16.msra.mxu0 %v5445_v0  ;;  %v5450_v63 = vcombine.high %v2662_v58, %v2678_v59  ;;  %v2693_v0 = vld [vmem:[#allocation16 + $0x440] sm:$0xff] }
 0xd66   :  { %4515 = vmatprep.subr.bf16.mxu1 %v5476_v1  ;;  %4556 = vmatprep.subr.bf16.mxu0 %v5478_v2  ;;  %v2709_v1 = vld [vmem:[#allocation16 + $0x4c0] sm:$0xff]  ;;  %v2694_v2 = vld [vmem:[#allocation16 + $0x448] sm:$0xff] }
 0xd67   :  { %v5480_v23 = vcombine.high %v2693_v0, %v2709_v1  ;;  %v5479_v39 = vcombine.low %v2693_v0, %v2709_v1  ;;  %v5481_v40 = vcombine.low %v2694_v2, %v2710_v20  ;;  %v2680_v0 = vld [vmem:[#allocation16 + $0x3d8] sm:$0xff] }
 0xd69   :  { %4516 = vmatpush1.bf16.msra.mxu1 %v5475_v24  ;;  %4557 = vmatpush1.bf16.msra.mxu0 %v5477_v25  ;;  %v5482_v24 = vcombine.high %v2694_v2, %v2710_v20  ;;  %v2725_v25 = vld [vmem:[#allocation16 + $0x540] sm:$0xff] }
 0xd6a   :  { %4517 = vmatprep.subr.bf16.mxu1 %v5508_v19  ;;  %4558 = vmatprep.subr.bf16.mxu0 %v5510_v37  ;;  %v2741_v19 = vld [vmem:[#allocation16 + $0x5c0] sm:$0xff]  ;;  %v2726_v37 = vld [vmem:[#allocation16 + $0x548] sm:$0xff] }
 0xd6b   :  { %v5512_v41 = vcombine.high %v2725_v25, %v2741_v19  ;;  %v5511_v51 = vcombine.low %v2725_v25, %v2741_v19  ;;  %v5513_v52 = vcombine.low %v2726_v37, %v2742_v38  ;;  %v2712_v25 = vld [vmem:[#allocation16 + $0x4d8] sm:$0xff] }
 0xd6d   :  { %4518 = vmatpush1.bf16.msra.mxu1 %v5507_v43  ;;  %4559 = vmatpush1.bf16.msra.mxu0 %v5509_v45  ;;  %v5514_v43 = vcombine.high %v2726_v37, %v2742_v38  ;;  %v2757_v45 = vld [vmem:[#allocation16 + $0x640] sm:$0xff] }
 0xd6e   :  { %4519 = vmatprep.subr.bf16.mxu1 %v5540_v46  ;;  %4560 = vmatprep.subr.bf16.mxu0 %v5542_v47  ;;  %v2773_v46 = vld [vmem:[#allocation16 + $0x6c0] sm:$0xff]  ;;  %v2758_v47 = vld [vmem:[#allocation16 + $0x648] sm:$0xff] }
 0xd6f   :  { %v5544_v27 = vcombine.high %v2757_v45, %v2773_v46  ;;  %v5543_v17 = vcombine.low %v2757_v45, %v2773_v46  ;;  %v5545_v18 = vcombine.low %v2758_v47, %v2774_v48  ;;  %v2744_v45 = vld [vmem:[#allocation16 + $0x5d8] sm:$0xff] }
 0xd71   :  { %4520 = vmatpush1.bf16.msra.mxu1 %v5539_v54  ;;  %4561 = vmatpush1.bf16.msra.mxu0 %v5541_v55  ;;  %v5546_v54 = vcombine.high %v2758_v47, %v2774_v48  ;;  %v2789_v55 = vld [vmem:[#allocation16 + $0x740] sm:$0xff] }
 0xd72   :  { %4521 = vmatprep.subr.bf16.mxu1 %v5572_v26  ;;  %4562 = vmatprep.subr.bf16.mxu0 %v5574_v44  ;;  %v2805_v26 = vld [vmem:[#allocation16 + $0x7c0] sm:$0xff]  ;;  %v2790_v44 = vld [vmem:[#allocation16 + $0x748] sm:$0xff] }
 0xd73   :  { %v5576_v21 = vcombine.high %v2789_v55, %v2805_v26  ;;  %v5575_v50 = vcombine.low %v2789_v55, %v2805_v26  ;;  %v5577_v30 = vcombine.low %v2790_v44, %v2806_v16  ;;  %v2776_v55 = vld [vmem:[#allocation16 + $0x6d8] sm:$0xff] }
 0xd75   :  { %4522 = vmatpush1.bf16.msra.mxu1 %v5571_v22  ;;  %4563 = vmatpush1.bf16.msra.mxu0 %v5573_v28  ;;  %v5578_v22 = vcombine.high %v2790_v44, %v2806_v16  ;;  %v2567_v28 = vld [vmem:[#allocation16 + $0x50] sm:$0xff] }
 0xd76   :  { %4589 = vmatprep.subr.bf16.mxu1 %v5352_v29  ;;  %4630 = vmatprep.subr.bf16.mxu0 %v5354_v15  ;;  %v2583_v29 = vld [vmem:[#allocation16 + $0xd0] sm:$0xff]  ;;  %v2568_v15 = vld [vmem:[#allocation16 + $0x58] sm:$0xff] }
 0xd77   :  { %v5356_v13 = vcombine.high %v2567_v28, %v2583_v29  ;;  %v5355_v6 = vcombine.low %v2567_v28, %v2583_v29  ;;  %v5357_v7 = vcombine.low %v2568_v15, %v2584_v12  ;;  %v2808_v28 = vld [vmem:[#allocation16 + $0x7d8] sm:$0xff] }
 0xd78   :  { %4540 = vmatmul.mubr.bf16.vlgmr.msra.gmra.mrb[40].mxu1 %v6914_v42  ;;  %4581 = vmatmul.mubr.bf16.vlgmr.msra.gmra.mrb[40].mxu0 %v6914_v42 }
 0xd79   :  { %4590 = vmatpush1.bf16.msra.mxu1 %v5351_v31  ;;  %4631 = vmatpush1.bf16.msra.mxu0 %v5353_v34  ;;  %v5358_v31 = vcombine.high %v2568_v15, %v2584_v12  ;;  %v2599_v34 = vld [vmem:[#allocation16 + $0x150] sm:$0xff] }
 0xd7a   :  { %4591 = vmatprep.subr.bf16.mxu1 %v5384_v36  ;;  %4632 = vmatprep.subr.bf16.mxu0 %v5386_v56  ;;  %v2615_v36 = vld [vmem:[#allocation16 + $0x1d0] sm:$0xff]  ;;  %v2600_v56 = vld [vmem:[#allocation16 + $0x158] sm:$0xff] }
 0xd7b   :  { %4621 = vmatprep.mubr.bf16.mxu1 %v6413_v53  ;;  %4662 = vmatprep.mubr.bf16.mxu0 %v6413_v53  ;;  %v5388_v8 = vcombine.high %v2599_v34, %v2615_v36  ;;  %v5387_v49 = vcombine.low %v2599_v34, %v2615_v36  ;;  %v5389_v58 = vcombine.low %v2600_v56, %v2616_v5  ;;  %v2586_v34 = vld [vmem:[#allocation16 + $0xe8] sm:$0xff] }
 0xd7d   :  { %4592 = vmatpush1.bf16.msra.mxu1 %v5383_v9  ;;  %4633 = vmatpush1.bf16.msra.mxu0 %v5385_v10  ;;  %v5390_v9 = vcombine.high %v2600_v56, %v2616_v5  ;;  %v2631_v10 = vld [vmem:[#allocation16 + $0x250] sm:$0xff] }
 0xd7e   :  { %4593 = vmatprep.subr.bf16.mxu1 %v5416_v57  ;;  %4634 = vmatprep.subr.bf16.mxu0 %v5418_v11  ;;  %v2647_v57 = vld [vmem:[#allocation16 + $0x2d0] sm:$0xff]  ;;  %v2632_v11 = vld [vmem:[#allocation16 + $0x258] sm:$0xff] }
 0xd7f   :  { %v5420_v59 = vcombine.high %v2631_v10, %v2647_v57  ;;  %v5419_v1 = vcombine.low %v2631_v10, %v2647_v57  ;;  %v5421_v2 = vcombine.low %v2632_v11, %v2648_v14  ;;  %v2618_v10 = vld [vmem:[#allocation16 + $0x1e8] sm:$0xff] }
 0xd81   :  { %4594 = vmatpush1.bf16.msra.mxu1 %v5415_v60  ;;  %4635 = vmatpush1.bf16.msra.mxu0 %v5417_v61  ;;  %v5422_v60 = vcombine.high %v2632_v11, %v2648_v14  ;;  %v2663_v61 = vld [vmem:[#allocation16 + $0x350] sm:$0xff] }
 0xd82   :  { %4595 = vmatprep.subr.bf16.mxu1 %v5448_v62  ;;  %4636 = vmatprep.subr.bf16.mxu0 %v5450_v63  ;;  %v2679_v62 = vld [vmem:[#allocation16 + $0x3d0] sm:$0xff]  ;;  %v2664_v63 = vld [vmem:[#allocation16 + $0x358] sm:$0xff] }
 0xd83   :  { %v5452_v20 = vcombine.high %v2663_v61, %v2679_v62  ;;  %v5451_v19 = vcombine.low %v2663_v61, %v2679_v62  ;;  %v5453_v37 = vcombine.low %v2664_v63, %v2680_v0  ;;  %v2650_v61 = vld [vmem:[#allocation16 + $0x2e8] sm:$0xff] }
 0xd85   :  { %4596 = vmatpush1.bf16.msra.mxu1 %v5447_v3  ;;  %4637 = vmatpush1.bf16.msra.mxu0 %v5449_v4  ;;  %v5454_v3 = vcombine.high %v2664_v63, %v2680_v0  ;;  %v2695_v4 = vld [vmem:[#allocation16 + $0x450] sm:$0xff] }
 0xd86   :  { %4597 = vmatprep.subr.bf16.mxu1 %v5480_v23  ;;  %4638 = vmatprep.subr.bf16.mxu0 %v5482_v24  ;;  %v2711_v23 = vld [vmem:[#allocation16 + $0x4d0] sm:$0xff]  ;;  %v2696_v24 = vld [vmem:[#allocation16 + $0x458] sm:$0xff] }
 0xd87   :  { %v5484_v38 = vcombine.high %v2695_v4, %v2711_v23  ;;  %v5483_v46 = vcombine.low %v2695_v4, %v2711_v23  ;;  %v5485_v47 = vcombine.low %v2696_v24, %v2712_v25  ;;  %v2682_v4 = vld [vmem:[#allocation16 + $0x3e8] sm:$0xff] }
 0xd89   :  { %4598 = vmatpush1.bf16.msra.mxu1 %v5479_v39  ;;  %4639 = vmatpush1.bf16.msra.mxu0 %v5481_v40  ;;  %v5486_v39 = vcombine.high %v2696_v24, %v2712_v25  ;;  %v2727_v40 = vld [vmem:[#allocation16 + $0x550] sm:$0xff] }
 0xd8a   :  { %4599 = vmatprep.subr.bf16.mxu1 %v5512_v41  ;;  %4640 = vmatprep.subr.bf16.mxu0 %v5514_v43  ;;  %v2743_v41 = vld [vmem:[#allocation16 + $0x5d0] sm:$0xff]  ;;  %v2728_v43 = vld [vmem:[#allocation16 + $0x558] sm:$0xff] }
 0xd8b   :  { %v5516_v48 = vcombine.high %v2727_v40, %v2743_v41  ;;  %v5515_v26 = vcombine.low %v2727_v40, %v2743_v41  ;;  %v5517_v44 = vcombine.low %v2728_v43, %v2744_v45  ;;  %v2714_v40 = vld [vmem:[#allocation16 + $0x4e8] sm:$0xff] }
 0xd8d   :  { %4600 = vmatpush1.bf16.msra.mxu1 %v5511_v51  ;;  %4641 = vmatpush1.bf16.msra.mxu0 %v5513_v52  ;;  %v5518_v51 = vcombine.high %v2728_v43, %v2744_v45  ;;  %v2759_v52 = vld [vmem:[#allocation16 + $0x650] sm:$0xff] }
 0xd8e   :  { %4601 = vmatprep.subr.bf16.mxu1 %v5544_v27  ;;  %4642 = vmatprep.subr.bf16.mxu0 %v5546_v54  ;;  %v2775_v27 = vld [vmem:[#allocation16 + $0x6d0] sm:$0xff]  ;;  %v2760_v54 = vld [vmem:[#allocation16 + $0x658] sm:$0xff] }
 0xd8f   :  { %v5548_v16 = vcombine.high %v2759_v52, %v2775_v27  ;;  %v5547_v29 = vcombine.low %v2759_v52, %v2775_v27  ;;  %v5549_v15 = vcombine.low %v2760_v54, %v2776_v55  ;;  %v2746_v52 = vld [vmem:[#allocation16 + $0x5e8] sm:$0xff] }
 0xd91   :  { %4602 = vmatpush1.bf16.msra.mxu1 %v5543_v17  ;;  %4643 = vmatpush1.bf16.msra.mxu0 %v5545_v18  ;;  %v5550_v17 = vcombine.high %v2760_v54, %v2776_v55  ;;  %v2791_v18 = vld [vmem:[#allocation16 + $0x750] sm:$0xff] }
 0xd92   :  { %4603 = vmatprep.subr.bf16.mxu1 %v5576_v21  ;;  %4644 = vmatprep.subr.bf16.mxu0 %v5578_v22  ;;  %v2807_v21 = vld [vmem:[#allocation16 + $0x7d0] sm:$0xff]  ;;  %v2792_v22 = vld [vmem:[#allocation16 + $0x758] sm:$0xff] }
 0xd93   :  { %v5580_v12 = vcombine.high %v2791_v18, %v2807_v21  ;;  %v5579_v36 = vcombine.low %v2791_v18, %v2807_v21  ;;  %v5581_v56 = vcombine.low %v2792_v22, %v2808_v28  ;;  %v2778_v18 = vld [vmem:[#allocation16 + $0x6e8] sm:$0xff] }
 0xd95   :  { %4604 = vmatpush1.bf16.msra.mxu1 %v5575_v50  ;;  %4645 = vmatpush1.bf16.msra.mxu0 %v5577_v30  ;;  %v5582_v50 = vcombine.high %v2792_v22, %v2808_v28  ;;  %v2569_v30 = vld [vmem:[#allocation16 + $0x60] sm:$0xff] }
 0xd96   :  { %4671 = vmatprep.subr.bf16.mxu1 %v5356_v13  ;;  %4712 = vmatprep.subr.bf16.mxu0 %v5358_v31  ;;  %v2585_v13 = vld [vmem:[#allocation16 + $0xe0] sm:$0xff]  ;;  %v2570_v31 = vld [vmem:[#allocation16 + $0x68] sm:$0xff] }
 0xd97   :  { %v5360_v5 = vcombine.high %v2569_v30, %v2585_v13  ;;  %v5359_v57 = vcombine.low %v2569_v30, %v2585_v13  ;;  %v5361_v11 = vcombine.low %v2570_v31, %v2586_v34  ;;  %v2810_v30 = vld [vmem:[#allocation16 + $0x7e8] sm:$0xff] }
 0xd98   :  { %4622 = vmatmul.mubr.bf16.vlgmr.msra.gmra.mrb[44].mxu1 %v6914_v42  ;;  %4663 = vmatmul.mubr.bf16.vlgmr.msra.gmra.mrb[44].mxu0 %v6914_v42 }
 0xd99   :  { %4672 = vmatpush1.bf16.msra.mxu1 %v5355_v6  ;;  %4713 = vmatpush1.bf16.msra.mxu0 %v5357_v7  ;;  %v5362_v6 = vcombine.high %v2570_v31, %v2586_v34  ;;  %v2601_v7 = vld [vmem:[#allocation16 + $0x160] sm:$0xff] }
 0xd9a   :  { %4673 = vmatprep.subr.bf16.mxu1 %v5388_v8  ;;  %4714 = vmatprep.subr.bf16.mxu0 %v5390_v9  ;;  %v2617_v8 = vld [vmem:[#allocation16 + $0x1e0] sm:$0xff]  ;;  %v2602_v9 = vld [vmem:[#allocation16 + $0x168] sm:$0xff] }
 0xd9b   :  { %4703 = vmatprep.mubr.bf16.mxu1 %v6413_v53  ;;  %4744 = vmatprep.mubr.bf16.mxu0 %v6413_v53  ;;  %v5392_v14 = vcombine.high %v2601_v7, %v2617_v8  ;;  %v5391_v62 = vcombine.low %v2601_v7, %v2617_v8  ;;  %v5393_v63 = vcombine.low %v2602_v9, %v2618_v10  ;;  %v2588_v7 = vld [vmem:[#allocation16 + $0xf8] sm:$0xff] }
 0xd9d   :  { %4674 = vmatpush1.bf16.msra.mxu1 %v5387_v49  ;;  %4715 = vmatpush1.bf16.msra.mxu0 %v5389_v58  ;;  %v5394_v49 = vcombine.high %v2602_v9, %v2618_v10  ;;  %v2633_v58 = vld [vmem:[#allocation16 + $0x260] sm:$0xff] }
 0xd9e   :  { %4675 = vmatprep.subr.bf16.mxu1 %v5420_v59  ;;  %4716 = vmatprep.subr.bf16.mxu0 %v5422_v60  ;;  %v2649_v59 = vld [vmem:[#allocation16 + $0x2e0] sm:$0xff]  ;;  %v2634_v60 = vld [vmem:[#allocation16 + $0x268] sm:$0xff] }
 0xd9f   :  { %v5424_v0 = vcombine.high %v2633_v58, %v2649_v59  ;;  %v5423_v23 = vcombine.low %v2633_v58, %v2649_v59  ;;  %v5425_v24 = vcombine.low %v2634_v60, %v2650_v61  ;;  %v2620_v58 = vld [vmem:[#allocation16 + $0x1f8] sm:$0xff] }
 0xda1   :  { %4676 = vmatpush1.bf16.msra.mxu1 %v5419_v1  ;;  %4717 = vmatpush1.bf16.msra.mxu0 %v5421_v2  ;;  %v5426_v1 = vcombine.high %v2634_v60, %v2650_v61  ;;  %v2665_v2 = vld [vmem:[#allocation16 + $0x360] sm:$0xff] }
 0xda2   :  { %4677 = vmatprep.subr.bf16.mxu1 %v5452_v20  ;;  %4718 = vmatprep.subr.bf16.mxu0 %v5454_v3  ;;  %v2681_v20 = vld [vmem:[#allocation16 + $0x3e0] sm:$0xff]  ;;  %v2666_v3 = vld [vmem:[#allocation16 + $0x368] sm:$0xff] }
 0xda3   :  { %v5456_v25 = vcombine.high %v2665_v2, %v2681_v20  ;;  %v5455_v41 = vcombine.low %v2665_v2, %v2681_v20  ;;  %v5457_v43 = vcombine.low %v2666_v3, %v2682_v4  ;;  %v2652_v2 = vld [vmem:[#allocation16 + $0x2f8] sm:$0xff] }
 0xda5   :  { %4678 = vmatpush1.bf16.msra.mxu1 %v5451_v19  ;;  %4719 = vmatpush1.bf16.msra.mxu0 %v5453_v37  ;;  %v5458_v19 = vcombine.high %v2666_v3, %v2682_v4  ;;  %v2697_v37 = vld [vmem:[#allocation16 + $0x460] sm:$0xff] }
 0xda6   :  { %4679 = vmatprep.subr.bf16.mxu1 %v5484_v38  ;;  %4720 = vmatprep.subr.bf16.mxu0 %v5486_v39  ;;  %v2713_v38 = vld [vmem:[#allocation16 + $0x4e0] sm:$0xff]  ;;  %v2698_v39 = vld [vmem:[#allocation16 + $0x468] sm:$0xff] }
 0xda7   :  { %v5488_v45 = vcombine.high %v2697_v37, %v2713_v38  ;;  %v5487_v27 = vcombine.low %v2697_v37, %v2713_v38  ;;  %v5489_v54 = vcombine.low %v2698_v39, %v2714_v40  ;;  %v2684_v37 = vld [vmem:[#allocation16 + $0x3f8] sm:$0xff] }
 0xda9   :  { %4680 = vmatpush1.bf16.msra.mxu1 %v5483_v46  ;;  %4721 = vmatpush1.bf16.msra.mxu0 %v5485_v47  ;;  %v5490_v46 = vcombine.high %v2698_v39, %v2714_v40  ;;  %v2729_v47 = vld [vmem:[#allocation16 + $0x560] sm:$0xff] }
 0xdaa   :  { %4681 = vmatprep.subr.bf16.mxu1 %v5516_v48  ;;  %4722 = vmatprep.subr.bf16.mxu0 %v5518_v51  ;;  %v2745_v48 = vld [vmem:[#allocation16 + $0x5e0] sm:$0xff]  ;;  %v2730_v51 = vld [vmem:[#allocation16 + $0x568] sm:$0xff] }
 0xdab   :  { %v5520_v55 = vcombine.high %v2729_v47, %v2745_v48  ;;  %v5519_v21 = vcombine.low %v2729_v47, %v2745_v48  ;;  %v5521_v22 = vcombine.low %v2730_v51, %v2746_v52  ;;  %v2716_v47 = vld [vmem:[#allocation16 + $0x4f8] sm:$0xff] }
 0xdad   :  { %4682 = vmatpush1.bf16.msra.mxu1 %v5515_v26  ;;  %4723 = vmatpush1.bf16.msra.mxu0 %v5517_v44  ;;  %v5522_v26 = vcombine.high %v2730_v51, %v2746_v52  ;;  %v2761_v44 = vld [vmem:[#allocation16 + $0x660] sm:$0xff] }
 0xdae   :  { %4683 = vmatprep.subr.bf16.mxu1 %v5548_v16  ;;  %4724 = vmatprep.subr.bf16.mxu0 %v5550_v17  ;;  %v2777_v16 = vld [vmem:[#allocation16 + $0x6e0] sm:$0xff]  ;;  %v2762_v17 = vld [vmem:[#allocation16 + $0x668] sm:$0xff] }
 0xdaf   :  { %v5552_v28 = vcombine.high %v2761_v44, %v2777_v16  ;;  %v5551_v13 = vcombine.low %v2761_v44, %v2777_v16  ;;  %v5553_v31 = vcombine.low %v2762_v17, %v2778_v18  ;;  %v6945_v44 = vsub.s32 2, %v6644_v32 }
 0xdb1   :  { %4684 = vmatpush1.bf16.msra.mxu1 %v5547_v29  ;;  %4725 = vmatpush1.bf16.msra.mxu0 %v5549_v15  ;;  %v5554_v29 = vcombine.high %v2762_v17, %v2778_v18  ;;  %v2793_v15 = vld [vmem:[#allocation16 + $0x760] sm:$0xff] }
 0xdb2   :  { %4685 = vmatprep.subr.bf16.mxu1 %v5580_v12  ;;  %4726 = vmatprep.subr.bf16.mxu0 %v5582_v50  ;;  %v2809_v12 = vld [vmem:[#allocation16 + $0x7e0] sm:$0xff]  ;;  %v2794_v50 = vld [vmem:[#allocation16 + $0x768] sm:$0xff] }
 0xdb3   :  { %v5584_v34 = vcombine.high %v2793_v15, %v2809_v12  ;;  %v5583_v8 = vcombine.low %v2793_v15, %v2809_v12  ;;  %v5585_v9 = vcombine.low %v2794_v50, %v2810_v30  ;;  %v6950_v18 = vld [vmem:[%s7043_s13] sm:$0xff]  ;;  %v2779_v15 = vld [vmem:[#allocation16 + $0x6f0] sm:$0xff] }
 0xdb4   :  { %v2764_v12 = vld [vmem:[#allocation16 + $0x678] sm:$0xff] }
 0xdb5   :  { %4686 = vmatpush1.bf16.msra.mxu1 %v5579_v36  ;;  %4727 = vmatpush1.bf16.msra.mxu0 %v5581_v56  ;;  %v5586_v36 = vcombine.high %v2794_v50, %v2810_v30  ;;  %v2571_v56 = vld [vmem:[#allocation16 + $0x70] sm:$0xff]  ;;  %v2780_v50 = vld [vmem:[#allocation16 + $0x6f8] sm:$0xff]  ;;  %v2824_v30 = vrot.slane %v6950_v18, %v6647_v33 }
 0xdb6   :  { %4753 = vmatprep.subr.bf16.mxu1 %v5360_v5  ;;  %4794 = vmatprep.subr.bf16.mxu0 %v5362_v6  ;;  %v2587_v5 = vld [vmem:[#allocation16 + $0xf0] sm:$0xff]  ;;  %v2572_v6 = vld [vmem:[#allocation16 + $0x78] sm:$0xff] }
 0xdb7   :  { %v5364_v10 = vcombine.high %v2571_v56, %v2587_v5  ;;  %v5363_v59 = vcombine.low %v2571_v56, %v2587_v5  ;;  %v5365_v60 = vcombine.low %v2572_v6, %v2588_v7 }
 0xdb8   :  { %4704 = vmatmul.mubr.bf16.vlgmr.msra.gmra.mrb[48].mxu1 %v6914_v42  ;;  %4745 = vmatmul.mubr.bf16.vlgmr.msra.gmra.mrb[48].mxu0 %v6914_v42 }
 0xdb9   :  { %4754 = vmatpush1.bf16.msra.mxu1 %v5359_v57  ;;  %4795 = vmatpush1.bf16.msra.mxu0 %v5361_v11  ;;  %v5366_v57 = vcombine.high %v2572_v6, %v2588_v7  ;;  %v2603_v11 = vld [vmem:[#allocation16 + $0x170] sm:$0xff]  ;;  %v5558_v6 = vcombine.high %v2764_v12, %v2780_v50 }
 0xdba   :  { %4755 = vmatprep.subr.bf16.mxu1 %v5392_v14  ;;  %4796 = vmatprep.subr.bf16.mxu0 %v5394_v49  ;;  %v2619_v14 = vld [vmem:[#allocation16 + $0x1f0] sm:$0xff]  ;;  %v2604_v49 = vld [vmem:[#allocation16 + $0x178] sm:$0xff] }
 0xdbb   :  { %4785 = vmatprep.mubr.bf16.mxu1 %v6413_v53  ;;  %4826 = vmatprep.mubr.bf16.mxu0 %v6413_v53  ;;  %v5396_v61 = vcombine.high %v2603_v11, %v2619_v14  ;;  %v5395_v20 = vcombine.low %v2603_v11, %v2619_v14  ;;  %v5397_v3 = vcombine.low %v2604_v49, %v2620_v58  ;;  %v2795_v7 = vld [vmem:[#allocation16 + $0x770] sm:$0xff]  ;;  %v2812_v11 = vld [vmem:[#allocation16 + $0x7f8] sm:$0xff] }
 0xdbd   :  { %4756 = vmatpush1.bf16.msra.mxu1 %v5391_v62  ;;  %4797 = vmatpush1.bf16.msra.mxu0 %v5393_v63  ;;  %v5398_v62 = vcombine.high %v2604_v49, %v2620_v58  ;;  %v2635_v63 = vld [vmem:[#allocation16 + $0x270] sm:$0xff] }
 0xdbe   :  { %4757 = vmatprep.subr.bf16.mxu1 %v5424_v0  ;;  %4798 = vmatprep.subr.bf16.mxu0 %v5426_v1  ;;  %v2651_v0 = vld [vmem:[#allocation16 + $0x2f0] sm:$0xff]  ;;  %v2636_v1 = vld [vmem:[#allocation16 + $0x278] sm:$0xff] }
 0xdbf   :  { %v5428_v4 = vcombine.high %v2635_v63, %v2651_v0  ;;  %v5427_v38 = vcombine.low %v2635_v63, %v2651_v0  ;;  %v5429_v39 = vcombine.low %v2636_v1, %v2652_v2 }
 0xdc1   :  { %4758 = vmatpush1.bf16.msra.mxu1 %v5423_v23  ;;  %4799 = vmatpush1.bf16.msra.mxu0 %v5425_v24  ;;  %v5430_v23 = vcombine.high %v2636_v1, %v2652_v2  ;;  %v2667_v24 = vld [vmem:[#allocation16 + $0x370] sm:$0xff]  ;;  %v5557_v1 = vcombine.low %v2764_v12, %v2780_v50 }
 0xdc2   :  { %4759 = vmatprep.subr.bf16.mxu1 %v5456_v25  ;;  %4800 = vmatprep.subr.bf16.mxu0 %v5458_v19  ;;  %v2683_v25 = vld [vmem:[#allocation16 + $0x3f0] sm:$0xff]  ;;  %v2668_v19 = vld [vmem:[#allocation16 + $0x378] sm:$0xff] }
 0xdc3   :  { %v5460_v40 = vcombine.high %v2667_v24, %v2683_v25  ;;  %v5459_v48 = vcombine.low %v2667_v24, %v2683_v25  ;;  %v5461_v51 = vcombine.low %v2668_v19, %v2684_v37 }
 0xdc5   :  { %4760 = vmatpush1.bf16.msra.mxu1 %v5455_v41  ;;  %4801 = vmatpush1.bf16.msra.mxu0 %v5457_v43  ;;  %v5462_v41 = vcombine.high %v2668_v19, %v2684_v37  ;;  %v2699_v43 = vld [vmem:[#allocation16 + $0x470] sm:$0xff]  ;;  %v6966_v37 = vsub.s32 4, %v6644_v32 }
 0xdc6   :  { %4761 = vmatprep.subr.bf16.mxu1 %v5488_v45  ;;  %4802 = vmatprep.subr.bf16.mxu0 %v5490_v46  ;;  %v2715_v45 = vld [vmem:[#allocation16 + $0x4f0] sm:$0xff]  ;;  %v2700_v46 = vld [vmem:[#allocation16 + $0x478] sm:$0xff] }
 0xdc7   :  { %v5492_v52 = vcombine.high %v2699_v43, %v2715_v45  ;;  %v5491_v16 = vcombine.low %v2699_v43, %v2715_v45  ;;  %v5493_v17 = vcombine.low %v2700_v46, %v2716_v47 }
 0xdc9   :  { %4762 = vmatpush1.bf16.msra.mxu1 %v5487_v27  ;;  %4803 = vmatpush1.bf16.msra.mxu0 %v5489_v54  ;;  %v2731_v27 = vld [vmem:[#allocation16 + $0x570] sm:$0xff] }
 0xdca   :  { %4763 = vmatprep.subr.bf16.mxu1 %v5520_v55  ;;  %4804 = vmatprep.subr.bf16.mxu0 %v5522_v26  ;;  %v2747_v54 = vld [vmem:[#allocation16 + $0x5f0] sm:$0xff]  ;;  %v2732_v55 = vld [vmem:[#allocation16 + $0x578] sm:$0xff] }
 0xdcb   :  { %v2748_v26 = vld [vmem:[#allocation16 + $0x5f8] sm:$0xff] }
 0xdcd   :  { %4764 = vmatpush1.bf16.msra.mxu1 %v5519_v21  ;;  %4805 = vmatpush1.bf16.msra.mxu0 %v5521_v22  ;;  %v6953_v21 = vsub.s32 3, %v6644_v32  ;;  %v5524_v22 = vcombine.high %v2731_v27, %v2747_v54 }
 0xdce   :  { %4765 = vmatprep.subr.bf16.mxu1 %v5552_v28  ;;  %4806 = vmatprep.subr.bf16.mxu0 %v5554_v29  ;;  %v5526_v28 = vcombine.high %v2732_v55, %v2748_v26  ;;  %v2763_v29 = vld [vmem:[#allocation16 + $0x670] sm:$0xff] }
 0xdcf   :  { %v2836_v56 = vrot.slane %v6950_v18, %v6953_v21  ;;  %v5556_v5 = vcombine.high %v2763_v29, %v2779_v15 }
 0xdd1   :  { %4766 = vmatpush1.bf16.msra.mxu1 %v5551_v13  ;;  %4807 = vmatpush1.bf16.msra.mxu0 %v5553_v31  ;;  %v2832_v13 = vrot.slane %v6950_v18, %v6945_v44  ;;  %v5523_v31 = vcombine.low %v2731_v27, %v2747_v54 }
 0xdd2   :  { %4767 = vmatprep.subr.bf16.mxu1 %v5584_v34  ;;  %4808 = vmatprep.subr.bf16.mxu0 %v5586_v36  ;;  %v5525_v34 = vcombine.low %v2732_v55, %v2748_v26  ;;  %v2828_v36 = vrot.slane %v6950_v18, %v6650_v35 }
 0xdd5   :  { %4768 = vmatpush1.bf16.msra.mxu1 %v5583_v8  ;;  %4809 = vmatpush1.bf16.msra.mxu0 %v5585_v9 }
 0xdd6   :  { %4835 = vmatprep.subr.bf16.mxu1 %v5364_v10  ;;  %4876 = vmatprep.subr.bf16.mxu0 %v5366_v57  ;;  %v2811_v10 = vld [vmem:[#allocation16 + $0x7f0] sm:$0xff]  ;;  %v2796_v57 = vld [vmem:[#allocation16 + $0x778] sm:$0xff] }
 0xdd7   :  { %v5587_v25 = vcombine.low %v2795_v7, %v2811_v10  ;;  %v5589_v19 = vcombine.low %v2796_v57, %v2812_v11 }
 0xdd8   :  { %4786 = vmatmul.mubr.bf16.vlgmr.msra.gmra.mrb[52].mxu1 %v6914_v42  ;;  %4827 = vmatmul.mubr.bf16.vlgmr.msra.gmra.mrb[52].mxu0 %v6914_v42 }
 0xdd9   :  { %4836 = vmatpush1.bf16.msra.mxu1 %v5363_v59  ;;  %4877 = vmatpush1.bf16.msra.mxu0 %v5365_v60  ;;  %v5555_v60 = vcombine.low %v2763_v29, %v2779_v15 }
 0xdda   :  { %4837 = vmatprep.subr.bf16.mxu1 %v5396_v61  ;;  %4878 = vmatprep.subr.bf16.mxu0 %v5398_v62 }
 0xddb   :  { %4867 = vmatprep.mubr.bf16.mxu1 %v6413_v53  ;;  %4908 = vmatprep.mubr.bf16.mxu0 %v6413_v53  ;;  %v5494_v53 = vcombine.high %v2700_v46, %v2716_v47 }
 0xddd   :  { %4838 = vmatpush1.bf16.msra.mxu1 %v5395_v20  ;;  %4879 = vmatpush1.bf16.msra.mxu0 %v5397_v3  ;;  %v5588_v3 = vcombine.high %v2795_v7, %v2811_v10 }
 0xdde   :  { %4839 = vmatprep.subr.bf16.mxu1 %v5428_v4  ;;  %4880 = vmatprep.subr.bf16.mxu0 %v5430_v23  ;;  %v5590_v4 = vcombine.high %v2796_v57, %v2812_v11 }
 0xde1   :  { %4840 = vmatpush1.bf16.msra.mxu1 %v5427_v38  ;;  %4881 = vmatpush1.bf16.msra.mxu0 %v5429_v39  ;;  %v6969_v38 = vsub.s32 6, %v6644_v32  ;;  %v6972_v39 = vsub.s32 5, %v6644_v32 }
 0xde2   :  { %4841 = vmatprep.subr.bf16.mxu1 %v5460_v40  ;;  %4882 = vmatprep.subr.bf16.mxu0 %v5462_v41  ;;  %v6975_v40 = vsub.s32 7, %v6644_v32  ;;  %v2840_v41 = vrot.slane %v6950_v18, %v6966_v37 }
 0xde3   :  { %v2848_v43 = vrot.slane %v6950_v18, %v6969_v38 }
 0xde4   :  { %v2852_v45 = vrot.slane %v6950_v18, %v6975_v40 }
 0xde5   :  { %4842 = vmatpush1.bf16.msra.mxu1 %v5459_v48  ;;  %4883 = vmatpush1.bf16.msra.mxu0 %v5461_v51 }
 0xde6   :  { %4843 = vmatprep.subr.bf16.mxu1 %v5492_v52  ;;  %4884 = vmatprep.subr.bf16.mxu0 %v5494_v53 }
 0xde9   :  { %4844 = vmatpush1.bf16.msra.mxu1 %v5491_v16  ;;  %4885 = vmatpush1.bf16.msra.mxu0 %v5493_v17 }
 0xdea   :  { %4845 = vmatprep.subr.bf16.mxu1 %v5524_v22  ;;  %4886 = vmatprep.subr.bf16.mxu0 %v5526_v28 }
 0xdeb   :  { %v4295_v8 = vpop.f32.mrb[28].mxu1  ;;  %v4336_v9 = vpop.f32.mrb[28].mxu0 }
 0xdec   :  { %v4296_v14 = vadd.f32 %v4295_v8, %v2824_v30  ;;  %v4337_v49 = vadd.f32 %v4336_v9, %v2832_v13  ;;  %v4297_v58 = vpop.f32.mrb[29].mxu1  ;;  %v4338_v59 = vpop.f32.mrb[29].mxu0 }
 0xded   :  { %v4298_v61 = vadd.f32 %v4297_v58, %v2828_v36  ;;  %v4339_v62 = vadd.f32 %v4338_v59, %v2836_v56  ;;  %4846 = vmatpush1.bf16.msra.mxu1 %v5523_v31  ;;  %4887 = vmatpush1.bf16.msra.mxu0 %v5525_v34  ;;  %v4299_v63 = vpop.f32.mrb[30].mxu1  ;;  %v4340_v0 = vpop.f32.mrb[30].mxu0 }
 0xdee   :  { %v4300_v2 = vpop.f32.mrb[31].mxu1  ;;  %v4341_v20 = vpop.f32.mrb[31].mxu0  ;;  %4847 = vmatprep.subr.bf16.mxu1 %v5556_v5  ;;  %4888 = vmatprep.subr.bf16.mxu0 %v5558_v6 }
 0xdef   :  { %v5607_v23 = vpack.c.bf16 %v4298_v61, %v4296_v14  ;;  %v5608_v24 = vpack.c.bf16 %v4339_v62, %v4337_v49 }
 0xdf1   :  { %5045 = vst [vmem:[#allocation17] sm:$0xff] %v5607_v23  ;;  %5046 = vst [vmem:[#allocation17 + $0x8] sm:$0xff] %v5608_v24  ;;  %4848 = vmatpush1.bf16.msra.mxu1 %v5555_v60  ;;  %4889 = vmatpush1.bf16.msra.mxu0 %v5557_v1 }
 0xdf2   :  { %4849 = vmatprep.subr.bf16.mxu1 %v5588_v3  ;;  %4890 = vmatprep.subr.bf16.mxu0 %v5590_v4 }
 0xdf5   :  { %4850 = vmatpush1.bf16.msra.mxu1 %v5587_v25  ;;  %4891 = vmatpush1.bf16.msra.mxu0 %v5589_v19  ;;  %v2815_v19 = vld [vmem:[%s7043_s13 + $0x10] sm:$0xff] }
 0xdf8   :  { %4868 = vmatmul.mubr.bf16.vlgmr.msra.gmra.mrb[56].mxu1 %v6914_v42  ;;  %4909 = vmatmul.mubr.bf16.vlgmr.msra.gmra.mrb[56].mxu0 %v6914_v42  ;;  %v2844_v42 = vrot.slane %v6950_v18, %v6972_v39  ;;  %v2814_v18 = vld [vmem:[%s7043_s13 + $0x8] sm:$0xff] }
 0xdf9   :  { %v2856_v28 = vrot.slane %v2814_v18, %v6647_v33  ;;  %v2864_v29 = vrot.slane %v2814_v18, %v6945_v44  ;;  %v2860_v15 = vrot.slane %v2814_v18, %v6650_v35  ;;  %v2868_v12 = vrot.slane %v2814_v18, %v6953_v21 }
 0xdfa   :  { %v2872_v11 = vrot.slane %v2814_v18, %v6966_v37  ;;  %v2880_v14 = vrot.slane %v2814_v18, %v6969_v38  ;;  %v2876_v49 = vrot.slane %v2814_v18, %v6972_v39  ;;  %v2884_v58 = vrot.slane %v2814_v18, %v6975_v40 }
 0xdfb   :  { %v2904_v18 = vrot.slane %v2815_v19, %v6966_v37 }
 0xe0b   :  { %v4377_v46 = vpop.f32.mrb[32].mxu1  ;;  %v4418_v47 = vpop.f32.mrb[32].mxu0 }
 0xe0c   :  { %v4378_v48 = vadd.f32 %v4377_v46, %v2840_v41  ;;  %v4419_v51 = vadd.f32 %v4418_v47, %v2848_v43  ;;  %v4379_v52 = vpop.f32.mrb[33].mxu1  ;;  %v4420_v53 = vpop.f32.mrb[33].mxu0  ;;  %v2888_v41 = vrot.slane %v2815_v19, %v6647_v33  ;;  %v2896_v43 = vrot.slane %v2815_v19, %v6945_v44 }
 0xe0d   :  { %v4380_v32 = vadd.f32 %v4379_v52, %v2844_v42  ;;  %v4421_v27 = vadd.f32 %v4420_v53, %v2852_v45  ;;  %v4381_v54 = vpop.f32.mrb[34].mxu1  ;;  %v4422_v55 = vpop.f32.mrb[34].mxu0  ;;  %v2892_v42 = vrot.slane %v2815_v19, %v6650_v35  ;;  %v2900_v45 = vrot.slane %v2815_v19, %v6953_v21 }
 0xe0e   :  { %v4382_v26 = vpop.f32.mrb[35].mxu1  ;;  %v4423_v16 = vpop.f32.mrb[35].mxu0 }
 0xe0f   :  { %v5609_v17 = vpack.c.bf16 %v4380_v32, %v4378_v48  ;;  %v5610_v22 = vpack.c.bf16 %v4421_v27, %v4419_v51 }
 0xe11   :  { %5047 = vst [vmem:[#allocation17 + $0x10] sm:$0xff] %v5609_v17  ;;  %5048 = vst [vmem:[#allocation17 + $0x18] sm:$0xff] %v5610_v22 }
 0xe2b   :  { %v4459_v50 = vpop.f32.mrb[36].mxu1  ;;  %v4500_v30 = vpop.f32.mrb[36].mxu0 }
 0xe2c   :  { %v4460_v13 = vadd.f32 %v4459_v50, %v2856_v28  ;;  %v4501_v31 = vadd.f32 %v4500_v30, %v2864_v29  ;;  %v4461_v34 = vpop.f32.mrb[37].mxu1  ;;  %v4502_v36 = vpop.f32.mrb[37].mxu0  ;;  %v2912_v28 = vrot.slane %v2815_v19, %v6969_v38  ;;  %v2908_v29 = vrot.slane %v2815_v19, %v6972_v39 }
 0xe2d   :  { %v4462_v56 = vadd.f32 %v4461_v34, %v2860_v15  ;;  %v4503_v5 = vadd.f32 %v4502_v36, %v2868_v12  ;;  %v4463_v6 = vpop.f32.mrb[38].mxu1  ;;  %v4504_v7 = vpop.f32.mrb[38].mxu0  ;;  %v2916_v15 = vrot.slane %v2815_v19, %v6975_v40 }
 0xe2e   :  { %v4464_v8 = vpop.f32.mrb[39].mxu1  ;;  %v4505_v9 = vpop.f32.mrb[39].mxu0 }
 0xe2f   :  { %v5611_v10 = vpack.c.bf16 %v4462_v56, %v4460_v13  ;;  %v5612_v57 = vpack.c.bf16 %v4503_v5, %v4501_v31 }
 0xe31   :  { %5049 = vst [vmem:[#allocation17 + $0x20] sm:$0xff] %v5611_v10  ;;  %5050 = vst [vmem:[#allocation17 + $0x28] sm:$0xff] %v5612_v57  ;;  %v2816_v57 = vld [vmem:[%s7043_s13 + $0x18] sm:$0xff]  ;;  %s6414_s13 = smov [#allocation17]  }
 0xe32   :  { %s5067_s30 = sshll.u32 %s6414_s13, 4  ;;  %s5068_s30 = int_to_ptr.vmem [resolvable:$true] %s5067_s30 }
 0xe33   :  { %s6361_s12 = scalar_lea.vmem %s5068_s30, 2048  ;;  %p6366_p3 = scmp.lt.s32.totalorder %s5068_s30, %s5068_s30 }
 0xe34   :  { %p6362_p2 = scmp.ne.s32.totalorder %s5068_s30, %s6361_s12  ;;  %p6367_p4 = scmp.lt.s32.totalorder %s6361_s12, %s6361_s12 }
 0xe36   :  { %p6368_p5 = por %p6367_p4, %p6366_p3 }
 0xe38   :  { %p6369_p6 = pnand %p6368_p5, %p6362_p2 }
 0xe4b   :  { %v4541_v59 = vpop.f32.mrb[40].mxu1  ;;  %v4582_v60 = vpop.f32.mrb[40].mxu0 }
 0xe4c   :  { %v4542_v61 = vadd.f32 %v4541_v59, %v2872_v11  ;;  %v4583_v62 = vadd.f32 %v4582_v60, %v2880_v14  ;;  %v4543_v63 = vpop.f32.mrb[41].mxu1  ;;  %v4584_v0 = vpop.f32.mrb[41].mxu0  ;;  %v2920_v11 = vrot.slane %v2816_v57, %v6647_v33  ;;  %v2928_v14 = vrot.slane %v2816_v57, %v6945_v44 }
 0xe4d   :  { %v4544_v1 = vadd.f32 %v4543_v63, %v2876_v49  ;;  %v4585_v2 = vadd.f32 %v4584_v0, %v2884_v58  ;;  %v4545_v20 = vpop.f32.mrb[42].mxu1  ;;  %v4586_v3 = vpop.f32.mrb[42].mxu0  ;;  %v2924_v49 = vrot.slane %v2816_v57, %v6650_v35  ;;  %v2932_v58 = vrot.slane %v2816_v57, %v6953_v21 }
 0xe4e   :  { %v4546_v4 = vpop.f32.mrb[43].mxu1  ;;  %v4587_v23 = vpop.f32.mrb[43].mxu0  ;;  %v2936_v35 = vrot.slane %v2816_v57, %v6966_v37  ;;  %v2944_v44 = vrot.slane %v2816_v57, %v6969_v38  ;;  %v2940_v21 = vrot.slane %v2816_v57, %v6972_v39 }
 0xe4f   :  { %v5613_v24 = vpack.c.bf16 %v4544_v1, %v4542_v61  ;;  %v5614_v25 = vpack.c.bf16 %v4585_v2, %v4583_v62 }
 0xe51   :  { %5051 = vst [vmem:[#allocation17 + $0x30] sm:$0xff] %v5613_v24  ;;  %5052 = vst [vmem:[#allocation17 + $0x38] sm:$0xff] %v5614_v25  ;;  %v2948_v25 = vrot.slane %v2816_v57, %v6975_v40 }
 0xe6b   :  { %v4623_v46 = vpop.f32.mrb[44].mxu1  ;;  %v4664_v47 = vpop.f32.mrb[44].mxu0 }
 0xe6c   :  { %v4624_v48 = vadd.f32 %v4623_v46, %v2888_v41  ;;  %v4665_v51 = vadd.f32 %v4664_v47, %v2896_v43  ;;  %v4625_v52 = vpop.f32.mrb[45].mxu1  ;;  %v4666_v53 = vpop.f32.mrb[45].mxu0 }
 0xe6d   :  { %v4626_v32 = vadd.f32 %v4625_v52, %v2892_v42  ;;  %v4667_v27 = vadd.f32 %v4666_v53, %v2900_v45  ;;  %v4627_v54 = vpop.f32.mrb[46].mxu1  ;;  %v4668_v55 = vpop.f32.mrb[46].mxu0 }
 0xe6e   :  { %v4628_v26 = vpop.f32.mrb[47].mxu1  ;;  %v4669_v16 = vpop.f32.mrb[47].mxu0 }
 0xe6f   :  { %v5615_v17 = vpack.c.bf16 %v4626_v32, %v4624_v48  ;;  %v5616_v22 = vpack.c.bf16 %v4667_v27, %v4665_v51 }
 0xe71   :  { %5053 = vst [vmem:[#allocation17 + $0x40] sm:$0xff] %v5615_v17  ;;  %5054 = vst [vmem:[#allocation17 + $0x48] sm:$0xff] %v5616_v22 }
 0xe8b   :  { %v4705_v12 = vpop.f32.mrb[48].mxu1  ;;  %v4746_v50 = vpop.f32.mrb[48].mxu0 }
 0xe8c   :  { %v4706_v30 = vadd.f32 %v4705_v12, %v2904_v18  ;;  %v4747_v13 = vadd.f32 %v4746_v50, %v2912_v28  ;;  %v4707_v31 = vpop.f32.mrb[49].mxu1  ;;  %v4748_v34 = vpop.f32.mrb[49].mxu0 }
 0xe8d   :  { %v4708_v36 = vadd.f32 %v4707_v31, %v2908_v29  ;;  %v4749_v56 = vadd.f32 %v4748_v34, %v2916_v15  ;;  %v4709_v5 = vpop.f32.mrb[50].mxu1  ;;  %v4750_v6 = vpop.f32.mrb[50].mxu0 }
 0xe8e   :  { %v4710_v7 = vpop.f32.mrb[51].mxu1  ;;  %v4751_v8 = vpop.f32.mrb[51].mxu0 }
 0xe8f   :  { %v5617_v9 = vpack.c.bf16 %v4708_v36, %v4706_v30  ;;  %v5618_v10 = vpack.c.bf16 %v4749_v56, %v4747_v13 }
 0xe91   :  { %5055 = vst [vmem:[#allocation17 + $0x50] sm:$0xff] %v5617_v9  ;;  %5056 = vst [vmem:[#allocation17 + $0x58] sm:$0xff] %v5618_v10 }
 0xeab   :  { %v4787_v59 = vpop.f32.mrb[52].mxu1  ;;  %v4828_v60 = vpop.f32.mrb[52].mxu0 }
 0xeac   :  { %v4788_v61 = vadd.f32 %v4787_v59, %v2920_v11  ;;  %v4829_v62 = vadd.f32 %v4828_v60, %v2928_v14  ;;  %v4789_v63 = vpop.f32.mrb[53].mxu1  ;;  %v4830_v0 = vpop.f32.mrb[53].mxu0 }
 0xead   :  { %v4790_v1 = vadd.f32 %v4789_v63, %v2924_v49  ;;  %v4831_v2 = vadd.f32 %v4830_v0, %v2932_v58  ;;  %v4791_v20 = vpop.f32.mrb[54].mxu1  ;;  %v4832_v3 = vpop.f32.mrb[54].mxu0 }
 0xeae   :  { %v4792_v4 = vpop.f32.mrb[55].mxu1  ;;  %v4833_v23 = vpop.f32.mrb[55].mxu0 }
 0xeaf   :  { %v5619_v24 = vpack.c.bf16 %v4790_v1, %v4788_v61  ;;  %v5620_v33 = vpack.c.bf16 %v4831_v2, %v4829_v62 }
 0xeb1   :  { %5057 = vst [vmem:[#allocation17 + $0x60] sm:$0xff] %v5619_v24  ;;  %5058 = vst [vmem:[#allocation17 + $0x68] sm:$0xff] %v5620_v33 }
 0xecb   :  { %v4869_v19 = vpop.f32.mrb[56].mxu1  ;;  %v4910_v41 = vpop.f32.mrb[56].mxu0 }
 0xecc   :  { %v4870_v43 = vadd.f32 %v4869_v19, %v2936_v35  ;;  %v4911_v42 = vadd.f32 %v4910_v41, %v2944_v44  ;;  %v4871_v45 = vpop.f32.mrb[57].mxu1  ;;  %v4912_v46 = vpop.f32.mrb[57].mxu0 }
 0xecd   :  { %v4872_v47 = vadd.f32 %v4871_v45, %v2940_v21  ;;  %v4913_v48 = vadd.f32 %v4912_v46, %v2948_v25  ;;  %v4873_v51 = vpop.f32.mrb[58].mxu1  ;;  %v4914_v52 = vpop.f32.mrb[58].mxu0 }
 0xece   :  { %v4874_v53 = vpop.f32.mrb[59].mxu1  ;;  %v4915_v37 = vpop.f32.mrb[59].mxu0 }
 0xecf   :  { %v5621_v32 = vpack.c.bf16 %v4872_v47, %v4870_v43  ;;  %v5622_v38 = vpack.c.bf16 %v4913_v48, %v4911_v42 }
 0xed1   :  { %5059 = vst [vmem:[#allocation17 + $0x70] sm:$0xff] %v5621_v32  ;;  %5060 = vst [vmem:[#allocation17 + $0x78] sm:$0xff] %v5622_v38 }
 0xed2   :  { %6372 = shalt.err (!%p6369_p6)
}
 0xed3   :  { %s6373_s21 = scalar_lea.hbm %s7044_s14, 2048 }
 0xed4   :  { %p6374_p7 = scmp.ne.s32.totalorder %s7044_s14, %s6373_s21  ;;  %p6377_p8 = scmp.lt.u32.totalorder %s6373_s21, %s7044_s14 }
 0xed6   :  { %p6379_p9 = pnand %p6377_p8, %p6374_p7 }
 0xed8   :  { %6382 = shalt.err (!%p6379_p9)
}
 0xed9   :  { %5070 = dma.vmem_to_hbm [thread:$0]  %s5068_s30, 2048, %s7044_s14, [#allocation4]  }
 0xeda   :  { %6393 = dma.done.wait [#allocation4], 2048  }
 0xedb   :  { %6394 = vsyncadd [#allocation4], 4294965248 }
 0xedc   :  { %5074 = vsyncpa [#allocation3], 1 }
 0xedd   :  { %5075 = vsyncpa [#allocation6], 1 }
 0xede   :  { %5076 = vsyncpa [#allocation9], 1 }
 0xedf   :  { %5077 = vsyncpa [#allocation12], 1 }
 0xee0   :  { %5078 = vsyncpa [#allocation15], 1 }
 0xee1   :  { %5079 = vsyncpa [#allocation4], 1 }

// kernel: tpu_custom_call.1
= control target key start
LH: loop header
LB: loop body
LE: loop exit
PB: predicated region body
PF: predicated region fallthrough
CT: control target
= control target key end

     0   :  { %19 = vsyncpa [#allocation3], 0  ;;  %s7030_s0 = inlined_call_operand.hbm [shape: bf16[8,256], index: 0, kind: input, shape index: {}]   ;;  %s7031_s1 = inlined_call_operand.hbm [shape: bf16[5,256,256], index: 1, kind: input, shape index: {}]   ;;  %s7032_s2 = inlined_call_operand.hbm [shape: f32[5,1,256], index: 2, kind: input, shape index: {}]   ;;  %s7033_s3 = inlined_call_operand.vmem [shape: f32[5,1,256], index: 3, kind: input, shape index: {}]   ;;  %s7034_s4 = inlined_call_operand.hbm [shape: bf16[256,128], index: 4, kind: input, shape index: {}]   ;;  %s7035_s5 = inlined_call_operand.hbm [shape: bf16[128,256], index: 5, kind: input, shape index: {}]   ;;  %s7036_s6 = inlined_call_operand.hbm [shape: bf16[2,128,128], index: 6, kind: input, shape index: {}]   ;;  %s7037_s7 = inlined_call_operand.vmem [shape: f32[2,1,128], index: 7, kind: input, shape index: {}]   ;;  %s7038_s8 = inlined_call_operand.hbm [shape: bf16[2,128,128], index: 8, kind: input, shape index: {}]   ;;  %s7039_s9 = inlined_call_operand.vmem [shape: f32[2,1,128], index: 9, kind: input, shape index: {}]   ;;  %s7040_s10 = inlined_call_operand.hbm [shape: bf16[256,128], index: 10, kind: input, shape index: {}]   ;;  %s7041_s11 = inlined_call_operand.vmem [shape: f32[1,128], index: 11, kind: input, shape index: {}]   ;;  %s7042_s12 = inlined_call_operand.hbm [shape: bf16[128,4096], index: 12, kind: input, shape index: {}]   ;;  %s7043_s13 = inlined_call_operand.vmem [shape: f32[1,4096], index: 13, kind: input, shape index: {}]   ;;  %s7044_s14 = inlined_call_operand.hbm [shape: bf16[8,4096], index: 14, kind: output, shape index: {}]  }
   0x1   :  { %20 = vsyncpa [#allocation6], 0 }
   0x2   :  { %21 = vsyncpa [#allocation9], 0 }
   0x3   :  { %22 = vsyncpa [#allocation12], 0 }
   0x4   :  { %23 = vsyncpa [#allocation15], 0 }
   0x5   :  { %24 = vsyncpa [#allocation4], 0  ;;  %s6395_s29 = smov [#allocation5]   ;;  %s6163_s17 = scalar_lea.hbm %s7031_s1, 20480 }
   0x6   :  { %s40_s30 = sshll.u32 %s6395_s29, 4  ;;  %p6164_p0 = scmp.ne.s32.totalorder %s7031_s1, %s6163_s17  ;;  %s41_s30 = int_to_ptr.vmem [resolvable:$true] %s40_s30 }
   0x7   :  { %p6167_p1 = scmp.lt.u32.totalorder %s6163_s17, %s7031_s1 }
   0x9   :  { %p6169_p2 = pnand %p6167_p1, %p6164_p0 }
   0xb   :  { %6172 = shalt.err (!%p6169_p2)
}
   0xc   :  { %s6173_s22 = scalar_lea.vmem %s41_s30, 20480  ;;  %p6178_p4 = scmp.lt.s32.totalorder %s41_s30, %s41_s30 }
   0xd   :  { %p6174_p3 = scmp.ne.s32.totalorder %s41_s30, %s6173_s22  ;;  %p6179_p5 = scmp.lt.s32.totalorder %s6173_s22, %s6173_s22 }
   0xf   :  { %p6180_p6 = por %p6179_p5, %p6178_p4 }
  0x11   :  { %p6181_p7 = pnand %p6180_p6, %p6174_p3 }
  0x13   :  { %6184 = shalt.err (!%p6181_p7)
}
  0x14   :  { %s7045_s23 = smov 128   ;;  %s6397_s24 = smov 8  }
  0x15   :  { %46 = dma.hbm_to_vmem [thread:$0]  %s7031_s1, 20480, %s41_s30, [#allocation6], %s7045_s23, %s7045_s23, %s6397_s24  }
  0x16   :  { %s6398_s27 = smov [#allocation8]   ;;  %s6185_s16 = scalar_lea.hbm %s7034_s4, 2048 }
  0x17   :  { %s66_s28 = sshll.u32 %s6398_s27, 4  ;;  %p6186_p8 = scmp.ne.s32.totalorder %s7034_s4, %s6185_s16  ;;  %s67_s28 = int_to_ptr.vmem [resolvable:$true] %s66_s28 }
  0x18   :  { %p6189_p9 = scmp.lt.u32.totalorder %s6185_s16, %s7034_s4 }
  0x1a   :  { %p6191_p10 = pnand %p6189_p9, %p6186_p8 }
  0x1c   :  { %6194 = shalt.err (!%p6191_p10)
}
  0x1d   :  { %s6195_s21 = scalar_lea.vmem %s67_s28, 2048  ;;  %p6200_p12 = scmp.lt.s32.totalorder %s67_s28, %s67_s28 }
  0x1e   :  { %p6196_p11 = scmp.ne.s32.totalorder %s67_s28, %s6195_s21  ;;  %p6201_p13 = scmp.lt.s32.totalorder %s6195_s21, %s6195_s21 }
  0x20   :  { %p6202_p0 = por %p6201_p13, %p6200_p12 }
  0x22   :  { %p6203_p1 = pnand %p6202_p0, %p6196_p11 }
  0x24   :  { %6206 = shalt.err (!%p6203_p1)
}
  0x25   :  { %s6399_s1 = smov 64   ;;  %s6400_s30 = smov 4  }
  0x26   :  { %72 = dma.hbm_to_vmem [thread:$0]  %s7034_s4, 2048, %s67_s28, [#allocation9], %s6399_s1, %s6399_s1, %s6400_s30  }
  0x27   :  { %s6401_s26 = smov [#allocation11]   ;;  %s6402_s29 = smov [#allocation14]  }
  0x28   :  { %s90_s27 = sshll.u32 %s6401_s26, 4  ;;  %s118_s15 = sshll.u32 %s6402_s29, 4  ;;  %s91_s27 = int_to_ptr.vmem [resolvable:$true] %s90_s27  ;;  %s6520_s15 = int_to_ptr.vmem [resolvable:$true] %s118_s15 }
  0x29   :  { %s6207_s18 = scalar_lea.hbm %s7036_s6, 2048 }
  0x2a   :  { %p6208_p2 = scmp.ne.s32.totalorder %s7036_s6, %s6207_s18  ;;  %p6211_p3 = scmp.lt.u32.totalorder %s6207_s18, %s7036_s6 }
  0x2c   :  { %p6213_p4 = pnand %p6211_p3, %p6208_p2 }
  0x2e   :  { %6216 = shalt.err (!%p6213_p4)
}
  0x2f   :  { %s6217_s4 = scalar_lea.vmem %s91_s27, 2048  ;;  %p6222_p6 = scmp.lt.s32.totalorder %s91_s27, %s91_s27 }
  0x30   :  { %p6218_p5 = scmp.ne.s32.totalorder %s91_s27, %s6217_s4  ;;  %p6223_p7 = scmp.lt.s32.totalorder %s6217_s4, %s6217_s4 }
  0x32   :  { %p6224_p8 = por %p6223_p7, %p6222_p6 }
  0x34   :  { %p6225_p9 = pnand %p6224_p8, %p6218_p5 }
  0x36   :  { %6228 = shalt.err (!%p6225_p9)
}
  0x37   :  { %96 = dma.hbm_to_vmem [thread:$0]  %s7036_s6, 2048, %s91_s27, [#allocation12], %s6399_s1, %s6399_s1, %s6400_s30  }
  0x38   :  { %s6229_s23 = scalar_lea.hbm %s7040_s10, 2048 }
  0x39   :  { %p6230_p10 = scmp.ne.s32.totalorder %s7040_s10, %s6229_s23  ;;  %p6233_p11 = scmp.lt.u32.totalorder %s6229_s23, %s7040_s10 }
  0x3b   :  { %p6235_p12 = pnand %p6233_p11, %p6230_p10 }
  0x3d   :  { %6238 = shalt.err (!%p6235_p12)
}
  0x3e   :  { %s6239_s19 = scalar_lea.vmem %s6520_s15, 2048  ;;  %p6244_p0 = scmp.lt.s32.totalorder %s6520_s15, %s6520_s15 }
  0x3f   :  { %p6240_p13 = scmp.ne.s32.totalorder %s6520_s15, %s6239_s19  ;;  %p6245_p1 = scmp.lt.s32.totalorder %s6239_s19, %s6239_s19 }
  0x41   :  { %p6246_p2 = por %p6245_p1, %p6244_p0 }
  0x43   :  { %p6247_p3 = pnand %p6246_p2, %p6240_p13 }
  0x45   :  { %6250 = shalt.err (!%p6247_p3)
}
  0x46   :  { %124 = dma.hbm_to_vmem [thread:$0]  %s7040_s10, 2048, %s6520_s15, [#allocation15], %s6399_s1, %s6399_s1, %s6400_s30  }
  0x47   :  { %s6403_s20 = smov [#allocation2]   ;;  %s6404_s4 = smov [#allocation7]  }
  0x48   :  { %s31_s21 = sshll.u32 %s6403_s20, 4  ;;  %s52_s28 = sshll.u32 %s6404_s4, 4  ;;  %s32_s21 = int_to_ptr.vmem [resolvable:$true] %s31_s21  ;;  %s6557_s28 = int_to_ptr.vmem [resolvable:$true] %s52_s28 }
  0x49   :  { %s6251_s26 = scalar_lea.hbm %s7030_s0, 128 }
  0x4a   :  { %p6252_p4 = scmp.ne.s32.totalorder %s7030_s0, %s6251_s26  ;;  %p6255_p5 = scmp.lt.u32.totalorder %s6251_s26, %s7030_s0 }
  0x4c   :  { %p6257_p6 = pnand %p6255_p5, %p6252_p4 }
  0x4e   :  { %6260 = shalt.err (!%p6257_p6)
}
  0x4f   :  { %s6261_s10 = scalar_lea.vmem %s32_s21, 128  ;;  %p6266_p8 = scmp.lt.s32.totalorder %s32_s21, %s32_s21 }
  0x50   :  { %p6262_p7 = scmp.ne.s32.totalorder %s32_s21, %s6261_s10  ;;  %p6267_p9 = scmp.lt.s32.totalorder %s6261_s10, %s6261_s10 }
  0x52   :  { %p6268_p10 = por %p6267_p9, %p6266_p8 }
  0x54   :  { %p6269_p11 = pnand %p6268_p10, %p6262_p7 }
  0x56   :  { %6272 = shalt.err (!%p6269_p11)
}
  0x57   :  { %34 = dma.hbm_to_vmem [thread:$0]  %s7030_s0, 128, %s32_s21, [#allocation3]  }
  0x58   :  { %s6273_s27 = scalar_lea.hbm %s7032_s2, 160 }
  0x59   :  { %p6274_p12 = scmp.ne.s32.totalorder %s7032_s2, %s6273_s27  ;;  %p6277_p13 = scmp.lt.u32.totalorder %s6273_s27, %s7032_s2 }
  0x5b   :  { %p6279_p0 = pnand %p6277_p13, %p6274_p12 }
  0x5d   :  { %6282 = shalt.err (!%p6279_p0)
}
  0x5e   :  { %s6283_s26 = scalar_lea.vmem %s6557_s28, 160  ;;  %p6288_p2 = scmp.lt.s32.totalorder %s6557_s28, %s6557_s28 }
  0x5f   :  { %p6284_p1 = scmp.ne.s32.totalorder %s6557_s28, %s6283_s26  ;;  %p6289_p3 = scmp.lt.s32.totalorder %s6283_s26, %s6283_s26 }
  0x61   :  { %p6290_p4 = por %p6289_p3, %p6288_p2 }
  0x63   :  { %p6291_p5 = pnand %p6290_p4, %p6284_p1 }
  0x65   :  { %6294 = shalt.err (!%p6291_p5)
}
  0x66   :  { %s6405_s0 = smov 32   ;;  %s6406_s21 = smov 2  }
  0x67   :  { %58 = dma.hbm_to_vmem [thread:$0]  %s7032_s2, 160, %s6557_s28, [#allocation6], %s6405_s0, %s6405_s0, %s6406_s21  }
  0x68   :  { %s6407_s16 = smov [#allocation10]   ;;  %s6408_s10 = smov [#allocation13]  }
  0x69   :  { %s78_s17 = sshll.u32 %s6407_s16, 4  ;;  %s104_s15 = sshll.u32 %s6408_s10, 4  ;;  %s79_s17 = int_to_ptr.vmem [resolvable:$true] %s78_s17  ;;  %s6588_s15 = int_to_ptr.vmem [resolvable:$true] %s104_s15 }
  0x6a   :  { %s6295_s6 = scalar_lea.hbm %s7035_s5, 2048 }
  0x6b   :  { %p6296_p6 = scmp.ne.s32.totalorder %s7035_s5, %s6295_s6  ;;  %p6299_p7 = scmp.lt.u32.totalorder %s6295_s6, %s7035_s5 }
  0x6d   :  { %p6301_p8 = pnand %p6299_p7, %p6296_p6 }
  0x6f   :  { %6304 = shalt.err (!%p6301_p8)
}
  0x70   :  { %s6305_s2 = scalar_lea.vmem %s79_s17, 2048  ;;  %p6310_p10 = scmp.lt.s32.totalorder %s79_s17, %s79_s17 }
  0x71   :  { %p6306_p9 = scmp.ne.s32.totalorder %s79_s17, %s6305_s2  ;;  %p6311_p11 = scmp.lt.s32.totalorder %s6305_s2, %s6305_s2 }
  0x73   :  { %p6312_p12 = por %p6311_p11, %p6310_p10 }
  0x75   :  { %p6313_p13 = pnand %p6312_p12, %p6306_p9 }
  0x77   :  { %6316 = shalt.err (!%p6313_p13)
}
  0x78   :  { %s7047_s28 = smov 128   ;;  %s6317_s23 = scalar_lea.hbm %s7038_s8, 2048 }
  0x79   :  { %84 = dma.hbm_to_vmem [thread:$0]  %s7035_s5, 2048, %s79_s17, [#allocation9], %s7047_s28, %s7047_s28, %s6397_s24  }
  0x7a   :  { %p6318_p0 = scmp.ne.s32.totalorder %s7038_s8, %s6317_s23  ;;  %p6321_p1 = scmp.lt.u32.totalorder %s6317_s23, %s7038_s8 }
  0x7c   :  { %p6323_p2 = pnand %p6321_p1, %p6318_p0 }
  0x7e   :  { %6326 = shalt.err (!%p6323_p2)
}
  0x7f   :  { %s6327_s19 = scalar_lea.vmem %s6588_s15, 2048  ;;  %p6332_p4 = scmp.lt.s32.totalorder %s6588_s15, %s6588_s15 }
  0x80   :  { %p6328_p3 = scmp.ne.s32.totalorder %s6588_s15, %s6327_s19  ;;  %p6333_p5 = scmp.lt.s32.totalorder %s6327_s19, %s6327_s19 }
  0x82   :  { %p6334_p6 = por %p6333_p5, %p6332_p4 }
  0x84   :  { %p6335_p7 = pnand %p6334_p6, %p6328_p3 }
  0x86   :  { %6338 = shalt.err (!%p6335_p7)
}
  0x87   :  { %110 = dma.hbm_to_vmem [thread:$0]  %s7038_s8, 2048, %s6588_s15, [#allocation12], %s6399_s1, %s6399_s1, %s6400_s30  }
  0x88   :  { %s6409_s17 = smov [#allocation16]   ;;  %s6339_s4 = scalar_lea.hbm %s7042_s12, 32768 }
  0x89   :  { %s132_s6 = sshll.u32 %s6409_s17, 4  ;;  %p6340_p8 = scmp.ne.s32.totalorder %s7042_s12, %s6339_s4  ;;  %s133_s6 = int_to_ptr.vmem [resolvable:$true] %s132_s6 }
  0x8a   :  { %p6343_p9 = scmp.lt.u32.totalorder %s6339_s4, %s7042_s12 }
  0x8c   :  { %p6345_p10 = pnand %p6343_p9, %p6340_p8 }
  0x8e   :  { %6348 = shalt.err (!%p6345_p10)
}
  0x8f   :  { %s6349_s0 = scalar_lea.vmem %s133_s6, 32768  ;;  %p6354_p12 = scmp.lt.s32.totalorder %s133_s6, %s133_s6 }
  0x90   :  { %p6350_p11 = scmp.ne.s32.totalorder %s133_s6, %s6349_s0  ;;  %p6355_p13 = scmp.lt.s32.totalorder %s6349_s0, %s6349_s0 }
  0x92   :  { %p6356_p0 = por %p6355_p13, %p6354_p12 }
  0x94   :  { %p6357_p1 = pnand %p6356_p0, %p6350_p11 }
  0x96   :  { %6360 = shalt.err (!%p6357_p1)
}
  0x97   :  { %s6410_s8 = smov 2048  }
  0x98   :  { %138 = dma.hbm_to_vmem [thread:$0]  %s7042_s12, 32768, %s133_s6, [#allocation15], %s6410_s8, %s6410_s8, %s7047_s28  }
  0x99   :  { %6383 = dma.done.wait [#allocation3], 128  }
  0x9a   :  { %6384 = vsyncadd [#allocation3], 4294967168 }
  0x9b   :  { %6385 = dma.done.wait [#allocation6], 20640  }
  0x9c   :  { %6386 = vsyncadd [#allocation6], 4294946656 }
  0x9d   :  { %6387 = dma.done.wait [#allocation9], 4096  }
  0x9e   :  { %6388 = vsyncadd [#allocation9], 4294963200 }
  0x9f   :  { %6389 = dma.done.wait [#allocation12], 4096  }
  0xa0   :  { %6390 = vsyncadd [#allocation12], 4294963200 }
  0xa1   :  { %6391 = dma.done.wait [#allocation15], 34816  }
  0xa2   :  { %6392 = vsyncadd [#allocation15], 4294932480  ;;  %v5825_v0 = vld [vmem:[#allocation5 + $0x4] ss:$8 sps:$4 sm:$0xff]   ;;  %v5827_v1 = vld [vmem:[#allocation5] ss:$8 sps:$4 sm:$0xff]  }
  0xa3   :  { %369 = vmatprep.subr.bf16.mxu0 %v5825_v0  ;;  %v5828_v2 = vld [vmem:[#allocation5 + $0x14] ss:$8 sps:$4 sm:$0xff]   ;;  %v5830_v3 = vld [vmem:[#allocation5 + $0x10] ss:$8 sps:$4 sm:$0xff]   ;;  %v5831_v4 = vld [vmem:[#allocation5 + $0x24] ss:$8 sps:$4 sm:$0xff]  }
  0xa4   :  { %370 = vmatpush1.bf16.msra.mxu0 %v5827_v1  ;;  %v5833_v5 = vld [vmem:[#allocation5 + $0x20] ss:$8 sps:$4 sm:$0xff]   ;;  %v5834_v6 = vld [vmem:[#allocation5 + $0x34] ss:$8 sps:$4 sm:$0xff]   ;;  %v5836_v7 = vld [vmem:[#allocation5 + $0x30] ss:$8 sps:$4 sm:$0xff]  }
  0xa5   :  { %371 = vmatprep.subr.bf16.mxu0 %v5828_v2  ;;  %v5837_v8 = vld [vmem:[#allocation5 + $0x44] ss:$8 sps:$4 sm:$0xff]   ;;  %v5839_v9 = vld [vmem:[#allocation5 + $0x40] ss:$8 sps:$4 sm:$0xff]   ;;  %v5840_v10 = vld [vmem:[#allocation5 + $0x54] ss:$8 sps:$4 sm:$0xff]  }
  0xa6   :  { %v5842_v11 = vld [vmem:[#allocation5 + $0x50] ss:$8 sps:$4 sm:$0xff]   ;;  %v5843_v12 = vld [vmem:[#allocation5 + $0x64] ss:$8 sps:$4 sm:$0xff]   ;;  %v5845_v13 = vld [vmem:[#allocation5 + $0x60] ss:$8 sps:$4 sm:$0xff]  }
  0xa7   :  { %v6638_v14 = vld [vmem:[#allocation2] sm:$0xff]  ;;  %v5875_v16 = vld [vmem:[#allocation5 + $0x104] ss:$8 sps:$4 sm:$0xff]   ;;  %v5877_v17 = vld [vmem:[#allocation5 + $0x100] ss:$8 sps:$4 sm:$0xff]   ;;  %vm6412_vm0 = vmmov 0  }
  0xa8   :  { %372 = vmatpush1.bf16.msra.mxu0 %v5830_v3  ;;  %v5081_v15 = vcombine.high %v6638_v14, %v6638_v14  ;;  %v5878_v18 = vld [vmem:[#allocation5 + $0x114] ss:$8 sps:$4 sm:$0xff]   ;;  %635 = vmatprep.subr.bf16.mxu1 %v5875_v16  ;;  %v5848_v20 = vld [vmem:[#allocation5 + $0x70] ss:$8 sps:$4 sm:$0xff]   ;;  %v5881_v22 = vld [vmem:[#allocation5 + $0x124] ss:$8 sps:$4 sm:$0xff]   ;;  %v5080_v57 = vcombine.low %v6638_v14, %v6638_v14 }
  0xa9   :  { %373 = vmatprep.subr.bf16.mxu0 %v5831_v4  ;;  %v5846_v19 = vld [vmem:[#allocation5 + $0x74] ss:$8 sps:$4 sm:$0xff]   ;;  %636 = vmatpush1.bf16.msra.mxu1 %v5877_v17  ;;  %v5880_v21 = vld [vmem:[#allocation5 + $0x110] ss:$8 sps:$4 sm:$0xff]   ;;  %v5849_v23 = vld [vmem:[#allocation5 + $0x84] ss:$8 sps:$4 sm:$0xff]  }
  0xaa   :  { %401 = vmatprep.mubr.bf16.mxu0 %v5081_v15  ;;  %637 = vmatprep.subr.bf16.mxu1 %v5878_v18  ;;  %v5851_v24 = vld [vmem:[#allocation5 + $0x80] ss:$8 sps:$4 sm:$0xff]   ;;  %v5884_v26 = vld [vmem:[#allocation5 + $0x134] ss:$8 sps:$4 sm:$0xff]   ;;  %v5854_v28 = vld [vmem:[#allocation5 + $0x90] ss:$8 sps:$4 sm:$0xff]  }
  0xab   :  { %v5883_v25 = vld [vmem:[#allocation5 + $0x120] ss:$8 sps:$4 sm:$0xff]   ;;  %v5852_v27 = vld [vmem:[#allocation5 + $0x94] ss:$8 sps:$4 sm:$0xff]   ;;  %v5886_v29 = vld [vmem:[#allocation5 + $0x130] ss:$8 sps:$4 sm:$0xff]  }
  0xac   :  { %374 = vmatpush1.bf16.msra.mxu0 %v5833_v5  ;;  %v5887_v30 = vld [vmem:[#allocation5 + $0x144] ss:$8 sps:$4 sm:$0xff]   ;;  %v5857_v32 = vld [vmem:[#allocation5 + $0xa0] ss:$8 sps:$4 sm:$0xff]   ;;  %v5858_v33 = vld [vmem:[#allocation5 + $0xb4] ss:$8 sps:$4 sm:$0xff]  }
  0xad   :  { %375 = vmatprep.subr.bf16.mxu0 %v5834_v6  ;;  %638 = vmatpush1.bf16.msra.mxu1 %v5880_v21  ;;  %v5855_v31 = vld [vmem:[#allocation5 + $0xa4] ss:$8 sps:$4 sm:$0xff]   ;;  %v5889_v34 = vld [vmem:[#allocation5 + $0x140] ss:$8 sps:$4 sm:$0xff]   ;;  %v5890_v35 = vld [vmem:[#allocation5 + $0x154] ss:$8 sps:$4 sm:$0xff]  }
  0xae   :  { %639 = vmatprep.subr.bf16.mxu1 %v5881_v22  ;;  %v5892_v36 = vld [vmem:[#allocation5 + $0x150] ss:$8 sps:$4 sm:$0xff]   ;;  %v5893_v38 = vld [vmem:[#allocation5 + $0x164] ss:$8 sps:$4 sm:$0xff]   ;;  %v5895_v40 = vld [vmem:[#allocation5 + $0x160] ss:$8 sps:$4 sm:$0xff]  }
  0xaf   :  { %v5860_v37 = vld [vmem:[#allocation5 + $0xb0] ss:$8 sps:$4 sm:$0xff]   ;;  %v5861_v39 = vld [vmem:[#allocation5 + $0xc4] ss:$8 sps:$4 sm:$0xff]   ;;  %v5863_v41 = vld [vmem:[#allocation5 + $0xc0] ss:$8 sps:$4 sm:$0xff]  }
  0xb0   :  { %376 = vmatpush1.bf16.msra.mxu0 %v5836_v7  ;;  %v5896_v42 = vld [vmem:[#allocation5 + $0x174] ss:$8 sps:$4 sm:$0xff]   ;;  %v5898_v44 = vld [vmem:[#allocation5 + $0x170] ss:$8 sps:$4 sm:$0xff]   ;;  %v5899_v46 = vld [vmem:[#allocation5 + $0x184] ss:$8 sps:$4 sm:$0xff]  }
  0xb1   :  { %377 = vmatprep.subr.bf16.mxu0 %v5837_v8  ;;  %640 = vmatpush1.bf16.msra.mxu1 %v5883_v25  ;;  %v5864_v43 = vld [vmem:[#allocation5 + $0xd4] ss:$8 sps:$4 sm:$0xff]   ;;  %v5866_v45 = vld [vmem:[#allocation5 + $0xd0] ss:$8 sps:$4 sm:$0xff]   ;;  %v5867_v47 = vld [vmem:[#allocation5 + $0xe4] ss:$8 sps:$4 sm:$0xff]  }
  0xb2   :  { %641 = vmatprep.subr.bf16.mxu1 %v5884_v26  ;;  %v5901_v48 = vld [vmem:[#allocation5 + $0x180] ss:$8 sps:$4 sm:$0xff]   ;;  %v5902_v50 = vld [vmem:[#allocation5 + $0x194] ss:$8 sps:$4 sm:$0xff]   ;;  %v5904_v52 = vld [vmem:[#allocation5 + $0x190] ss:$8 sps:$4 sm:$0xff]  }
  0xb3   :  { %v5869_v49 = vld [vmem:[#allocation5 + $0xe0] ss:$8 sps:$4 sm:$0xff]   ;;  %v5870_v51 = vld [vmem:[#allocation5 + $0xf4] ss:$8 sps:$4 sm:$0xff]   ;;  %v5872_v53 = vld [vmem:[#allocation5 + $0xf0] ss:$8 sps:$4 sm:$0xff]  }
  0xb4   :  { %378 = vmatpush1.bf16.msra.mxu0 %v5839_v9  ;;  %v5905_v54 = vld [vmem:[#allocation5 + $0x1a4] ss:$8 sps:$4 sm:$0xff]   ;;  %v5907_v55 = vld [vmem:[#allocation5 + $0x1a0] ss:$8 sps:$4 sm:$0xff]   ;;  %v5908_v56 = vld [vmem:[#allocation5 + $0x1b4] ss:$8 sps:$4 sm:$0xff]  }
  0xb5   :  { %379 = vmatprep.subr.bf16.mxu0 %v5840_v10  ;;  %642 = vmatpush1.bf16.msra.mxu1 %v5886_v29  ;;  %v5910_v58 = vld [vmem:[#allocation5 + $0x1b0] ss:$8 sps:$4 sm:$0xff]   ;;  %v5911_v59 = vld [vmem:[#allocation5 + $0x1c4] ss:$8 sps:$4 sm:$0xff]   ;;  %v5913_v60 = vld [vmem:[#allocation5 + $0x1c0] ss:$8 sps:$4 sm:$0xff]  }
  0xb6   :  { %643 = vmatprep.subr.bf16.mxu1 %v5887_v30  ;;  %v5914_v61 = vld [vmem:[#allocation5 + $0x1d4] ss:$8 sps:$4 sm:$0xff]   ;;  %v5916_v62 = vld [vmem:[#allocation5 + $0x1d0] ss:$8 sps:$4 sm:$0xff]   ;;  %v5917_v63 = vld [vmem:[#allocation5 + $0x1e4] ss:$8 sps:$4 sm:$0xff]  }
  0xb7   :  { %v5919_v0 = vld [vmem:[#allocation5 + $0x1e0] ss:$8 sps:$4 sm:$0xff]   ;;  %v5920_v1 = vld [vmem:[#allocation5 + $0x1f4] ss:$8 sps:$4 sm:$0xff]   ;;  %v5922_v2 = vld [vmem:[#allocation5 + $0x1f0] ss:$8 sps:$4 sm:$0xff]  }
  0xb8   :  { %380 = vmatpush1.bf16.msra.mxu0 %v5842_v11  ;;  %v5923_v3 = vld [vmem:[#allocation5 + $0x200] ss:$8 sps:$4 sm:$0xff]   ;;  %v5925_v4 = vld [vmem:[#allocation5 + $0x204] ss:$8 sps:$4 sm:$0xff]   ;;  %v5928_v5 = vld [vmem:[#allocation5 + $0x214] ss:$8 sps:$4 sm:$0xff]  }
  0xb9   :  { %381 = vmatprep.subr.bf16.mxu0 %v5843_v12  ;;  %644 = vmatpush1.bf16.msra.mxu1 %v5889_v34  ;;  %v5926_v6 = vld [vmem:[#allocation5 + $0x210] ss:$8 sps:$4 sm:$0xff]   ;;  %v5931_v7 = vld [vmem:[#allocation5 + $0x224] ss:$8 sps:$4 sm:$0xff]   ;;  %v5929_v8 = vld [vmem:[#allocation5 + $0x220] ss:$8 sps:$4 sm:$0xff]  }
  0xba   :  { %645 = vmatprep.subr.bf16.mxu1 %v5890_v35  ;;  %v5934_v9 = vld [vmem:[#allocation5 + $0x234] ss:$8 sps:$4 sm:$0xff]   ;;  %v5932_v10 = vld [vmem:[#allocation5 + $0x230] ss:$8 sps:$4 sm:$0xff]   ;;  %v5937_v11 = vld [vmem:[#allocation5 + $0x244] ss:$8 sps:$4 sm:$0xff]  }
  0xbb   :  { %v5935_v12 = vld [vmem:[#allocation5 + $0x240] ss:$8 sps:$4 sm:$0xff]   ;;  %v5938_v14 = vld [vmem:[#allocation5 + $0x250] ss:$8 sps:$4 sm:$0xff]   ;;  %v5943_v15 = vld [vmem:[#allocation5 + $0x264] ss:$8 sps:$4 sm:$0xff]  }
  0xbc   :  { %382 = vmatpush1.bf16.msra.mxu0 %v5845_v13  ;;  %v5940_v13 = vld [vmem:[#allocation5 + $0x254] ss:$8 sps:$4 sm:$0xff]   ;;  %v5941_v16 = vld [vmem:[#allocation5 + $0x260] ss:$8 sps:$4 sm:$0xff]   ;;  %v5944_v18 = vld [vmem:[#allocation5 + $0x270] ss:$8 sps:$4 sm:$0xff]  }
  0xbd   :  { %383 = vmatprep.subr.bf16.mxu0 %v5846_v19  ;;  %646 = vmatpush1.bf16.msra.mxu1 %v5892_v36  ;;  %v5946_v17 = vld [vmem:[#allocation5 + $0x274] ss:$8 sps:$4 sm:$0xff]   ;;  %v5949_v19 = vld [vmem:[#allocation5 + $0x284] ss:$8 sps:$4 sm:$0xff]   ;;  %v5950_v22 = vld [vmem:[#allocation5 + $0x290] ss:$8 sps:$4 sm:$0xff]  }
  0xbe   :  { %647 = vmatprep.subr.bf16.mxu1 %v5893_v38  ;;  %v5952_v21 = vld [vmem:[#allocation5 + $0x294] ss:$8 sps:$4 sm:$0xff]   ;;  %v5956_v26 = vld [vmem:[#allocation5 + $0x2b0] ss:$8 sps:$4 sm:$0xff]   ;;  %v410_v34 = vld [vmem:[#allocation7] sm:$0x3] }
  0xbf   :  { %v5958_v25 = vld [vmem:[#allocation5 + $0x2b4] ss:$8 sps:$4 sm:$0xff]   ;;  %v5962_v30 = vld [vmem:[#allocation5 + $0x2d0] ss:$8 sps:$4 sm:$0xff]   ;;  %v424_v36 = vld [vmem:[%s7033_s3] sm:$0x3] }
  0xc0   :  { %384 = vmatpush1.bf16.msra.mxu0 %v5848_v20  ;;  %v5947_v20 = vld [vmem:[#allocation5 + $0x280] ss:$8 sps:$4 sm:$0xff]   ;;  %v5964_v29 = vld [vmem:[#allocation5 + $0x2d4] ss:$8 sps:$4 sm:$0xff]  }
  0xc1   :  { %385 = vmatprep.subr.bf16.mxu0 %v5849_v23  ;;  %648 = vmatpush1.bf16.msra.mxu1 %v5895_v40  ;;  %v5955_v23 = vld [vmem:[#allocation5 + $0x2a4] ss:$8 sps:$4 sm:$0xff]  }
  0xc2   :  { %649 = vmatprep.subr.bf16.mxu1 %v5896_v42 }
  0xc4   :  { %386 = vmatpush1.bf16.msra.mxu0 %v5851_v24  ;;  %v5953_v24 = vld [vmem:[#allocation5 + $0x2a0] ss:$8 sps:$4 sm:$0xff]  }
  0xc5   :  { %387 = vmatprep.subr.bf16.mxu0 %v5852_v27  ;;  %650 = vmatpush1.bf16.msra.mxu1 %v5898_v44  ;;  %v5961_v27 = vld [vmem:[#allocation5 + $0x2c4] ss:$8 sps:$4 sm:$0xff]  }
  0xc6   :  { %651 = vmatprep.subr.bf16.mxu1 %v5899_v46 }
  0xc8   :  { %388 = vmatpush1.bf16.msra.mxu0 %v5854_v28  ;;  %v5959_v28 = vld [vmem:[#allocation5 + $0x2c0] ss:$8 sps:$4 sm:$0xff]  }
  0xc9   :  { %389 = vmatprep.subr.bf16.mxu0 %v5855_v31  ;;  %652 = vmatpush1.bf16.msra.mxu1 %v5901_v48  ;;  %v412_v31 = vlaneseq }
  0xca   :  { %653 = vmatprep.subr.bf16.mxu1 %v5902_v50 }
  0xcc   :  { %390 = vmatpush1.bf16.msra.mxu0 %v5857_v32  ;;  %v6644_v32 = vshrl.u32 %v412_v31, 7 }
  0xcd   :  { %391 = vmatprep.subr.bf16.mxu0 %v5858_v33  ;;  %654 = vmatpush1.bf16.msra.mxu1 %v5904_v52 }
  0xce   :  { %655 = vmatprep.subr.bf16.mxu1 %v5905_v54  ;;  %v6647_v33 = vsub.s32 0, %v6644_v32  ;;  %v6650_v35 = vsub.s32 1, %v6644_v32  ;;  %v5965_v54 = vld [vmem:[#allocation5 + $0x2e0] ss:$8 sps:$4 sm:$0xff]  }
  0xd0   :  { %392 = vmatpush1.bf16.msra.mxu0 %v5860_v37  ;;  %v415_v37 = vrot.slane %v410_v34, %v6647_v33  ;;  %v419_v38 = vrot.slane %v410_v34, %v6650_v35 }
  0xd1   :  { %393 = vmatprep.subr.bf16.mxu0 %v5861_v39  ;;  %656 = vmatpush1.bf16.msra.mxu1 %v5907_v55  ;;  %v429_v39 = vrot.slane %v424_v36, %v6647_v33  ;;  %v5970_v55 = vld [vmem:[#allocation5 + $0x2f4] ss:$8 sps:$4 sm:$0xff]  }
  0xd2   :  { %657 = vmatprep.subr.bf16.mxu1 %v5908_v56  ;;  %v5968_v56 = vld [vmem:[#allocation5 + $0x2f0] ss:$8 sps:$4 sm:$0xff]  }
  0xd4   :  { %394 = vmatpush1.bf16.msra.mxu0 %v5863_v41  ;;  %v433_v41 = vrot.slane %v424_v36, %v6650_v35 }
  0xd5   :  { %395 = vmatprep.subr.bf16.mxu0 %v5864_v43  ;;  %658 = vmatpush1.bf16.msra.mxu1 %v5910_v58  ;;  %v6669_v58 = vld [vmem:[#allocation8] sm:$0xff]  }
  0xd6   :  { %659 = vmatprep.subr.bf16.mxu1 %v5911_v59  ;;  %v6671_v59 = vld [vmem:[#allocation8 + $0x48] sm:$0xff]  }
  0xd8   :  { %396 = vmatpush1.bf16.msra.mxu0 %v5866_v45 }
  0xd9   :  { %397 = vmatprep.subr.bf16.mxu0 %v5867_v47  ;;  %660 = vmatpush1.bf16.msra.mxu1 %v5913_v60  ;;  %v6675_v60 = vld [vmem:[#allocation8 + $0x8] sm:$0xff]  }
  0xda   :  { %661 = vmatprep.subr.bf16.mxu1 %v5914_v61  ;;  %v6678_v61 = vld [vmem:[#allocation8 + $0x50] sm:$0xff]  }
  0xdc   :  { %398 = vmatpush1.bf16.msra.mxu0 %v5869_v49 }
  0xdd   :  { %399 = vmatprep.subr.bf16.mxu0 %v5870_v51  ;;  %662 = vmatpush1.bf16.msra.mxu1 %v5916_v62  ;;  %v6681_v62 = vld [vmem:[#allocation8 + $0x10] sm:$0xff]  }
  0xde   :  { %663 = vmatprep.subr.bf16.mxu1 %v5917_v63  ;;  %v6684_v63 = vld [vmem:[#allocation8 + $0x58] sm:$0xff]  }
  0xe0   :  { %400 = vmatpush1.bf16.msra.mxu0 %v5872_v53  ;;  %v5967_v53 = vld [vmem:[#allocation5 + $0x2e4] ss:$8 sps:$4 sm:$0xff]  }
  0xe1   :  { %664 = vmatpush1.bf16.msra.mxu1 %v5919_v0  ;;  %903 = vmatprep.subr.bf16.mxu0 %v5925_v4  ;;  %v6687_v0 = vld [vmem:[#allocation8 + $0x18] sm:$0xff]   ;;  %v6699_v4 = vld [vmem:[#allocation8 + $0x28] sm:$0xff]  }
  0xe2   :  { %665 = vmatprep.subr.bf16.mxu1 %v5920_v1  ;;  %v6690_v1 = vld [vmem:[#allocation8 + $0x60] sm:$0xff]  }
  0xe3   :  { %402 = vmatmul.mubr.bf16.vlgmr.msra.gmra.mrb[0].mxu0 %v5080_v57  ;;  %v6667_v57 = vld [vmem:[#allocation8 + $0x40] sm:$0xff]  }
  0xe4   :  { %904 = vmatpush1.bf16.msra.mxu0 %v5923_v3  ;;  %v6696_v3 = vld [vmem:[#allocation8 + $0x68] sm:$0xff]  }
  0xe5   :  { %666 = vmatpush1.bf16.msra.mxu1 %v5922_v2  ;;  %905 = vmatprep.subr.bf16.mxu0 %v5928_v5  ;;  %v6693_v2 = vld [vmem:[#allocation8 + $0x20] sm:$0xff]   ;;  %v677_v5 = vld [vmem:[#allocation7 + $0x2] sm:$0x3] }
  0xe6   :  { %5623 = vmatprep.subr.bf16.mxu1 %v6667_v57 }
  0xe8   :  { %906 = vmatpush1.bf16.msra.mxu0 %v5926_v6  ;;  %v5146_v6 = vld [vmem:[%s7033_s3 + $0x2] sm:$0x3] }
  0xe9   :  { %907 = vmatprep.subr.bf16.mxu0 %v5931_v7  ;;  %v682_v7 = vrot.slane %v677_v5, %v6647_v33 }
  0xec   :  { %908 = vmatpush1.bf16.msra.mxu0 %v5929_v8  ;;  %v686_v8 = vrot.slane %v677_v5, %v6650_v35  ;;  %v5995_v5 = vld [vmem:[#allocation13] sm:$0xff]  }
  0xed   :  { %909 = vmatprep.subr.bf16.mxu0 %v5934_v9  ;;  %v697_v9 = vrot.slane %v5146_v6, %v6647_v33 }
  0xf0   :  { %910 = vmatpush1.bf16.msra.mxu0 %v5932_v10 }
  0xf1   :  { %911 = vmatprep.subr.bf16.mxu0 %v5937_v11  ;;  %v701_v11 = vrot.slane %v5146_v6, %v6650_v35  ;;  %v5996_v6 = vld [vmem:[#allocation13 + $0x8] sm:$0xff]  }
  0xf4   :  { %912 = vmatpush1.bf16.msra.mxu0 %v5935_v12 }
  0xf5   :  { %913 = vmatprep.subr.bf16.mxu0 %v5940_v13 }
  0xf8   :  { %914 = vmatpush1.bf16.msra.mxu0 %v5938_v14 }
  0xf9   :  { %915 = vmatprep.subr.bf16.mxu0 %v5943_v15 }
  0xfc   :  { %916 = vmatpush1.bf16.msra.mxu0 %v5941_v16 }
  0xfd   :  { %917 = vmatprep.subr.bf16.mxu0 %v5946_v17 }
 0x100   :  { %918 = vmatpush1.bf16.msra.mxu0 %v5944_v18 }
 0x101   :  { %919 = vmatprep.subr.bf16.mxu0 %v5949_v19 }
 0x104   :  { %920 = vmatpush1.bf16.msra.mxu0 %v5947_v20 }
 0x105   :  { %921 = vmatprep.subr.bf16.mxu0 %v5952_v21 }
 0x108   :  { %922 = vmatpush1.bf16.msra.mxu0 %v5950_v22 }
 0x109   :  { %923 = vmatprep.subr.bf16.mxu0 %v5955_v23  ;;  %v6710_v23 = vld [vmem:[#allocation8 + $0x70] sm:$0xff]  }
 0x10c   :  { %924 = vmatpush1.bf16.msra.mxu0 %v5953_v24  ;;  %v6712_v24 = vld [vmem:[#allocation8 + $0x30] sm:$0xff]  }
 0x10d   :  { %925 = vmatprep.subr.bf16.mxu0 %v5958_v25  ;;  %v6716_v25 = vld [vmem:[#allocation8 + $0x78] sm:$0xff]  }
 0x110   :  { %926 = vmatpush1.bf16.msra.mxu0 %v5956_v26  ;;  %v6718_v26 = vld [vmem:[#allocation8 + $0x38] sm:$0xff]  }
 0x111   :  { %927 = vmatprep.subr.bf16.mxu0 %v5961_v27  ;;  %v6411_v27 = vmov 0.0  }
 0x114   :  { %928 = vmatpush1.bf16.msra.mxu0 %v5959_v28  ;;  %v945_v28 = vld [vmem:[#allocation7 + $0x4] sm:$0x3] }
 0x115   :  { %929 = vmatprep.subr.bf16.mxu0 %v5964_v29  ;;  %v5179_v29 = vld [vmem:[%s7033_s3 + $0x4] sm:$0x3]  ;;  %v954_v31 = vrot.slane %v945_v28, %v6650_v35 }
 0x116   :  { %v965_v34 = vrot.slane %v5179_v29, %v6647_v33 }
 0x118   :  { %930 = vmatpush1.bf16.msra.mxu0 %v5962_v30  ;;  %v950_v30 = vrot.slane %v945_v28, %v6647_v33 }
 0x119   :  { %931 = vmatprep.subr.bf16.mxu0 %v5967_v53  ;;  %v5991_v53 = vld [vmem:[#allocation11 + $0x20] sm:$0xff]  }
 0x11c   :  { %932 = vmatpush1.bf16.msra.mxu0 %v5965_v54  ;;  %v5992_v54 = vld [vmem:[#allocation11 + $0x28] sm:$0xff]  }
 0x11d   :  { %933 = vmatprep.subr.bf16.mxu0 %v5970_v55  ;;  %v5993_v55 = vld [vmem:[#allocation11 + $0x30] sm:$0xff]  }
 0x120   :  { %934 = vmatpush1.bf16.msra.mxu0 %v5968_v56  ;;  %v5994_v56 = vld [vmem:[#allocation11 + $0x38] sm:$0xff]  }
 0x121   :  { %5745 = vmatprep.subr.bf16.mxu0 %v6411_v27 }
 0x1b6   :  { %v403_v40 = vpop.f32.mrb[0].mxu0 }
 0x1b7   :  { %v422_v42 = vmul.f32 %v415_v37, %v403_v40  ;;  %v405_v43 = vpop.f32.mrb[1].mxu0  ;;  %v969_v37 = vrot.slane %v5179_v29, %v6650_v35 }
 0x1b8   :  { %v423_v44 = vmul.f32 %v419_v38, %v405_v43  ;;  %v407_v45 = vpop.f32.mrb[2].mxu0 }
 0x1b9   :  { %v436_v46 = vadd.f32 %v429_v39, %v422_v42  ;;  %v408_v47 = vpop.f32.mrb[3].mxu0 }
 0x1ba   :  { %v437_v48 = vadd.f32 %v433_v41, %v423_v44 }
 0x1bb   :  { %v6659_v49 = vmax.f32 %v436_v46, 0.0  ;;  %v5987_v46 = vld [vmem:[#allocation11] sm:$0xff]  }
 0x1bc   :  { %v6661_v50 = vmax.f32 %v437_v48, 0.0  ;;  %v5988_v48 = vld [vmem:[#allocation11 + $0x8] sm:$0xff]  }
 0x1bd   :  { %v440_v52 = vpack.c.bf16 %v6659_v49, %v6659_v49 }
 0x1be   :  { %v441_v51 = vpack.c.bf16 %v6661_v50, %v6661_v50 }
 0x1c0   :  { %667 = vmatprep.mubr.bf16.mxu1 %v441_v51  ;;  %v5989_v51 = vld [vmem:[#allocation11 + $0x10] sm:$0xff]  }
 0x1c1   :  { %668 = vmatmul.mubr.bf16.vlgmr.msra.gmra.mrb[0].mxu1 %v440_v52  ;;  %v5990_v52 = vld [vmem:[#allocation11 + $0x18] sm:$0xff]  }
 0x1c2   :  { %5624 = vmatpush3.bf16.msra.mxu1 %v6669_v58 }
 0x1c3   :  { %5625 = vmatprep.subr.bf16.mxu1 %v6671_v59 }
 0x1c6   :  { %5626 = vmatpush3.bf16.msra.mxu1 %v6675_v60 }
 0x1c7   :  { %5627 = vmatprep.subr.bf16.mxu1 %v6678_v61 }
 0x1ca   :  { %5628 = vmatpush3.bf16.msra.mxu1 %v6681_v62 }
 0x1cb   :  { %5629 = vmatprep.subr.bf16.mxu1 %v6684_v63 }
 0x1ce   :  { %5630 = vmatpush3.bf16.msra.mxu1 %v6687_v0 }
 0x1cf   :  { %5631 = vmatprep.subr.bf16.mxu1 %v6690_v1 }
 0x1d2   :  { %5632 = vmatpush3.bf16.msra.mxu1 %v6693_v2 }
 0x1d3   :  { %5633 = vmatprep.subr.bf16.mxu1 %v6696_v3 }
 0x1d6   :  { %5634 = vmatpush3.bf16.msra.mxu1 %v6699_v4 }
 0x1d7   :  { %5635 = vmatprep.subr.bf16.mxu1 %v6710_v23 }
 0x1da   :  { %5636 = vmatpush3.bf16.msra.mxu1 %v6712_v24 }
 0x1db   :  { %5637 = vmatprep.subr.bf16.mxu1 %v6716_v25 }
 0x1de   :  { %5638 = vmatpush3.bf16.msra.mxu1 %v6718_v26 }
 0x1df   :  { %5725 = vmatprep.subr.bf16.mxu1 %v6411_v27 }
 0x294   :  { %v669_v10 = vpop.f32.mrb[0].mxu1 }
 0x295   :  { %v689_v12 = vmul.f32 %v682_v7, %v669_v10  ;;  %v671_v13 = vpop.f32.mrb[1].mxu1  ;;  %v5997_v7 = vld [vmem:[#allocation13 + $0x10] sm:$0xff]   ;;  %v6000_v10 = vld [vmem:[#allocation13 + $0x28] sm:$0xff]  }
 0x296   :  { %v690_v14 = vmul.f32 %v686_v8, %v671_v13  ;;  %v673_v15 = vpop.f32.mrb[2].mxu1  ;;  %v5998_v8 = vld [vmem:[#allocation13 + $0x18] sm:$0xff]  }
 0x297   :  { %v704_v16 = vadd.f32 %v697_v9, %v689_v12  ;;  %v674_v17 = vpop.f32.mrb[3].mxu1  ;;  %v5999_v9 = vld [vmem:[#allocation13 + $0x20] sm:$0xff]  }
 0x298   :  { %v705_v18 = vadd.f32 %v701_v11, %v690_v14  ;;  %v6001_v17 = vld [vmem:[#allocation13 + $0x30] sm:$0xff]  }
 0x299   :  { %v706_v19 = vmax.f32 %v704_v16, 0.0 }
 0x29a   :  { %v707_v20 = vmax.f32 %v705_v18, 0.0  ;;  %v6002_v18 = vld [vmem:[#allocation13 + $0x38] sm:$0xff]  }
 0x29b   :  { %v708_v22 = vpack.c.bf16 %v706_v19, %v706_v19  ;;  %v6757_v19 = vld [vmem:[#allocation10] ss:$8 sps:$4 sm:$0xff]  }
 0x29c   :  { %v709_v21 = vpack.c.bf16 %v707_v20, %v707_v20  ;;  %v6759_v20 = vld [vmem:[#allocation10 + $0x4] ss:$8 sps:$4 sm:$0xff]  }
 0x29e   :  { %935 = vmatprep.mubr.bf16.mxu0 %v709_v21  ;;  %v5196_v21 = vld [vmem:[%s7037_s7] ss:$0 sm:$0xff] }
 0x29f   :  { %936 = vmatmul.mubr.bf16.vlgmr.msra.gmra.mrb[4].mxu0 %v708_v22 }
 0x2a0   :  { %5761 = vmatprep.mubr.msk.bf16.mxu0 %vm6412_vm0, %v6411_v27  ;;  %5746 = vmatpush3.bf16.msra.mxu0 %v5995_v5  ;;  %v6029_v5 = vld [vmem:[#allocation5 + $0x304] ss:$8 sps:$4 sm:$0xff]  }
 0x2a1   :  { %5747 = vmatprep.subr.bf16.mxu0 %v6411_v27 }
 0x2a4   :  { %5748 = vmatpush3.bf16.msra.mxu0 %v5996_v6  ;;  %v6032_v6 = vld [vmem:[#allocation5 + $0x314] ss:$8 sps:$4 sm:$0xff]  }
 0x2a5   :  { %5749 = vmatprep.subr.bf16.mxu0 %v6411_v27 }
 0x2a8   :  { %5750 = vmatpush3.bf16.msra.mxu0 %v5997_v7  ;;  %v6030_v7 = vld [vmem:[#allocation5 + $0x310] ss:$8 sps:$4 sm:$0xff]  }
 0x2a9   :  { %5751 = vmatprep.subr.bf16.mxu0 %v6411_v27 }
 0x2ac   :  { %5752 = vmatpush3.bf16.msra.mxu0 %v5998_v8  ;;  %v6035_v8 = vld [vmem:[#allocation5 + $0x324] ss:$8 sps:$4 sm:$0xff]  }
 0x2ad   :  { %5753 = vmatprep.subr.bf16.mxu0 %v6411_v27 }
 0x2b0   :  { %5754 = vmatpush3.bf16.msra.mxu0 %v5999_v9  ;;  %v6033_v9 = vld [vmem:[#allocation5 + $0x320] ss:$8 sps:$4 sm:$0xff]  }
 0x2b1   :  { %5755 = vmatprep.subr.bf16.mxu0 %v6411_v27 }
 0x2b4   :  { %5756 = vmatpush3.bf16.msra.mxu0 %v6000_v10  ;;  %v6038_v10 = vld [vmem:[#allocation5 + $0x334] ss:$8 sps:$4 sm:$0xff]  }
 0x2b5   :  { %5757 = vmatprep.subr.bf16.mxu0 %v6411_v27 }
 0x2b8   :  { %5758 = vmatpush3.bf16.msra.mxu0 %v6001_v17  ;;  %v6045_v17 = vld [vmem:[#allocation5 + $0x360] ss:$8 sps:$4 sm:$0xff]  }
 0x2b9   :  { %5759 = vmatprep.subr.bf16.mxu0 %v6411_v27 }
 0x2bc   :  { %5760 = vmatpush3.bf16.msra.mxu0 %v6002_v18  ;;  %v6050_v18 = vld [vmem:[#allocation5 + $0x374] ss:$8 sps:$4 sm:$0xff]  }
 0x2bd   :  { %1714 = vmatprep.subr.bf16.mxu0 %v6029_v5  ;;  %v6065_v5 = vld [vmem:[#allocation5 + $0x3c4] ss:$8 sps:$4 sm:$0xff]  }
 0x372   :  { %v937_v36 = vpop.f32.mrb[4].mxu0 }
 0x373   :  { %v957_v38 = vmul.f32 %v950_v30, %v937_v36  ;;  %v939_v39 = vpop.f32.mrb[5].mxu0 }
 0x374   :  { %v958_v40 = vmul.f32 %v954_v31, %v939_v39  ;;  %v941_v41 = vpop.f32.mrb[6].mxu0  ;;  %v6772_v39 = vld [vmem:[#allocation10 + $0x24] ss:$8 sps:$4 sm:$0xff]  }
 0x375   :  { %v6731_v42 = vadd.f32 %v965_v34, %v957_v38  ;;  %v942_v43 = vpop.f32.mrb[7].mxu0  ;;  %v6768_v38 = vld [vmem:[#allocation10 + $0x10] ss:$8 sps:$4 sm:$0xff]   ;;  %v6778_v41 = vld [vmem:[#allocation10 + $0x34] ss:$8 sps:$4 sm:$0xff]  }
 0x376   :  { %v6733_v44 = vadd.f32 %v969_v37, %v958_v40  ;;  %v6766_v37 = vld [vmem:[#allocation10 + $0x14] ss:$8 sps:$4 sm:$0xff]   ;;  %v6774_v40 = vld [vmem:[#allocation10 + $0x20] ss:$8 sps:$4 sm:$0xff]   ;;  %v6780_v43 = vld [vmem:[#allocation10 + $0x30] ss:$8 sps:$4 sm:$0xff]  }
 0x377   :  { %v974_v47 = vpack.c.bf16 %v6731_v42, %v6731_v42 }
 0x378   :  { %v975_v45 = vpack.c.bf16 %v6733_v44, %v6733_v44 }
 0x37a   :  { %1136 = vmatprep.mubr.bf16.mxu1 %v975_v45  ;;  %v6784_v45 = vld [vmem:[#allocation10 + $0x44] ss:$8 sps:$4 sm:$0xff]  }
 0x37b   :  { %1137 = vmatmul.mubr.bf16.vlgmr.msra.gmra.mrb[4].mxu1 %v974_v47  ;;  %v6790_v47 = vld [vmem:[#allocation10 + $0x54] ss:$8 sps:$4 sm:$0xff]  }
 0x37c   :  { %5726 = vmatpush3.bf16.msra.mxu1 %v5987_v46  ;;  %5741 = vmatprep.mubr.msk.bf16.mxu1 %vm6412_vm0, %v6411_v27  ;;  %v6786_v46 = vld [vmem:[#allocation10 + $0x40] ss:$8 sps:$4 sm:$0xff]  }
 0x37d   :  { %5727 = vmatprep.subr.bf16.mxu1 %v6411_v27 }
 0x380   :  { %5728 = vmatpush3.bf16.msra.mxu1 %v5988_v48  ;;  %v6792_v48 = vld [vmem:[#allocation10 + $0x50] ss:$8 sps:$4 sm:$0xff]  }
 0x381   :  { %5729 = vmatprep.subr.bf16.mxu1 %v6411_v27 }
 0x384   :  { %5730 = vmatpush3.bf16.msra.mxu1 %v5989_v51  ;;  %v6794_v51 = vld [vmem:[#allocation10 + $0x64] ss:$8 sps:$4 sm:$0xff]  }
 0x385   :  { %5731 = vmatprep.subr.bf16.mxu1 %v6411_v27 }
 0x388   :  { %5732 = vmatpush3.bf16.msra.mxu1 %v5990_v52  ;;  %v6798_v52 = vld [vmem:[#allocation10 + $0x60] ss:$8 sps:$4 sm:$0xff]  }
 0x389   :  { %5733 = vmatprep.subr.bf16.mxu1 %v6411_v27 }
 0x38c   :  { %5734 = vmatpush3.bf16.msra.mxu1 %v5991_v53  ;;  %v6413_v53 = vmov 0  }
 0x38d   :  { %5735 = vmatprep.subr.bf16.mxu1 %v6411_v27 }
 0x390   :  { %5736 = vmatpush3.bf16.msra.mxu1 %v5992_v54  ;;  %v6802_v54 = vld [vmem:[#allocation10 + $0x74] ss:$8 sps:$4 sm:$0xff]  }
 0x391   :  { %5737 = vmatprep.subr.bf16.mxu1 %v6411_v27 }
 0x394   :  { %5738 = vmatpush3.bf16.msra.mxu1 %v5993_v55  ;;  %v6805_v55 = vld [vmem:[#allocation10 + $0x70] ss:$8 sps:$4 sm:$0xff]  }
 0x395   :  { %5739 = vmatprep.subr.bf16.mxu1 %v6411_v27 }
 0x398   :  { %5740 = vmatpush3.bf16.msra.mxu1 %v5994_v56  ;;  %v6027_v56 = vld [vmem:[#allocation5 + $0x300] ss:$8 sps:$4 sm:$0xff]  }
 0x399   :  { %1472 = vmatprep.subr.bf16.mxu1 %v6759_v20 }
 0x44e   :  { %v5639_v11 = vpop.f32.mrb[4].mxu1 }
 0x44f   :  { %v5640_v12 = vpop.f32.mrb[5].mxu1 }
 0x450   :  { %v5641_v13 = vadd.f32 %v5640_v12, %v5639_v11  ;;  %v5642_v14 = vpop.f32.mrb[6].mxu1  ;;  %v6036_v11 = vld [vmem:[#allocation5 + $0x330] ss:$8 sps:$4 sm:$0xff]   ;;  %v6041_v12 = vld [vmem:[#allocation5 + $0x344] ss:$8 sps:$4 sm:$0xff]  }
 0x451   :  { %v5643_v15 = vpop.f32.mrb[7].mxu1  ;;  %v6044_v14 = vld [vmem:[#allocation5 + $0x354] ss:$8 sps:$4 sm:$0xff]  }
 0x452   :  { %v1144_v16 = vpack.c.bf16 %v5641_v13, %v5641_v13  ;;  %v6039_v13 = vld [vmem:[#allocation5 + $0x340] ss:$8 sps:$4 sm:$0xff]   ;;  %v6042_v15 = vld [vmem:[#allocation5 + $0x350] ss:$8 sps:$4 sm:$0xff]  }
 0x454   :  { %5742 = vmatmul.mubr.bf16.vlgmr.msra.gmra.mrb[8].mxu1 %v1144_v16  ;;  %v6047_v16 = vld [vmem:[#allocation5 + $0x364] ss:$8 sps:$4 sm:$0xff]  }
 0x455   :  { %1473 = vmatpush1.bf16.msra.mxu1 %v6757_v19  ;;  %1504 = vmatprep.mubr.bf16.mxu1 %v6413_v53 }
 0x456   :  { %1474 = vmatprep.subr.bf16.mxu1 %v6766_v37 }
 0x459   :  { %1475 = vmatpush1.bf16.msra.mxu1 %v6768_v38 }
 0x45a   :  { %1476 = vmatprep.subr.bf16.mxu1 %v6772_v39 }
 0x45d   :  { %1477 = vmatpush1.bf16.msra.mxu1 %v6774_v40 }
 0x45e   :  { %1478 = vmatprep.subr.bf16.mxu1 %v6778_v41 }
 0x461   :  { %1479 = vmatpush1.bf16.msra.mxu1 %v6780_v43 }
 0x462   :  { %1480 = vmatprep.subr.bf16.mxu1 %v6784_v45 }
 0x465   :  { %1481 = vmatpush1.bf16.msra.mxu1 %v6786_v46 }
 0x466   :  { %1482 = vmatprep.subr.bf16.mxu1 %v6790_v47 }
 0x469   :  { %1483 = vmatpush1.bf16.msra.mxu1 %v6792_v48 }
 0x46a   :  { %1484 = vmatprep.subr.bf16.mxu1 %v6794_v51 }
 0x46d   :  { %1485 = vmatpush1.bf16.msra.mxu1 %v6798_v52 }
 0x46e   :  { %1486 = vmatprep.subr.bf16.mxu1 %v6802_v54 }
 0x471   :  { %1487 = vmatpush1.bf16.msra.mxu1 %v6805_v55 }
 0x527   :  { %v1250_v22 = vpop.f32.mrb[8].mxu1 }
 0x528   :  { %v1251_v28 = vadd.f32 %v5196_v21, %v1250_v22  ;;  %v5743_v29 = vpop.f32.mrb[9].mxu1  ;;  %v6048_v21 = vld [vmem:[#allocation5 + $0x370] ss:$8 sps:$4 sm:$0xff]   ;;  %v6053_v22 = vld [vmem:[#allocation5 + $0x384] ss:$8 sps:$4 sm:$0xff]  }
 0x529   :  { %v1253_v30 = vpop.f32.mrb[10].mxu1  ;;  %v6056_v29 = vld [vmem:[#allocation5 + $0x394] ss:$8 sps:$4 sm:$0xff]  }
 0x52a   :  { %v1256_v31 = vmax.f32 %v1251_v28, 0.0  ;;  %v5744_v34 = vpop.f32.mrb[11].mxu1  ;;  %v6051_v28 = vld [vmem:[#allocation5 + $0x380] ss:$8 sps:$4 sm:$0xff]   ;;  %v6054_v30 = vld [vmem:[#allocation5 + $0x390] ss:$8 sps:$4 sm:$0xff]  }
 0x52b   :  { %v6057_v34 = vld [vmem:[#allocation5 + $0x3a0] ss:$8 sps:$4 sm:$0xff]  }
 0x52c   :  { %v1257_v36 = vpack.c.bf16 %v1256_v31, %v1256_v31  ;;  %v6059_v31 = vld [vmem:[#allocation5 + $0x3a4] ss:$8 sps:$4 sm:$0xff]  }
 0x52e   :  { %5762 = vmatmul.mubr.bf16.vlgmr.msra.gmra.mrb[8].mxu0 %v1257_v36  ;;  %v6062_v36 = vld [vmem:[#allocation5 + $0x3b4] ss:$8 sps:$4 sm:$0xff]  }
 0x52f   :  { %1715 = vmatpush1.bf16.msra.mxu0 %v6027_v56  ;;  %v6060_v56 = vld [vmem:[#allocation5 + $0x3b0] ss:$8 sps:$4 sm:$0xff]  }
 0x530   :  { %1716 = vmatprep.subr.bf16.mxu0 %v6032_v6  ;;  %v6063_v6 = vld [vmem:[#allocation5 + $0x3c0] ss:$8 sps:$4 sm:$0xff]  }
 0x533   :  { %1717 = vmatpush1.bf16.msra.mxu0 %v6030_v7  ;;  %v6068_v7 = vld [vmem:[#allocation5 + $0x3d4] ss:$8 sps:$4 sm:$0xff]  }
 0x534   :  { %1718 = vmatprep.subr.bf16.mxu0 %v6035_v8  ;;  %v6066_v8 = vld [vmem:[#allocation5 + $0x3d0] ss:$8 sps:$4 sm:$0xff]  }
 0x537   :  { %1719 = vmatpush1.bf16.msra.mxu0 %v6033_v9  ;;  %v5205_v9 = vld [vmem:[%s7039_s9] ss:$0 sm:$0xff] }
 0x538   :  { %1720 = vmatprep.subr.bf16.mxu0 %v6038_v10 }
 0x53b   :  { %1721 = vmatpush1.bf16.msra.mxu0 %v6036_v11 }
 0x53c   :  { %1722 = vmatprep.subr.bf16.mxu0 %v6041_v12 }
 0x53f   :  { %1723 = vmatpush1.bf16.msra.mxu0 %v6039_v13 }
 0x540   :  { %1724 = vmatprep.subr.bf16.mxu0 %v6044_v14 }
 0x543   :  { %1725 = vmatpush1.bf16.msra.mxu0 %v6042_v15 }
 0x544   :  { %1726 = vmatprep.subr.bf16.mxu0 %v6047_v16 }
 0x547   :  { %1727 = vmatpush1.bf16.msra.mxu0 %v6045_v17 }
 0x548   :  { %1728 = vmatprep.subr.bf16.mxu0 %v6050_v18 }
 0x54b   :  { %1729 = vmatpush1.bf16.msra.mxu0 %v6048_v21 }
 0x54c   :  { %1730 = vmatprep.subr.bf16.mxu0 %v6053_v22  ;;  %v6071_v22 = vld [vmem:[#allocation5 + $0x3e4] ss:$8 sps:$4 sm:$0xff]  }
 0x54f   :  { %1731 = vmatpush1.bf16.msra.mxu0 %v6051_v28  ;;  %v6069_v28 = vld [vmem:[#allocation5 + $0x3e0] ss:$8 sps:$4 sm:$0xff]  }
 0x550   :  { %1732 = vmatprep.subr.bf16.mxu0 %v6056_v29  ;;  %v6074_v29 = vld [vmem:[#allocation5 + $0x3f4] ss:$8 sps:$4 sm:$0xff]  }
 0x553   :  { %1733 = vmatpush1.bf16.msra.mxu0 %v6054_v30  ;;  %v6072_v30 = vld [vmem:[#allocation5 + $0x3f0] ss:$8 sps:$4 sm:$0xff]  }
 0x554   :  { %1734 = vmatprep.subr.bf16.mxu0 %v6059_v31  ;;  %v6075_v31 = vld [vmem:[#allocation5 + $0x400] ss:$8 sps:$4 sm:$0xff]  }
 0x557   :  { %1735 = vmatpush1.bf16.msra.mxu0 %v6057_v34  ;;  %v6077_v34 = vld [vmem:[#allocation5 + $0x404] ss:$8 sps:$4 sm:$0xff]  }
 0x558   :  { %1736 = vmatprep.subr.bf16.mxu0 %v6062_v36  ;;  %v6080_v36 = vld [vmem:[#allocation5 + $0x414] ss:$8 sps:$4 sm:$0xff]   ;;  %1982 = vmatprep.subr.bf16.mxu1 %v6077_v34  ;;  %v6111_v34 = vld [vmem:[#allocation5 + $0x4c0] ss:$8 sps:$4 sm:$0xff]  }
 0x55b   :  { %1737 = vmatpush1.bf16.msra.mxu0 %v6060_v56  ;;  %v6078_v56 = vld [vmem:[#allocation5 + $0x410] ss:$8 sps:$4 sm:$0xff]  }
 0x55c   :  { %1738 = vmatprep.subr.bf16.mxu0 %v6065_v5  ;;  %v6083_v5 = vld [vmem:[#allocation5 + $0x424] ss:$8 sps:$4 sm:$0xff]  }
 0x55f   :  { %1739 = vmatpush1.bf16.msra.mxu0 %v6063_v6  ;;  %v6081_v6 = vld [vmem:[#allocation5 + $0x420] ss:$8 sps:$4 sm:$0xff]  }
 0x560   :  { %1740 = vmatprep.subr.bf16.mxu0 %v6068_v7  ;;  %v6086_v7 = vld [vmem:[#allocation5 + $0x434] ss:$8 sps:$4 sm:$0xff]  }
 0x563   :  { %1741 = vmatpush1.bf16.msra.mxu0 %v6066_v8  ;;  %v6084_v8 = vld [vmem:[#allocation5 + $0x430] ss:$8 sps:$4 sm:$0xff]  }
 0x564   :  { %1742 = vmatprep.subr.bf16.mxu0 %v6071_v22  ;;  %v6107_v22 = vld [vmem:[#allocation5 + $0x4a4] ss:$8 sps:$4 sm:$0xff]  }
 0x567   :  { %1743 = vmatpush1.bf16.msra.mxu0 %v6069_v28  ;;  %v6105_v28 = vld [vmem:[#allocation5 + $0x4a0] ss:$8 sps:$4 sm:$0xff]  }
 0x568   :  { %1744 = vmatprep.subr.bf16.mxu0 %v6074_v29  ;;  %v6110_v29 = vld [vmem:[#allocation5 + $0x4b4] ss:$8 sps:$4 sm:$0xff]  }
 0x56b   :  { %1745 = vmatpush1.bf16.msra.mxu0 %v6072_v30  ;;  %v6108_v30 = vld [vmem:[#allocation5 + $0x4b0] ss:$8 sps:$4 sm:$0xff]  }
 0x56c   :  { %5663 = vmatprep.subr.bf16.mxu0 %v6667_v57  ;;  %v6092_v57 = vld [vmem:[#allocation5 + $0x454] ss:$8 sps:$4 sm:$0xff]  }
 0x601   :  { %v1363_v10 = vpop.f32.mrb[8].mxu0 }
 0x602   :  { %v1364_v11 = vadd.f32 %v5205_v9, %v1363_v10  ;;  %v5763_v12 = vpop.f32.mrb[9].mxu0  ;;  %v6089_v9 = vld [vmem:[#allocation5 + $0x444] ss:$8 sps:$4 sm:$0xff]   ;;  %v6087_v10 = vld [vmem:[#allocation5 + $0x440] ss:$8 sps:$4 sm:$0xff]  }
 0x603   :  { %v1366_v13 = vpop.f32.mrb[10].mxu0  ;;  %v6095_v12 = vld [vmem:[#allocation5 + $0x464] ss:$8 sps:$4 sm:$0xff]  }
 0x604   :  { %v5214_v14 = vmul.f32 -1.442695, %v1364_v11  ;;  %v5764_v15 = vpop.f32.mrb[11].mxu0  ;;  %v6090_v11 = vld [vmem:[#allocation5 + $0x450] ss:$8 sps:$4 sm:$0xff]  }
 0x605   :  { %v6093_v13 = vld [vmem:[#allocation5 + $0x460] ss:$8 sps:$4 sm:$0xff]   ;;  %v6096_v15 = vld [vmem:[#allocation5 + $0x470] ss:$8 sps:$4 sm:$0xff]  }
 0x606   :  { %6155 = vpow2.f32 %v5214_v14  ;;  %v6098_v14 = vld [vmem:[#allocation5 + $0x474] ss:$8 sps:$4 sm:$0xff]  }
 0x610   :  { %v6156_v16 = vpop.eup %6155 }
 0x611   :  { %v1372_v17 = vadd.f32 1.0, %v6156_v16  ;;  %v6101_v16 = vld [vmem:[#allocation5 + $0x484] ss:$8 sps:$4 sm:$0xff]  }
 0x613   :  { %6157 = vrcp.f32 %v1372_v17  ;;  %v6099_v17 = vld [vmem:[#allocation5 + $0x480] ss:$8 sps:$4 sm:$0xff]  }
 0x61d   :  { %v6158_v18 = vpop.eup %6157 }
 0x61e   :  { %v1375_v21 = vpack.c.bf16 %v6158_v18, %v6158_v18  ;;  %v6104_v18 = vld [vmem:[#allocation5 + $0x494] ss:$8 sps:$4 sm:$0xff]  }
 0x620   :  { %1505 = vmatmul.mubr.bf16.vlgmr.msra.gmra.mrb[12].mxu1 %v1375_v21  ;;  %v6102_v21 = vld [vmem:[#allocation5 + $0x490] ss:$8 sps:$4 sm:$0xff]  }
 0x621   :  { %1983 = vmatpush1.bf16.msra.mxu1 %v6075_v31  ;;  %v6113_v31 = vld [vmem:[#allocation5 + $0x4c4] ss:$8 sps:$4 sm:$0xff]  }
 0x622   :  { %1984 = vmatprep.subr.bf16.mxu1 %v6080_v36  ;;  %v6116_v36 = vld [vmem:[#allocation5 + $0x4d4] ss:$8 sps:$4 sm:$0xff]  }
 0x625   :  { %1985 = vmatpush1.bf16.msra.mxu1 %v6078_v56  ;;  %v6114_v56 = vld [vmem:[#allocation5 + $0x4d0] ss:$8 sps:$4 sm:$0xff]  }
 0x626   :  { %1986 = vmatprep.subr.bf16.mxu1 %v6083_v5 }
 0x629   :  { %1987 = vmatpush1.bf16.msra.mxu1 %v6081_v6 }
 0x62a   :  { %1988 = vmatprep.subr.bf16.mxu1 %v6086_v7 }
 0x62d   :  { %1989 = vmatpush1.bf16.msra.mxu1 %v6084_v8 }
 0x62e   :  { %1990 = vmatprep.subr.bf16.mxu1 %v6089_v9 }
 0x631   :  { %1991 = vmatpush1.bf16.msra.mxu1 %v6087_v10 }
 0x632   :  { %1992 = vmatprep.subr.bf16.mxu1 %v6092_v57 }
 0x635   :  { %1993 = vmatpush1.bf16.msra.mxu1 %v6090_v11 }
 0x636   :  { %1994 = vmatprep.subr.bf16.mxu1 %v6095_v12 }
 0x639   :  { %1995 = vmatpush1.bf16.msra.mxu1 %v6093_v13 }
 0x63a   :  { %1996 = vmatprep.subr.bf16.mxu1 %v6098_v14 }
 0x63d   :  { %1997 = vmatpush1.bf16.msra.mxu1 %v6096_v15 }
 0x63e   :  { %1998 = vmatprep.subr.bf16.mxu1 %v6101_v16 }
 0x641   :  { %1999 = vmatpush1.bf16.msra.mxu1 %v6099_v17 }
 0x642   :  { %2000 = vmatprep.subr.bf16.mxu1 %v6104_v18 }
 0x645   :  { %2001 = vmatpush1.bf16.msra.mxu1 %v6102_v21  ;;  %v6123_v21 = vld [vmem:[#allocation11 + $0x40] sm:$0xff]  }
 0x646   :  { %2002 = vmatprep.subr.bf16.mxu1 %v6107_v22  ;;  %v6124_v22 = vld [vmem:[#allocation11 + $0x48] sm:$0xff]  }
 0x649   :  { %2003 = vmatpush1.bf16.msra.mxu1 %v6105_v28  ;;  %v6125_v28 = vld [vmem:[#allocation11 + $0x50] sm:$0xff]  }
 0x64a   :  { %2004 = vmatprep.subr.bf16.mxu1 %v6110_v29  ;;  %v6126_v29 = vld [vmem:[#allocation11 + $0x58] sm:$0xff]  }
 0x64d   :  { %2005 = vmatpush1.bf16.msra.mxu1 %v6108_v30  ;;  %v6127_v30 = vld [vmem:[#allocation11 + $0x60] sm:$0xff]  }
 0x64e   :  { %2006 = vmatprep.subr.bf16.mxu1 %v6113_v31  ;;  %v6128_v31 = vld [vmem:[#allocation11 + $0x68] sm:$0xff]  }
 0x651   :  { %2007 = vmatpush1.bf16.msra.mxu1 %v6111_v34  ;;  %v6129_v34 = vld [vmem:[#allocation11 + $0x70] sm:$0xff]  }
 0x652   :  { %2008 = vmatprep.subr.bf16.mxu1 %v6116_v36  ;;  %v2024_v36 = vld [vmem:[#allocation7 + $0x8] sm:$0x3] }
 0x655   :  { %2009 = vmatpush1.bf16.msra.mxu1 %v6114_v56  ;;  %v5296_v56 = vld [vmem:[%s7033_s3 + $0x8] sm:$0x3] }
 0x6f3   :  { %v1506_v5 = vpop.f32.mrb[12].mxu1 }
 0x6f4   :  { %v1513_v6 = vmul.f32 %v1506_v5, %v6731_v42  ;;  %v1508_v7 = vpop.f32.mrb[13].mxu1  ;;  %v2029_v5 = vrot.slane %v2024_v36, %v6647_v33 }
 0x6f5   :  { %v1514_v8 = vmul.f32 %v1508_v7, %v6733_v44  ;;  %v1510_v9 = vpop.f32.mrb[14].mxu1  ;;  %v2044_v7 = vrot.slane %v5296_v56, %v6647_v33 }
 0x6f6   :  { %v1515_v10 = vadd.f32 %v1513_v6, %v6659_v49  ;;  %v1511_v57 = vpop.f32.mrb[15].mxu1  ;;  %v6119_v49 = vld [vmem:[#allocation5 + $0x4e4] ss:$8 sps:$4 sm:$0xff]   ;;  %v2033_v6 = vrot.slane %v2024_v36, %v6650_v35  ;;  %v2048_v9 = vrot.slane %v5296_v56, %v6650_v35 }
 0x6f7   :  { %v1516_v11 = vadd.f32 %v1514_v8, %v6661_v50  ;;  %v6117_v50 = vld [vmem:[#allocation5 + $0x4e0] ss:$8 sps:$4 sm:$0xff]   ;;  %2010 = vmatprep.subr.bf16.mxu1 %v6119_v49 }
 0x6f8   :  { %v6817_v12 = vmax.f32 %v1515_v10, 0.0  ;;  %2011 = vmatpush1.bf16.msra.mxu1 %v6117_v50 }
 0x6f9   :  { %v6819_v13 = vmax.f32 %v1516_v11, 0.0 }
 0x6fa   :  { %v1519_v15 = vpack.c.bf16 %v6817_v12, %v6817_v12 }
 0x6fb   :  { %v1520_v14 = vpack.c.bf16 %v6819_v13, %v6819_v13 }
 0x6fd   :  { %1746 = vmatprep.mubr.bf16.mxu0 %v1520_v14 }
 0x6fe   :  { %1747 = vmatmul.mubr.bf16.vlgmr.msra.gmra.mrb[12].mxu0 %v1519_v15 }
 0x6ff   :  { %5664 = vmatpush3.bf16.msra.mxu0 %v6669_v58  ;;  %v6122_v58 = vld [vmem:[#allocation5 + $0x4f4] ss:$8 sps:$4 sm:$0xff]  }
 0x700   :  { %5665 = vmatprep.subr.bf16.mxu0 %v6671_v59  ;;  %v6120_v59 = vld [vmem:[#allocation5 + $0x4f0] ss:$8 sps:$4 sm:$0xff]   ;;  %2012 = vmatprep.subr.bf16.mxu1 %v6122_v58 }
 0x701   :  { %2013 = vmatpush1.bf16.msra.mxu1 %v6120_v59 }
 0x702   :  { %5765 = vmatprep.subr.bf16.mxu1 %v6411_v27 }
 0x703   :  { %5666 = vmatpush3.bf16.msra.mxu0 %v6675_v60  ;;  %v1756_v60 = vld [vmem:[#allocation7 + $0x6] sm:$0x3] }
 0x704   :  { %5667 = vmatprep.subr.bf16.mxu0 %v6678_v61  ;;  %v5263_v61 = vld [vmem:[%s7033_s3 + $0x6] sm:$0x3] }
 0x707   :  { %5668 = vmatpush3.bf16.msra.mxu0 %v6681_v62  ;;  %v1761_v62 = vrot.slane %v1756_v60, %v6647_v33 }
 0x708   :  { %5669 = vmatprep.subr.bf16.mxu0 %v6684_v63  ;;  %v1765_v63 = vrot.slane %v1756_v60, %v6650_v35  ;;  %v6130_v60 = vld [vmem:[#allocation11 + $0x78] sm:$0xff]  }
 0x70b   :  { %5670 = vmatpush3.bf16.msra.mxu0 %v6687_v0  ;;  %v1776_v0 = vrot.slane %v5263_v61, %v6647_v33 }
 0x70c   :  { %5671 = vmatprep.subr.bf16.mxu0 %v6690_v1 }
 0x70f   :  { %5672 = vmatpush3.bf16.msra.mxu0 %v6693_v2  ;;  %v1780_v2 = vrot.slane %v5263_v61, %v6650_v35  ;;  %v6131_v61 = vld [vmem:[#allocation13 + $0x40] sm:$0xff]  }
 0x710   :  { %5673 = vmatprep.subr.bf16.mxu0 %v6696_v3 }
 0x713   :  { %5674 = vmatpush3.bf16.msra.mxu0 %v6699_v4 }
 0x714   :  { %5675 = vmatprep.subr.bf16.mxu0 %v6710_v23 }
 0x717   :  { %5676 = vmatpush3.bf16.msra.mxu0 %v6712_v24 }
 0x718   :  { %5677 = vmatprep.subr.bf16.mxu0 %v6716_v25 }
 0x71b   :  { %5678 = vmatpush3.bf16.msra.mxu0 %v6718_v26 }
 0x71c   :  { %5785 = vmatprep.subr.bf16.mxu0 %v6411_v27 }
 0x7d1   :  { %v1748_v1 = vpop.f32.mrb[12].mxu0 }
 0x7d2   :  { %v1768_v3 = vmul.f32 %v1761_v62, %v1748_v1  ;;  %v1750_v4 = vpop.f32.mrb[13].mxu0  ;;  %v6132_v62 = vld [vmem:[#allocation13 + $0x48] sm:$0xff]   ;;  %v6135_v1 = vld [vmem:[#allocation13 + $0x60] sm:$0xff]  }
 0x7d3   :  { %v1769_v23 = vmul.f32 %v1765_v63, %v1750_v4  ;;  %v1752_v24 = vpop.f32.mrb[14].mxu0  ;;  %v6133_v63 = vld [vmem:[#allocation13 + $0x50] sm:$0xff]  }
 0x7d4   :  { %v1783_v25 = vadd.f32 %v1776_v0, %v1768_v3  ;;  %v1753_v26 = vpop.f32.mrb[15].mxu0  ;;  %v6134_v0 = vld [vmem:[#allocation13 + $0x58] sm:$0xff]  }
 0x7d5   :  { %v1784_v42 = vadd.f32 %v1780_v2, %v1769_v23  ;;  %v6136_v2 = vld [vmem:[#allocation13 + $0x68] sm:$0xff]   ;;  %v6145_v26 = vld [vmem:[#allocation14 + $0x58] sm:$0xff]  }
 0x7d6   :  { %v1785_v44 = vmax.f32 %v1783_v25, 0.0 }
 0x7d7   :  { %v1786_v16 = vmax.f32 %v1784_v42, 0.0  ;;  %v6146_v42 = vld [vmem:[#allocation14 + $0x18] sm:$0xff]  }
 0x7d8   :  { %v1787_v18 = vpack.c.bf16 %v1785_v44, %v1785_v44  ;;  %v6147_v44 = vld [vmem:[#allocation14 + $0x60] sm:$0xff]  }
 0x7d9   :  { %v1788_v17 = vpack.c.bf16 %v1786_v16, %v1786_v16  ;;  %v6148_v16 = vld [vmem:[#allocation14 + $0x20] sm:$0xff]  }
 0x7db   :  { %2014 = vmatprep.mubr.bf16.mxu1 %v1788_v17  ;;  %v6149_v17 = vld [vmem:[#allocation14 + $0x68] sm:$0xff]  }
 0x7dc   :  { %2015 = vmatmul.mubr.bf16.vlgmr.msra.gmra.mrb[16].mxu1 %v1787_v18  ;;  %v5308_v18 = vld [vmem:[%s7039_s9 + $0x1] ss:$0 sm:$0xff] }
 0x7dd   :  { %5781 = vmatprep.mubr.msk.bf16.mxu1 %vm6412_vm0, %v6411_v27  ;;  %5766 = vmatpush3.bf16.msra.mxu1 %v6123_v21 }
 0x7de   :  { %5767 = vmatprep.subr.bf16.mxu1 %v6411_v27 }
 0x7e1   :  { %5768 = vmatpush3.bf16.msra.mxu1 %v6124_v22 }
 0x7e2   :  { %5769 = vmatprep.subr.bf16.mxu1 %v6411_v27 }
 0x7e5   :  { %5770 = vmatpush3.bf16.msra.mxu1 %v6125_v28 }
 0x7e6   :  { %5771 = vmatprep.subr.bf16.mxu1 %v6411_v27 }
 0x7e9   :  { %5772 = vmatpush3.bf16.msra.mxu1 %v6126_v29 }
 0x7ea   :  { %5773 = vmatprep.subr.bf16.mxu1 %v6411_v27 }
 0x7ed   :  { %5774 = vmatpush3.bf16.msra.mxu1 %v6127_v30 }
 0x7ee   :  { %5775 = vmatprep.subr.bf16.mxu1 %v6411_v27 }
 0x7f1   :  { %5776 = vmatpush3.bf16.msra.mxu1 %v6128_v31 }
 0x7f2   :  { %5777 = vmatprep.subr.bf16.mxu1 %v6411_v27 }
 0x7f5   :  { %5778 = vmatpush3.bf16.msra.mxu1 %v6129_v34 }
 0x7f6   :  { %5779 = vmatprep.subr.bf16.mxu1 %v6411_v27 }
 0x7f9   :  { %5780 = vmatpush3.bf16.msra.mxu1 %v6130_v60  ;;  %v2589_v60 = vld [vmem:[#allocation16 + $0x100] sm:$0xff] }
 0x7fa   :  { %2331 = vmatprep.subr.bf16.mxu1 %v6759_v20 }
 0x8af   :  { %v2016_v8 = vpop.f32.mrb[16].mxu1 }
 0x8b0   :  { %v2036_v10 = vmul.f32 %v2029_v5, %v2016_v8  ;;  %v2018_v57 = vpop.f32.mrb[17].mxu1  ;;  %v6152_v8 = vld [vmem:[#allocation14 + $0x30] sm:$0xff]  }
 0x8b1   :  { %v2037_v11 = vmul.f32 %v2033_v6, %v2018_v57  ;;  %v2020_v14 = vpop.f32.mrb[18].mxu1  ;;  %v6150_v6 = vld [vmem:[#allocation14 + $0x28] sm:$0xff]   ;;  %v2557_v57 = vld [vmem:[#allocation16] sm:$0xff] }
 0x8b2   :  { %v6865_v15 = vadd.f32 %v2044_v7, %v2036_v10  ;;  %v2021_v49 = vpop.f32.mrb[19].mxu1  ;;  %v6151_v7 = vld [vmem:[#allocation14 + $0x70] sm:$0xff]   ;;  %v6154_v10 = vld [vmem:[#allocation14 + $0x38] sm:$0xff]   ;;  %v2558_v14 = vld [vmem:[#allocation16 + $0x8] sm:$0xff] }
 0x8b3   :  { %v6867_v50 = vadd.f32 %v2048_v9, %v2037_v11  ;;  %v6153_v9 = vld [vmem:[#allocation14 + $0x78] sm:$0xff]   ;;  %v2573_v11 = vld [vmem:[#allocation16 + $0x80] sm:$0xff] }
 0x8b4   :  { %v2053_v59 = vpack.c.bf16 %v6865_v15, %v6865_v15  ;;  %v5335_v49 = vcombine.low %v2557_v57, %v2573_v11 }
 0x8b5   :  { %v2054_v58 = vpack.c.bf16 %v6867_v50, %v6867_v50 }
 0x8b7   :  { %2087 = vmatprep.mubr.bf16.mxu0 %v2054_v58  ;;  %v5336_v58 = vcombine.high %v2557_v57, %v2573_v11  ;;  %v2749_v57 = vld [vmem:[#allocation16 + $0x600] sm:$0xff] }
 0x8b8   :  { %2088 = vmatmul.mubr.bf16.vlgmr.msra.gmra.mrb[16].mxu0 %v2053_v59  ;;  %v2574_v59 = vld [vmem:[#allocation16 + $0x88] sm:$0xff]  ;;  %v2765_v11 = vld [vmem:[#allocation16 + $0x680] sm:$0xff] }
 0x8b9   :  { %5801 = vmatprep.mubr.msk.bf16.mxu0 %vm6412_vm0, %v6411_v27  ;;  %5786 = vmatpush3.bf16.msra.mxu0 %v6131_v61  ;;  %v2605_v61 = vld [vmem:[#allocation16 + $0x180] sm:$0xff] }
 0x8ba   :  { %5787 = vmatprep.subr.bf16.mxu0 %v6411_v27 }
 0x8bd   :  { %5788 = vmatpush3.bf16.msra.mxu0 %v6132_v62  ;;  %v5337_v62 = vcombine.low %v2558_v14, %v2574_v59 }
 0x8be   :  { %5789 = vmatprep.subr.bf16.mxu0 %v6411_v27 }
 0x8c1   :  { %5790 = vmatpush3.bf16.msra.mxu0 %v6133_v63  ;;  %v5338_v63 = vcombine.high %v2558_v14, %v2574_v59  ;;  %v2750_v14 = vld [vmem:[#allocation16 + $0x608] sm:$0xff]  ;;  %v5527_v59 = vcombine.low %v2749_v57, %v2765_v11 }
 0x8c2   :  { %5791 = vmatprep.subr.bf16.mxu0 %v6411_v27 }
 0x8c5   :  { %5792 = vmatpush3.bf16.msra.mxu0 %v6134_v0  ;;  %v5368_v0 = vcombine.high %v2589_v60, %v2605_v61 }
 0x8c6   :  { %5793 = vmatprep.subr.bf16.mxu0 %v6411_v27 }
 0x8c9   :  { %5794 = vmatpush3.bf16.msra.mxu0 %v6135_v1  ;;  %v5367_v1 = vcombine.low %v2589_v60, %v2605_v61 }
 0x8ca   :  { %5795 = vmatprep.subr.bf16.mxu0 %v6411_v27 }
 0x8cd   :  { %5796 = vmatpush3.bf16.msra.mxu0 %v6136_v2  ;;  %v2621_v2 = vld [vmem:[#allocation16 + $0x200] sm:$0xff] }
 0x8ce   :  { %5797 = vmatprep.subr.bf16.mxu0 %v6411_v27 }
 0x98b   :  { %v5679_v20 = vpop.f32.mrb[16].mxu0 }
 0x98c   :  { %v5680_v3 = vpop.f32.mrb[17].mxu0 }
 0x98d   :  { %v5681_v4 = vadd.f32 %v5680_v3, %v5679_v20  ;;  %v5682_v23 = vpop.f32.mrb[18].mxu0  ;;  %v2637_v20 = vld [vmem:[#allocation16 + $0x280] sm:$0xff] }
 0x98e   :  { %v5683_v24 = vpop.f32.mrb[19].mxu0  ;;  %v5400_v3 = vcombine.high %v2621_v2, %v2637_v20  ;;  %v2653_v23 = vld [vmem:[#allocation16 + $0x300] sm:$0xff] }
 0x98f   :  { %v2095_v25 = vpack.c.bf16 %v5681_v4, %v5681_v4  ;;  %v5399_v4 = vcombine.low %v2621_v2, %v2637_v20  ;;  %v2669_v24 = vld [vmem:[#allocation16 + $0x380] sm:$0xff]  ;;  %v2798_v2 = vld [vmem:[#allocation16 + $0x788] sm:$0xff] }
 0x991   :  { %5782 = vmatmul.mubr.bf16.vlgmr.msra.gmra.mrb[20].mxu1 %v2095_v25  ;;  %v5432_v25 = vcombine.high %v2653_v23, %v2669_v24 }
 0x992   :  { %2332 = vmatpush1.bf16.msra.mxu1 %v6757_v19  ;;  %2363 = vmatprep.mubr.bf16.mxu1 %v6413_v53  ;;  %v6137_v19 = vld [vmem:[#allocation13 + $0x70] sm:$0xff]  }
 0x993   :  { %2333 = vmatprep.subr.bf16.mxu1 %v6766_v37  ;;  %5798 = vmatpush3.bf16.msra.mxu0 %v6137_v19  ;;  %v6138_v37 = vld [vmem:[#allocation13 + $0x78] sm:$0xff]   ;;  %v5431_v19 = vcombine.low %v2653_v23, %v2669_v24  ;;  %v2559_v23 = vld [vmem:[#allocation16 + $0x10] sm:$0xff] }
 0x994   :  { %5799 = vmatprep.subr.bf16.mxu0 %v6411_v27  ;;  %v6142_v27 = vld [vmem:[#allocation14 + $0x8] sm:$0xff]   ;;  %v2575_v24 = vld [vmem:[#allocation16 + $0x90] sm:$0xff] }
 0x996   :  { %2334 = vmatpush1.bf16.msra.mxu1 %v6768_v38  ;;  %v5298_v38 = vld [vmem:[%s7037_s7 + $0x1] ss:$0 sm:$0xff] }
 0x997   :  { %2335 = vmatprep.subr.bf16.mxu1 %v6772_v39  ;;  %5800 = vmatpush3.bf16.msra.mxu0 %v6138_v37  ;;  %v2685_v37 = vld [vmem:[#allocation16 + $0x400] sm:$0xff] }
 0x99a   :  { %2336 = vmatpush1.bf16.msra.mxu1 %v6774_v40 }
 0x99b   :  { %2337 = vmatprep.subr.bf16.mxu1 %v6778_v41 }
 0x99e   :  { %2338 = vmatpush1.bf16.msra.mxu1 %v6780_v43 }
 0x99f   :  { %2339 = vmatprep.subr.bf16.mxu1 %v6784_v45 }
 0x9a2   :  { %2340 = vmatpush1.bf16.msra.mxu1 %v6786_v46 }
 0x9a3   :  { %2341 = vmatprep.subr.bf16.mxu1 %v6790_v47 }
 0x9a6   :  { %2342 = vmatpush1.bf16.msra.mxu1 %v6792_v48  ;;  %v6139_v48 = vld [vmem:[#allocation14 + $0x40] sm:$0xff]  }
 0x9a7   :  { %2343 = vmatprep.subr.bf16.mxu1 %v6794_v51  ;;  %v6140_v51 = vld [vmem:[#allocation14] sm:$0xff]   ;;  %5703 = vmatprep.subr.bf16.mxu0 %v6139_v48 }
 0x9aa   :  { %2344 = vmatpush1.bf16.msra.mxu1 %v6798_v52  ;;  %v6141_v52 = vld [vmem:[#allocation14 + $0x48] sm:$0xff]  }
 0x9ab   :  { %2345 = vmatprep.subr.bf16.mxu1 %v6802_v54  ;;  %v6143_v54 = vld [vmem:[#allocation14 + $0x50] sm:$0xff]  }
 0x9ae   :  { %2346 = vmatpush1.bf16.msra.mxu1 %v6805_v55  ;;  %v6144_v55 = vld [vmem:[#allocation14 + $0x10] sm:$0xff]  }
 0x9af   :  { %4261 = vmatprep.subr.bf16.mxu1 %v5336_v58  ;;  %v2766_v58 = vld [vmem:[#allocation16 + $0x688] sm:$0xff] }
 0x9b0   :  { %v5529_v60 = vcombine.low %v2750_v14, %v2766_v58  ;;  %v5530_v61 = vcombine.high %v2750_v14, %v2766_v58  ;;  %v2735_v58 = vld [vmem:[#allocation16 + $0x590] sm:$0xff] }
 0xa64   :  { %v2203_v39 = vpop.f32.mrb[20].mxu1 }
 0xa65   :  { %v2204_v40 = vadd.f32 %v5298_v38, %v2203_v39  ;;  %v5783_v41 = vpop.f32.mrb[21].mxu1  ;;  %v2701_v38 = vld [vmem:[#allocation16 + $0x480] sm:$0xff] }
 0xa66   :  { %v2206_v43 = vpop.f32.mrb[22].mxu1  ;;  %v5464_v39 = vcombine.high %v2685_v37, %v2701_v38  ;;  %v2717_v41 = vld [vmem:[#allocation16 + $0x500] sm:$0xff] }
 0xa67   :  { %v2209_v45 = vmax.f32 %v2204_v40, 0.0  ;;  %v5784_v46 = vpop.f32.mrb[23].mxu1  ;;  %v5463_v40 = vcombine.low %v2685_v37, %v2701_v38  ;;  %v2733_v43 = vld [vmem:[#allocation16 + $0x580] sm:$0xff]  ;;  %v2576_v37 = vld [vmem:[#allocation16 + $0x98] sm:$0xff]  ;;  %v5339_v38 = vcombine.low %v2559_v23, %v2575_v24 }
 0xa68   :  { %v5495_v46 = vcombine.low %v2717_v41, %v2733_v43 }
 0xa69   :  { %v2210_v47 = vpack.c.bf16 %v2209_v45, %v2209_v45  ;;  %v5496_v45 = vcombine.high %v2717_v41, %v2733_v43  ;;  %v5318_v43 = vld [vmem:[%s7041_s11] ss:$0 sm:$0xff] }
 0xa6b   :  { %5802 = vmatmul.mubr.bf16.vlgmr.msra.gmra.mrb[20].mxu0 %v2210_v47 }
 0xa6c   :  { %5704 = vmatpush3.bf16.msra.mxu0 %v6140_v51 }
 0xa6d   :  { %5705 = vmatprep.subr.bf16.mxu0 %v6141_v52 }
 0xa70   :  { %5706 = vmatpush3.bf16.msra.mxu0 %v6142_v27 }
 0xa71   :  { %5707 = vmatprep.subr.bf16.mxu0 %v6143_v54 }
 0xa74   :  { %5708 = vmatpush3.bf16.msra.mxu0 %v6144_v55 }
 0xa75   :  { %5709 = vmatprep.subr.bf16.mxu0 %v6145_v26 }
 0xa78   :  { %5710 = vmatpush3.bf16.msra.mxu0 %v6146_v42 }
 0xa79   :  { %5711 = vmatprep.subr.bf16.mxu0 %v6147_v44 }
 0xa7c   :  { %5712 = vmatpush3.bf16.msra.mxu0 %v6148_v16  ;;  %v2590_v16 = vld [vmem:[#allocation16 + $0x108] sm:$0xff] }
 0xa7d   :  { %5713 = vmatprep.subr.bf16.mxu0 %v6149_v17  ;;  %v2606_v17 = vld [vmem:[#allocation16 + $0x188] sm:$0xff] }
 0xa80   :  { %5714 = vmatpush3.bf16.msra.mxu0 %v6150_v6  ;;  %v2718_v6 = vld [vmem:[#allocation16 + $0x508] sm:$0xff] }
 0xa81   :  { %5715 = vmatprep.subr.bf16.mxu0 %v6151_v7  ;;  %v2734_v7 = vld [vmem:[#allocation16 + $0x588] sm:$0xff] }
 0xa84   :  { %5716 = vmatpush3.bf16.msra.mxu0 %v6152_v8 }
 0xa85   :  { %5717 = vmatprep.subr.bf16.mxu0 %v6153_v9  ;;  %v5498_v9 = vcombine.high %v2718_v6, %v2734_v7 }
 0xa88   :  { %5718 = vmatpush3.bf16.msra.mxu0 %v6154_v10  ;;  %v5497_v10 = vcombine.low %v2718_v6, %v2734_v7  ;;  %v2687_v6 = vld [vmem:[#allocation16 + $0x410] sm:$0xff] }
 0xa89   :  { %4302 = vmatprep.subr.bf16.mxu0 %v5338_v63  ;;  %v2797_v63 = vld [vmem:[#allocation16 + $0x780] sm:$0xff]  ;;  %v2703_v7 = vld [vmem:[#allocation16 + $0x490] sm:$0xff] }
 0xb3e   :  { %v2318_v21 = vpop.f32.mrb[20].mxu0 }
 0xb3f   :  { %v2319_v22 = vadd.f32 %v5308_v18, %v2318_v21  ;;  %v5803_v28 = vpop.f32.mrb[21].mxu0 }
 0xb40   :  { %v2321_v29 = vpop.f32.mrb[22].mxu0  ;;  %v2622_v28 = vld [vmem:[#allocation16 + $0x208] sm:$0xff] }
 0xb41   :  { %v5317_v30 = vmul.f32 -1.442695, %v2319_v22  ;;  %v5804_v31 = vpop.f32.mrb[23].mxu0  ;;  %v5370_v22 = vcombine.high %v2590_v16, %v2606_v17  ;;  %v2638_v29 = vld [vmem:[#allocation16 + $0x288] sm:$0xff] }
 0xb43   :  { %6159 = vpow2.f32 %v5317_v30  ;;  %v2670_v30 = vld [vmem:[#allocation16 + $0x388] sm:$0xff] }
 0xb4d   :  { %v6160_v34 = vpop.eup %6159 }
 0xb4e   :  { %v2327_v36 = vadd.f32 1.0, %v6160_v34  ;;  %v2686_v34 = vld [vmem:[#allocation16 + $0x408] sm:$0xff] }
 0xb50   :  { %6161 = vrcp.f32 %v2327_v36  ;;  %v2702_v36 = vld [vmem:[#allocation16 + $0x488] sm:$0xff] }
 0xb51   :  { %v5465_v8 = vcombine.low %v2686_v34, %v2702_v36 }
 0xb5a   :  { %v6162_v56 = vpop.eup %6161 }
 0xb5b   :  { %v2330_v5 = vpack.c.bf16 %v6162_v56, %v6162_v56 }
 0xb5d   :  { %2364 = vmatmul.mubr.bf16.vlgmr.msra.gmra.mrb[24].mxu1 %v2330_v5  ;;  %v5466_v5 = vcombine.high %v2686_v34, %v2702_v36 }
 0xb5e   :  { %4293 = vmatprep.mubr.bf16.mxu1 %v6413_v53  ;;  %4262 = vmatpush1.bf16.msra.mxu1 %v5335_v49  ;;  %v5528_v49 = vcombine.high %v2749_v57, %v2765_v11  ;;  %v5468_v11 = vcombine.high %v2687_v6, %v2703_v7 }
 0xb5f   :  { %4263 = vmatprep.subr.bf16.mxu1 %v5368_v0  ;;  %v2782_v0 = vld [vmem:[#allocation16 + $0x708] sm:$0xff] }
 0xb62   :  { %4264 = vmatpush1.bf16.msra.mxu1 %v5367_v1 }
 0xb63   :  { %4265 = vmatprep.subr.bf16.mxu1 %v5400_v3  ;;  %v5561_v3 = vcombine.low %v2782_v0, %v2798_v2 }
 0xb66   :  { %4266 = vmatpush1.bf16.msra.mxu1 %v5399_v4  ;;  %v5562_v4 = vcombine.high %v2782_v0, %v2798_v2  ;;  %v2767_v2 = vld [vmem:[#allocation16 + $0x690] sm:$0xff] }
 0xb67   :  { %4267 = vmatprep.subr.bf16.mxu1 %v5432_v25  ;;  %v2560_v25 = vld [vmem:[#allocation16 + $0x18] sm:$0xff] }
 0xb6a   :  { %4268 = vmatpush1.bf16.msra.mxu1 %v5431_v19  ;;  %v5340_v19 = vcombine.high %v2559_v23, %v2575_v24 }
 0xb6b   :  { %4269 = vmatprep.subr.bf16.mxu1 %v5464_v39  ;;  %v5341_v39 = vcombine.low %v2560_v25, %v2576_v37 }
 0xb6e   :  { %4270 = vmatpush1.bf16.msra.mxu1 %v5463_v40  ;;  %v5342_v40 = vcombine.high %v2560_v25, %v2576_v37  ;;  %v2799_v37 = vld [vmem:[#allocation16 + $0x790] sm:$0xff] }
 0xb6f   :  { %4271 = vmatprep.subr.bf16.mxu1 %v5496_v45 }
 0xb72   :  { %4272 = vmatpush1.bf16.msra.mxu1 %v5495_v46 }
 0xb73   :  { %4273 = vmatprep.subr.bf16.mxu1 %v5528_v49  ;;  %v2719_v49 = vld [vmem:[#allocation16 + $0x510] sm:$0xff] }
 0xb76   :  { %4274 = vmatpush1.bf16.msra.mxu1 %v5527_v59  ;;  %v2720_v59 = vld [vmem:[#allocation16 + $0x518] sm:$0xff] }
 0xc30   :  { %v2365_v47 = vpop.f32.mrb[24].mxu1 }
 0xc31   :  { %v2372_v48 = vmul.f32 %v2365_v47, %v6865_v15  ;;  %v2367_v51 = vpop.f32.mrb[25].mxu1  ;;  %v5369_v15 = vcombine.low %v2590_v16, %v2606_v17  ;;  %v2623_v17 = vld [vmem:[#allocation16 + $0x210] sm:$0xff] }
 0xc32   :  { %v2373_v52 = vmul.f32 %v2367_v51, %v6867_v50  ;;  %v2369_v27 = vpop.f32.mrb[26].mxu1  ;;  %v2654_v50 = vld [vmem:[#allocation16 + $0x308] sm:$0xff] }
 0xc33   :  { %v2374_v54 = vadd.f32 %v2372_v48, %v6817_v12  ;;  %v2370_v55 = vpop.f32.mrb[27].mxu1  ;;  %v5402_v12 = vcombine.high %v2622_v28, %v2638_v29  ;;  %v5434_v31 = vcombine.high %v2654_v50, %v2670_v30  ;;  %v5433_v56 = vcombine.low %v2654_v50, %v2670_v30  ;;  %v2607_v27 = vld [vmem:[#allocation16 + $0x190] sm:$0xff] }
 0xc34   :  { %v2375_v26 = vadd.f32 %v2373_v52, %v6819_v13  ;;  %v5401_v13 = vcombine.low %v2622_v28, %v2638_v29  ;;  %v2591_v52 = vld [vmem:[#allocation16 + $0x110] sm:$0xff]  ;;  %v2608_v55 = vld [vmem:[#allocation16 + $0x198] sm:$0xff] }
 0xc35   :  { %v2376_v42 = vmax.f32 %v2374_v54, 0.0  ;;  %v2592_v54 = vld [vmem:[#allocation16 + $0x118] sm:$0xff]  ;;  %v5371_v28 = vcombine.low %v2591_v52, %v2607_v27  ;;  %v2655_v50 = vld [vmem:[#allocation16 + $0x310] sm:$0xff] }
 0xc36   :  { %v2377_v44 = vmax.f32 %v2375_v26, 0.0  ;;  %v5374_v16 = vcombine.high %v2592_v54, %v2608_v55  ;;  %v5373_v29 = vcombine.low %v2592_v54, %v2608_v55  ;;  %v2671_v30 = vld [vmem:[#allocation16 + $0x390] sm:$0xff] }
 0xc37   :  { %v2378_v21 = vpack.c.bf16 %v2376_v42, %v2376_v42 }
 0xc38   :  { %v2379_v18 = vpack.c.bf16 %v2377_v44, %v2377_v44  ;;  %v5372_v44 = vcombine.high %v2591_v52, %v2607_v27 }
 0xc3a   :  { %2547 = vmatprep.mubr.bf16.mxu0 %v2379_v18  ;;  %v2639_v18 = vld [vmem:[#allocation16 + $0x290] sm:$0xff] }
 0xc3b   :  { %2548 = vmatmul.mubr.bf16.vlgmr.msra.gmra.mrb[24].mxu0 %v2378_v21  ;;  %v2624_v21 = vld [vmem:[#allocation16 + $0x218] sm:$0xff]  ;;  %v5403_v34 = vcombine.low %v2623_v17, %v2639_v18 }
 0xc3c   :  { %4303 = vmatpush1.bf16.msra.mxu0 %v5337_v62  ;;  %4334 = vmatprep.mubr.bf16.mxu0 %v6413_v53  ;;  %v2781_v62 = vld [vmem:[#allocation16 + $0x700] sm:$0xff] }
 0xc3d   :  { %4304 = vmatprep.subr.bf16.mxu0 %v5370_v22  ;;  %v5560_v1 = vcombine.high %v2781_v62, %v2797_v63  ;;  %v5559_v20 = vcombine.low %v2781_v62, %v2797_v63  ;;  %v2640_v22 = vld [vmem:[#allocation16 + $0x298] sm:$0xff]  ;;  %v5500_v63 = vcombine.high %v2719_v49, %v2735_v58 }
 0xc3e   :  { %v5405_v36 = vcombine.low %v2624_v21, %v2640_v22 }
 0xc3f   :  { %4275 = vmatprep.subr.bf16.mxu1 %v5560_v1  ;;  %v2751_v1 = vld [vmem:[#allocation16 + $0x610] sm:$0xff] }
 0xc40   :  { %4305 = vmatpush1.bf16.msra.mxu0 %v5369_v15  ;;  %4276 = vmatpush1.bf16.msra.mxu1 %v5559_v20  ;;  %v5404_v15 = vcombine.high %v2623_v17, %v2639_v18  ;;  %v2752_v20 = vld [vmem:[#allocation16 + $0x618] sm:$0xff]  ;;  %v5532_v24 = vcombine.high %v2751_v1, %v2767_v2  ;;  %v2610_v17 = vld [vmem:[#allocation16 + $0x1a8] sm:$0xff] }
 0xc41   :  { %4306 = vmatprep.subr.bf16.mxu0 %v5402_v12  ;;  %4343 = vmatprep.subr.bf16.mxu1 %v5340_v19  ;;  %v5406_v12 = vcombine.high %v2624_v21, %v2640_v22  ;;  %v2783_v19 = vld [vmem:[#allocation16 + $0x710] sm:$0xff] }
 0xc42   :  { %v5563_v52 = vcombine.low %v2783_v19, %v2799_v37 }
 0xc44   :  { %4307 = vmatpush1.bf16.msra.mxu0 %v5401_v13  ;;  %v2656_v13 = vld [vmem:[#allocation16 + $0x318] sm:$0xff] }
 0xc45   :  { %4308 = vmatprep.subr.bf16.mxu0 %v5434_v31  ;;  %v2672_v31 = vld [vmem:[#allocation16 + $0x398] sm:$0xff] }
 0xc46   :  { %v5437_v57 = vcombine.low %v2656_v13, %v2672_v31 }
 0xc48   :  { %4309 = vmatpush1.bf16.msra.mxu0 %v5433_v56  ;;  %v5436_v56 = vcombine.high %v2655_v50, %v2671_v30 }
 0xc49   :  { %4310 = vmatprep.subr.bf16.mxu0 %v5466_v5  ;;  %v5438_v5 = vcombine.high %v2656_v13, %v2672_v31 }
 0xc4c   :  { %4311 = vmatpush1.bf16.msra.mxu0 %v5465_v8  ;;  %v2688_v8 = vld [vmem:[#allocation16 + $0x418] sm:$0xff] }
 0xc4d   :  { %4312 = vmatprep.subr.bf16.mxu0 %v5498_v9  ;;  %v2704_v9 = vld [vmem:[#allocation16 + $0x498] sm:$0xff] }
 0xc4e   :  { %v5470_v14 = vcombine.high %v2688_v8, %v2704_v9  ;;  %v5469_v62 = vcombine.low %v2688_v8, %v2704_v9 }
 0xc50   :  { %4313 = vmatpush1.bf16.msra.mxu0 %v5497_v10  ;;  %v5435_v10 = vcombine.low %v2655_v50, %v2671_v30  ;;  %v2642_v50 = vld [vmem:[#allocation16 + $0x2a8] sm:$0xff] }
 0xc51   :  { %4314 = vmatprep.subr.bf16.mxu0 %v5530_v61  ;;  %v5467_v61 = vcombine.low %v2687_v6, %v2703_v7  ;;  %v2674_v6 = vld [vmem:[#allocation16 + $0x3a8] sm:$0xff] }
 0xc54   :  { %4315 = vmatpush1.bf16.msra.mxu0 %v5529_v60  ;;  %v2736_v60 = vld [vmem:[#allocation16 + $0x598] sm:$0xff] }
 0xc55   :  { %4316 = vmatprep.subr.bf16.mxu0 %v5562_v4  ;;  %v5502_v0 = vcombine.high %v2720_v59, %v2736_v60  ;;  %v5499_v4 = vcombine.low %v2719_v49, %v2735_v58  ;;  %v5501_v23 = vcombine.low %v2720_v59, %v2736_v60  ;;  %v2706_v49 = vld [vmem:[#allocation16 + $0x4a8] sm:$0xff] }
 0xc58   :  { %4317 = vmatpush1.bf16.msra.mxu0 %v5561_v3  ;;  %v2768_v3 = vld [vmem:[#allocation16 + $0x698] sm:$0xff] }
 0xc59   :  { %4384 = vmatprep.subr.bf16.mxu0 %v5342_v40  ;;  %v5534_v25 = vcombine.high %v2752_v20, %v2768_v3  ;;  %v5531_v40 = vcombine.low %v2751_v1, %v2767_v2  ;;  %v2738_v1 = vld [vmem:[#allocation16 + $0x5a8] sm:$0xff] }
 0xd0e   :  { %v5719_v41 = vpop.f32.mrb[24].mxu0 }
 0xd0f   :  { %v5720_v45 = vpop.f32.mrb[25].mxu0 }
 0xd10   :  { %v5721_v46 = vadd.f32 %v5720_v45, %v5719_v41  ;;  %v5722_v47 = vpop.f32.mrb[26].mxu0  ;;  %v5533_v41 = vcombine.low %v2752_v20, %v2768_v3 }
 0xd11   :  { %v5723_v48 = vpop.f32.mrb[27].mxu0  ;;  %v2577_v47 = vld [vmem:[#allocation16 + $0xa0] sm:$0xff] }
 0xd12   :  { %v2550_v51 = vadd.f32 %v5721_v46, %v5318_v43  ;;  %v5564_v43 = vcombine.high %v2783_v19, %v2799_v37  ;;  %v2561_v46 = vld [vmem:[#allocation16 + $0x20] sm:$0xff]  ;;  %v2562_v48 = vld [vmem:[#allocation16 + $0x28] sm:$0xff] }
 0xd13   :  { %v5344_v54 = vcombine.high %v2561_v46, %v2577_v47  ;;  %v5343_v18 = vcombine.low %v2561_v46, %v2577_v47  ;;  %v2770_v19 = vld [vmem:[#allocation16 + $0x6a8] sm:$0xff] }
 0xd14   :  { %v2555_v26 = vmax.f32 %v2550_v51, 0.0  ;;  %v2578_v51 = vld [vmem:[#allocation16 + $0xa8] sm:$0xff] }
 0xd15   :  { %v5346_v55 = vcombine.high %v2562_v48, %v2578_v51  ;;  %v5345_v21 = vcombine.low %v2562_v48, %v2578_v51  ;;  %v2802_v46 = vld [vmem:[#allocation16 + $0x7a8] sm:$0xff] }
 0xd16   :  { %v6914_v42 = vpack.c.bf16 %v2555_v26, %v2555_v26  ;;  %v2593_v26 = vld [vmem:[#allocation16 + $0x120] sm:$0xff] }
 0xd18   :  { %4294 = vmatmul.mubr.bf16.vlgmr.msra.gmra.mrb[28].mxu1 %v6914_v42  ;;  %4335 = vmatmul.mubr.bf16.vlgmr.msra.gmra.mrb[28].mxu0 %v6914_v42 }
 0xd19   :  { %4344 = vmatpush1.bf16.msra.mxu1 %v5339_v38  ;;  %4385 = vmatpush1.bf16.msra.mxu0 %v5341_v39  ;;  %v2784_v38 = vld [vmem:[#allocation16 + $0x718] sm:$0xff] }
 0xd1a   :  { %4345 = vmatprep.subr.bf16.mxu1 %v5372_v44  ;;  %4386 = vmatprep.subr.bf16.mxu0 %v5374_v16  ;;  %v2800_v39 = vld [vmem:[#allocation16 + $0x798] sm:$0xff]  ;;  %v2609_v44 = vld [vmem:[#allocation16 + $0x1a0] sm:$0xff]  ;;  %v2594_v16 = vld [vmem:[#allocation16 + $0x128] sm:$0xff] }
 0xd1b   :  { %4375 = vmatprep.mubr.bf16.mxu1 %v6413_v53  ;;  %4416 = vmatprep.mubr.bf16.mxu0 %v6413_v53  ;;  %v5566_v45 = vcombine.high %v2784_v38, %v2800_v39  ;;  %v5565_v27 = vcombine.low %v2784_v38, %v2800_v39  ;;  %v5376_v22 = vcombine.high %v2593_v26, %v2609_v44 }
 0xd1c   :  { %v5375_v30 = vcombine.low %v2593_v26, %v2609_v44  ;;  %v5377_v13 = vcombine.low %v2594_v16, %v2610_v17  ;;  %v2580_v26 = vld [vmem:[#allocation16 + $0xb8] sm:$0xff] }
 0xd1d   :  { %4346 = vmatpush1.bf16.msra.mxu1 %v5371_v28  ;;  %4387 = vmatpush1.bf16.msra.mxu0 %v5373_v29  ;;  %v5378_v28 = vcombine.high %v2594_v16, %v2610_v17  ;;  %v2625_v29 = vld [vmem:[#allocation16 + $0x220] sm:$0xff] }
 0xd1e   :  { %4347 = vmatprep.subr.bf16.mxu1 %v5404_v15  ;;  %4388 = vmatprep.subr.bf16.mxu0 %v5406_v12  ;;  %v2641_v15 = vld [vmem:[#allocation16 + $0x2a0] sm:$0xff]  ;;  %v2626_v12 = vld [vmem:[#allocation16 + $0x228] sm:$0xff] }
 0xd1f   :  { %v5408_v31 = vcombine.high %v2625_v29, %v2641_v15  ;;  %v5407_v7 = vcombine.low %v2625_v29, %v2641_v15  ;;  %v5409_v8 = vcombine.low %v2626_v12, %v2642_v50  ;;  %v2612_v29 = vld [vmem:[#allocation16 + $0x1b8] sm:$0xff] }
 0xd21   :  { %4348 = vmatpush1.bf16.msra.mxu1 %v5403_v34  ;;  %4389 = vmatpush1.bf16.msra.mxu0 %v5405_v36  ;;  %v5410_v34 = vcombine.high %v2626_v12, %v2642_v50  ;;  %v2657_v36 = vld [vmem:[#allocation16 + $0x320] sm:$0xff] }
 0xd22   :  { %4349 = vmatprep.subr.bf16.mxu1 %v5436_v56  ;;  %4390 = vmatprep.subr.bf16.mxu0 %v5438_v5  ;;  %v2673_v56 = vld [vmem:[#allocation16 + $0x3a0] sm:$0xff]  ;;  %v2658_v5 = vld [vmem:[#allocation16 + $0x328] sm:$0xff] }
 0xd23   :  { %v5440_v9 = vcombine.high %v2657_v36, %v2673_v56  ;;  %v5439_v58 = vcombine.low %v2657_v36, %v2673_v56  ;;  %v5441_v59 = vcombine.low %v2658_v5, %v2674_v6  ;;  %v2644_v36 = vld [vmem:[#allocation16 + $0x2b8] sm:$0xff] }
 0xd25   :  { %4350 = vmatpush1.bf16.msra.mxu1 %v5435_v10  ;;  %4391 = vmatpush1.bf16.msra.mxu0 %v5437_v57  ;;  %v5442_v10 = vcombine.high %v2658_v5, %v2674_v6  ;;  %v2689_v57 = vld [vmem:[#allocation16 + $0x420] sm:$0xff] }
 0xd26   :  { %4351 = vmatprep.subr.bf16.mxu1 %v5468_v11  ;;  %4392 = vmatprep.subr.bf16.mxu0 %v5470_v14  ;;  %v2705_v11 = vld [vmem:[#allocation16 + $0x4a0] sm:$0xff]  ;;  %v2690_v14 = vld [vmem:[#allocation16 + $0x428] sm:$0xff] }
 0xd27   :  { %v5472_v60 = vcombine.high %v2689_v57, %v2705_v11  ;;  %v5471_v2 = vcombine.low %v2689_v57, %v2705_v11  ;;  %v5473_v20 = vcombine.low %v2690_v14, %v2706_v49  ;;  %v2676_v57 = vld [vmem:[#allocation16 + $0x3b8] sm:$0xff] }
 0xd29   :  { %4352 = vmatpush1.bf16.msra.mxu1 %v5467_v61  ;;  %4393 = vmatpush1.bf16.msra.mxu0 %v5469_v62  ;;  %v5474_v61 = vcombine.high %v2690_v14, %v2706_v49  ;;  %v2721_v62 = vld [vmem:[#allocation16 + $0x520] sm:$0xff] }
 0xd2a   :  { %4353 = vmatprep.subr.bf16.mxu1 %v5500_v63  ;;  %4394 = vmatprep.subr.bf16.mxu0 %v5502_v0  ;;  %v2737_v63 = vld [vmem:[#allocation16 + $0x5a0] sm:$0xff]  ;;  %v2722_v0 = vld [vmem:[#allocation16 + $0x528] sm:$0xff] }
 0xd2b   :  { %v5504_v3 = vcombine.high %v2721_v62, %v2737_v63  ;;  %v5503_v37 = vcombine.low %v2721_v62, %v2737_v63  ;;  %v5505_v38 = vcombine.low %v2722_v0, %v2738_v1  ;;  %v2708_v62 = vld [vmem:[#allocation16 + $0x4b8] sm:$0xff] }
 0xd2d   :  { %4354 = vmatpush1.bf16.msra.mxu1 %v5499_v4  ;;  %4395 = vmatpush1.bf16.msra.mxu0 %v5501_v23  ;;  %v5506_v4 = vcombine.high %v2722_v0, %v2738_v1  ;;  %v2753_v23 = vld [vmem:[#allocation16 + $0x620] sm:$0xff] }
 0xd2e   :  { %4355 = vmatprep.subr.bf16.mxu1 %v5532_v24  ;;  %4396 = vmatprep.subr.bf16.mxu0 %v5534_v25  ;;  %v2769_v24 = vld [vmem:[#allocation16 + $0x6a0] sm:$0xff]  ;;  %v2754_v25 = vld [vmem:[#allocation16 + $0x628] sm:$0xff] }
 0xd2f   :  { %v5536_v39 = vcombine.high %v2753_v23, %v2769_v24  ;;  %v5535_v47 = vcombine.low %v2753_v23, %v2769_v24  ;;  %v5537_v48 = vcombine.low %v2754_v25, %v2770_v19  ;;  %v2740_v23 = vld [vmem:[#allocation16 + $0x5b8] sm:$0xff] }
 0xd31   :  { %4356 = vmatpush1.bf16.msra.mxu1 %v5531_v40  ;;  %4397 = vmatpush1.bf16.msra.mxu0 %v5533_v41  ;;  %v5538_v40 = vcombine.high %v2754_v25, %v2770_v19  ;;  %v2785_v41 = vld [vmem:[#allocation16 + $0x720] sm:$0xff] }
 0xd32   :  { %4357 = vmatprep.subr.bf16.mxu1 %v5564_v43  ;;  %4398 = vmatprep.subr.bf16.mxu0 %v5566_v45  ;;  %v2801_v43 = vld [vmem:[#allocation16 + $0x7a0] sm:$0xff]  ;;  %v2786_v45 = vld [vmem:[#allocation16 + $0x728] sm:$0xff] }
 0xd33   :  { %v5568_v51 = vcombine.high %v2785_v41, %v2801_v43  ;;  %v5567_v44 = vcombine.low %v2785_v41, %v2801_v43  ;;  %v5569_v16 = vcombine.low %v2786_v45, %v2802_v46  ;;  %v2772_v41 = vld [vmem:[#allocation16 + $0x6b8] sm:$0xff] }
 0xd35   :  { %4358 = vmatpush1.bf16.msra.mxu1 %v5563_v52  ;;  %4399 = vmatpush1.bf16.msra.mxu0 %v5565_v27  ;;  %v5570_v52 = vcombine.high %v2786_v45, %v2802_v46  ;;  %v2563_v27 = vld [vmem:[#allocation16 + $0x30] sm:$0xff] }
 0xd36   :  { %4425 = vmatprep.subr.bf16.mxu1 %v5344_v54  ;;  %4466 = vmatprep.subr.bf16.mxu0 %v5346_v55  ;;  %v2579_v54 = vld [vmem:[#allocation16 + $0xb0] sm:$0xff]  ;;  %v2564_v55 = vld [vmem:[#allocation16 + $0x38] sm:$0xff] }
 0xd37   :  { %v5348_v17 = vcombine.high %v2563_v27, %v2579_v54  ;;  %v5347_v15 = vcombine.low %v2563_v27, %v2579_v54  ;;  %v5349_v12 = vcombine.low %v2564_v55, %v2580_v26  ;;  %v2804_v27 = vld [vmem:[#allocation16 + $0x7b8] sm:$0xff] }
 0xd38   :  { %4376 = vmatmul.mubr.bf16.vlgmr.msra.gmra.mrb[32].mxu1 %v6914_v42  ;;  %4417 = vmatmul.mubr.bf16.vlgmr.msra.gmra.mrb[32].mxu0 %v6914_v42 }
 0xd39   :  { %4426 = vmatpush1.bf16.msra.mxu1 %v5343_v18  ;;  %4467 = vmatpush1.bf16.msra.mxu0 %v5345_v21  ;;  %v5350_v18 = vcombine.high %v2564_v55, %v2580_v26  ;;  %v2595_v21 = vld [vmem:[#allocation16 + $0x130] sm:$0xff] }
 0xd3a   :  { %4427 = vmatprep.subr.bf16.mxu1 %v5376_v22  ;;  %4468 = vmatprep.subr.bf16.mxu0 %v5378_v28  ;;  %v2611_v22 = vld [vmem:[#allocation16 + $0x1b0] sm:$0xff]  ;;  %v2596_v28 = vld [vmem:[#allocation16 + $0x138] sm:$0xff] }
 0xd3b   :  { %4457 = vmatprep.mubr.bf16.mxu1 %v6413_v53  ;;  %4498 = vmatprep.mubr.bf16.mxu0 %v6413_v53  ;;  %v5380_v50 = vcombine.high %v2595_v21, %v2611_v22  ;;  %v5379_v56 = vcombine.low %v2595_v21, %v2611_v22  ;;  %v5381_v5 = vcombine.low %v2596_v28, %v2612_v29  ;;  %v2582_v21 = vld [vmem:[#allocation16 + $0xc8] sm:$0xff] }
 0xd3d   :  { %4428 = vmatpush1.bf16.msra.mxu1 %v5375_v30  ;;  %4469 = vmatpush1.bf16.msra.mxu0 %v5377_v13  ;;  %v5382_v30 = vcombine.high %v2596_v28, %v2612_v29  ;;  %v2627_v13 = vld [vmem:[#allocation16 + $0x230] sm:$0xff] }
 0xd3e   :  { %4429 = vmatprep.subr.bf16.mxu1 %v5408_v31  ;;  %4470 = vmatprep.subr.bf16.mxu0 %v5410_v34  ;;  %v2643_v31 = vld [vmem:[#allocation16 + $0x2b0] sm:$0xff]  ;;  %v2628_v34 = vld [vmem:[#allocation16 + $0x238] sm:$0xff] }
 0xd3f   :  { %v5412_v6 = vcombine.high %v2627_v13, %v2643_v31  ;;  %v5411_v11 = vcombine.low %v2627_v13, %v2643_v31  ;;  %v5413_v14 = vcombine.low %v2628_v34, %v2644_v36  ;;  %v2614_v13 = vld [vmem:[#allocation16 + $0x1c8] sm:$0xff] }
 0xd41   :  { %4430 = vmatpush1.bf16.msra.mxu1 %v5407_v7  ;;  %4471 = vmatpush1.bf16.msra.mxu0 %v5409_v8  ;;  %v5414_v7 = vcombine.high %v2628_v34, %v2644_v36  ;;  %v2659_v8 = vld [vmem:[#allocation16 + $0x330] sm:$0xff] }
 0xd42   :  { %4431 = vmatprep.subr.bf16.mxu1 %v5440_v9  ;;  %4472 = vmatprep.subr.bf16.mxu0 %v5442_v10  ;;  %v2675_v9 = vld [vmem:[#allocation16 + $0x3b0] sm:$0xff]  ;;  %v2660_v10 = vld [vmem:[#allocation16 + $0x338] sm:$0xff] }
 0xd43   :  { %v5444_v49 = vcombine.high %v2659_v8, %v2675_v9  ;;  %v5443_v63 = vcombine.low %v2659_v8, %v2675_v9  ;;  %v5445_v0 = vcombine.low %v2660_v10, %v2676_v57  ;;  %v2646_v8 = vld [vmem:[#allocation16 + $0x2c8] sm:$0xff] }
 0xd45   :  { %4432 = vmatpush1.bf16.msra.mxu1 %v5439_v58  ;;  %4473 = vmatpush1.bf16.msra.mxu0 %v5441_v59  ;;  %v5446_v58 = vcombine.high %v2660_v10, %v2676_v57  ;;  %v2691_v59 = vld [vmem:[#allocation16 + $0x430] sm:$0xff] }
 0xd46   :  { %4433 = vmatprep.subr.bf16.mxu1 %v5472_v60  ;;  %4474 = vmatprep.subr.bf16.mxu0 %v5474_v61  ;;  %v2707_v60 = vld [vmem:[#allocation16 + $0x4b0] sm:$0xff]  ;;  %v2692_v61 = vld [vmem:[#allocation16 + $0x438] sm:$0xff] }
 0xd47   :  { %v5476_v1 = vcombine.high %v2691_v59, %v2707_v60  ;;  %v5475_v24 = vcombine.low %v2691_v59, %v2707_v60  ;;  %v5477_v25 = vcombine.low %v2692_v61, %v2708_v62  ;;  %v2678_v59 = vld [vmem:[#allocation16 + $0x3c8] sm:$0xff] }
 0xd49   :  { %4434 = vmatpush1.bf16.msra.mxu1 %v5471_v2  ;;  %4475 = vmatpush1.bf16.msra.mxu0 %v5473_v20  ;;  %v5478_v2 = vcombine.high %v2692_v61, %v2708_v62  ;;  %v2723_v20 = vld [vmem:[#allocation16 + $0x530] sm:$0xff] }
 0xd4a   :  { %4435 = vmatprep.subr.bf16.mxu1 %v5504_v3  ;;  %4476 = vmatprep.subr.bf16.mxu0 %v5506_v4  ;;  %v2739_v3 = vld [vmem:[#allocation16 + $0x5b0] sm:$0xff]  ;;  %v2724_v4 = vld [vmem:[#allocation16 + $0x538] sm:$0xff] }
 0xd4b   :  { %v5508_v19 = vcombine.high %v2723_v20, %v2739_v3  ;;  %v5507_v43 = vcombine.low %v2723_v20, %v2739_v3  ;;  %v5509_v45 = vcombine.low %v2724_v4, %v2740_v23  ;;  %v2710_v20 = vld [vmem:[#allocation16 + $0x4c8] sm:$0xff] }
 0xd4d   :  { %4436 = vmatpush1.bf16.msra.mxu1 %v5503_v37  ;;  %4477 = vmatpush1.bf16.msra.mxu0 %v5505_v38  ;;  %v5510_v37 = vcombine.high %v2724_v4, %v2740_v23  ;;  %v2755_v38 = vld [vmem:[#allocation16 + $0x630] sm:$0xff] }
 0xd4e   :  { %4437 = vmatprep.subr.bf16.mxu1 %v5536_v39  ;;  %4478 = vmatprep.subr.bf16.mxu0 %v5538_v40  ;;  %v2771_v39 = vld [vmem:[#allocation16 + $0x6b0] sm:$0xff]  ;;  %v2756_v40 = vld [vmem:[#allocation16 + $0x638] sm:$0xff] }
 0xd4f   :  { %v5540_v46 = vcombine.high %v2755_v38, %v2771_v39  ;;  %v5539_v54 = vcombine.low %v2755_v38, %v2771_v39  ;;  %v5541_v55 = vcombine.low %v2756_v40, %v2772_v41  ;;  %v2742_v38 = vld [vmem:[#allocation16 + $0x5c8] sm:$0xff] }
 0xd51   :  { %4438 = vmatpush1.bf16.msra.mxu1 %v5535_v47  ;;  %4479 = vmatpush1.bf16.msra.mxu0 %v5537_v48  ;;  %v5542_v47 = vcombine.high %v2756_v40, %v2772_v41  ;;  %v2787_v48 = vld [vmem:[#allocation16 + $0x730] sm:$0xff] }
 0xd52   :  { %4439 = vmatprep.subr.bf16.mxu1 %v5568_v51  ;;  %4480 = vmatprep.subr.bf16.mxu0 %v5570_v52  ;;  %v2803_v51 = vld [vmem:[#allocation16 + $0x7b0] sm:$0xff]  ;;  %v2788_v52 = vld [vmem:[#allocation16 + $0x738] sm:$0xff] }
 0xd53   :  { %v5572_v26 = vcombine.high %v2787_v48, %v2803_v51  ;;  %v5571_v22 = vcombine.low %v2787_v48, %v2803_v51  ;;  %v5573_v28 = vcombine.low %v2788_v52, %v2804_v27  ;;  %v2774_v48 = vld [vmem:[#allocation16 + $0x6c8] sm:$0xff] }
 0xd55   :  { %4440 = vmatpush1.bf16.msra.mxu1 %v5567_v44  ;;  %4481 = vmatpush1.bf16.msra.mxu0 %v5569_v16  ;;  %v5574_v44 = vcombine.high %v2788_v52, %v2804_v27  ;;  %v2565_v16 = vld [vmem:[#allocation16 + $0x40] sm:$0xff] }
 0xd56   :  { %4507 = vmatprep.subr.bf16.mxu1 %v5348_v17  ;;  %4548 = vmatprep.subr.bf16.mxu0 %v5350_v18  ;;  %v2581_v17 = vld [vmem:[#allocation16 + $0xc0] sm:$0xff]  ;;  %v2566_v18 = vld [vmem:[#allocation16 + $0x48] sm:$0xff] }
 0xd57   :  { %v5352_v29 = vcombine.high %v2565_v16, %v2581_v17  ;;  %v5351_v31 = vcombine.low %v2565_v16, %v2581_v17  ;;  %v5353_v34 = vcombine.low %v2566_v18, %v2582_v21  ;;  %v2806_v16 = vld [vmem:[#allocation16 + $0x7c8] sm:$0xff] }
 0xd58   :  { %4458 = vmatmul.mubr.bf16.vlgmr.msra.gmra.mrb[36].mxu1 %v6914_v42  ;;  %4499 = vmatmul.mubr.bf16.vlgmr.msra.gmra.mrb[36].mxu0 %v6914_v42 }
 0xd59   :  { %4508 = vmatpush1.bf16.msra.mxu1 %v5347_v15  ;;  %4549 = vmatpush1.bf16.msra.mxu0 %v5349_v12  ;;  %v5354_v15 = vcombine.high %v2566_v18, %v2582_v21  ;;  %v2597_v12 = vld [vmem:[#allocation16 + $0x140] sm:$0xff] }
 0xd5a   :  { %4509 = vmatprep.subr.bf16.mxu1 %v5380_v50  ;;  %4550 = vmatprep.subr.bf16.mxu0 %v5382_v30  ;;  %v2613_v50 = vld [vmem:[#allocation16 + $0x1c0] sm:$0xff]  ;;  %v2598_v30 = vld [vmem:[#allocation16 + $0x148] sm:$0xff] }
 0xd5b   :  { %4539 = vmatprep.mubr.bf16.mxu1 %v6413_v53  ;;  %4580 = vmatprep.mubr.bf16.mxu0 %v6413_v53  ;;  %v5384_v36 = vcombine.high %v2597_v12, %v2613_v50  ;;  %v5383_v9 = vcombine.low %v2597_v12, %v2613_v50  ;;  %v5385_v10 = vcombine.low %v2598_v30, %v2614_v13  ;;  %v2584_v12 = vld [vmem:[#allocation16 + $0xd8] sm:$0xff] }
 0xd5d   :  { %4510 = vmatpush1.bf16.msra.mxu1 %v5379_v56  ;;  %4551 = vmatpush1.bf16.msra.mxu0 %v5381_v5  ;;  %v5386_v56 = vcombine.high %v2598_v30, %v2614_v13  ;;  %v2629_v5 = vld [vmem:[#allocation16 + $0x240] sm:$0xff] }
 0xd5e   :  { %4511 = vmatprep.subr.bf16.mxu1 %v5412_v6  ;;  %4552 = vmatprep.subr.bf16.mxu0 %v5414_v7  ;;  %v2645_v6 = vld [vmem:[#allocation16 + $0x2c0] sm:$0xff]  ;;  %v2630_v7 = vld [vmem:[#allocation16 + $0x248] sm:$0xff] }
 0xd5f   :  { %v5416_v57 = vcombine.high %v2629_v5, %v2645_v6  ;;  %v5415_v60 = vcombine.low %v2629_v5, %v2645_v6  ;;  %v5417_v61 = vcombine.low %v2630_v7, %v2646_v8  ;;  %v2616_v5 = vld [vmem:[#allocation16 + $0x1d8] sm:$0xff] }
 0xd61   :  { %4512 = vmatpush1.bf16.msra.mxu1 %v5411_v11  ;;  %4553 = vmatpush1.bf16.msra.mxu0 %v5413_v14  ;;  %v5418_v11 = vcombine.high %v2630_v7, %v2646_v8  ;;  %v2661_v14 = vld [vmem:[#allocation16 + $0x340] sm:$0xff] }
 0xd62   :  { %4513 = vmatprep.subr.bf16.mxu1 %v5444_v49  ;;  %4554 = vmatprep.subr.bf16.mxu0 %v5446_v58  ;;  %v2677_v49 = vld [vmem:[#allocation16 + $0x3c0] sm:$0xff]  ;;  %v2662_v58 = vld [vmem:[#allocation16 + $0x348] sm:$0xff] }
 0xd63   :  { %v5448_v62 = vcombine.high %v2661_v14, %v2677_v49  ;;  %v5447_v3 = vcombine.low %v2661_v14, %v2677_v49  ;;  %v5449_v4 = vcombine.low %v2662_v58, %v2678_v59  ;;  %v2648_v14 = vld [vmem:[#allocation16 + $0x2d8] sm:$0xff] }
 0xd65   :  { %4514 = vmatpush1.bf16.msra.mxu1 %v5443_v63  ;;  %4555 = vmatpush1.bf16.msra.mxu0 %v5445_v0  ;;  %v5450_v63 = vcombine.high %v2662_v58, %v2678_v59  ;;  %v2693_v0 = vld [vmem:[#allocation16 + $0x440] sm:$0xff] }
 0xd66   :  { %4515 = vmatprep.subr.bf16.mxu1 %v5476_v1  ;;  %4556 = vmatprep.subr.bf16.mxu0 %v5478_v2  ;;  %v2709_v1 = vld [vmem:[#allocation16 + $0x4c0] sm:$0xff]  ;;  %v2694_v2 = vld [vmem:[#allocation16 + $0x448] sm:$0xff] }
 0xd67   :  { %v5480_v23 = vcombine.high %v2693_v0, %v2709_v1  ;;  %v5479_v39 = vcombine.low %v2693_v0, %v2709_v1  ;;  %v5481_v40 = vcombine.low %v2694_v2, %v2710_v20  ;;  %v2680_v0 = vld [vmem:[#allocation16 + $0x3d8] sm:$0xff] }
 0xd69   :  { %4516 = vmatpush1.bf16.msra.mxu1 %v5475_v24  ;;  %4557 = vmatpush1.bf16.msra.mxu0 %v5477_v25  ;;  %v5482_v24 = vcombine.high %v2694_v2, %v2710_v20  ;;  %v2725_v25 = vld [vmem:[#allocation16 + $0x540] sm:$0xff] }
 0xd6a   :  { %4517 = vmatprep.subr.bf16.mxu1 %v5508_v19  ;;  %4558 = vmatprep.subr.bf16.mxu0 %v5510_v37  ;;  %v2741_v19 = vld [vmem:[#allocation16 + $0x5c0] sm:$0xff]  ;;  %v2726_v37 = vld [vmem:[#allocation16 + $0x548] sm:$0xff] }
 0xd6b   :  { %v5512_v41 = vcombine.high %v2725_v25, %v2741_v19  ;;  %v5511_v51 = vcombine.low %v2725_v25, %v2741_v19  ;;  %v5513_v52 = vcombine.low %v2726_v37, %v2742_v38  ;;  %v2712_v25 = vld [vmem:[#allocation16 + $0x4d8] sm:$0xff] }
 0xd6d   :  { %4518 = vmatpush1.bf16.msra.mxu1 %v5507_v43  ;;  %4559 = vmatpush1.bf16.msra.mxu0 %v5509_v45  ;;  %v5514_v43 = vcombine.high %v2726_v37, %v2742_v38  ;;  %v2757_v45 = vld [vmem:[#allocation16 + $0x640] sm:$0xff] }
 0xd6e   :  { %4519 = vmatprep.subr.bf16.mxu1 %v5540_v46  ;;  %4560 = vmatprep.subr.bf16.mxu0 %v5542_v47  ;;  %v2773_v46 = vld [vmem:[#allocation16 + $0x6c0] sm:$0xff]  ;;  %v2758_v47 = vld [vmem:[#allocation16 + $0x648] sm:$0xff] }
 0xd6f   :  { %v5544_v27 = vcombine.high %v2757_v45, %v2773_v46  ;;  %v5543_v17 = vcombine.low %v2757_v45, %v2773_v46  ;;  %v5545_v18 = vcombine.low %v2758_v47, %v2774_v48  ;;  %v2744_v45 = vld [vmem:[#allocation16 + $0x5d8] sm:$0xff] }
 0xd71   :  { %4520 = vmatpush1.bf16.msra.mxu1 %v5539_v54  ;;  %4561 = vmatpush1.bf16.msra.mxu0 %v5541_v55  ;;  %v5546_v54 = vcombine.high %v2758_v47, %v2774_v48  ;;  %v2789_v55 = vld [vmem:[#allocation16 + $0x740] sm:$0xff] }
 0xd72   :  { %4521 = vmatprep.subr.bf16.mxu1 %v5572_v26  ;;  %4562 = vmatprep.subr.bf16.mxu0 %v5574_v44  ;;  %v2805_v26 = vld [vmem:[#allocation16 + $0x7c0] sm:$0xff]  ;;  %v2790_v44 = vld [vmem:[#allocation16 + $0x748] sm:$0xff] }
 0xd73   :  { %v5576_v21 = vcombine.high %v2789_v55, %v2805_v26  ;;  %v5575_v50 = vcombine.low %v2789_v55, %v2805_v26  ;;  %v5577_v30 = vcombine.low %v2790_v44, %v2806_v16  ;;  %v2776_v55 = vld [vmem:[#allocation16 + $0x6d8] sm:$0xff] }
 0xd75   :  { %4522 = vmatpush1.bf16.msra.mxu1 %v5571_v22  ;;  %4563 = vmatpush1.bf16.msra.mxu0 %v5573_v28  ;;  %v5578_v22 = vcombine.high %v2790_v44, %v2806_v16  ;;  %v2567_v28 = vld [vmem:[#allocation16 + $0x50] sm:$0xff] }
 0xd76   :  { %4589 = vmatprep.subr.bf16.mxu1 %v5352_v29  ;;  %4630 = vmatprep.subr.bf16.mxu0 %v5354_v15  ;;  %v2583_v29 = vld [vmem:[#allocation16 + $0xd0] sm:$0xff]  ;;  %v2568_v15 = vld [vmem:[#allocation16 + $0x58] sm:$0xff] }
 0xd77   :  { %v5356_v13 = vcombine.high %v2567_v28, %v2583_v29  ;;  %v5355_v6 = vcombine.low %v2567_v28, %v2583_v29  ;;  %v5357_v7 = vcombine.low %v2568_v15, %v2584_v12  ;;  %v2808_v28 = vld [vmem:[#allocation16 + $0x7d8] sm:$0xff] }
 0xd78   :  { %4540 = vmatmul.mubr.bf16.vlgmr.msra.gmra.mrb[40].mxu1 %v6914_v42  ;;  %4581 = vmatmul.mubr.bf16.vlgmr.msra.gmra.mrb[40].mxu0 %v6914_v42 }
 0xd79   :  { %4590 = vmatpush1.bf16.msra.mxu1 %v5351_v31  ;;  %4631 = vmatpush1.bf16.msra.mxu0 %v5353_v34  ;;  %v5358_v31 = vcombine.high %v2568_v15, %v2584_v12  ;;  %v2599_v34 = vld [vmem:[#allocation16 + $0x150] sm:$0xff] }
 0xd7a   :  { %4591 = vmatprep.subr.bf16.mxu1 %v5384_v36  ;;  %4632 = vmatprep.subr.bf16.mxu0 %v5386_v56  ;;  %v2615_v36 = vld [vmem:[#allocation16 + $0x1d0] sm:$0xff]  ;;  %v2600_v56 = vld [vmem:[#allocation16 + $0x158] sm:$0xff] }
 0xd7b   :  { %4621 = vmatprep.mubr.bf16.mxu1 %v6413_v53  ;;  %4662 = vmatprep.mubr.bf16.mxu0 %v6413_v53  ;;  %v5388_v8 = vcombine.high %v2599_v34, %v2615_v36  ;;  %v5387_v49 = vcombine.low %v2599_v34, %v2615_v36  ;;  %v5389_v58 = vcombine.low %v2600_v56, %v2616_v5  ;;  %v2586_v34 = vld [vmem:[#allocation16 + $0xe8] sm:$0xff] }
 0xd7d   :  { %4592 = vmatpush1.bf16.msra.mxu1 %v5383_v9  ;;  %4633 = vmatpush1.bf16.msra.mxu0 %v5385_v10  ;;  %v5390_v9 = vcombine.high %v2600_v56, %v2616_v5  ;;  %v2631_v10 = vld [vmem:[#allocation16 + $0x250] sm:$0xff] }
 0xd7e   :  { %4593 = vmatprep.subr.bf16.mxu1 %v5416_v57  ;;  %4634 = vmatprep.subr.bf16.mxu0 %v5418_v11  ;;  %v2647_v57 = vld [vmem:[#allocation16 + $0x2d0] sm:$0xff]  ;;  %v2632_v11 = vld [vmem:[#allocation16 + $0x258] sm:$0xff] }
 0xd7f   :  { %v5420_v59 = vcombine.high %v2631_v10, %v2647_v57  ;;  %v5419_v1 = vcombine.low %v2631_v10, %v2647_v57  ;;  %v5421_v2 = vcombine.low %v2632_v11, %v2648_v14  ;;  %v2618_v10 = vld [vmem:[#allocation16 + $0x1e8] sm:$0xff] }
 0xd81   :  { %4594 = vmatpush1.bf16.msra.mxu1 %v5415_v60  ;;  %4635 = vmatpush1.bf16.msra.mxu0 %v5417_v61  ;;  %v5422_v60 = vcombine.high %v2632_v11, %v2648_v14  ;;  %v2663_v61 = vld [vmem:[#allocation16 + $0x350] sm:$0xff] }
 0xd82   :  { %4595 = vmatprep.subr.bf16.mxu1 %v5448_v62  ;;  %4636 = vmatprep.subr.bf16.mxu0 %v5450_v63  ;;  %v2679_v62 = vld [vmem:[#allocation16 + $0x3d0] sm:$0xff]  ;;  %v2664_v63 = vld [vmem:[#allocation16 + $0x358] sm:$0xff] }
 0xd83   :  { %v5452_v20 = vcombine.high %v2663_v61, %v2679_v62  ;;  %v5451_v19 = vcombine.low %v2663_v61, %v2679_v62  ;;  %v5453_v37 = vcombine.low %v2664_v63, %v2680_v0  ;;  %v2650_v61 = vld [vmem:[#allocation16 + $0x2e8] sm:$0xff] }
 0xd85   :  { %4596 = vmatpush1.bf16.msra.mxu1 %v5447_v3  ;;  %4637 = vmatpush1.bf16.msra.mxu0 %v5449_v4  ;;  %v5454_v3 = vcombine.high %v2664_v63, %v2680_v0  ;;  %v2695_v4 = vld [vmem:[#allocation16 + $0x450] sm:$0xff] }
 0xd86   :  { %4597 = vmatprep.subr.bf16.mxu1 %v5480_v23  ;;  %4638 = vmatprep.subr.bf16.mxu0 %v5482_v24  ;;  %v2711_v23 = vld [vmem:[#allocation16 + $0x4d0] sm:$0xff]  ;;  %v2696_v24 = vld [vmem:[#allocation16 + $0x458] sm:$0xff] }
 0xd87   :  { %v5484_v38 = vcombine.high %v2695_v4, %v2711_v23  ;;  %v5483_v46 = vcombine.low %v2695_v4, %v2711_v23  ;;  %v5485_v47 = vcombine.low %v2696_v24, %v2712_v25  ;;  %v2682_v4 = vld [vmem:[#allocation16 + $0x3e8] sm:$0xff] }
 0xd89   :  { %4598 = vmatpush1.bf16.msra.mxu1 %v5479_v39  ;;  %4639 = vmatpush1.bf16.msra.mxu0 %v5481_v40  ;;  %v5486_v39 = vcombine.high %v2696_v24, %v2712_v25  ;;  %v2727_v40 = vld [vmem:[#allocation16 + $0x550] sm:$0xff] }
 0xd8a   :  { %4599 = vmatprep.subr.bf16.mxu1 %v5512_v41  ;;  %4640 = vmatprep.subr.bf16.mxu0 %v5514_v43  ;;  %v2743_v41 = vld [vmem:[#allocation16 + $0x5d0] sm:$0xff]  ;;  %v2728_v43 = vld [vmem:[#allocation16 + $0x558] sm:$0xff] }
 0xd8b   :  { %v5516_v48 = vcombine.high %v2727_v40, %v2743_v41  ;;  %v5515_v26 = vcombine.low %v2727_v40, %v2743_v41  ;;  %v5517_v44 = vcombine.low %v2728_v43, %v2744_v45  ;;  %v2714_v40 = vld [vmem:[#allocation16 + $0x4e8] sm:$0xff] }
 0xd8d   :  { %4600 = vmatpush1.bf16.msra.mxu1 %v5511_v51  ;;  %4641 = vmatpush1.bf16.msra.mxu0 %v5513_v52  ;;  %v5518_v51 = vcombine.high %v2728_v43, %v2744_v45  ;;  %v2759_v52 = vld [vmem:[#allocation16 + $0x650] sm:$0xff] }
 0xd8e   :  { %4601 = vmatprep.subr.bf16.mxu1 %v5544_v27  ;;  %4642 = vmatprep.subr.bf16.mxu0 %v5546_v54  ;;  %v2775_v27 = vld [vmem:[#allocation16 + $0x6d0] sm:$0xff]  ;;  %v2760_v54 = vld [vmem:[#allocation16 + $0x658] sm:$0xff] }
 0xd8f   :  { %v5548_v16 = vcombine.high %v2759_v52, %v2775_v27  ;;  %v5547_v29 = vcombine.low %v2759_v52, %v2775_v27  ;;  %v5549_v15 = vcombine.low %v2760_v54, %v2776_v55  ;;  %v2746_v52 = vld [vmem:[#allocation16 + $0x5e8] sm:$0xff] }
 0xd91   :  { %4602 = vmatpush1.bf16.msra.mxu1 %v5543_v17  ;;  %4643 = vmatpush1.bf16.msra.mxu0 %v5545_v18  ;;  %v5550_v17 = vcombine.high %v2760_v54, %v2776_v55  ;;  %v2791_v18 = vld [vmem:[#allocation16 + $0x750] sm:$0xff] }
 0xd92   :  { %4603 = vmatprep.subr.bf16.mxu1 %v5576_v21  ;;  %4644 = vmatprep.subr.bf16.mxu0 %v5578_v22  ;;  %v2807_v21 = vld [vmem:[#allocation16 + $0x7d0] sm:$0xff]  ;;  %v2792_v22 = vld [vmem:[#allocation16 + $0x758] sm:$0xff] }
 0xd93   :  { %v5580_v12 = vcombine.high %v2791_v18, %v2807_v21  ;;  %v5579_v36 = vcombine.low %v2791_v18, %v2807_v21  ;;  %v5581_v56 = vcombine.low %v2792_v22, %v2808_v28  ;;  %v2778_v18 = vld [vmem:[#allocation16 + $0x6e8] sm:$0xff] }
 0xd95   :  { %4604 = vmatpush1.bf16.msra.mxu1 %v5575_v50  ;;  %4645 = vmatpush1.bf16.msra.mxu0 %v5577_v30  ;;  %v5582_v50 = vcombine.high %v2792_v22, %v2808_v28  ;;  %v2569_v30 = vld [vmem:[#allocation16 + $0x60] sm:$0xff] }
 0xd96   :  { %4671 = vmatprep.subr.bf16.mxu1 %v5356_v13  ;;  %4712 = vmatprep.subr.bf16.mxu0 %v5358_v31  ;;  %v2585_v13 = vld [vmem:[#allocation16 + $0xe0] sm:$0xff]  ;;  %v2570_v31 = vld [vmem:[#allocation16 + $0x68] sm:$0xff] }
 0xd97   :  { %v5360_v5 = vcombine.high %v2569_v30, %v2585_v13  ;;  %v5359_v57 = vcombine.low %v2569_v30, %v2585_v13  ;;  %v5361_v11 = vcombine.low %v2570_v31, %v2586_v34  ;;  %v2810_v30 = vld [vmem:[#allocation16 + $0x7e8] sm:$0xff] }
 0xd98   :  { %4622 = vmatmul.mubr.bf16.vlgmr.msra.gmra.mrb[44].mxu1 %v6914_v42  ;;  %4663 = vmatmul.mubr.bf16.vlgmr.msra.gmra.mrb[44].mxu0 %v6914_v42 }
 0xd99   :  { %4672 = vmatpush1.bf16.msra.mxu1 %v5355_v6  ;;  %4713 = vmatpush1.bf16.msra.mxu0 %v5357_v7  ;;  %v5362_v6 = vcombine.high %v2570_v31, %v2586_v34  ;;  %v2601_v7 = vld [vmem:[#allocation16 + $0x160] sm:$0xff] }
 0xd9a   :  { %4673 = vmatprep.subr.bf16.mxu1 %v5388_v8  ;;  %4714 = vmatprep.subr.bf16.mxu0 %v5390_v9  ;;  %v2617_v8 = vld [vmem:[#allocation16 + $0x1e0] sm:$0xff]  ;;  %v2602_v9 = vld [vmem:[#allocation16 + $0x168] sm:$0xff] }
 0xd9b   :  { %4703 = vmatprep.mubr.bf16.mxu1 %v6413_v53  ;;  %4744 = vmatprep.mubr.bf16.mxu0 %v6413_v53  ;;  %v5392_v14 = vcombine.high %v2601_v7, %v2617_v8  ;;  %v5391_v62 = vcombine.low %v2601_v7, %v2617_v8  ;;  %v5393_v63 = vcombine.low %v2602_v9, %v2618_v10  ;;  %v2588_v7 = vld [vmem:[#allocation16 + $0xf8] sm:$0xff] }
 0xd9d   :  { %4674 = vmatpush1.bf16.msra.mxu1 %v5387_v49  ;;  %4715 = vmatpush1.bf16.msra.mxu0 %v5389_v58  ;;  %v5394_v49 = vcombine.high %v2602_v9, %v2618_v10  ;;  %v2633_v58 = vld [vmem:[#allocation16 + $0x260] sm:$0xff] }
 0xd9e   :  { %4675 = vmatprep.subr.bf16.mxu1 %v5420_v59  ;;  %4716 = vmatprep.subr.bf16.mxu0 %v5422_v60  ;;  %v2649_v59 = vld [vmem:[#allocation16 + $0x2e0] sm:$0xff]  ;;  %v2634_v60 = vld [vmem:[#allocation16 + $0x268] sm:$0xff] }
 0xd9f   :  { %v5424_v0 = vcombine.high %v2633_v58, %v2649_v59  ;;  %v5423_v23 = vcombine.low %v2633_v58, %v2649_v59  ;;  %v5425_v24 = vcombine.low %v2634_v60, %v2650_v61  ;;  %v2620_v58 = vld [vmem:[#allocation16 + $0x1f8] sm:$0xff] }
 0xda1   :  { %4676 = vmatpush1.bf16.msra.mxu1 %v5419_v1  ;;  %4717 = vmatpush1.bf16.msra.mxu0 %v5421_v2  ;;  %v5426_v1 = vcombine.high %v2634_v60, %v2650_v61  ;;  %v2665_v2 = vld [vmem:[#allocation16 + $0x360] sm:$0xff] }
 0xda2   :  { %4677 = vmatprep.subr.bf16.mxu1 %v5452_v20  ;;  %4718 = vmatprep.subr.bf16.mxu0 %v5454_v3  ;;  %v2681_v20 = vld [vmem:[#allocation16 + $0x3e0] sm:$0xff]  ;;  %v2666_v3 = vld [vmem:[#allocation16 + $0x368] sm:$0xff] }
 0xda3   :  { %v5456_v25 = vcombine.high %v2665_v2, %v2681_v20  ;;  %v5455_v41 = vcombine.low %v2665_v2, %v2681_v20  ;;  %v5457_v43 = vcombine.low %v2666_v3, %v2682_v4  ;;  %v2652_v2 = vld [vmem:[#allocation16 + $0x2f8] sm:$0xff] }
 0xda5   :  { %4678 = vmatpush1.bf16.msra.mxu1 %v5451_v19  ;;  %4719 = vmatpush1.bf16.msra.mxu0 %v5453_v37  ;;  %v5458_v19 = vcombine.high %v2666_v3, %v2682_v4  ;;  %v2697_v37 = vld [vmem:[#allocation16 + $0x460] sm:$0xff] }
 0xda6   :  { %4679 = vmatprep.subr.bf16.mxu1 %v5484_v38  ;;  %4720 = vmatprep.subr.bf16.mxu0 %v5486_v39  ;;  %v2713_v38 = vld [vmem:[#allocation16 + $0x4e0] sm:$0xff]  ;;  %v2698_v39 = vld [vmem:[#allocation16 + $0x468] sm:$0xff] }
 0xda7   :  { %v5488_v45 = vcombine.high %v2697_v37, %v2713_v38  ;;  %v5487_v27 = vcombine.low %v2697_v37, %v2713_v38  ;;  %v5489_v54 = vcombine.low %v2698_v39, %v2714_v40  ;;  %v2684_v37 = vld [vmem:[#allocation16 + $0x3f8] sm:$0xff] }
 0xda9   :  { %4680 = vmatpush1.bf16.msra.mxu1 %v5483_v46  ;;  %4721 = vmatpush1.bf16.msra.mxu0 %v5485_v47  ;;  %v5490_v46 = vcombine.high %v2698_v39, %v2714_v40  ;;  %v2729_v47 = vld [vmem:[#allocation16 + $0x560] sm:$0xff] }
 0xdaa   :  { %4681 = vmatprep.subr.bf16.mxu1 %v5516_v48  ;;  %4722 = vmatprep.subr.bf16.mxu0 %v5518_v51  ;;  %v2745_v48 = vld [vmem:[#allocation16 + $0x5e0] sm:$0xff]  ;;  %v2730_v51 = vld [vmem:[#allocation16 + $0x568] sm:$0xff] }
 0xdab   :  { %v5520_v55 = vcombine.high %v2729_v47, %v2745_v48  ;;  %v5519_v21 = vcombine.low %v2729_v47, %v2745_v48  ;;  %v5521_v22 = vcombine.low %v2730_v51, %v2746_v52  ;;  %v2716_v47 = vld [vmem:[#allocation16 + $0x4f8] sm:$0xff] }
 0xdad   :  { %4682 = vmatpush1.bf16.msra.mxu1 %v5515_v26  ;;  %4723 = vmatpush1.bf16.msra.mxu0 %v5517_v44  ;;  %v5522_v26 = vcombine.high %v2730_v51, %v2746_v52  ;;  %v2761_v44 = vld [vmem:[#allocation16 + $0x660] sm:$0xff] }
 0xdae   :  { %4683 = vmatprep.subr.bf16.mxu1 %v5548_v16  ;;  %4724 = vmatprep.subr.bf16.mxu0 %v5550_v17  ;;  %v2777_v16 = vld [vmem:[#allocation16 + $0x6e0] sm:$0xff]  ;;  %v2762_v17 = vld [vmem:[#allocation16 + $0x668] sm:$0xff] }
 0xdaf   :  { %v5552_v28 = vcombine.high %v2761_v44, %v2777_v16  ;;  %v5551_v13 = vcombine.low %v2761_v44, %v2777_v16  ;;  %v5553_v31 = vcombine.low %v2762_v17, %v2778_v18  ;;  %v6945_v44 = vsub.s32 2, %v6644_v32 }
 0xdb1   :  { %4684 = vmatpush1.bf16.msra.mxu1 %v5547_v29  ;;  %4725 = vmatpush1.bf16.msra.mxu0 %v5549_v15  ;;  %v5554_v29 = vcombine.high %v2762_v17, %v2778_v18  ;;  %v2793_v15 = vld [vmem:[#allocation16 + $0x760] sm:$0xff] }
 0xdb2   :  { %4685 = vmatprep.subr.bf16.mxu1 %v5580_v12  ;;  %4726 = vmatprep.subr.bf16.mxu0 %v5582_v50  ;;  %v2809_v12 = vld [vmem:[#allocation16 + $0x7e0] sm:$0xff]  ;;  %v2794_v50 = vld [vmem:[#allocation16 + $0x768] sm:$0xff] }
 0xdb3   :  { %v5584_v34 = vcombine.high %v2793_v15, %v2809_v12  ;;  %v5583_v8 = vcombine.low %v2793_v15, %v2809_v12  ;;  %v5585_v9 = vcombine.low %v2794_v50, %v2810_v30  ;;  %v6950_v18 = vld [vmem:[%s7043_s13] sm:$0xff]  ;;  %v2779_v15 = vld [vmem:[#allocation16 + $0x6f0] sm:$0xff] }
 0xdb4   :  { %v2764_v12 = vld [vmem:[#allocation16 + $0x678] sm:$0xff] }
 0xdb5   :  { %4686 = vmatpush1.bf16.msra.mxu1 %v5579_v36  ;;  %4727 = vmatpush1.bf16.msra.mxu0 %v5581_v56  ;;  %v5586_v36 = vcombine.high %v2794_v50, %v2810_v30  ;;  %v2571_v56 = vld [vmem:[#allocation16 + $0x70] sm:$0xff]  ;;  %v2780_v50 = vld [vmem:[#allocation16 + $0x6f8] sm:$0xff]  ;;  %v2824_v30 = vrot.slane %v6950_v18, %v6647_v33 }
 0xdb6   :  { %4753 = vmatprep.subr.bf16.mxu1 %v5360_v5  ;;  %4794 = vmatprep.subr.bf16.mxu0 %v5362_v6  ;;  %v2587_v5 = vld [vmem:[#allocation16 + $0xf0] sm:$0xff]  ;;  %v2572_v6 = vld [vmem:[#allocation16 + $0x78] sm:$0xff] }
 0xdb7   :  { %v5364_v10 = vcombine.high %v2571_v56, %v2587_v5  ;;  %v5363_v59 = vcombine.low %v2571_v56, %v2587_v5  ;;  %v5365_v60 = vcombine.low %v2572_v6, %v2588_v7 }
 0xdb8   :  { %4704 = vmatmul.mubr.bf16.vlgmr.msra.gmra.mrb[48].mxu1 %v6914_v42  ;;  %4745 = vmatmul.mubr.bf16.vlgmr.msra.gmra.mrb[48].mxu0 %v6914_v42 }
 0xdb9   :  { %4754 = vmatpush1.bf16.msra.mxu1 %v5359_v57  ;;  %4795 = vmatpush1.bf16.msra.mxu0 %v5361_v11  ;;  %v5366_v57 = vcombine.high %v2572_v6, %v2588_v7  ;;  %v2603_v11 = vld [vmem:[#allocation16 + $0x170] sm:$0xff]  ;;  %v5558_v6 = vcombine.high %v2764_v12, %v2780_v50 }
 0xdba   :  { %4755 = vmatprep.subr.bf16.mxu1 %v5392_v14  ;;  %4796 = vmatprep.subr.bf16.mxu0 %v5394_v49  ;;  %v2619_v14 = vld [vmem:[#allocation16 + $0x1f0] sm:$0xff]  ;;  %v2604_v49 = vld [vmem:[#allocation16 + $0x178] sm:$0xff] }
 0xdbb   :  { %4785 = vmatprep.mubr.bf16.mxu1 %v6413_v53  ;;  %4826 = vmatprep.mubr.bf16.mxu0 %v6413_v53  ;;  %v5396_v61 = vcombine.high %v2603_v11, %v2619_v14  ;;  %v5395_v20 = vcombine.low %v2603_v11, %v2619_v14  ;;  %v5397_v3 = vcombine.low %v2604_v49, %v2620_v58  ;;  %v2795_v7 = vld [vmem:[#allocation16 + $0x770] sm:$0xff]  ;;  %v2812_v11 = vld [vmem:[#allocation16 + $0x7f8] sm:$0xff] }
 0xdbd   :  { %4756 = vmatpush1.bf16.msra.mxu1 %v5391_v62  ;;  %4797 = vmatpush1.bf16.msra.mxu0 %v5393_v63  ;;  %v5398_v62 = vcombine.high %v2604_v49, %v2620_v58  ;;  %v2635_v63 = vld [vmem:[#allocation16 + $0x270] sm:$0xff] }
 0xdbe   :  { %4757 = vmatprep.subr.bf16.mxu1 %v5424_v0  ;;  %4798 = vmatprep.subr.bf16.mxu0 %v5426_v1  ;;  %v2651_v0 = vld [vmem:[#allocation16 + $0x2f0] sm:$0xff]  ;;  %v2636_v1 = vld [vmem:[#allocation16 + $0x278] sm:$0xff] }
 0xdbf   :  { %v5428_v4 = vcombine.high %v2635_v63, %v2651_v0  ;;  %v5427_v38 = vcombine.low %v2635_v63, %v2651_v0  ;;  %v5429_v39 = vcombine.low %v2636_v1, %v2652_v2 }
 0xdc1   :  { %4758 = vmatpush1.bf16.msra.mxu1 %v5423_v23  ;;  %4799 = vmatpush1.bf16.msra.mxu0 %v5425_v24  ;;  %v5430_v23 = vcombine.high %v2636_v1, %v2652_v2  ;;  %v2667_v24 = vld [vmem:[#allocation16 + $0x370] sm:$0xff]  ;;  %v5557_v1 = vcombine.low %v2764_v12, %v2780_v50 }
 0xdc2   :  { %4759 = vmatprep.subr.bf16.mxu1 %v5456_v25  ;;  %4800 = vmatprep.subr.bf16.mxu0 %v5458_v19  ;;  %v2683_v25 = vld [vmem:[#allocation16 + $0x3f0] sm:$0xff]  ;;  %v2668_v19 = vld [vmem:[#allocation16 + $0x378] sm:$0xff] }
 0xdc3   :  { %v5460_v40 = vcombine.high %v2667_v24, %v2683_v25  ;;  %v5459_v48 = vcombine.low %v2667_v24, %v2683_v25  ;;  %v5461_v51 = vcombine.low %v2668_v19, %v2684_v37 }
 0xdc5   :  { %4760 = vmatpush1.bf16.msra.mxu1 %v5455_v41  ;;  %4801 = vmatpush1.bf16.msra.mxu0 %v5457_v43  ;;  %v5462_v41 = vcombine.high %v2668_v19, %v2684_v37  ;;  %v2699_v43 = vld [vmem:[#allocation16 + $0x470] sm:$0xff]  ;;  %v6966_v37 = vsub.s32 4, %v6644_v32 }
 0xdc6   :  { %4761 = vmatprep.subr.bf16.mxu1 %v5488_v45  ;;  %4802 = vmatprep.subr.bf16.mxu0 %v5490_v46  ;;  %v2715_v45 = vld [vmem:[#allocation16 + $0x4f0] sm:$0xff]  ;;  %v2700_v46 = vld [vmem:[#allocation16 + $0x478] sm:$0xff] }
 0xdc7   :  { %v5492_v52 = vcombine.high %v2699_v43, %v2715_v45  ;;  %v5491_v16 = vcombine.low %v2699_v43, %v2715_v45  ;;  %v5493_v17 = vcombine.low %v2700_v46, %v2716_v47 }
 0xdc9   :  { %4762 = vmatpush1.bf16.msra.mxu1 %v5487_v27  ;;  %4803 = vmatpush1.bf16.msra.mxu0 %v5489_v54  ;;  %v2731_v27 = vld [vmem:[#allocation16 + $0x570] sm:$0xff] }
 0xdca   :  { %4763 = vmatprep.subr.bf16.mxu1 %v5520_v55  ;;  %4804 = vmatprep.subr.bf16.mxu0 %v5522_v26  ;;  %v2747_v54 = vld [vmem:[#allocation16 + $0x5f0] sm:$0xff]  ;;  %v2732_v55 = vld [vmem:[#allocation16 + $0x578] sm:$0xff] }
 0xdcb   :  { %v2748_v26 = vld [vmem:[#allocation16 + $0x5f8] sm:$0xff] }
 0xdcd   :  { %4764 = vmatpush1.bf16.msra.mxu1 %v5519_v21  ;;  %4805 = vmatpush1.bf16.msra.mxu0 %v5521_v22  ;;  %v6953_v21 = vsub.s32 3, %v6644_v32  ;;  %v5524_v22 = vcombine.high %v2731_v27, %v2747_v54 }
 0xdce   :  { %4765 = vmatprep.subr.bf16.mxu1 %v5552_v28  ;;  %4806 = vmatprep.subr.bf16.mxu0 %v5554_v29  ;;  %v5526_v28 = vcombine.high %v2732_v55, %v2748_v26  ;;  %v2763_v29 = vld [vmem:[#allocation16 + $0x670] sm:$0xff] }
 0xdcf   :  { %v2836_v56 = vrot.slane %v6950_v18, %v6953_v21  ;;  %v5556_v5 = vcombine.high %v2763_v29, %v2779_v15 }
 0xdd1   :  { %4766 = vmatpush1.bf16.msra.mxu1 %v5551_v13  ;;  %4807 = vmatpush1.bf16.msra.mxu0 %v5553_v31  ;;  %v2832_v13 = vrot.slane %v6950_v18, %v6945_v44  ;;  %v5523_v31 = vcombine.low %v2731_v27, %v2747_v54 }
 0xdd2   :  { %4767 = vmatprep.subr.bf16.mxu1 %v5584_v34  ;;  %4808 = vmatprep.subr.bf16.mxu0 %v5586_v36  ;;  %v5525_v34 = vcombine.low %v2732_v55, %v2748_v26  ;;  %v2828_v36 = vrot.slane %v6950_v18, %v6650_v35 }
 0xdd5   :  { %4768 = vmatpush1.bf16.msra.mxu1 %v5583_v8  ;;  %4809 = vmatpush1.bf16.msra.mxu0 %v5585_v9 }
 0xdd6   :  { %4835 = vmatprep.subr.bf16.mxu1 %v5364_v10  ;;  %4876 = vmatprep.subr.bf16.mxu0 %v5366_v57  ;;  %v2811_v10 = vld [vmem:[#allocation16 + $0x7f0] sm:$0xff]  ;;  %v2796_v57 = vld [vmem:[#allocation16 + $0x778] sm:$0xff] }
 0xdd7   :  { %v5587_v25 = vcombine.low %v2795_v7, %v2811_v10  ;;  %v5589_v19 = vcombine.low %v2796_v57, %v2812_v11 }
 0xdd8   :  { %4786 = vmatmul.mubr.bf16.vlgmr.msra.gmra.mrb[52].mxu1 %v6914_v42  ;;  %4827 = vmatmul.mubr.bf16.vlgmr.msra.gmra.mrb[52].mxu0 %v6914_v42 }
 0xdd9   :  { %4836 = vmatpush1.bf16.msra.mxu1 %v5363_v59  ;;  %4877 = vmatpush1.bf16.msra.mxu0 %v5365_v60  ;;  %v5555_v60 = vcombine.low %v2763_v29, %v2779_v15 }
 0xdda   :  { %4837 = vmatprep.subr.bf16.mxu1 %v5396_v61  ;;  %4878 = vmatprep.subr.bf16.mxu0 %v5398_v62 }
 0xddb   :  { %4867 = vmatprep.mubr.bf16.mxu1 %v6413_v53  ;;  %4908 = vmatprep.mubr.bf16.mxu0 %v6413_v53  ;;  %v5494_v53 = vcombine.high %v2700_v46, %v2716_v47 }
 0xddd   :  { %4838 = vmatpush1.bf16.msra.mxu1 %v5395_v20  ;;  %4879 = vmatpush1.bf16.msra.mxu0 %v5397_v3  ;;  %v5588_v3 = vcombine.high %v2795_v7, %v2811_v10 }
 0xdde   :  { %4839 = vmatprep.subr.bf16.mxu1 %v5428_v4  ;;  %4880 = vmatprep.subr.bf16.mxu0 %v5430_v23  ;;  %v5590_v4 = vcombine.high %v2796_v57, %v2812_v11 }
 0xde1   :  { %4840 = vmatpush1.bf16.msra.mxu1 %v5427_v38  ;;  %4881 = vmatpush1.bf16.msra.mxu0 %v5429_v39  ;;  %v6969_v38 = vsub.s32 6, %v6644_v32  ;;  %v6972_v39 = vsub.s32 5, %v6644_v32 }
 0xde2   :  { %4841 = vmatprep.subr.bf16.mxu1 %v5460_v40  ;;  %4882 = vmatprep.subr.bf16.mxu0 %v5462_v41  ;;  %v6975_v40 = vsub.s32 7, %v6644_v32  ;;  %v2840_v41 = vrot.slane %v6950_v18, %v6966_v37 }
 0xde3   :  { %v2848_v43 = vrot.slane %v6950_v18, %v6969_v38 }
 0xde4   :  { %v2852_v45 = vrot.slane %v6950_v18, %v6975_v40 }
 0xde5   :  { %4842 = vmatpush1.bf16.msra.mxu1 %v5459_v48  ;;  %4883 = vmatpush1.bf16.msra.mxu0 %v5461_v51 }
 0xde6   :  { %4843 = vmatprep.subr.bf16.mxu1 %v5492_v52  ;;  %4884 = vmatprep.subr.bf16.mxu0 %v5494_v53 }
 0xde9   :  { %4844 = vmatpush1.bf16.msra.mxu1 %v5491_v16  ;;  %4885 = vmatpush1.bf16.msra.mxu0 %v5493_v17 }
 0xdea   :  { %4845 = vmatprep.subr.bf16.mxu1 %v5524_v22  ;;  %4886 = vmatprep.subr.bf16.mxu0 %v5526_v28 }
 0xdeb   :  { %v4295_v8 = vpop.f32.mrb[28].mxu1  ;;  %v4336_v9 = vpop.f32.mrb[28].mxu0 }
 0xdec   :  { %v4296_v14 = vadd.f32 %v4295_v8, %v2824_v30  ;;  %v4337_v49 = vadd.f32 %v4336_v9, %v2832_v13  ;;  %v4297_v58 = vpop.f32.mrb[29].mxu1  ;;  %v4338_v59 = vpop.f32.mrb[29].mxu0 }
 0xded   :  { %v4298_v61 = vadd.f32 %v4297_v58, %v2828_v36  ;;  %v4339_v62 = vadd.f32 %v4338_v59, %v2836_v56  ;;  %4846 = vmatpush1.bf16.msra.mxu1 %v5523_v31  ;;  %4887 = vmatpush1.bf16.msra.mxu0 %v5525_v34  ;;  %v4299_v63 = vpop.f32.mrb[30].mxu1  ;;  %v4340_v0 = vpop.f32.mrb[30].mxu0 }
 0xdee   :  { %v4300_v2 = vpop.f32.mrb[31].mxu1  ;;  %v4341_v20 = vpop.f32.mrb[31].mxu0  ;;  %4847 = vmatprep.subr.bf16.mxu1 %v5556_v5  ;;  %4888 = vmatprep.subr.bf16.mxu0 %v5558_v6 }
 0xdef   :  { %v5607_v23 = vpack.c.bf16 %v4298_v61, %v4296_v14  ;;  %v5608_v24 = vpack.c.bf16 %v4339_v62, %v4337_v49 }
 0xdf1   :  { %5045 = vst [vmem:[#allocation17] sm:$0xff] %v5607_v23  ;;  %5046 = vst [vmem:[#allocation17 + $0x8] sm:$0xff] %v5608_v24  ;;  %4848 = vmatpush1.bf16.msra.mxu1 %v5555_v60  ;;  %4889 = vmatpush1.bf16.msra.mxu0 %v5557_v1 }
 0xdf2   :  { %4849 = vmatprep.subr.bf16.mxu1 %v5588_v3  ;;  %4890 = vmatprep.subr.bf16.mxu0 %v5590_v4 }
 0xdf5   :  { %4850 = vmatpush1.bf16.msra.mxu1 %v5587_v25  ;;  %4891 = vmatpush1.bf16.msra.mxu0 %v5589_v19  ;;  %v2815_v19 = vld [vmem:[%s7043_s13 + $0x10] sm:$0xff] }
 0xdf8   :  { %4868 = vmatmul.mubr.bf16.vlgmr.msra.gmra.mrb[56].mxu1 %v6914_v42  ;;  %4909 = vmatmul.mubr.bf16.vlgmr.msra.gmra.mrb[56].mxu0 %v6914_v42  ;;  %v2844_v42 = vrot.slane %v6950_v18, %v6972_v39  ;;  %v2814_v18 = vld [vmem:[%s7043_s13 + $0x8] sm:$0xff] }
 0xdf9   :  { %v2856_v28 = vrot.slane %v2814_v18, %v6647_v33  ;;  %v2864_v29 = vrot.slane %v2814_v18, %v6945_v44  ;;  %v2860_v15 = vrot.slane %v2814_v18, %v6650_v35  ;;  %v2868_v12 = vrot.slane %v2814_v18, %v6953_v21 }
 0xdfa   :  { %v2872_v11 = vrot.slane %v2814_v18, %v6966_v37  ;;  %v2880_v14 = vrot.slane %v2814_v18, %v6969_v38  ;;  %v2876_v49 = vrot.slane %v2814_v18, %v6972_v39  ;;  %v2884_v58 = vrot.slane %v2814_v18, %v6975_v40 }
 0xdfb   :  { %v2904_v18 = vrot.slane %v2815_v19, %v6966_v37 }
 0xe0b   :  { %v4377_v46 = vpop.f32.mrb[32].mxu1  ;;  %v4418_v47 = vpop.f32.mrb[32].mxu0 }
 0xe0c   :  { %v4378_v48 = vadd.f32 %v4377_v46, %v2840_v41  ;;  %v4419_v51 = vadd.f32 %v4418_v47, %v2848_v43  ;;  %v4379_v52 = vpop.f32.mrb[33].mxu1  ;;  %v4420_v53 = vpop.f32.mrb[33].mxu0  ;;  %v2888_v41 = vrot.slane %v2815_v19, %v6647_v33  ;;  %v2896_v43 = vrot.slane %v2815_v19, %v6945_v44 }
 0xe0d   :  { %v4380_v32 = vadd.f32 %v4379_v52, %v2844_v42  ;;  %v4421_v27 = vadd.f32 %v4420_v53, %v2852_v45  ;;  %v4381_v54 = vpop.f32.mrb[34].mxu1  ;;  %v4422_v55 = vpop.f32.mrb[34].mxu0  ;;  %v2892_v42 = vrot.slane %v2815_v19, %v6650_v35  ;;  %v2900_v45 = vrot.slane %v2815_v19, %v6953_v21 }
 0xe0e   :  { %v4382_v26 = vpop.f32.mrb[35].mxu1  ;;  %v4423_v16 = vpop.f32.mrb[35].mxu0 }
 0xe0f   :  { %v5609_v17 = vpack.c.bf16 %v4380_v32, %v4378_v48  ;;  %v5610_v22 = vpack.c.bf16 %v4421_v27, %v4419_v51 }
 0xe11   :  { %5047 = vst [vmem:[#allocation17 + $0x10] sm:$0xff] %v5609_v17  ;;  %5048 = vst [vmem:[#allocation17 + $0x18] sm:$0xff] %v5610_v22 }
 0xe2b   :  { %v4459_v50 = vpop.f32.mrb[36].mxu1  ;;  %v4500_v30 = vpop.f32.mrb[36].mxu0 }
 0xe2c   :  { %v4460_v13 = vadd.f32 %v4459_v50, %v2856_v28  ;;  %v4501_v31 = vadd.f32 %v4500_v30, %v2864_v29  ;;  %v4461_v34 = vpop.f32.mrb[37].mxu1  ;;  %v4502_v36 = vpop.f32.mrb[37].mxu0  ;;  %v2912_v28 = vrot.slane %v2815_v19, %v6969_v38  ;;  %v2908_v29 = vrot.slane %v2815_v19, %v6972_v39 }
 0xe2d   :  { %v4462_v56 = vadd.f32 %v4461_v34, %v2860_v15  ;;  %v4503_v5 = vadd.f32 %v4502_v36, %v2868_v12  ;;  %v4463_v6 = vpop.f32.mrb[38].mxu1  ;;  %v4504_v7 = vpop.f32.mrb[38].mxu0  ;;  %v2916_v15 = vrot.slane %v2815_v19, %v6975_v40 }
 0xe2e   :  { %v4464_v8 = vpop.f32.mrb[39].mxu1  ;;  %v4505_v9 = vpop.f32.mrb[39].mxu0 }
 0xe2f   :  { %v5611_v10 = vpack.c.bf16 %v4462_v56, %v4460_v13  ;;  %v5612_v57 = vpack.c.bf16 %v4503_v5, %v4501_v31 }
 0xe31   :  { %5049 = vst [vmem:[#allocation17 + $0x20] sm:$0xff] %v5611_v10  ;;  %5050 = vst [vmem:[#allocation17 + $0x28] sm:$0xff] %v5612_v57  ;;  %v2816_v57 = vld [vmem:[%s7043_s13 + $0x18] sm:$0xff]  ;;  %s6414_s13 = smov [#allocation17]  }
 0xe32   :  { %s5067_s30 = sshll.u32 %s6414_s13, 4  ;;  %s5068_s30 = int_to_ptr.vmem [resolvable:$true] %s5067_s30 }
 0xe33   :  { %s6361_s12 = scalar_lea.vmem %s5068_s30, 2048  ;;  %p6366_p3 = scmp.lt.s32.totalorder %s5068_s30, %s5068_s30 }
 0xe34   :  { %p6362_p2 = scmp.ne.s32.totalorder %s5068_s30, %s6361_s12  ;;  %p6367_p4 = scmp.lt.s32.totalorder %s6361_s12, %s6361_s12 }
 0xe36   :  { %p6368_p5 = por %p6367_p4, %p6366_p3 }
 0xe38   :  { %p6369_p6 = pnand %p6368_p5, %p6362_p2 }
 0xe4b   :  { %v4541_v59 = vpop.f32.mrb[40].mxu1  ;;  %v4582_v60 = vpop.f32.mrb[40].mxu0 }
 0xe4c   :  { %v4542_v61 = vadd.f32 %v4541_v59, %v2872_v11  ;;  %v4583_v62 = vadd.f32 %v4582_v60, %v2880_v14  ;;  %v4543_v63 = vpop.f32.mrb[41].mxu1  ;;  %v4584_v0 = vpop.f32.mrb[41].mxu0  ;;  %v2920_v11 = vrot.slane %v2816_v57, %v6647_v33  ;;  %v2928_v14 = vrot.slane %v2816_v57, %v6945_v44 }
 0xe4d   :  { %v4544_v1 = vadd.f32 %v4543_v63, %v2876_v49  ;;  %v4585_v2 = vadd.f32 %v4584_v0, %v2884_v58  ;;  %v4545_v20 = vpop.f32.mrb[42].mxu1  ;;  %v4586_v3 = vpop.f32.mrb[42].mxu0  ;;  %v2924_v49 = vrot.slane %v2816_v57, %v6650_v35  ;;  %v2932_v58 = vrot.slane %v2816_v57, %v6953_v21 }
 0xe4e   :  { %v4546_v4 = vpop.f32.mrb[43].mxu1  ;;  %v4587_v23 = vpop.f32.mrb[43].mxu0  ;;  %v2936_v35 = vrot.slane %v2816_v57, %v6966_v37  ;;  %v2944_v44 = vrot.slane %v2816_v57, %v6969_v38  ;;  %v2940_v21 = vrot.slane %v2816_v57, %v6972_v39 }
 0xe4f   :  { %v5613_v24 = vpack.c.bf16 %v4544_v1, %v4542_v61  ;;  %v5614_v25 = vpack.c.bf16 %v4585_v2, %v4583_v62 }
 0xe51   :  { %5051 = vst [vmem:[#allocation17 + $0x30] sm:$0xff] %v5613_v24  ;;  %5052 = vst [vmem:[#allocation17 + $0x38] sm:$0xff] %v5614_v25  ;;  %v2948_v25 = vrot.slane %v2816_v57, %v6975_v40 }
 0xe6b   :  { %v4623_v46 = vpop.f32.mrb[44].mxu1  ;;  %v4664_v47 = vpop.f32.mrb[44].mxu0 }
 0xe6c   :  { %v4624_v48 = vadd.f32 %v4623_v46, %v2888_v41  ;;  %v4665_v51 = vadd.f32 %v4664_v47, %v2896_v43  ;;  %v4625_v52 = vpop.f32.mrb[45].mxu1  ;;  %v4666_v53 = vpop.f32.mrb[45].mxu0 }
 0xe6d   :  { %v4626_v32 = vadd.f32 %v4625_v52, %v2892_v42  ;;  %v4667_v27 = vadd.f32 %v4666_v53, %v2900_v45  ;;  %v4627_v54 = vpop.f32.mrb[46].mxu1  ;;  %v4668_v55 = vpop.f32.mrb[46].mxu0 }
 0xe6e   :  { %v4628_v26 = vpop.f32.mrb[47].mxu1  ;;  %v4669_v16 = vpop.f32.mrb[47].mxu0 }
 0xe6f   :  { %v5615_v17 = vpack.c.bf16 %v4626_v32, %v4624_v48  ;;  %v5616_v22 = vpack.c.bf16 %v4667_v27, %v4665_v51 }
 0xe71   :  { %5053 = vst [vmem:[#allocation17 + $0x40] sm:$0xff] %v5615_v17  ;;  %5054 = vst [vmem:[#allocation17 + $0x48] sm:$0xff] %v5616_v22 }
 0xe8b   :  { %v4705_v12 = vpop.f32.mrb[48].mxu1  ;;  %v4746_v50 = vpop.f32.mrb[48].mxu0 }
 0xe8c   :  { %v4706_v30 = vadd.f32 %v4705_v12, %v2904_v18  ;;  %v4747_v13 = vadd.f32 %v4746_v50, %v2912_v28  ;;  %v4707_v31 = vpop.f32.mrb[49].mxu1  ;;  %v4748_v34 = vpop.f32.mrb[49].mxu0 }
 0xe8d   :  { %v4708_v36 = vadd.f32 %v4707_v31, %v2908_v29  ;;  %v4749_v56 = vadd.f32 %v4748_v34, %v2916_v15  ;;  %v4709_v5 = vpop.f32.mrb[50].mxu1  ;;  %v4750_v6 = vpop.f32.mrb[50].mxu0 }
 0xe8e   :  { %v4710_v7 = vpop.f32.mrb[51].mxu1  ;;  %v4751_v8 = vpop.f32.mrb[51].mxu0 }
 0xe8f   :  { %v5617_v9 = vpack.c.bf16 %v4708_v36, %v4706_v30  ;;  %v5618_v10 = vpack.c.bf16 %v4749_v56, %v4747_v13 }
 0xe91   :  { %5055 = vst [vmem:[#allocation17 + $0x50] sm:$0xff] %v5617_v9  ;;  %5056 = vst [vmem:[#allocation17 + $0x58] sm:$0xff] %v5618_v10 }
 0xeab   :  { %v4787_v59 = vpop.f32.mrb[52].mxu1  ;;  %v4828_v60 = vpop.f32.mrb[52].mxu0 }
 0xeac   :  { %v4788_v61 = vadd.f32 %v4787_v59, %v2920_v11  ;;  %v4829_v62 = vadd.f32 %v4828_v60, %v2928_v14  ;;  %v4789_v63 = vpop.f32.mrb[53].mxu1  ;;  %v4830_v0 = vpop.f32.mrb[53].mxu0 }
 0xead   :  { %v4790_v1 = vadd.f32 %v4789_v63, %v2924_v49  ;;  %v4831_v2 = vadd.f32 %v4830_v0, %v2932_v58  ;;  %v4791_v20 = vpop.f32.mrb[54].mxu1  ;;  %v4832_v3 = vpop.f32.mrb[54].mxu0 }
 0xeae   :  { %v4792_v4 = vpop.f32.mrb[55].mxu1  ;;  %v4833_v23 = vpop.f32.mrb[55].mxu0 }
 0xeaf   :  { %v5619_v24 = vpack.c.bf16 %v4790_v1, %v4788_v61  ;;  %v5620_v33 = vpack.c.bf16 %v4831_v2, %v4829_v62 }
 0xeb1   :  { %5057 = vst [vmem:[#allocation17 + $0x60] sm:$0xff] %v5619_v24  ;;  %5058 = vst [vmem:[#allocation17 + $0x68] sm:$0xff] %v5620_v33 }
 0xecb   :  { %v4869_v19 = vpop.f32.mrb[56].mxu1  ;;  %v4910_v41 = vpop.f32.mrb[56].mxu0 }
 0xecc   :  { %v4870_v43 = vadd.f32 %v4869_v19, %v2936_v35  ;;  %v4911_v42 = vadd.f32 %v4910_v41, %v2944_v44  ;;  %v4871_v45 = vpop.f32.mrb[57].mxu1  ;;  %v4912_v46 = vpop.f32.mrb[57].mxu0 }
 0xecd   :  { %v4872_v47 = vadd.f32 %v4871_v45, %v2940_v21  ;;  %v4913_v48 = vadd.f32 %v4912_v46, %v2948_v25  ;;  %v4873_v51 = vpop.f32.mrb[58].mxu1  ;;  %v4914_v52 = vpop.f32.mrb[58].mxu0 }
 0xece   :  { %v4874_v53 = vpop.f32.mrb[59].mxu1  ;;  %v4915_v37 = vpop.f32.mrb[59].mxu0 }
 0xecf   :  { %v5621_v32 = vpack.c.bf16 %v4872_v47, %v4870_v43  ;;  %v5622_v38 = vpack.c.bf16 %v4913_v48, %v4911_v42 }
 0xed1   :  { %5059 = vst [vmem:[#allocation17 + $0x70] sm:$0xff] %v5621_v32  ;;  %5060 = vst [vmem:[#allocation17 + $0x78] sm:$0xff] %v5622_v38 }
 0xed2   :  { %6372 = shalt.err (!%p6369_p6)
}
 0xed3   :  { %s6373_s21 = scalar_lea.hbm %s7044_s14, 2048 }
 0xed4   :  { %p6374_p7 = scmp.ne.s32.totalorder %s7044_s14, %s6373_s21  ;;  %p6377_p8 = scmp.lt.u32.totalorder %s6373_s21, %s7044_s14 }
 0xed6   :  { %p6379_p9 = pnand %p6377_p8, %p6374_p7 }
 0xed8   :  { %6382 = shalt.err (!%p6379_p9)
}
 0xed9   :  { %5070 = dma.vmem_to_hbm [thread:$0]  %s5068_s30, 2048, %s7044_s14, [#allocation4]  }
 0xeda   :  { %6393 = dma.done.wait [#allocation4], 2048  }
 0xedb   :  { %6394 = vsyncadd [#allocation4], 4294965248 }
 0xedc   :  { %5074 = vsyncpa [#allocation3], 1 }
 0xedd   :  { %5075 = vsyncpa [#allocation6], 1 }
 0xede   :  { %5076 = vsyncpa [#allocation9], 1 }
 0xedf   :  { %5077 = vsyncpa [#allocation12], 1 }
 0xee0   :  { %5078 = vsyncpa [#allocation15], 1 }
 0xee1   :  { %5079 = vsyncpa [#allocation4], 1 }

</bundles_post_ra>
